<compile_context>
chip_gen: v5e
topology: v5e:2x2
jax: 0.10.0
libtpu: 0.0.40
codegen_flags: <defaults>
</compile_context>

<pallas_src>
import jax
import jax.numpy as jnp
from jax.experimental import pallas as pl
from jax.experimental.pallas import tpu as pltpu

EPS = 1e-5


def _conv3x3_in_relu(x_hwc, w_flat, xpad_ref, patch_ref, H, W, C):
    """One Conv2dBlock (3x3 conv + InstanceNorm + ReLU) on a single sample.

    x_hwc:     (H, W, C) f32 value (resident in VMEM/vregs)
    w_flat:    (9*C, C) f32 value, rows ordered tap-major ((dy*3+dx)*C + cin)
    xpad_ref:  VMEM scratch (H+2, W+2, C) f32, border already zero
    patch_ref: VMEM scratch (H*W, 9*C) f32 (im2col patch matrix)
    returns:   (H, W, C) f32
    """
    # In-kernel ZeroPad2d(1): overwrite only the interior; border stays zero.
    xpad_ref[1:H + 1, 1:W + 1, :] = x_hwc

    # im2col: copy the 9 shifted taps (ref-view slices) into the patch matrix.
    for dy in range(3):
        for dx in range(3):
            t = dy * 3 + dx
            tap = xpad_ref[dy:dy + H, dx:dx + W, :].reshape(H * W, C)
            patch_ref[:, t * C:(t + 1) * C] = tap

    # Single long-K MXU matmul (K = 9*C) instead of 9 short-K accumulations.
    # (No bias add: InstanceNorm without affine cancels it exactly.)
    acc = jnp.dot(patch_ref[...], w_flat, preferred_element_type=jnp.float32)

    # InstanceNorm2d (no affine, biased variance), (acc - mean) hoisted.
    mean = jnp.mean(acc, axis=0, keepdims=True)
    centered = acc - mean
    var = jnp.mean(centered * centered, axis=0, keepdims=True)
    y = centered * jax.lax.rsqrt(var + EPS)
    y = jnp.maximum(y, 0.0)                                   # ReLU
    return y.reshape(H, W, C)


def _res_blocks_kernel(x_ref, w_ref, o_ref, xpad_ref, patch_ref):
    H, W, C = o_ref.shape[1], o_ref.shape[2], o_ref.shape[3]
    num_blocks = w_ref.shape[0] // 2

    # Zero the padded scratch once per grid step; the border is never written
    # afterwards, so it stays zero for every conv in the fused chain.
    xpad_ref[...] = jnp.zeros_like(xpad_ref)

    # NOTE: for bf16 deployments, feed bf16 activations/weights directly into
    # jnp.dot (preferred_element_type=f32) and keep the IN stats / residual in
    # f32; the test inputs are f32 so everything runs in f32 here.
    x_cur = x_ref[0].astype(jnp.float32)                      # (H, W, C)
    for blk in range(num_blocks):
        res = x_cur
        w1 = w_ref[2 * blk].astype(jnp.float32)               # (9*C, C)
        w2 = w_ref[2 * blk + 1].astype(jnp.float32)
        h = _conv3x3_in_relu(x_cur, w1, xpad_ref, patch_ref, H, W, C)
        y = _conv3x3_in_relu(h, w2, xpad_ref, patch_ref, H, W, C)
        x_cur = y + res                                       # ResBlock skip
    o_ref[0] = x_cur.astype(o_ref.dtype)


def res_blocks_forward(x_nchw, params):
    """ResBlocks forward.

    x_nchw: (N, C, H, W); params: list of (w1, b1, w2, b2), w* HWIO (3,3,C,C).
    Biases are accepted but unused by the kernel (InstanceNorm without affine
    cancels a per-output-channel constant bias exactly).
    """
    x = jnp.transpose(x_nchw, (0, 2, 3, 1))                   # NCHW -> NHWC
    N, H, W, C = x.shape
    num_blocks = len(params)

    # Pre-flatten weights to (2*num_blocks, 9*C, C), tap-major rows, matching
    # the in-kernel im2col column order.
    w_all = jnp.stack(
        [w.reshape(9 * C, C) for (w1, _b1, w2, _b2) in params for w in (w1, w2)],
        axis=0)

    out = pl.pallas_call(
        _res_blocks_kernel,
        out_shape=jax.ShapeDtypeStruct((N, H, W, C), x.dtype),
        grid=(N,),
        in_specs=[
            pl.BlockSpec((1, H, W, C), lambda n: (n, 0, 0, 0)),
            # Constant index_map -> weights fetched once and kept resident.
            # (pl.Buffered(1) would drop the redundant second weight buffer;
            # left at the default for lowering safety -- negligible here.)
            pl.BlockSpec((2 * num_blocks, 9 * C, C), lambda n: (0, 0, 0)),
        ],
        out_specs=pl.BlockSpec((1, H, W, C), lambda n: (n, 0, 0, 0)),
        scratch_shapes=[
            pltpu.VMEM((H + 2, W + 2, C), jnp.float32),       # padded activation
            pltpu.VMEM((H * W, 9 * C), jnp.float32),          # im2col patches
        ],
        compiler_params=pltpu.CompilerParams(
            dimension_semantics=("parallel",),
            vmem_limit_bytes=48 * 1024 * 1024,
        ),
    )(x, w_all)
    return jnp.transpose(out, (0, 3, 1, 2))                   # NHWC -> NCHW


# ---------------------------- pure-JAX reference ----------------------------
def _ref_conv_block(x, w, b, residual=None):
    xpad = jnp.pad(x, ((0, 0), (1, 1), (1, 1), (0, 0)))
    y = jax.lax.conv_general_dilated(
        xpad, w, window_strides=(1, 1), padding="VALID",
        dimension_numbers=("NHWC", "HWIO", "NHWC")) + b
    mean = y.mean(axis=(1, 2), keepdims=True)
    var = jnp.mean((y - mean) ** 2, axis=(1, 2), keepdims=True)
    y = (y - mean) / jnp.sqrt(var + EPS)
    y = jnp.maximum(y, 0.0)
    if residual is not None:
        y = y + residual
    return y


def _ref_forward(x_nchw, params):
    x = jnp.transpose(x_nchw, (0, 2, 3, 1))
    for (w1, b1, w2, b2) in params:
        h = _ref_conv_block(x, w1, b1)
        x = _ref_conv_block(h, w2, b2, residual=x)
    return jnp.transpose(x, (0, 3, 1, 2))


def init_params(key, num_blocks, dim):
    """Deterministic Conv2d-like init: weights (3,3,dim,dim) HWIO, bias (dim,)."""
    params = []
    fan_in = dim * 3 * 3
    bound = 1.0 / (fan_in ** 0.5)
    for _ in range(num_blocks):
        key, k1, k2, k3, k4 = jax.random.split(key, 5)
        w1 = jax.random.uniform(k1, (3, 3, dim, dim), jnp.float32, -bound, bound)
        b1 = jax.random.uniform(k2, (dim,), jnp.float32, -bound, bound)
        w2 = jax.random.uniform(k3, (3, 3, dim, dim), jnp.float32, -bound, bound)
        b2 = jax.random.uniform(k4, (dim,), jnp.float32, -bound, bound)
        params.append((w1, b1, w2, b2))
    return params


if __name__ == "__main__":
    num_blocks = 2
    N, C, H, W = 2, 4, 16, 16

    key = jax.random.PRNGKey(0)
    key, kx = jax.random.split(key)
    x = jax.random.normal(kx, (N, C, H, W), jnp.float32)
    params = init_params(key, num_blocks, C)

    out = jax.block_until_ready(res_blocks_forward(x, params))
    ref = jax.block_until_ready(_ref_forward(x, params))

    assert out.shape == (N, C, H, W)
    assert jnp.allclose(out, ref, atol=1e-4, rtol=1e-4), "mismatch vs reference"

    print("KERNEL_OK")
</pallas_src>

<mosaic_0001>
module attributes {stable_mosaic.version = 11 : i64} {
  func.func @_res_blocks_kernel(%arg0: i32, %arg1: memref<1x16x16x4xf32, #tpu.memory_space<vmem>>, %arg2: memref<4x36x4xf32, #tpu.memory_space<vmem>>, %arg3: memref<1x16x16x4xf32, #tpu.memory_space<vmem>>, %arg4: memref<18x18x4xf32, #tpu.memory_space<vmem>>, %arg5: memref<256x36xf32, #tpu.memory_space<vmem>>) attributes {dimension_semantics = [#tpu.dimension_semantics<parallel>], iteration_bounds = array<i64: 2>, scalar_prefetch = 0 : i64, scratch_operands = 2 : i64, tpu.core_type = #tpu.core_type<tc>, window_params = [{transform_indices = @transform_0, window_bounds = array<i64: 1, 16, 16, 4>}, {pipeline_mode = #tpu.pipeline_mode<synchronous>, transform_indices = @transform_1, window_bounds = array<i64: 4, 36, 4>}, {transform_indices = @transform_2, window_bounds = array<i64: 1, 16, 16, 4>}]} {
    %cst = arith.constant 0.000000e+00 : f32
    %0 = vector.broadcast %cst : f32 to vector<18x18x4xf32>
    %c0 = arith.constant 0 : index
    %c0_0 = arith.constant 0 : index
    %c0_1 = arith.constant 0 : index
    %1 = vector.load %arg4[%c0, %c0_0, %c0_1] : memref<18x18x4xf32, #tpu.memory_space<vmem>>, vector<18x18x4xf32>
    tpu.vector_store %arg4[%c0, %c0_0, %c0_1], %0 {strides = array<i32>} : memref<18x18x4xf32, #tpu.memory_space<vmem>>, vector<18x18x4xf32>,
    %c0_2 = arith.constant 0 : index
    %c0_3 = arith.constant 0 : index
    %c0_4 = arith.constant 0 : index
    %c0_5 = arith.constant 0 : index
    %2 = vector.load %arg1[%c0_2, %c0_3, %c0_4, %c0_5] : memref<1x16x16x4xf32, #tpu.memory_space<vmem>>, vector<1x16x16x4xf32>
    %3 = vector.shape_cast %2 : vector<1x16x16x4xf32> to vector<16x16x4xf32>
    %c0_6 = arith.constant 0 : index
    %c0_7 = arith.constant 0 : index
    %c0_8 = arith.constant 0 : index
    %4 = vector.load %arg2[%c0_6, %c0_7, %c0_8] : memref<4x36x4xf32, #tpu.memory_space<vmem>>, vector<1x36x4xf32>
    %5 = vector.shape_cast %4 : vector<1x36x4xf32> to vector<36x4xf32>
    %c1 = arith.constant 1 : index
    %c0_9 = arith.constant 0 : index
    %c0_10 = arith.constant 0 : index
    %6 = vector.load %arg2[%c1, %c0_9, %c0_10] : memref<4x36x4xf32, #tpu.memory_space<vmem>>, vector<1x36x4xf32>
    %7 = vector.shape_cast %6 : vector<1x36x4xf32> to vector<36x4xf32>
    %c1_11 = arith.constant 1 : index
    %c1_12 = arith.constant 1 : index
    %c0_13 = arith.constant 0 : index
    %8 = vector.load %arg4[%c1_11, %c1_12, %c0_13] : memref<18x18x4xf32, #tpu.memory_space<vmem>>, vector<16x16x4xf32>
    tpu.vector_store %arg4[%c1_11, %c1_12, %c0_13], %3 {strides = array<i32>} : memref<18x18x4xf32, #tpu.memory_space<vmem>>, vector<16x16x4xf32>,
    %c0_14 = arith.constant 0 : index
    %c0_15 = arith.constant 0 : index
    %c0_16 = arith.constant 0 : index
    %9 = vector.load %arg4[%c0_14, %c0_15, %c0_16] : memref<18x18x4xf32, #tpu.memory_space<vmem>>, vector<16x16x4xf32>
    %10 = vector.shape_cast %9 : vector<16x16x4xf32> to vector<256x4xf32>
    %c0_17 = arith.constant 0 : index
    %c0_18 = arith.constant 0 : index
    %11 = vector.load %arg5[%c0_17, %c0_18] : memref<256x36xf32, #tpu.memory_space<vmem>>, vector<256x4xf32>
    tpu.vector_store %arg5[%c0_17, %c0_18], %10 {strides = array<i32>} : memref<256x36xf32, #tpu.memory_space<vmem>>, vector<256x4xf32>,
    %c0_19 = arith.constant 0 : index
    %c1_20 = arith.constant 1 : index
    %c0_21 = arith.constant 0 : index
    %12 = vector.load %arg4[%c0_19, %c1_20, %c0_21] : memref<18x18x4xf32, #tpu.memory_space<vmem>>, vector<16x16x4xf32>
    %13 = vector.shape_cast %12 : vector<16x16x4xf32> to vector<256x4xf32>
    %c0_22 = arith.constant 0 : index
    %c4 = arith.constant 4 : index
    %14 = vector.load %arg5[%c0_22, %c4] : memref<256x36xf32, #tpu.memory_space<vmem>>, vector<256x4xf32>
    tpu.vector_store %arg5[%c0_22, %c4], %13 {strides = array<i32>} : memref<256x36xf32, #tpu.memory_space<vmem>>, vector<256x4xf32>,
    %c0_23 = arith.constant 0 : index
    %c2 = arith.constant 2 : index
    %c0_24 = arith.constant 0 : index
    %15 = vector.load %arg4[%c0_23, %c2, %c0_24] : memref<18x18x4xf32, #tpu.memory_space<vmem>>, vector<16x16x4xf32>
    %16 = vector.shape_cast %15 : vector<16x16x4xf32> to vector<256x4xf32>
    %c0_25 = arith.constant 0 : index
    %c8 = arith.constant 8 : index
    %17 = vector.load %arg5[%c0_25, %c8] : memref<256x36xf32, #tpu.memory_space<vmem>>, vector<256x4xf32>
    tpu.vector_store %arg5[%c0_25, %c8], %16 {strides = array<i32>} : memref<256x36xf32, #tpu.memory_space<vmem>>, vector<256x4xf32>,
    %c1_26 = arith.constant 1 : index
    %c0_27 = arith.constant 0 : index
    %c0_28 = arith.constant 0 : index
    %18 = vector.load %arg4[%c1_26, %c0_27, %c0_28] : memref<18x18x4xf32, #tpu.memory_space<vmem>>, vector<16x16x4xf32>
    %19 = vector.shape_cast %18 : vector<16x16x4xf32> to vector<256x4xf32>
    %c0_29 = arith.constant 0 : index
    %c12 = arith.constant 12 : index
    %20 = vector.load %arg5[%c0_29, %c12] : memref<256x36xf32, #tpu.memory_space<vmem>>, vector<256x4xf32>
    tpu.vector_store %arg5[%c0_29, %c12], %19 {strides = array<i32>} : memref<256x36xf32, #tpu.memory_space<vmem>>, vector<256x4xf32>,
    %c1_30 = arith.constant 1 : index
    %c1_31 = arith.constant 1 : index
    %c0_32 = arith.constant 0 : index
    %21 = vector.load %arg4[%c1_30, %c1_31, %c0_32] : memref<18x18x4xf32, #tpu.memory_space<vmem>>, vector<16x16x4xf32>
    %22 = vector.shape_cast %21 : vector<16x16x4xf32> to vector<256x4xf32>
    %c0_33 = arith.constant 0 : index
    %c16 = arith.constant 16 : index
    %23 = vector.load %arg5[%c0_33, %c16] : memref<256x36xf32, #tpu.memory_space<vmem>>, vector<256x4xf32>
    tpu.vector_store %arg5[%c0_33, %c16], %22 {strides = array<i32>} : memref<256x36xf32, #tpu.memory_space<vmem>>, vector<256x4xf32>,
    %c1_34 = arith.constant 1 : index
    %c2_35 = arith.constant 2 : index
    %c0_36 = arith.constant 0 : index
    %24 = vector.load %arg4[%c1_34, %c2_35, %c0_36] : memref<18x18x4xf32, #tpu.memory_space<vmem>>, vector<16x16x4xf32>
    %25 = vector.shape_cast %24 : vector<16x16x4xf32> to vector<256x4xf32>
    %c0_37 = arith.constant 0 : index
    %c20 = arith.constant 20 : index
    %26 = vector.load %arg5[%c0_37, %c20] : memref<256x36xf32, #tpu.memory_space<vmem>>, vector<256x4xf32>
    tpu.vector_store %arg5[%c0_37, %c20], %25 {strides = array<i32>} : memref<256x36xf32, #tpu.memory_space<vmem>>, vector<256x4xf32>,
    %c2_38 = arith.constant 2 : index
    %c0_39 = arith.constant 0 : index
    %c0_40 = arith.constant 0 : index
    %27 = vector.load %arg4[%c2_38, %c0_39, %c0_40] : memref<18x18x4xf32, #tpu.memory_space<vmem>>, vector<16x16x4xf32>
    %28 = vector.shape_cast %27 : vector<16x16x4xf32> to vector<256x4xf32>
    %c0_41 = arith.constant 0 : index
    %c24 = arith.constant 24 : index
    %29 = vector.load %arg5[%c0_41, %c24] : memref<256x36xf32, #tpu.memory_space<vmem>>, vector<256x4xf32>
    tpu.vector_store %arg5[%c0_41, %c24], %28 {strides = array<i32>} : memref<256x36xf32, #tpu.memory_space<vmem>>, vector<256x4xf32>,
    %c2_42 = arith.constant 2 : index
    %c1_43 = arith.constant 1 : index
    %c0_44 = arith.constant 0 : index
    %30 = vector.load %arg4[%c2_42, %c1_43, %c0_44] : memref<18x18x4xf32, #tpu.memory_space<vmem>>, vector<16x16x4xf32>
    %31 = vector.shape_cast %30 : vector<16x16x4xf32> to vector<256x4xf32>
    %c0_45 = arith.constant 0 : index
    %c28 = arith.constant 28 : index
    %32 = vector.load %arg5[%c0_45, %c28] : memref<256x36xf32, #tpu.memory_space<vmem>>, vector<256x4xf32>
    tpu.vector_store %arg5[%c0_45, %c28], %31 {strides = array<i32>} : memref<256x36xf32, #tpu.memory_space<vmem>>, vector<256x4xf32>,
    %c2_46 = arith.constant 2 : index
    %c2_47 = arith.constant 2 : index
    %c0_48 = arith.constant 0 : index
    %33 = vector.load %arg4[%c2_46, %c2_47, %c0_48] : memref<18x18x4xf32, #tpu.memory_space<vmem>>, vector<16x16x4xf32>
    %34 = vector.shape_cast %33 : vector<16x16x4xf32> to vector<256x4xf32>
    %c0_49 = arith.constant 0 : index
    %c32 = arith.constant 32 : index
    %35 = vector.load %arg5[%c0_49, %c32] : memref<256x36xf32, #tpu.memory_space<vmem>>, vector<256x4xf32>
    tpu.vector_store %arg5[%c0_49, %c32], %34 {strides = array<i32>} : memref<256x36xf32, #tpu.memory_space<vmem>>, vector<256x4xf32>,
    %c0_50 = arith.constant 0 : index
    %c0_51 = arith.constant 0 : index
    %36 = vector.load %arg5[%c0_50, %c0_51] : memref<256x36xf32, #tpu.memory_space<vmem>>, vector<256x36xf32>
    %cst_52 = arith.constant dense<0.000000e+00> : vector<256x4xf32>
    %37 = tpu.matmul %36, %5, %cst_52 {dimension_numbers = #tpu.dot_dimension_numbers<[1], [0], [0], [1], [0, 0, 1, 1], [], []>} : vector<256x36xf32>, vector<36x4xf32>, vector<256x4xf32> -> vector<256x4xf32>
    %cst_53 = arith.constant dense<0.000000e+00> : vector<4xf32>
    %38 = vector.multi_reduction <add>, %37, %cst_53 [0] : vector<256x4xf32> to vector<4xf32>
    %39 = vector.shape_cast %38 : vector<4xf32> to vector<1x4xf32>
    %cst_54 = arith.constant 2.560000e+02 : f32
    %40 = vector.broadcast %cst_54 : f32 to vector<1x4xf32>
    %41 = arith.divf %39, %40 : vector<1x4xf32>
    %42 = vector.broadcast %41 : vector<1x4xf32> to vector<256x4xf32>
    %43 = arith.subf %37, %42 : vector<256x4xf32>
    %44 = arith.mulf %43, %43 : vector<256x4xf32>
    %cst_55 = arith.constant dense<0.000000e+00> : vector<4xf32>
    %45 = vector.multi_reduction <add>, %44, %cst_55 [0] : vector<256x4xf32> to vector<4xf32>
    %46 = vector.shape_cast %45 : vector<4xf32> to vector<1x4xf32>
    %cst_56 = arith.constant 2.560000e+02 : f32
    %47 = vector.broadcast %cst_56 : f32 to vector<1x4xf32>
    %48 = arith.divf %46, %47 : vector<1x4xf32>
    %cst_57 = arith.constant 9.99999974E-6 : f32
    %49 = vector.broadcast %cst_57 : f32 to vector<1x4xf32>
    %50 = arith.addf %48, %49 : vector<1x4xf32>
    %51 = math.rsqrt %50 : vector<1x4xf32>
    %52 = vector.broadcast %51 : vector<1x4xf32> to vector<256x4xf32>
    %53 = arith.mulf %43, %52 : vector<256x4xf32>
    %cst_58 = arith.constant 0.000000e+00 : f32
    %54 = vector.broadcast %cst_58 : f32 to vector<256x4xf32>
    %55 = arith.maximumf %53, %54 : vector<256x4xf32>
    %56 = vector.shape_cast %55 : vector<256x4xf32> to vector<16x16x4xf32>
    %c1_59 = arith.constant 1 : index
    %c1_60 = arith.constant 1 : index
    %c0_61 = arith.constant 0 : index
    %57 = vector.load %arg4[%c1_59, %c1_60, %c0_61] : memref<18x18x4xf32, #tpu.memory_space<vmem>>, vector<16x16x4xf32>
    tpu.vector_store %arg4[%c1_59, %c1_60, %c0_61], %56 {strides = array<i32>} : memref<18x18x4xf32, #tpu.memory_space<vmem>>, vector<16x16x4xf32>,
    %c0_62 = arith.constant 0 : index
    %c0_63 = arith.constant 0 : index
    %c0_64 = arith.constant 0 : index
    %58 = vector.load %arg4[%c0_62, %c0_63, %c0_64] : memref<18x18x4xf32, #tpu.memory_space<vmem>>, vector<16x16x4xf32>
    %59 = vector.shape_cast %58 : vector<16x16x4xf32> to vector<256x4xf32>
    %c0_65 = arith.constant 0 : index
    %c0_66 = arith.constant 0 : index
    %60 = vector.load %arg5[%c0_65, %c0_66] : memref<256x36xf32, #tpu.memory_space<vmem>>, vector<256x4xf32>
    tpu.vector_store %arg5[%c0_65, %c0_66], %59 {strides = array<i32>} : memref<256x36xf32, #tpu.memory_space<vmem>>, vector<256x4xf32>,
    %c0_67 = arith.constant 0 : index
    %c1_68 = arith.constant 1 : index
    %c0_69 = arith.constant 0 : index
    %61 = vector.load %arg4[%c0_67, %c1_68, %c0_69] : memref<18x18x4xf32, #tpu.memory_space<vmem>>, vector<16x16x4xf32>
    %62 = vector.shape_cast %61 : vector<16x16x4xf32> to vector<256x4xf32>
    %c0_70 = arith.constant 0 : index
    %c4_71 = arith.constant 4 : index
    %63 = vector.load %arg5[%c0_70, %c4_71] : memref<256x36xf32, #tpu.memory_space<vmem>>, vector<256x4xf32>
    tpu.vector_store %arg5[%c0_70, %c4_71], %62 {strides = array<i32>} : memref<256x36xf32, #tpu.memory_space<vmem>>, vector<256x4xf32>,
    %c0_72 = arith.constant 0 : index
    %c2_73 = arith.constant 2 : index
    %c0_74 = arith.constant 0 : index
    %64 = vector.load %arg4[%c0_72, %c2_73, %c0_74] : memref<18x18x4xf32, #tpu.memory_space<vmem>>, vector<16x16x4xf32>
    %65 = vector.shape_cast %64 : vector<16x16x4xf32> to vector<256x4xf32>
    %c0_75 = arith.constant 0 : index
    %c8_76 = arith.constant 8 : index
    %66 = vector.load %arg5[%c0_75, %c8_76] : memref<256x36xf32, #tpu.memory_space<vmem>>, vector<256x4xf32>
    tpu.vector_store %arg5[%c0_75, %c8_76], %65 {strides = array<i32>} : memref<256x36xf32, #tpu.memory_space<vmem>>, vector<256x4xf32>,
    %c1_77 = arith.constant 1 : index
    %c0_78 = arith.constant 0 : index
    %c0_79 = arith.constant 0 : index
    %67 = vector.load %arg4[%c1_77, %c0_78, %c0_79] : memref<18x18x4xf32, #tpu.memory_space<vmem>>, vector<16x16x4xf32>
    %68 = vector.shape_cast %67 : vector<16x16x4xf32> to vector<256x4xf32>
    %c0_80 = arith.constant 0 : index
    %c12_81 = arith.constant 12 : index
    %69 = vector.load %arg5[%c0_80, %c12_81] : memref<256x36xf32, #tpu.memory_space<vmem>>, vector<256x4xf32>
    tpu.vector_store %arg5[%c0_80, %c12_81], %68 {strides = array<i32>} : memref<256x36xf32, #tpu.memory_space<vmem>>, vector<256x4xf32>,
    %c1_82 = arith.constant 1 : index
    %c1_83 = arith.constant 1 : index
    %c0_84 = arith.constant 0 : index
    %70 = vector.load %arg4[%c1_82, %c1_83, %c0_84] : memref<18x18x4xf32, #tpu.memory_space<vmem>>, vector<16x16x4xf32>
    %71 = vector.shape_cast %70 : vector<16x16x4xf32> to vector<256x4xf32>
    %c0_85 = arith.constant 0 : index
    %c16_86 = arith.constant 16 : index
    %72 = vector.load %arg5[%c0_85, %c16_86] : memref<256x36xf32, #tpu.memory_space<vmem>>, vector<256x4xf32>
    tpu.vector_store %arg5[%c0_85, %c16_86], %71 {strides = array<i32>} : memref<256x36xf32, #tpu.memory_space<vmem>>, vector<256x4xf32>,
    %c1_87 = arith.constant 1 : index
    %c2_88 = arith.constant 2 : index
    %c0_89 = arith.constant 0 : index
    %73 = vector.load %arg4[%c1_87, %c2_88, %c0_89] : memref<18x18x4xf32, #tpu.memory_space<vmem>>, vector<16x16x4xf32>
    %74 = vector.shape_cast %73 : vector<16x16x4xf32> to vector<256x4xf32>
    %c0_90 = arith.constant 0 : index
    %c20_91 = arith.constant 20 : index
    %75 = vector.load %arg5[%c0_90, %c20_91] : memref<256x36xf32, #tpu.memory_space<vmem>>, vector<256x4xf32>
    tpu.vector_store %arg5[%c0_90, %c20_91], %74 {strides = array<i32>} : memref<256x36xf32, #tpu.memory_space<vmem>>, vector<256x4xf32>,
    %c2_92 = arith.constant 2 : index
    %c0_93 = arith.constant 0 : index
    %c0_94 = arith.constant 0 : index
    %76 = vector.load %arg4[%c2_92, %c0_93, %c0_94] : memref<18x18x4xf32, #tpu.memory_space<vmem>>, vector<16x16x4xf32>
    %77 = vector.shape_cast %76 : vector<16x16x4xf32> to vector<256x4xf32>
    %c0_95 = arith.constant 0 : index
    %c24_96 = arith.constant 24 : index
    %78 = vector.load %arg5[%c0_95, %c24_96] : memref<256x36xf32, #tpu.memory_space<vmem>>, vector<256x4xf32>
    tpu.vector_store %arg5[%c0_95, %c24_96], %77 {strides = array<i32>} : memref<256x36xf32, #tpu.memory_space<vmem>>, vector<256x4xf32>,
    %c2_97 = arith.constant 2 : index
    %c1_98 = arith.constant 1 : index
    %c0_99 = arith.constant 0 : index
    %79 = vector.load %arg4[%c2_97, %c1_98, %c0_99] : memref<18x18x4xf32, #tpu.memory_space<vmem>>, vector<16x16x4xf32>
    %80 = vector.shape_cast %79 : vector<16x16x4xf32> to vector<256x4xf32>
    %c0_100 = arith.constant 0 : index
    %c28_101 = arith.constant 28 : index
    %81 = vector.load %arg5[%c0_100, %c28_101] : memref<256x36xf32, #tpu.memory_space<vmem>>, vector<256x4xf32>
    tpu.vector_store %arg5[%c0_100, %c28_101], %80 {strides = array<i32>} : memref<256x36xf32, #tpu.memory_space<vmem>>, vector<256x4xf32>,
    %c2_102 = arith.constant 2 : index
    %c2_103 = arith.constant 2 : index
    %c0_104 = arith.constant 0 : index
    %82 = vector.load %arg4[%c2_102, %c2_103, %c0_104] : memref<18x18x4xf32, #tpu.memory_space<vmem>>, vector<16x16x4xf32>
    %83 = vector.shape_cast %82 : vector<16x16x4xf32> to vector<256x4xf32>
    %c0_105 = arith.constant 0 : index
    %c32_106 = arith.constant 32 : index
    %84 = vector.load %arg5[%c0_105, %c32_106] : memref<256x36xf32, #tpu.memory_space<vmem>>, vector<256x4xf32>
    tpu.vector_store %arg5[%c0_105, %c32_106], %83 {strides = array<i32>} : memref<256x36xf32, #tpu.memory_space<vmem>>, vector<256x4xf32>,
    %c0_107 = arith.constant 0 : index
    %c0_108 = arith.constant 0 : index
    %85 = vector.load %arg5[%c0_107, %c0_108] : memref<256x36xf32, #tpu.memory_space<vmem>>, vector<256x36xf32>
    %cst_109 = arith.constant dense<0.000000e+00> : vector<256x4xf32>
    %86 = tpu.matmul %85, %7, %cst_109 {dimension_numbers = #tpu.dot_dimension_numbers<[1], [0], [0], [1], [0, 0, 1, 1], [], []>} : vector<256x36xf32>, vector<36x4xf32>, vector<256x4xf32> -> vector<256x4xf32>
    %cst_110 = arith.constant dense<0.000000e+00> : vector<4xf32>
    %87 = vector.multi_reduction <add>, %86, %cst_110 [0] : vector<256x4xf32> to vector<4xf32>
    %88 = vector.shape_cast %87 : vector<4xf32> to vector<1x4xf32>
    %cst_111 = arith.constant 2.560000e+02 : f32
    %89 = vector.broadcast %cst_111 : f32 to vector<1x4xf32>
    %90 = arith.divf %88, %89 : vector<1x4xf32>
    %91 = vector.broadcast %90 : vector<1x4xf32> to vector<256x4xf32>
    %92 = arith.subf %86, %91 : vector<256x4xf32>
    %93 = arith.mulf %92, %92 : vector<256x4xf32>
    %cst_112 = arith.constant dense<0.000000e+00> : vector<4xf32>
    %94 = vector.multi_reduction <add>, %93, %cst_112 [0] : vector<256x4xf32> to vector<4xf32>
    %95 = vector.shape_cast %94 : vector<4xf32> to vector<1x4xf32>
    %cst_113 = arith.constant 2.560000e+02 : f32
    %96 = vector.broadcast %cst_113 : f32 to vector<1x4xf32>
    %97 = arith.divf %95, %96 : vector<1x4xf32>
    %cst_114 = arith.constant 9.99999974E-6 : f32
    %98 = vector.broadcast %cst_114 : f32 to vector<1x4xf32>
    %99 = arith.addf %97, %98 : vector<1x4xf32>
    %100 = math.rsqrt %99 : vector<1x4xf32>
    %101 = vector.broadcast %100 : vector<1x4xf32> to vector<256x4xf32>
    %102 = arith.mulf %92, %101 : vector<256x4xf32>
    %cst_115 = arith.constant 0.000000e+00 : f32
    %103 = vector.broadcast %cst_115 : f32 to vector<256x4xf32>
    %104 = arith.maximumf %102, %103 : vector<256x4xf32>
    %105 = vector.shape_cast %104 : vector<256x4xf32> to vector<16x16x4xf32>
    %106 = arith.addf %105, %3 : vector<16x16x4xf32>
    %c2_116 = arith.constant 2 : index
    %c0_117 = arith.constant 0 : index
    %c0_118 = arith.constant 0 : index
    %107 = vector.load %arg2[%c2_116, %c0_117, %c0_118] : memref<4x36x4xf32, #tpu.memory_space<vmem>>, vector<1x36x4xf32>
    %108 = vector.shape_cast %107 : vector<1x36x4xf32> to vector<36x4xf32>
    %c3 = arith.constant 3 : index
    %c0_119 = arith.constant 0 : index
    %c0_120 = arith.constant 0 : index
    %109 = vector.load %arg2[%c3, %c0_119, %c0_120] : memref<4x36x4xf32, #tpu.memory_space<vmem>>, vector<1x36x4xf32>
    %110 = vector.shape_cast %109 : vector<1x36x4xf32> to vector<36x4xf32>
    %c1_121 = arith.constant 1 : index
    %c1_122 = arith.constant 1 : index
    %c0_123 = arith.constant 0 : index
    %111 = vector.load %arg4[%c1_121, %c1_122, %c0_123] : memref<18x18x4xf32, #tpu.memory_space<vmem>>, vector<16x16x4xf32>
    tpu.vector_store %arg4[%c1_121, %c1_122, %c0_123], %106 {strides = array<i32>} : memref<18x18x4xf32, #tpu.memory_space<vmem>>, vector<16x16x4xf32>,
    %c0_124 = arith.constant 0 : index
    %c0_125 = arith.constant 0 : index
    %c0_126 = arith.constant 0 : index
    %112 = vector.load %arg4[%c0_124, %c0_125, %c0_126] : memref<18x18x4xf32, #tpu.memory_space<vmem>>, vector<16x16x4xf32>
    %113 = vector.shape_cast %112 : vector<16x16x4xf32> to vector<256x4xf32>
    %c0_127 = arith.constant 0 : index
    %c0_128 = arith.constant 0 : index
    %114 = vector.load %arg5[%c0_127, %c0_128] : memref<256x36xf32, #tpu.memory_space<vmem>>, vector<256x4xf32>
    tpu.vector_store %arg5[%c0_127, %c0_128], %113 {strides = array<i32>} : memref<256x36xf32, #tpu.memory_space<vmem>>, vector<256x4xf32>,
    %c0_129 = arith.constant 0 : index
    %c1_130 = arith.constant 1 : index
    %c0_131 = arith.constant 0 : index
    %115 = vector.load %arg4[%c0_129, %c1_130, %c0_131] : memref<18x18x4xf32, #tpu.memory_space<vmem>>, vector<16x16x4xf32>
    %116 = vector.shape_cast %115 : vector<16x16x4xf32> to vector<256x4xf32>
    %c0_132 = arith.constant 0 : index
    %c4_133 = arith.constant 4 : index
    %117 = vector.load %arg5[%c0_132, %c4_133] : memref<256x36xf32, #tpu.memory_space<vmem>>, vector<256x4xf32>
    tpu.vector_store %arg5[%c0_132, %c4_133], %116 {strides = array<i32>} : memref<256x36xf32, #tpu.memory_space<vmem>>, vector<256x4xf32>,
    %c0_134 = arith.constant 0 : index
    %c2_135 = arith.constant 2 : index
    %c0_136 = arith.constant 0 : index
    %118 = vector.load %arg4[%c0_134, %c2_135, %c0_136] : memref<18x18x4xf32, #tpu.memory_space<vmem>>, vector<16x16x4xf32>
    %119 = vector.shape_cast %118 : vector<16x16x4xf32> to vector<256x4xf32>
    %c0_137 = arith.constant 0 : index
    %c8_138 = arith.constant 8 : index
    %120 = vector.load %arg5[%c0_137, %c8_138] : memref<256x36xf32, #tpu.memory_space<vmem>>, vector<256x4xf32>
    tpu.vector_store %arg5[%c0_137, %c8_138], %119 {strides = array<i32>} : memref<256x36xf32, #tpu.memory_space<vmem>>, vector<256x4xf32>,
    %c1_139 = arith.constant 1 : index
    %c0_140 = arith.constant 0 : index
    %c0_141 = arith.constant 0 : index
    %121 = vector.load %arg4[%c1_139, %c0_140, %c0_141] : memref<18x18x4xf32, #tpu.memory_space<vmem>>, vector<16x16x4xf32>
    %122 = vector.shape_cast %121 : vector<16x16x4xf32> to vector<256x4xf32>
    %c0_142 = arith.constant 0 : index
    %c12_143 = arith.constant 12 : index
    %123 = vector.load %arg5[%c0_142, %c12_143] : memref<256x36xf32, #tpu.memory_space<vmem>>, vector<256x4xf32>
    tpu.vector_store %arg5[%c0_142, %c12_143], %122 {strides = array<i32>} : memref<256x36xf32, #tpu.memory_space<vmem>>, vector<256x4xf32>,
    %c1_144 = arith.constant 1 : index
    %c1_145 = arith.constant 1 : index
    %c0_146 = arith.constant 0 : index
    %124 = vector.load %arg4[%c1_144, %c1_145, %c0_146] : memref<18x18x4xf32, #tpu.memory_space<vmem>>, vector<16x16x4xf32>
    %125 = vector.shape_cast %124 : vector<16x16x4xf32> to vector<256x4xf32>
    %c0_147 = arith.constant 0 : index
    %c16_148 = arith.constant 16 : index
    %126 = vector.load %arg5[%c0_147, %c16_148] : memref<256x36xf32, #tpu.memory_space<vmem>>, vector<256x4xf32>
    tpu.vector_store %arg5[%c0_147, %c16_148], %125 {strides = array<i32>} : memref<256x36xf32, #tpu.memory_space<vmem>>, vector<256x4xf32>,
    %c1_149 = arith.constant 1 : index
    %c2_150 = arith.constant 2 : index
    %c0_151 = arith.constant 0 : index
    %127 = vector.load %arg4[%c1_149, %c2_150, %c0_151] : memref<18x18x4xf32, #tpu.memory_space<vmem>>, vector<16x16x4xf32>
    %128 = vector.shape_cast %127 : vector<16x16x4xf32> to vector<256x4xf32>
    %c0_152 = arith.constant 0 : index
    %c20_153 = arith.constant 20 : index
    %129 = vector.load %arg5[%c0_152, %c20_153] : memref<256x36xf32, #tpu.memory_space<vmem>>, vector<256x4xf32>
    tpu.vector_store %arg5[%c0_152, %c20_153], %128 {strides = array<i32>} : memref<256x36xf32, #tpu.memory_space<vmem>>, vector<256x4xf32>,
    %c2_154 = arith.constant 2 : index
    %c0_155 = arith.constant 0 : index
    %c0_156 = arith.constant 0 : index
    %130 = vector.load %arg4[%c2_154, %c0_155, %c0_156] : memref<18x18x4xf32, #tpu.memory_space<vmem>>, vector<16x16x4xf32>
    %131 = vector.shape_cast %130 : vector<16x16x4xf32> to vector<256x4xf32>
    %c0_157 = arith.constant 0 : index
    %c24_158 = arith.constant 24 : index
    %132 = vector.load %arg5[%c0_157, %c24_158] : memref<256x36xf32, #tpu.memory_space<vmem>>, vector<256x4xf32>
    tpu.vector_store %arg5[%c0_157, %c24_158], %131 {strides = array<i32>} : memref<256x36xf32, #tpu.memory_space<vmem>>, vector<256x4xf32>,
    %c2_159 = arith.constant 2 : index
    %c1_160 = arith.constant 1 : index
    %c0_161 = arith.constant 0 : index
    %133 = vector.load %arg4[%c2_159, %c1_160, %c0_161] : memref<18x18x4xf32, #tpu.memory_space<vmem>>, vector<16x16x4xf32>
    %134 = vector.shape_cast %133 : vector<16x16x4xf32> to vector<256x4xf32>
    %c0_162 = arith.constant 0 : index
    %c28_163 = arith.constant 28 : index
    %135 = vector.load %arg5[%c0_162, %c28_163] : memref<256x36xf32, #tpu.memory_space<vmem>>, vector<256x4xf32>
    tpu.vector_store %arg5[%c0_162, %c28_163], %134 {strides = array<i32>} : memref<256x36xf32, #tpu.memory_space<vmem>>, vector<256x4xf32>,
    %c2_164 = arith.constant 2 : index
    %c2_165 = arith.constant 2 : index
    %c0_166 = arith.constant 0 : index
    %136 = vector.load %arg4[%c2_164, %c2_165, %c0_166] : memref<18x18x4xf32, #tpu.memory_space<vmem>>, vector<16x16x4xf32>
    %137 = vector.shape_cast %136 : vector<16x16x4xf32> to vector<256x4xf32>
    %c0_167 = arith.constant 0 : index
    %c32_168 = arith.constant 32 : index
    %138 = vector.load %arg5[%c0_167, %c32_168] : memref<256x36xf32, #tpu.memory_space<vmem>>, vector<256x4xf32>
    tpu.vector_store %arg5[%c0_167, %c32_168], %137 {strides = array<i32>} : memref<256x36xf32, #tpu.memory_space<vmem>>, vector<256x4xf32>,
    %c0_169 = arith.constant 0 : index
    %c0_170 = arith.constant 0 : index
    %139 = vector.load %arg5[%c0_169, %c0_170] : memref<256x36xf32, #tpu.memory_space<vmem>>, vector<256x36xf32>
    %cst_171 = arith.constant dense<0.000000e+00> : vector<256x4xf32>
    %140 = tpu.matmul %139, %108, %cst_171 {dimension_numbers = #tpu.dot_dimension_numbers<[1], [0], [0], [1], [0, 0, 1, 1], [], []>} : vector<256x36xf32>, vector<36x4xf32>, vector<256x4xf32> -> vector<256x4xf32>
    %cst_172 = arith.constant dense<0.000000e+00> : vector<4xf32>
    %141 = vector.multi_reduction <add>, %140, %cst_172 [0] : vector<256x4xf32> to vector<4xf32>
    %142 = vector.shape_cast %141 : vector<4xf32> to vector<1x4xf32>
    %cst_173 = arith.constant 2.560000e+02 : f32
    %143 = vector.broadcast %cst_173 : f32 to vector<1x4xf32>
    %144 = arith.divf %142, %143 : vector<1x4xf32>
    %145 = vector.broadcast %144 : vector<1x4xf32> to vector<256x4xf32>
    %146 = arith.subf %140, %145 : vector<256x4xf32>
    %147 = arith.mulf %146, %146 : vector<256x4xf32>
    %cst_174 = arith.constant dense<0.000000e+00> : vector<4xf32>
    %148 = vector.multi_reduction <add>, %147, %cst_174 [0] : vector<256x4xf32> to vector<4xf32>
    %149 = vector.shape_cast %148 : vector<4xf32> to vector<1x4xf32>
    %cst_175 = arith.constant 2.560000e+02 : f32
    %150 = vector.broadcast %cst_175 : f32 to vector<1x4xf32>
    %151 = arith.divf %149, %150 : vector<1x4xf32>
    %cst_176 = arith.constant 9.99999974E-6 : f32
    %152 = vector.broadcast %cst_176 : f32 to vector<1x4xf32>
    %153 = arith.addf %151, %152 : vector<1x4xf32>
    %154 = math.rsqrt %153 : vector<1x4xf32>
    %155 = vector.broadcast %154 : vector<1x4xf32> to vector<256x4xf32>
    %156 = arith.mulf %146, %155 : vector<256x4xf32>
    %cst_177 = arith.constant 0.000000e+00 : f32
    %157 = vector.broadcast %cst_177 : f32 to vector<256x4xf32>
    %158 = arith.maximumf %156, %157 : vector<256x4xf32>
    %159 = vector.shape_cast %158 : vector<256x4xf32> to vector<16x16x4xf32>
    %c1_178 = arith.constant 1 : index
    %c1_179 = arith.constant 1 : index
    %c0_180 = arith.constant 0 : index
    %160 = vector.load %arg4[%c1_178, %c1_179, %c0_180] : memref<18x18x4xf32, #tpu.memory_space<vmem>>, vector<16x16x4xf32>
    tpu.vector_store %arg4[%c1_178, %c1_179, %c0_180], %159 {strides = array<i32>} : memref<18x18x4xf32, #tpu.memory_space<vmem>>, vector<16x16x4xf32>,
    %c0_181 = arith.constant 0 : index
    %c0_182 = arith.constant 0 : index
    %c0_183 = arith.constant 0 : index
    %161 = vector.load %arg4[%c0_181, %c0_182, %c0_183] : memref<18x18x4xf32, #tpu.memory_space<vmem>>, vector<16x16x4xf32>
    %162 = vector.shape_cast %161 : vector<16x16x4xf32> to vector<256x4xf32>
    %c0_184 = arith.constant 0 : index
    %c0_185 = arith.constant 0 : index
    %163 = vector.load %arg5[%c0_184, %c0_185] : memref<256x36xf32, #tpu.memory_space<vmem>>, vector<256x4xf32>
    tpu.vector_store %arg5[%c0_184, %c0_185], %162 {strides = array<i32>} : memref<256x36xf32, #tpu.memory_space<vmem>>, vector<256x4xf32>,
    %c0_186 = arith.constant 0 : index
    %c1_187 = arith.constant 1 : index
    %c0_188 = arith.constant 0 : index
    %164 = vector.load %arg4[%c0_186, %c1_187, %c0_188] : memref<18x18x4xf32, #tpu.memory_space<vmem>>, vector<16x16x4xf32>
    %165 = vector.shape_cast %164 : vector<16x16x4xf32> to vector<256x4xf32>
    %c0_189 = arith.constant 0 : index
    %c4_190 = arith.constant 4 : index
    %166 = vector.load %arg5[%c0_189, %c4_190] : memref<256x36xf32, #tpu.memory_space<vmem>>, vector<256x4xf32>
    tpu.vector_store %arg5[%c0_189, %c4_190], %165 {strides = array<i32>} : memref<256x36xf32, #tpu.memory_space<vmem>>, vector<256x4xf32>,
    %c0_191 = arith.constant 0 : index
    %c2_192 = arith.constant 2 : index
    %c0_193 = arith.constant 0 : index
    %167 = vector.load %arg4[%c0_191, %c2_192, %c0_193] : memref<18x18x4xf32, #tpu.memory_space<vmem>>, vector<16x16x4xf32>
    %168 = vector.shape_cast %167 : vector<16x16x4xf32> to vector<256x4xf32>
    %c0_194 = arith.constant 0 : index
    %c8_195 = arith.constant 8 : index
    %169 = vector.load %arg5[%c0_194, %c8_195] : memref<256x36xf32, #tpu.memory_space<vmem>>, vector<256x4xf32>
    tpu.vector_store %arg5[%c0_194, %c8_195], %168 {strides = array<i32>} : memref<256x36xf32, #tpu.memory_space<vmem>>, vector<256x4xf32>,
    %c1_196 = arith.constant 1 : index
    %c0_197 = arith.constant 0 : index
    %c0_198 = arith.constant 0 : index
    %170 = vector.load %arg4[%c1_196, %c0_197, %c0_198] : memref<18x18x4xf32, #tpu.memory_space<vmem>>, vector<16x16x4xf32>
    %171 = vector.shape_cast %170 : vector<16x16x4xf32> to vector<256x4xf32>
    %c0_199 = arith.constant 0 : index
    %c12_200 = arith.constant 12 : index
    %172 = vector.load %arg5[%c0_199, %c12_200] : memref<256x36xf32, #tpu.memory_space<vmem>>, vector<256x4xf32>
    tpu.vector_store %arg5[%c0_199, %c12_200], %171 {strides = array<i32>} : memref<256x36xf32, #tpu.memory_space<vmem>>, vector<256x4xf32>,
    %c1_201 = arith.constant 1 : index
    %c1_202 = arith.constant 1 : index
    %c0_203 = arith.constant 0 : index
    %173 = vector.load %arg4[%c1_201, %c1_202, %c0_203] : memref<18x18x4xf32, #tpu.memory_space<vmem>>, vector<16x16x4xf32>
    %174 = vector.shape_cast %173 : vector<16x16x4xf32> to vector<256x4xf32>
    %c0_204 = arith.constant 0 : index
    %c16_205 = arith.constant 16 : index
    %175 = vector.load %arg5[%c0_204, %c16_205] : memref<256x36xf32, #tpu.memory_space<vmem>>, vector<256x4xf32>
    tpu.vector_store %arg5[%c0_204, %c16_205], %174 {strides = array<i32>} : memref<256x36xf32, #tpu.memory_space<vmem>>, vector<256x4xf32>,
    %c1_206 = arith.constant 1 : index
    %c2_207 = arith.constant 2 : index
    %c0_208 = arith.constant 0 : index
    %176 = vector.load %arg4[%c1_206, %c2_207, %c0_208] : memref<18x18x4xf32, #tpu.memory_space<vmem>>, vector<16x16x4xf32>
    %177 = vector.shape_cast %176 : vector<16x16x4xf32> to vector<256x4xf32>
    %c0_209 = arith.constant 0 : index
    %c20_210 = arith.constant 20 : index
    %178 = vector.load %arg5[%c0_209, %c20_210] : memref<256x36xf32, #tpu.memory_space<vmem>>, vector<256x4xf32>
    tpu.vector_store %arg5[%c0_209, %c20_210], %177 {strides = array<i32>} : memref<256x36xf32, #tpu.memory_space<vmem>>, vector<256x4xf32>,
    %c2_211 = arith.constant 2 : index
    %c0_212 = arith.constant 0 : index
    %c0_213 = arith.constant 0 : index
    %179 = vector.load %arg4[%c2_211, %c0_212, %c0_213] : memref<18x18x4xf32, #tpu.memory_space<vmem>>, vector<16x16x4xf32>
    %180 = vector.shape_cast %179 : vector<16x16x4xf32> to vector<256x4xf32>
    %c0_214 = arith.constant 0 : index
    %c24_215 = arith.constant 24 : index
    %181 = vector.load %arg5[%c0_214, %c24_215] : memref<256x36xf32, #tpu.memory_space<vmem>>, vector<256x4xf32>
    tpu.vector_store %arg5[%c0_214, %c24_215], %180 {strides = array<i32>} : memref<256x36xf32, #tpu.memory_space<vmem>>, vector<256x4xf32>,
    %c2_216 = arith.constant 2 : index
    %c1_217 = arith.constant 1 : index
    %c0_218 = arith.constant 0 : index
    %182 = vector.load %arg4[%c2_216, %c1_217, %c0_218] : memref<18x18x4xf32, #tpu.memory_space<vmem>>, vector<16x16x4xf32>
    %183 = vector.shape_cast %182 : vector<16x16x4xf32> to vector<256x4xf32>
    %c0_219 = arith.constant 0 : index
    %c28_220 = arith.constant 28 : index
    %184 = vector.load %arg5[%c0_219, %c28_220] : memref<256x36xf32, #tpu.memory_space<vmem>>, vector<256x4xf32>
    tpu.vector_store %arg5[%c0_219, %c28_220], %183 {strides = array<i32>} : memref<256x36xf32, #tpu.memory_space<vmem>>, vector<256x4xf32>,
    %c2_221 = arith.constant 2 : index
    %c2_222 = arith.constant 2 : index
    %c0_223 = arith.constant 0 : index
    %185 = vector.load %arg4[%c2_221, %c2_222, %c0_223] : memref<18x18x4xf32, #tpu.memory_space<vmem>>, vector<16x16x4xf32>
    %186 = vector.shape_cast %185 : vector<16x16x4xf32> to vector<256x4xf32>
    %c0_224 = arith.constant 0 : index
    %c32_225 = arith.constant 32 : index
    %187 = vector.load %arg5[%c0_224, %c32_225] : memref<256x36xf32, #tpu.memory_space<vmem>>, vector<256x4xf32>
    tpu.vector_store %arg5[%c0_224, %c32_225], %186 {strides = array<i32>} : memref<256x36xf32, #tpu.memory_space<vmem>>, vector<256x4xf32>,
    %c0_226 = arith.constant 0 : index
    %c0_227 = arith.constant 0 : index
    %188 = vector.load %arg5[%c0_226, %c0_227] : memref<256x36xf32, #tpu.memory_space<vmem>>, vector<256x36xf32>
    %cst_228 = arith.constant dense<0.000000e+00> : vector<256x4xf32>
    %189 = tpu.matmul %188, %110, %cst_228 {dimension_numbers = #tpu.dot_dimension_numbers<[1], [0], [0], [1], [0, 0, 1, 1], [], []>} : vector<256x36xf32>, vector<36x4xf32>, vector<256x4xf32> -> vector<256x4xf32>
    %cst_229 = arith.constant dense<0.000000e+00> : vector<4xf32>
    %190 = vector.multi_reduction <add>, %189, %cst_229 [0] : vector<256x4xf32> to vector<4xf32>
    %191 = vector.shape_cast %190 : vector<4xf32> to vector<1x4xf32>
    %cst_230 = arith.constant 2.560000e+02 : f32
    %192 = vector.broadcast %cst_230 : f32 to vector<1x4xf32>
    %193 = arith.divf %191, %192 : vector<1x4xf32>
    %194 = vector.broadcast %193 : vector<1x4xf32> to vector<256x4xf32>
    %195 = arith.subf %189, %194 : vector<256x4xf32>
    %196 = arith.mulf %195, %195 : vector<256x4xf32>
    %cst_231 = arith.constant dense<0.000000e+00> : vector<4xf32>
    %197 = vector.multi_reduction <add>, %196, %cst_231 [0] : vector<256x4xf32> to vector<4xf32>
    %198 = vector.shape_cast %197 : vector<4xf32> to vector<1x4xf32>
    %cst_232 = arith.constant 2.560000e+02 : f32
    %199 = vector.broadcast %cst_232 : f32 to vector<1x4xf32>
    %200 = arith.divf %198, %199 : vector<1x4xf32>
    %cst_233 = arith.constant 9.99999974E-6 : f32
    %201 = vector.broadcast %cst_233 : f32 to vector<1x4xf32>
    %202 = arith.addf %200, %201 : vector<1x4xf32>
    %203 = math.rsqrt %202 : vector<1x4xf32>
    %204 = vector.broadcast %203 : vector<1x4xf32> to vector<256x4xf32>
    %205 = arith.mulf %195, %204 : vector<256x4xf32>
    %cst_234 = arith.constant 0.000000e+00 : f32
    %206 = vector.broadcast %cst_234 : f32 to vector<256x4xf32>
    %207 = arith.maximumf %205, %206 : vector<256x4xf32>
    %208 = vector.shape_cast %207 : vector<256x4xf32> to vector<16x16x4xf32>
    %209 = arith.addf %208, %106 : vector<16x16x4xf32>
    %c0_235 = arith.constant 0 : index
    %c0_236 = arith.constant 0 : index
    %c0_237 = arith.constant 0 : index
    %c0_238 = arith.constant 0 : index
    %210 = vector.load %arg3[%c0_235, %c0_236, %c0_237, %c0_238] : memref<1x16x16x4xf32, #tpu.memory_space<vmem>>, vector<1x16x16x4xf32>
    %211 = vector.shape_cast %210 : vector<1x16x16x4xf32> to vector<16x16x4xf32>
    %212 = vector.shape_cast %209 : vector<16x16x4xf32> to vector<1x16x16x4xf32>
    tpu.vector_store %arg3[%c0_235, %c0_236, %c0_237, %c0_238], %212 {strides = array<i32>} : memref<1x16x16x4xf32, #tpu.memory_space<vmem>>, vector<1x16x16x4xf32>,
    return
  }
  func.func @transform_0(%arg0: i32) -> (i32, i32, i32, i32) {
    %c0_i32 = arith.constant 0 : i32
    %c0_i32_0 = arith.constant 0 : i32
    %c0_i32_1 = arith.constant 0 : i32
    %c0_i32_2 = arith.constant 0 : i32
    return %arg0, %c0_i32, %c0_i32_0, %c0_i32_1 : i32, i32, i32, i32
  }
  func.func @transform_1(%arg0: i32) -> (i32, i32, i32) {
    %c0_i32 = arith.constant 0 : i32
    %c0_i32_0 = arith.constant 0 : i32
    %c0_i32_1 = arith.constant 0 : i32
    %c0_i32_2 = arith.constant 0 : i32
    return %c0_i32, %c0_i32_0, %c0_i32_1 : i32, i32, i32
  }
  func.func @transform_2(%arg0: i32) -> (i32, i32, i32, i32) {
    %c0_i32 = arith.constant 0 : i32
    %c0_i32_0 = arith.constant 0 : i32
    %c0_i32_1 = arith.constant 0 : i32
    %c0_i32_2 = arith.constant 0 : i32
    return %arg0, %c0_i32, %c0_i32_0, %c0_i32_1 : i32, i32, i32, i32
  }
}

</mosaic_0001>

<bundles_post_ra>
// kernel: tpu_custom_call.1
= control target key start
LH: loop header
LB: loop body
LE: loop exit
PB: predicated region body
PF: predicated region fallthrough
CT: control target
= control target key end

     0   :  { %s9266_s9 = smov 0   ;;  %s15296_s0 = inlined_call_operand.vmem [shape: f32[2,16,16,4], index: 0, kind: input, shape index: {}]   ;;  %s15297_s1 = inlined_call_operand.vmem [shape: f32[4,36,4], index: 1, kind: input, shape index: {}]   ;;  %s15298_s2 = inlined_call_operand.vmem [shape: f32[2,16,16,4], index: 2, kind: output, shape index: {}]  }
   0x1 LB: > { %s9045_s10 = sadd.s32 4294967295, %s9239_s9   ;;  %p9049_p0 = scmp.ge.s32.totalorder %s9239_s9, 1  ;;  %s9239_s9 = sphi %s9266_s9, %s12_s9  }
   0x2   : > { %p112_p1 = scmp.lt.s32.totalorder %s9239_s9, 3 }
   0x4   : > { %p113_p2 = pnand %p9049_p0, %p112_p1 }
   0x6   : > { %116 = sbr.rel (%p113_p2) target bundleno = 4635 (0x121b), region = 28 }
   0xb   : > { %vm144_vm0 = vcmask 31744   ;;  %v9241_v0 = vmov 0.0   ;;  %s9242_s11 = smov 4   ;;  %vm147_vm1 = vcmask 25600   ;;  %p134_p3 = scmp.lt.s32.totalorder %s9045_s10, 1  ;;  %vm500_vm2 = vcmask 64544  }
   0xc   : > { %145 = vst.msk [vmem:[#allocation2] sm:$0xff] %vm144_vm0, %v9241_v0  ;;  %s9243_s16 = smov 8   ;;  %s9244_s17 = smov 12   ;;  %vm693_vm3 = vcmask 97344   ;;  %vm886_vm4 = vcmask 130144   ;;  %vm1079_vm5 = vcmask 162944  }
   0xd   : > { %146 = vst.msk [vmem:[#allocation2 + $0x8] sm:$0xff] %vm144_vm0, %v9241_v0  ;;  %s15732_s10 = smov (!%p134_p3, %s9045_s10), 1  ;;  %s9245_s18 = smov 16   ;;  %vm1272_vm6 = vcmask 195744   ;;  %vm1466_vm7 = vcmask 228544   ;;  %vm1659_vm8 = vcmask 261344  }
   0xe   : > { %149 = vst.msk [vmem:[#allocation2 + $0x18] sm:$0xff] %vm144_vm0, %v9241_v0  ;;  %s9203_s12 = sshll.u32 %s15732_s10, 8  ;;  %s9246_s19 = smov 20   ;;  %vm2014_vm9 = vcmask 1043456   ;;  %vm1852_vm10 = vcmask 294144   ;;  %vm1917_vm11 = vcmask 293888  }
   0xf   : > { %150 = vst.msk [vmem:[#allocation2 + $0x20] sm:$0xff] %vm144_vm0, %v9241_v0  ;;  %s9386_s15 = scalar_lea.vmem %s15296_s0, %s9203_s12  ;;  %s9247_s20 = smov 24  }
  0x10   : > { %152 = vst.msk [vmem:[#allocation2 + $0x30] sm:$0xff] %vm144_vm0, %v9241_v0  ;;  %v9395_v3 = vld [vmem:[%s9386_s15] sm:$0xff]  ;;  %v9405_v5 = vld [vmem:[%s9386_s15 + $0x8] sm:$0xff]  ;;  %v9410_v6 = vld [vmem:[%s9386_s15 + $0x38] sm:$0xff]  ;;  %s9248_s21 = smov 28   ;;  %s9249_s22 = smov 32  }
  0x11   : > { %153 = vst.msk [vmem:[#allocation2 + $0x38] sm:$0xff] %vm144_vm0, %v9241_v0  ;;  %v9400_v4 = vld [vmem:[%s9386_s15 + $0x20] sm:$0xff]  ;;  %v9415_v7 = vld [vmem:[%s9386_s15 + $0x10] sm:$0xff]  ;;  %v9420_v8 = vld [vmem:[%s9386_s15 + $0x28] sm:$0xff] }
  0x12   : > { %155 = vst.msk [vmem:[#allocation2 + $0x48] sm:$0xff] %vm144_vm0, %v9241_v0  ;;  %v9425_v9 = vld [vmem:[%s9386_s15 + $0x50] sm:$0xff]  ;;  %v9430_v10 = vld [vmem:[%s9386_s15 + $0x18] sm:$0xff]  ;;  %v9435_v11 = vld [vmem:[%s9386_s15 + $0x40] sm:$0xff] }
  0x13   : > { %156 = vst.msk [vmem:[#allocation2 + $0x50] sm:$0xff] %vm144_vm0, %v9241_v0  ;;  %v9440_v12 = vld [vmem:[%s9386_s15 + $0x68] sm:$0xff]  ;;  %v9447_v14 = vld [vmem:[%s9386_s15 + $0x30] sm:$0xff]  ;;  %v9456_v16 = vld [vmem:[%s9386_s15 + $0x58] sm:$0xff] }
  0x14   : > { %v340_v1 = vld [vmem:[#allocation2 + $0x1] sm:$0xff]  ;;  %158 = vst.msk [vmem:[#allocation2 + $0x60] sm:$0xff] %vm144_vm0, %v9241_v0  ;;  %v9475_v20 = vld [vmem:[%s9386_s15 + $0x70] sm:$0xff]  ;;  %v9490_v23 = vld [vmem:[%s9386_s15 + $0x98] sm:$0xff] }
  0x15   : > { %404 = vrot.lane.b32.xlu0 %v340_v1, %s9242_s11  ;;  %159 = vst.msk [vmem:[#allocation2 + $0x68] sm:$0xff] %vm144_vm0, %v9241_v0  ;;  %v9463_v17 = vld [vmem:[%s9386_s15 + $0x80] sm:$0xff]  ;;  %v9468_v18 = vld [vmem:[%s9386_s15 + $0x48] sm:$0xff]  ;;  %v9517_v29 = vld [vmem:[%s9386_s15 + $0xb0] sm:$0xff] }
  0x16   : > { %161 = vst.msk [vmem:[#allocation2 + $0x78] sm:$0xff] %vm144_vm0, %v9241_v0  ;;  %v9493_v24 = vld [vmem:[%s9386_s15 + $0x60] sm:$0xff]  ;;  %v9500_v25 = vld [vmem:[%s9386_s15 + $0x88] sm:$0xff]  ;;  %v9520_v30 = vld [vmem:[%s9386_s15 + $0x78] sm:$0xff] }
  0x17   : > { %162 = vst.msk [vmem:[#allocation2 + $0x80] sm:$0xff] %vm144_vm0, %v9241_v0  ;;  %v9527_v31 = vld [vmem:[%s9386_s15 + $0xa0] sm:$0xff]  ;;  %v9544_v35 = vld [vmem:[%s9386_s15 + $0xc8] sm:$0xff]  ;;  %v9547_v36 = vld [vmem:[%s9386_s15 + $0x90] sm:$0xff] }
  0x18   : > { %164 = vst.msk [vmem:[#allocation2 + $0x90] sm:$0xff] %vm144_vm0, %v9241_v0  ;;  %v9554_v37 = vld [vmem:[%s9386_s15 + $0xb8] sm:$0xff]  ;;  %v9571_v41 = vld [vmem:[%s9386_s15 + $0xe0] sm:$0xff]  ;;  %v9574_v42 = vld [vmem:[%s9386_s15 + $0xa8] sm:$0xff] }
  0x19   : > { %165 = vst.msk [vmem:[#allocation2 + $0x98] sm:$0xff] %vm144_vm0, %v9241_v0  ;;  %v9581_v43 = vld [vmem:[%s9386_s15 + $0xd0] sm:$0xff]  ;;  %v9598_v47 = vld [vmem:[%s9386_s15 + $0xc0] sm:$0xff]  ;;  %v9601_v48 = vld [vmem:[%s9386_s15 + $0xe8] sm:$0xff] }
  0x1a   : > { %167 = vst.msk [vmem:[#allocation2 + $0xa8] sm:$0xff] %vm144_vm0, %v9241_v0  ;;  %v9620_v52 = vld [vmem:[%s9386_s15 + $0xd8] sm:$0xff]  ;;  %v276_v63 = vld [vmem:[#allocation2] sm:$0xff] }
  0x1b   : > { %168 = vst.msk [vmem:[#allocation2 + $0xb0] sm:$0xff] %vm144_vm0, %v9241_v0 }
  0x1c   : > { %170 = vst.msk [vmem:[#allocation2 + $0xc0] sm:$0xff] %vm144_vm0, %v9241_v0 }
  0x1d   : > { %171 = vst.msk [vmem:[#allocation2 + $0xc8] sm:$0xff] %vm144_vm0, %v9241_v0 }
  0x1e   : > { %173 = vst.msk [vmem:[#allocation2 + $0xd8] sm:$0xff] %vm144_vm0, %v9241_v0 }
  0x1f   : > { %174 = vst.msk [vmem:[#allocation2 + $0xe0] sm:$0xff] %vm144_vm0, %v9241_v0 }
  0x20   : > { %176 = vst.msk [vmem:[#allocation2 + $0xf0] sm:$0xff] %vm144_vm0, %v9241_v0 }
  0x21   : > { %177 = vst.msk [vmem:[#allocation2 + $0xf8] sm:$0xff] %vm144_vm0, %v9241_v0 }
  0x22   : > { %179 = vst.msk [vmem:[#allocation2 + $0x108] sm:$0xff] %vm144_vm0, %v9241_v0 }
  0x23   : > { %180 = vst.msk [vmem:[#allocation2 + $0x110] sm:$0xff] %vm144_vm0, %v9241_v0 }
  0x24   : > { %182 = vst.msk [vmem:[#allocation2 + $0x120] sm:$0xff] %vm144_vm0, %v9241_v0 }
  0x25   : > { %183 = vst.msk [vmem:[#allocation2 + $0x128] sm:$0xff] %vm144_vm0, %v9241_v0 }
  0x26   : > { %185 = vst.msk [vmem:[#allocation2 + $0x138] sm:$0xff] %vm144_vm0, %v9241_v0 }
  0x27   : > { %186 = vst.msk [vmem:[#allocation2 + $0x140] sm:$0xff] %vm144_vm0, %v9241_v0 }
  0x28   : > { %188 = vst.msk [vmem:[#allocation2 + $0x150] sm:$0xff] %vm144_vm0, %v9241_v0 }
  0x29   : > { %189 = vst.msk [vmem:[#allocation2 + $0x158] sm:$0xff] %vm144_vm0, %v9241_v0 }
  0x2a   : > { %191 = vst.msk [vmem:[#allocation2 + $0x168] sm:$0xff] %vm144_vm0, %v9241_v0 }
  0x2b   : > { %192 = vst.msk [vmem:[#allocation2 + $0x170] sm:$0xff] %vm144_vm0, %v9241_v0 }
  0x2c   : > { %194 = vst.msk [vmem:[#allocation2 + $0x180] sm:$0xff] %vm144_vm0, %v9241_v0 }
  0x2d   : > { %195 = vst.msk [vmem:[#allocation2 + $0x188] sm:$0xff] %vm144_vm0, %v9241_v0 }
  0x2e   : > { %197 = vst.msk [vmem:[#allocation2 + $0x198] sm:$0xff] %vm144_vm0, %v9241_v0 }
  0x2f   : > { %198 = vst.msk [vmem:[#allocation2 + $0x1a0] sm:$0xff] %vm144_vm0, %v9241_v0 }
  0x30   : > { %148 = vst.msk [vmem:[#allocation2 + $0x10] sm:$0x3] %vm147_vm1, %v9241_v0 }
  0x31   : > { %151 = vst.msk [vmem:[#allocation2 + $0x28] sm:$0x3] %vm147_vm1, %v9241_v0 }
  0x32   : > { %154 = vst.msk [vmem:[#allocation2 + $0x40] sm:$0x3] %vm147_vm1, %v9241_v0 }
  0x33   : > { %157 = vst.msk [vmem:[#allocation2 + $0x58] sm:$0x3] %vm147_vm1, %v9241_v0 }
  0x34   : > { %160 = vst.msk [vmem:[#allocation2 + $0x70] sm:$0x3] %vm147_vm1, %v9241_v0 }
  0x35   : > { %163 = vst.msk [vmem:[#allocation2 + $0x88] sm:$0x3] %vm147_vm1, %v9241_v0 }
  0x36   : > { %166 = vst.msk [vmem:[#allocation2 + $0xa0] sm:$0x3] %vm147_vm1, %v9241_v0 }
  0x37   : > { %v341_v2 = vld [vmem:[#allocation2 + $0x9] sm:$0xff]  ;;  %169 = vst.msk [vmem:[#allocation2 + $0xb8] sm:$0x3] %vm147_vm1, %v9241_v0 }
  0x38   : > { %406 = vrot.lane.b32.xlu0 %v341_v2, %s9242_s11  ;;  %172 = vst.msk [vmem:[#allocation2 + $0xd0] sm:$0x3] %vm147_vm1, %v9241_v0  ;;  %v534_v61 = vld [vmem:[#allocation2 + $0xa] sm:$0xff] }
  0x39   : > { %175 = vst.msk [vmem:[#allocation2 + $0xe8] sm:$0x3] %vm147_vm1, %v9241_v0 }
  0x3a   : > { %178 = vst.msk [vmem:[#allocation2 + $0x100] sm:$0x3] %vm147_vm1, %v9241_v0 }
  0x3b   : > { %181 = vst.msk [vmem:[#allocation2 + $0x118] sm:$0x3] %vm147_vm1, %v9241_v0 }
  0x3c   : > { %184 = vst.msk [vmem:[#allocation2 + $0x130] sm:$0x3] %vm147_vm1, %v9241_v0 }
  0x3d   : > { %187 = vst.msk [vmem:[#allocation2 + $0x148] sm:$0x3] %vm147_vm1, %v9241_v0 }
  0x3e   : > { %190 = vst.msk [vmem:[#allocation2 + $0x160] sm:$0x3] %vm147_vm1, %v9241_v0 }
  0x3f   : > { %193 = vst.msk [vmem:[#allocation2 + $0x178] sm:$0x3] %vm147_vm1, %v9241_v0 }
  0x40   : > { %15446 = vst [vmem:[#allocation4_spill] sm:$0xff] %v9395_v3 }
  0x41   : > { %196 = vst.msk [vmem:[#allocation2 + $0x190] sm:$0x3] %vm147_vm1, %v9241_v0 }
  0x42   : > { %15447 = vst [vmem:[#allocation5_spill] sm:$0xff] %v9400_v4 }
  0x43   : > { %199 = vst.msk [vmem:[#allocation2 + $0x1a8] sm:$0x3] %vm147_vm1, %v9241_v0 }
  0x44   : > { %15448 = vst [vmem:[#allocation6_spill] sm:$0xff] %v9405_v5 }
  0x45   : > { %244 = vst.msk [vmem:[#allocation2 + $0x19] sm:$0xff] %vm144_vm0, %v9395_v3 }
  0x46   : > { %15449 = vst [vmem:[#allocation7_spill] sm:$0xff] %v9410_v6 }
  0x47   : > { %248 = vst.msk [vmem:[#allocation2 + $0x49] sm:$0xff] %vm144_vm0, %v9400_v4 }
  0x48   : > { %15450 = vst [vmem:[#allocation8_spill] sm:$0xff] %v9415_v7 }
  0x49   : > { %245 = vst.msk [vmem:[#allocation2 + $0x21] sm:$0xff] %vm144_vm0, %v9405_v5 }
  0x4a   : > { %15451 = vst [vmem:[#allocation9_spill] sm:$0xff] %v9420_v8 }
  0x4b   : > { %251 = vst.msk [vmem:[#allocation2 + $0x69] sm:$0xff] %vm144_vm0, %v9410_v6 }
  0x4c   : > { %15452 = vst [vmem:[#allocation10_spill] sm:$0xff] %v9425_v9  ;;  %v9442_v13 = vld [vmem:[#allocation2 + $0x19] sm:$0xff] }
  0x4d   : > { %246 = vst.msk [vmem:[#allocation2 + $0x31] sm:$0xff] %vm144_vm0, %v9415_v7  ;;  %408 = vrot.lane.b32.xlu1 %v9442_v13, %s9242_s11 }
  0x4e   : > { %15453 = vst [vmem:[#allocation11_spill] sm:$0xff] %v9430_v10  ;;  %v9451_v15 = vld [vmem:[#allocation2 + $0x49] sm:$0xff] }
  0x4f   : > { %249 = vst.msk [vmem:[#allocation2 + $0x51] sm:$0xff] %vm144_vm0, %v9420_v8  ;;  %416 = vrot.lane.b32.xlu0 %v9451_v15, %s9242_s11 }
  0x50   : > { %15454 = vst [vmem:[#allocation12_spill] sm:$0xff] %v9435_v11  ;;  %v9481_v21 = vld [vmem:[#allocation2 + $0x21] sm:$0xff] }
  0x51   : > { %254 = vst.msk [vmem:[#allocation2 + $0x91] sm:$0xff] %vm144_vm0, %v9425_v9 }
  0x52   : > { %15455 = vst [vmem:[#allocation13_spill] sm:$0xff] %v9440_v12  ;;  %v9485_v22 = vld [vmem:[#allocation2 + $0x69] sm:$0xff] }
  0x53   : > { %247 = vst.msk [vmem:[#allocation2 + $0x39] sm:$0xff] %vm144_vm0, %v9430_v10 }
  0x54   : > { %15456 = vst [vmem:[#allocation14_spill] sm:$0xff] %v9447_v14  ;;  %v9470_v19 = vld [vmem:[#allocation2 + $0x31] sm:$0xff] }
  0x55   : > { %252 = vst.msk [vmem:[#allocation2 + $0x79] sm:$0xff] %vm144_vm0, %v9435_v11  ;;  %412 = vrot.lane.b32.xlu2 %v9470_v19, %s9242_s11  ;;  %410 = vrot.lane.b32.xlu1 %v9481_v21, %s9242_s11  ;;  %v9660_v0 = vld [vmem:[#allocation2 + $0x30] sm:$0xff] }
  0x56   : > { %15457 = vst [vmem:[#allocation15_spill] sm:$0xff] %v9456_v16  ;;  %v9512_v27 = vld [vmem:[#allocation2 + $0x51] sm:$0xff] }
  0x57   : > { %257 = vst.msk [vmem:[#allocation2 + $0xb1] sm:$0xff] %vm144_vm0, %v9440_v12  ;;  %422 = vrot.lane.b32.xlu0 %v9485_v22, %s9242_s11 }
  0x58   : > { %15458 = vst [vmem:[#allocation16_spill] sm:$0xff] %v9463_v17  ;;  %v9514_v28 = vld [vmem:[#allocation2 + $0x91] sm:$0xff] }
  0x59   : > { %250 = vst.msk [vmem:[#allocation2 + $0x61] sm:$0xff] %vm144_vm0, %v9447_v14 }
  0x5a   : > { %15459 = vst [vmem:[#allocation17_spill] sm:$0xff] %v9468_v18  ;;  %v9504_v26 = vld [vmem:[#allocation2 + $0x39] sm:$0xff] }
  0x5b   : > { %255 = vst.msk [vmem:[#allocation2 + $0x99] sm:$0xff] %vm144_vm0, %v9456_v16  ;;  %v9754_v16 = vld [vmem:[#allocation2 + $0x6a] sm:$0xff] }
  0x5c   : > { %15460 = vst [vmem:[#allocation18_spill] sm:$0xff] %v9475_v20  ;;  %v9539_v33 = vld [vmem:[#allocation2 + $0x79] sm:$0xff] }
  0x5d   : > { %260 = vst.msk [vmem:[#allocation2 + $0xd9] sm:$0xff] %vm144_vm0, %v9463_v17  ;;  %414 = vrot.lane.b32.xlu2 %v9504_v26, %s9242_s11  ;;  %418 = vrot.lane.b32.xlu1 %v9512_v27, %s9242_s11  ;;  %v9729_v17 = vld [vmem:[#allocation2 + $0x50] sm:$0xff] }
  0x5e   : > { %253 = vst.msk [vmem:[#allocation2 + $0x81] sm:$0xff] %vm144_vm0, %v9468_v18  ;;  %v9541_v34 = vld [vmem:[#allocation2 + $0xb1] sm:$0xff] }
  0x5f   : > { %258 = vst.msk [vmem:[#allocation2 + $0xc1] sm:$0xff] %vm144_vm0, %v9475_v20  ;;  %428 = vrot.lane.b32.xlu0 %v9514_v28, %s9242_s11 }
  0x60   : > { %15461 = vst [vmem:[#allocation19_spill] sm:$0xff] %v9490_v23  ;;  %v9531_v32 = vld [vmem:[#allocation2 + $0x61] sm:$0xff] }
  0x61   : > { %15462 = vst [vmem:[#allocation20_spill] sm:$0xff] %v9493_v24 }
  0x62   : > { %263 = vst.msk [vmem:[#allocation2 + $0xf9] sm:$0xff] %vm144_vm0, %v9490_v23  ;;  %v9566_v39 = vld [vmem:[#allocation2 + $0x99] sm:$0xff]  ;;  %v9720_v23 = vld [vmem:[#allocation2 + $0x68] sm:$0xff] }
  0x63   : > { %15463 = vst [vmem:[#allocation21_spill] sm:$0xff] %v9500_v25  ;;  %v9777_v14 = vld [vmem:[#allocation2 + $0x92] sm:$0xff] }
  0x64   : > { %256 = vst.msk [vmem:[#allocation2 + $0xa9] sm:$0xff] %vm144_vm0, %v9493_v24  ;;  %v9568_v40 = vld [vmem:[#allocation2 + $0xd9] sm:$0xff] }
  0x65   : > { %261 = vst.msk [vmem:[#allocation2 + $0xe1] sm:$0xff] %vm144_vm0, %v9500_v25  ;;  %420 = vrot.lane.b32.xlu2 %v9531_v32, %s9242_s11  ;;  %424 = vrot.lane.b32.xlu1 %v9539_v33, %s9242_s11  ;;  %v9558_v38 = vld [vmem:[#allocation2 + $0x81] sm:$0xff]  ;;  %v9726_v25 = vld [vmem:[#allocation2 + $0x4a] sm:$0xff]  ;;  %v9750_v24 = vld [vmem:[#allocation2 + $0x78] sm:$0xff] }
  0x66   : > { %15464 = vst [vmem:[#allocation22_spill] sm:$0xff] %v9517_v29  ;;  %v9593_v45 = vld [vmem:[#allocation2 + $0xc1] sm:$0xff] }
  0x67   : > { %15465 = vst [vmem:[#allocation23_spill] sm:$0xff] %v9520_v30  ;;  %434 = vrot.lane.b32.xlu0 %v9541_v34, %s9242_s11 }
  0x68   : > { %266 = vst.msk [vmem:[#allocation2 + $0x121] sm:$0xff] %vm144_vm0, %v9517_v29  ;;  %v9715_v29 = vld [vmem:[#allocation2 + $0x7a] sm:$0xff] }
  0x69   : > { %15466 = vst [vmem:[#allocation24_spill] sm:$0xff] %v9527_v31  ;;  %v9595_v46 = vld [vmem:[#allocation2 + $0xf9] sm:$0xff] }
  0x6a   : > { %259 = vst.msk [vmem:[#allocation2 + $0xc9] sm:$0xff] %vm144_vm0, %v9520_v30  ;;  %v9741_v30 = vld [vmem:[#allocation2 + $0x9a] sm:$0xff] }
  0x6b   : > { %264 = vst.msk [vmem:[#allocation2 + $0x109] sm:$0xff] %vm144_vm0, %v9527_v31  ;;  %v9585_v44 = vld [vmem:[#allocation2 + $0xa9] sm:$0xff] }
  0x6c   : > { %15467 = vst [vmem:[#allocation25_spill] sm:$0xff] %v9544_v35  ;;  %v9615_v50 = vld [vmem:[#allocation2 + $0xe1] sm:$0xff]  ;;  %v9771_v11 = vld [vmem:[#allocation2 + $0xb0] sm:$0xff] }
  0x6d   : > { %15468 = vst [vmem:[#allocation26_spill] sm:$0xff] %v9547_v36  ;;  %426 = vrot.lane.b32.xlu2 %v9558_v38, %s9242_s11  ;;  %430 = vrot.lane.b32.xlu1 %v9566_v39, %s9242_s11  ;;  %v9748_v12 = vld [vmem:[#allocation2 + $0xa8] sm:$0xff] }
  0x6e   : > { %269 = vst.msk [vmem:[#allocation2 + $0x141] sm:$0xff] %vm144_vm0, %v9544_v35  ;;  %v9695_v35 = vld [vmem:[#allocation2 + $0x48] sm:$0xff] }
  0x6f   : > { %15469 = vst [vmem:[#allocation27_spill] sm:$0xff] %v9554_v37  ;;  %440 = vrot.lane.b32.xlu0 %v9568_v40, %s9242_s11  ;;  %v9617_v51 = vld [vmem:[#allocation2 + $0x121] sm:$0xff]  ;;  %v9789_v10 = vld [vmem:[#allocation2 + $0xaa] sm:$0xff] }
  0x70   : > { %262 = vst.msk [vmem:[#allocation2 + $0xf1] sm:$0xff] %vm144_vm0, %v9547_v36  ;;  %v9722_v36 = vld [vmem:[#allocation2 + $0x80] sm:$0xff] }
  0x71   : > { %267 = vst.msk [vmem:[#allocation2 + $0x129] sm:$0xff] %vm144_vm0, %v9554_v37  ;;  %v9609_v49 = vld [vmem:[#allocation2 + $0xc9] sm:$0xff]  ;;  %v9713_v37 = vld [vmem:[#allocation2 + $0x3a] sm:$0xff] }
  0x72   : > { %15470 = vst [vmem:[#allocation28_spill] sm:$0xff] %v9571_v41  ;;  %v9632_v54 = vld [vmem:[#allocation2 + $0x109] sm:$0xff] }
  0x73   : > { %15471 = vst [vmem:[#allocation29_spill] sm:$0xff] %v9574_v42  ;;  %v9766_v9 = vld [vmem:[#allocation2 + $0xc2] sm:$0xff] }
  0x74   : > { %272 = vst.msk [vmem:[#allocation2 + $0x169] sm:$0xff] %vm144_vm0, %v9571_v41  ;;  %v9677_v41 = vld [vmem:[#allocation2 + $0x38] sm:$0xff]  ;;  %v9773_v6 = vld [vmem:[#allocation2 + $0xc8] sm:$0xff] }
  0x75   : > { %15472 = vst [vmem:[#allocation30_spill] sm:$0xff] %v9581_v43  ;;  %432 = vrot.lane.b32.xlu2 %v9585_v44, %s9242_s11  ;;  %436 = vrot.lane.b32.xlu1 %v9593_v45, %s9242_s11  ;;  %v9634_v55 = vld [vmem:[#allocation2 + $0x141] sm:$0xff] }
  0x76   : > { %265 = vst.msk [vmem:[#allocation2 + $0x111] sm:$0xff] %vm144_vm0, %v9574_v42  ;;  %v9793_v7 = vld [vmem:[#allocation2 + $0xe2] sm:$0xff] }
  0x77   : > { %270 = vst.msk [vmem:[#allocation2 + $0x151] sm:$0xff] %vm144_vm0, %v9581_v43  ;;  %446 = vrot.lane.b32.xlu0 %v9595_v46, %s9242_s11  ;;  %v9628_v53 = vld [vmem:[#allocation2 + $0xf1] sm:$0xff] }
  0x78   : > { %15473 = vst [vmem:[#allocation31_spill] sm:$0xff] %v9598_v47  ;;  %v9644_v57 = vld [vmem:[#allocation2 + $0x129] sm:$0xff]  ;;  %v9691_v43 = vld [vmem:[#allocation2 + $0x52] sm:$0xff] }
  0x79   : > { %15474 = vst [vmem:[#allocation32_spill] sm:$0xff] %v9601_v48  ;;  %v9800_v3 = vld [vmem:[#allocation2 + $0xf0] sm:$0xff] }
  0x7a   : > { %268 = vst.msk [vmem:[#allocation2 + $0x139] sm:$0xff] %vm144_vm0, %v9598_v47  ;;  %v9701_v47 = vld [vmem:[#allocation2 + $0x22] sm:$0xff] }
  0x7b   : > { %273 = vst.msk [vmem:[#allocation2 + $0x171] sm:$0xff] %vm144_vm0, %v9601_v48  ;;  %v9646_v58 = vld [vmem:[#allocation2 + $0x169] sm:$0xff]  ;;  %v9673_v48 = vld [vmem:[#allocation2 + $0x32] sm:$0xff] }
  0x7c   : > { %15475 = vst [vmem:[#allocation33_spill] sm:$0xff] %v9620_v52 }
  0x7d   : > { %438 = vrot.lane.b32.xlu2 %v9609_v49, %s9242_s11  ;;  %442 = vrot.lane.b32.xlu1 %v9615_v50, %s9242_s11  ;;  %271 = vst.msk [vmem:[#allocation2 + $0x159] sm:$0xff] %vm144_vm0, %v9620_v52  ;;  %v9640_v56 = vld [vmem:[#allocation2 + $0x111] sm:$0xff]  ;;  %v9689_v52 = vld [vmem:[#allocation2 + $0x1a] sm:$0xff] }
  0x7e   : > { %v9656_v60 = vld [vmem:[#allocation2 + $0x151] sm:$0xff]  ;;  %308 = vst.msk [vmem:[#allocation3] sm:$0xff] %vm144_vm0, %v276_v63 }
  0x7f   : > { %452 = vrot.lane.b32.xlu0 %v9617_v51, %s9242_s11  ;;  %312 = vst.msk [vmem:[#allocation3 + $0x20] sm:$0xff] %vm144_vm0, %v9660_v0  ;;  %v9682_v63 = vld [vmem:[#allocation2 + $0x18] sm:$0xff] }
  0x80   : > { %15477 = vst [vmem:[#allocation35_spill] sm:$0xff] %v9673_v48 }
  0x81   : > { %v9652_v59 = vld [vmem:[#allocation2 + $0x139] sm:$0xff]  ;;  %313 = vst.msk [vmem:[#allocation3 + $0x28] sm:$0xff] %vm144_vm0, %v9677_v41 }
  0x82   : > { %v9671_v2 = vld [vmem:[#allocation2 + $0x171] sm:$0xff]  ;;  %310 = vst.msk [vmem:[#allocation3 + $0x10] sm:$0xff] %vm144_vm0, %v9682_v63 }
  0x83   : > { %15476 = vst [vmem:[#allocation34_spill] sm:$0xff] %v9671_v2 }
  0x84   : > { %v9663_v1 = vld [vmem:[#allocation2 + $0x159] sm:$0xff]  ;;  %15478 = vst [vmem:[#allocation36_spill] sm:$0xff] %v9689_v52 }
  0x85   : > { %444 = vrot.lane.b32.xlu2 %v9628_v53, %s9242_s11  ;;  %448 = vrot.lane.b32.xlu1 %v9632_v54, %s9242_s11  ;;  %15479 = vst [vmem:[#allocation37_spill] sm:$0xff] %v9691_v43 }
  0x86   : > { %15480 = vst [vmem:[#allocation38_spill] sm:$0xff] %v9701_v47 }
  0x87   : > { %458 = vrot.lane.b32.xlu0 %v9634_v55, %s9242_s11  ;;  %v405_v62 = vpop.permute.xlu0 %404  ;;  %314 = vst.msk [vmem:[#allocation3 + $0x30] sm:$0xff] %vm144_vm0, %v9695_v35 }
  0x88   : > { %501 = vst.msk [vmem:[#allocation3] sm:$0xff] %vm500_vm2, %v405_v62  ;;  %v533_v62 = vld [vmem:[#allocation2 + $0x2] sm:$0xff] }
  0x89   : > { %15481 = vst [vmem:[#allocation39_spill] sm:$0xff] %v9713_v37 }
  0x8a   : > { %15482 = vst [vmem:[#allocation40_spill] sm:$0xff] %v9715_v29 }
  0x8b   : > { %15483 = vst [vmem:[#allocation41_spill] sm:$0xff] %v9726_v25 }
  0x8c   : > { %317 = vst.msk [vmem:[#allocation3 + $0x48] sm:$0xff] %vm144_vm0, %v9720_v23 }
  0x8d   : > { %450 = vrot.lane.b32.xlu2 %v9640_v56, %s9242_s11  ;;  %454 = vrot.lane.b32.xlu1 %v9644_v57, %s9242_s11  ;;  %319 = vst.msk [vmem:[#allocation3 + $0x58] sm:$0xff] %vm144_vm0, %v9722_v36 }
  0x8e   : > { %315 = vst.msk [vmem:[#allocation3 + $0x38] sm:$0xff] %vm144_vm0, %v9729_v17 }
  0x8f   : > { %464 = vrot.lane.b32.xlu0 %v9646_v58, %s9242_s11  ;;  %15485 = vst [vmem:[#allocation43_spill] sm:$0xff] %v9741_v30 }
  0x90   : > { %15486 = vst [vmem:[#allocation44_spill] sm:$0xff] %v9754_v16 }
  0x91   : > { %322 = vst.msk [vmem:[#allocation3 + $0x70] sm:$0xff] %vm144_vm0, %v9748_v12 }
  0x92   : > { %318 = vst.msk [vmem:[#allocation3 + $0x50] sm:$0xff] %vm144_vm0, %v9750_v24 }
  0x93   : > { %15488 = vst [vmem:[#allocation46_spill] sm:$0xff] %v9766_v9 }
  0x94   : > { %15489 = vst [vmem:[#allocation47_spill] sm:$0xff] %v9777_v14 }
  0x95   : > { %456 = vrot.lane.b32.xlu2 %v9652_v59, %s9242_s11  ;;  %460 = vrot.lane.b32.xlu1 %v9656_v60, %s9242_s11  ;;  %323 = vst.msk [vmem:[#allocation3 + $0x78] sm:$0xff] %vm144_vm0, %v9771_v11 }
  0x96   : > { %325 = vst.msk [vmem:[#allocation3 + $0x88] sm:$0xff] %vm144_vm0, %v9773_v6 }
  0x97   : > { %599 = vrot.lane.b32.xlu0 %v534_v61, %s9243_s16  ;;  %v277_v61 = vld [vmem:[#allocation2 + $0x8] sm:$0xff]  ;;  %15490 = vst [vmem:[#allocation48_spill] sm:$0xff] %v9789_v10 }
  0x98   : > { %309 = vst.msk [vmem:[#allocation3 + $0x8] sm:$0xff] %vm144_vm0, %v277_v61  ;;  %v9697_v61 = vld [vmem:[#allocation2 + $0x60] sm:$0xff] }
  0x99   : > { %316 = vst.msk [vmem:[#allocation3 + $0x40] sm:$0xff] %vm144_vm0, %v9697_v61 }
  0x9a   : > { %15491 = vst [vmem:[#allocation49_spill] sm:$0xff] %v9793_v7 }
  0x9b   : > { %328 = vst.msk [vmem:[#allocation3 + $0xa0] sm:$0xff] %vm144_vm0, %v9800_v3 }
  0x9d   : > { %462 = vrot.lane.b32.xlu2 %v9663_v1, %s9242_s11  ;;  %466 = vrot.lane.b32.xlu1 %v9671_v2, %s9242_s11  ;;  %v9908_v2 = vld [vmem:[#allocation2 + $0x150] sm:$0xff] }
  0x9e   : > { %336 = vst.msk [vmem:[#allocation3 + $0xe0] sm:$0xff] %vm144_vm0, %v9908_v2 }
  0x9f   : > { %605 = vrot.lane.b32.xlu0 %v9673_v48, %s9243_s16  ;;  %v9881_v48 = vld [vmem:[#allocation2 + $0x158] sm:$0xff] }
  0xa0   : > { %337 = vst.msk [vmem:[#allocation3 + $0xe8] sm:$0xff] %vm144_vm0, %v9881_v48 }
  0xa5   : > { %597 = vrot.lane.b32.xlu2 %v533_v62, %s9243_s16  ;;  %601 = vrot.lane.b32.xlu1 %v9689_v52, %s9243_s16  ;;  %v9705_v62 = vld [vmem:[#allocation2 + $0x20] sm:$0xff]  ;;  %v9901_v52 = vld [vmem:[#allocation2 + $0x172] sm:$0xff] }
  0xa6   : > { %311 = vst.msk [vmem:[#allocation3 + $0x18] sm:$0xff] %vm144_vm0, %v9705_v62 }
  0xa7   : > { %611 = vrot.lane.b32.xlu0 %v9691_v43, %s9243_s16  ;;  %v9854_v43 = vld [vmem:[#allocation2 + $0x138] sm:$0xff]  ;;  %15503 = vst [vmem:[#allocation61_spill] sm:$0xff] %v9901_v52 }
  0xa8   : > { %334 = vst.msk [vmem:[#allocation3 + $0xd0] sm:$0xff] %vm144_vm0, %v9854_v43 }
  0xaa   : > { %v407_v31 = vpop.permute.xlu0 %406 }
  0xab   : > { %502 = vst.msk [vmem:[#allocation3 + $0x8] sm:$0xff] %vm500_vm2, %v407_v31  ;;  %v9746_v31 = vld [vmem:[#allocation2 + $0x90] sm:$0xff] }
  0xac   : > { %320 = vst.msk [vmem:[#allocation3 + $0x60] sm:$0xff] %vm144_vm0, %v9746_v31 }
  0xad   : > { %603 = vrot.lane.b32.xlu2 %v9701_v47, %s9243_s16  ;;  %607 = vrot.lane.b32.xlu1 %v9713_v37, %s9243_s16  ;;  %v9874_v37 = vld [vmem:[#allocation2 + $0x152] sm:$0xff] }
  0xae   : > { %15500 = vst [vmem:[#allocation58_spill] sm:$0xff] %v9874_v37  ;;  %v9927_v47 = vld [vmem:[#allocation2 + $0x170] sm:$0xff] }
  0xaf   : > { %v413_v42 = vpop.permute.xlu2 %412  ;;  %617 = vrot.lane.b32.xlu0 %v9715_v29, %s9243_s16  ;;  %v9827_v29 = vld [vmem:[#allocation2 + $0x110] sm:$0xff]  ;;  %339 = vst.msk [vmem:[#allocation3 + $0xf8] sm:$0xff] %vm144_vm0, %v9927_v47 }
  0xb0   : > { %505 = vst.msk [vmem:[#allocation3 + $0x20] sm:$0xff] %vm500_vm2, %v413_v42  ;;  %v9739_v42 = vld [vmem:[#allocation2 + $0x62] sm:$0xff] }
  0xb1   : > { %15484 = vst [vmem:[#allocation42_spill] sm:$0xff] %v9739_v42 }
  0xb2   : > { %331 = vst.msk [vmem:[#allocation3 + $0xb8] sm:$0xff] %vm144_vm0, %v9827_v29 }
  0xb5   : > { %609 = vrot.lane.b32.xlu2 %v9726_v25, %s9243_s16  ;;  %613 = vrot.lane.b32.xlu1 %v9739_v42, %s9243_s16  ;;  %v9847_v42 = vld [vmem:[#allocation2 + $0x12a] sm:$0xff] }
  0xb6   : > { %15497 = vst [vmem:[#allocation55_spill] sm:$0xff] %v9847_v42 }
  0xb7   : > { %v415_v20 = vpop.permute.xlu2 %414  ;;  %623 = vrot.lane.b32.xlu0 %v9741_v30, %s9243_s16  ;;  %v9820_v30 = vld [vmem:[#allocation2 + $0x10a] sm:$0xff] }
  0xb8   : > { %506 = vst.msk [vmem:[#allocation3 + $0x28] sm:$0xff] %vm500_vm2, %v415_v20  ;;  %v9764_v20 = vld [vmem:[#allocation2 + $0x82] sm:$0xff] }
  0xb9   : > { %15487 = vst [vmem:[#allocation45_spill] sm:$0xff] %v9764_v20 }
  0xba   : > { %15494 = vst [vmem:[#allocation52_spill] sm:$0xff] %v9820_v30 }
  0xbd   : > { %615 = vrot.lane.b32.xlu2 %v9754_v16, %s9243_s16  ;;  %619 = vrot.lane.b32.xlu1 %v9764_v20, %s9243_s16 }
  0xbf   : > { %v421_v18 = vpop.permute.xlu2 %420  ;;  %629 = vrot.lane.b32.xlu0 %v9766_v9, %s9243_s16  ;;  %v409_v8 = vpop.permute.xlu1 %408 }
  0xc0   : > { %509 = vst.msk [vmem:[#allocation3 + $0x40] sm:$0xff] %vm500_vm2, %v421_v18  ;;  %v9783_v18 = vld [vmem:[#allocation2 + $0x98] sm:$0xff] }
  0xc1   : > { %503 = vst.msk [vmem:[#allocation3 + $0x10] sm:$0xff] %vm500_vm2, %v409_v8  ;;  %v417_v4 = vpop.permute.xlu0 %416  ;;  %v9798_v8 = vld [vmem:[#allocation2 + $0xd8] sm:$0xff] }
  0xc2   : > { %507 = vst.msk [vmem:[#allocation3 + $0x30] sm:$0xff] %vm500_vm2, %v417_v4  ;;  %v9804_v4 = vld [vmem:[#allocation2 + $0xb2] sm:$0xff] }
  0xc3   : > { %321 = vst.msk [vmem:[#allocation3 + $0x68] sm:$0xff] %vm144_vm0, %v9783_v18 }
  0xc4   : > { %15492 = vst [vmem:[#allocation50_spill] sm:$0xff] %v9804_v4 }
  0xc5   : > { %621 = vrot.lane.b32.xlu2 %v9777_v14, %s9243_s16  ;;  %625 = vrot.lane.b32.xlu1 %v9789_v10, %s9243_s16  ;;  %326 = vst.msk [vmem:[#allocation3 + $0x90] sm:$0xff] %vm144_vm0, %v9798_v8 }
  0xc7   : > { %v427_v5 = vpop.permute.xlu2 %426  ;;  %635 = vrot.lane.b32.xlu0 %v9793_v7, %s9243_s16  ;;  %v411_v9 = vpop.permute.xlu1 %410  ;;  %v9816_v7 = vld [vmem:[#allocation2 + $0xca] sm:$0xff] }
  0xc8   : > { %512 = vst.msk [vmem:[#allocation3 + $0x58] sm:$0xff] %vm500_vm2, %v427_v5  ;;  %v9810_v5 = vld [vmem:[#allocation2 + $0xc0] sm:$0xff] }
  0xc9   : > { %504 = vst.msk [vmem:[#allocation3 + $0x18] sm:$0xff] %vm500_vm2, %v411_v9  ;;  %v423_v10 = vpop.permute.xlu0 %422  ;;  %v9825_v9 = vld [vmem:[#allocation2 + $0xf8] sm:$0xff] }
  0xca   : > { %510 = vst.msk [vmem:[#allocation3 + $0x48] sm:$0xff] %vm500_vm2, %v423_v10  ;;  %v9831_v10 = vld [vmem:[#allocation2 + $0xda] sm:$0xff] }
  0xcb   : > { %15493 = vst [vmem:[#allocation51_spill] sm:$0xff] %v9816_v7 }
  0xcc   : > { %324 = vst.msk [vmem:[#allocation3 + $0x80] sm:$0xff] %vm144_vm0, %v9810_v5 }
  0xcd   : > { %627 = vrot.lane.b32.xlu2 %v9804_v4, %s9243_s16  ;;  %631 = vrot.lane.b32.xlu1 %v9816_v7, %s9243_s16  ;;  %15495 = vst [vmem:[#allocation53_spill] sm:$0xff] %v9831_v10 }
  0xce   : > { %329 = vst.msk [vmem:[#allocation3 + $0xa8] sm:$0xff] %vm144_vm0, %v9825_v9 }
  0xcf   : > { %v433_v20 = vpop.permute.xlu2 %432  ;;  %641 = vrot.lane.b32.xlu0 %v9820_v30, %s9243_s16  ;;  %v419_v4 = vpop.permute.xlu1 %418  ;;  %v9843_v30 = vld [vmem:[#allocation2 + $0xf2] sm:$0xff] }
  0xd0   : > { %515 = vst.msk [vmem:[#allocation3 + $0x70] sm:$0xff] %vm500_vm2, %v433_v20  ;;  %v9837_v20 = vld [vmem:[#allocation2 + $0xe0] sm:$0xff] }
  0xd1   : > { %508 = vst.msk [vmem:[#allocation3 + $0x38] sm:$0xff] %vm500_vm2, %v419_v4  ;;  %v429_v7 = vpop.permute.xlu0 %428  ;;  %v9852_v4 = vld [vmem:[#allocation2 + $0x120] sm:$0xff] }
  0xd2   : > { %513 = vst.msk [vmem:[#allocation3 + $0x60] sm:$0xff] %vm500_vm2, %v429_v7  ;;  %v9858_v7 = vld [vmem:[#allocation2 + $0xfa] sm:$0xff] }
  0xd3   : > { %15496 = vst [vmem:[#allocation54_spill] sm:$0xff] %v9843_v30 }
  0xd4   : > { %327 = vst.msk [vmem:[#allocation3 + $0x98] sm:$0xff] %vm144_vm0, %v9837_v20 }
  0xd5   : > { %633 = vrot.lane.b32.xlu2 %v9831_v10, %s9243_s16  ;;  %637 = vrot.lane.b32.xlu1 %v9843_v30, %s9243_s16  ;;  %15498 = vst [vmem:[#allocation56_spill] sm:$0xff] %v9858_v7 }
  0xd6   : > { %332 = vst.msk [vmem:[#allocation3 + $0xc0] sm:$0xff] %vm144_vm0, %v9852_v4 }
  0xd7   : > { %v439_v14 = vpop.permute.xlu2 %438  ;;  %647 = vrot.lane.b32.xlu0 %v9847_v42, %s9243_s16  ;;  %v425_v10 = vpop.permute.xlu1 %424  ;;  %v9870_v42 = vld [vmem:[#allocation2 + $0x112] sm:$0xff] }
  0xd8   : > { %518 = vst.msk [vmem:[#allocation3 + $0x88] sm:$0xff] %vm500_vm2, %v439_v14  ;;  %v9864_v14 = vld [vmem:[#allocation2 + $0x108] sm:$0xff] }
  0xd9   : > { %511 = vst.msk [vmem:[#allocation3 + $0x50] sm:$0xff] %vm500_vm2, %v425_v10  ;;  %v435_v30 = vpop.permute.xlu0 %434  ;;  %v9879_v10 = vld [vmem:[#allocation2 + $0x140] sm:$0xff] }
  0xda   : > { %516 = vst.msk [vmem:[#allocation3 + $0x78] sm:$0xff] %vm500_vm2, %v435_v30  ;;  %v9885_v30 = vld [vmem:[#allocation2 + $0x122] sm:$0xff] }
  0xdb   : > { %15499 = vst [vmem:[#allocation57_spill] sm:$0xff] %v9870_v42 }
  0xdc   : > { %330 = vst.msk [vmem:[#allocation3 + $0xb0] sm:$0xff] %vm144_vm0, %v9864_v14 }
  0xdd   : > { %639 = vrot.lane.b32.xlu2 %v9858_v7, %s9243_s16  ;;  %643 = vrot.lane.b32.xlu1 %v9870_v42, %s9243_s16  ;;  %15501 = vst [vmem:[#allocation59_spill] sm:$0xff] %v9885_v30 }
  0xde   : > { %335 = vst.msk [vmem:[#allocation3 + $0xd8] sm:$0xff] %vm144_vm0, %v9879_v10 }
  0xdf   : > { %v445_v16 = vpop.permute.xlu2 %444  ;;  %653 = vrot.lane.b32.xlu0 %v9874_v37, %s9243_s16  ;;  %v431_v7 = vpop.permute.xlu1 %430  ;;  %v9897_v37 = vld [vmem:[#allocation2 + $0x13a] sm:$0xff] }
  0xe0   : > { %521 = vst.msk [vmem:[#allocation3 + $0xa0] sm:$0xff] %vm500_vm2, %v445_v16  ;;  %v9891_v16 = vld [vmem:[#allocation2 + $0x128] sm:$0xff] }
  0xe1   : > { %514 = vst.msk [vmem:[#allocation3 + $0x68] sm:$0xff] %vm500_vm2, %v431_v7  ;;  %v441_v42 = vpop.permute.xlu0 %440  ;;  %v9906_v7 = vld [vmem:[#allocation2 + $0x168] sm:$0xff] }
  0xe2   : > { %519 = vst.msk [vmem:[#allocation3 + $0x90] sm:$0xff] %vm500_vm2, %v441_v42  ;;  %v9912_v42 = vld [vmem:[#allocation2 + $0x142] sm:$0xff] }
  0xe3   : > { %15502 = vst [vmem:[#allocation60_spill] sm:$0xff] %v9897_v37 }
  0xe4   : > { %333 = vst.msk [vmem:[#allocation3 + $0xc8] sm:$0xff] %vm144_vm0, %v9891_v16 }
  0xe5   : > { %645 = vrot.lane.b32.xlu2 %v9885_v30, %s9243_s16  ;;  %649 = vrot.lane.b32.xlu1 %v9897_v37, %s9243_s16  ;;  %15504 = vst [vmem:[#allocation62_spill] sm:$0xff] %v9912_v42  ;;  %v9922_v37 = vld [vmem:[#allocation2 + $0x15a] sm:$0xff] }
  0xe6   : > { %338 = vst.msk [vmem:[#allocation3 + $0xf0] sm:$0xff] %vm144_vm0, %v9906_v7 }
  0xe7   : > { %v451_v25 = vpop.permute.xlu2 %450  ;;  %659 = vrot.lane.b32.xlu0 %v9901_v52, %s9243_s16  ;;  %v437_v30 = vpop.permute.xlu1 %436  ;;  %15505 = vst [vmem:[#allocation63_spill] sm:$0xff] %v9922_v37 }
  0xe8   : > { %524 = vst.msk [vmem:[#allocation3 + $0xb8] sm:$0xff] %vm500_vm2, %v451_v25 }
  0xe9   : > { %517 = vst.msk [vmem:[#allocation3 + $0x80] sm:$0xff] %vm500_vm2, %v437_v30  ;;  %v447_v25 = vpop.permute.xlu0 %446  ;;  %v9931_v30 = vld [vmem:[#allocation2 + $0x16a] sm:$0xff] }
  0xea   : > { %522 = vst.msk [vmem:[#allocation3 + $0xa8] sm:$0xff] %vm500_vm2, %v447_v25 }
  0xed   : > { %651 = vrot.lane.b32.xlu2 %v9912_v42, %s9243_s16  ;;  %655 = vrot.lane.b32.xlu1 %v9922_v37, %s9243_s16 }
  0xef   : > { %v457_v52 = vpop.permute.xlu2 %456  ;;  %794 = vrot.lane.b32.xlu0 %v9660_v0, %s9244_s17  ;;  %v443_v25 = vpop.permute.xlu1 %442 }
  0xf0   : > { %527 = vst.msk [vmem:[#allocation3 + $0xd0] sm:$0xff] %vm500_vm2, %v457_v52 }
  0xf1   : > { %520 = vst.msk [vmem:[#allocation3 + $0x98] sm:$0xff] %vm500_vm2, %v443_v25  ;;  %v453_v42 = vpop.permute.xlu0 %452 }
  0xf2   : > { %525 = vst.msk [vmem:[#allocation3 + $0xc0] sm:$0xff] %vm500_vm2, %v453_v42 }
  0xf5   : > { %657 = vrot.lane.b32.xlu2 %v9931_v30, %s9243_s16  ;;  %790 = vrot.lane.b32.xlu1 %v9682_v63, %s9244_s17 }
  0xf7   : > { %v463_v52 = vpop.permute.xlu2 %462  ;;  %800 = vrot.lane.b32.xlu0 %v9729_v17, %s9244_s17  ;;  %v449_v0 = vpop.permute.xlu1 %448 }
  0xf8   : > { %530 = vst.msk [vmem:[#allocation3 + $0xe8] sm:$0xff] %vm500_vm2, %v463_v52 }
  0xf9   : > { %523 = vst.msk [vmem:[#allocation3 + $0xb0] sm:$0xff] %vm500_vm2, %v449_v0  ;;  %v459_v37 = vpop.permute.xlu0 %458 }
  0xfa   : > { %528 = vst.msk [vmem:[#allocation3 + $0xd8] sm:$0xff] %vm500_vm2, %v459_v37 }
  0xfd   : > { %792 = vrot.lane.b32.xlu2 %v9705_v62, %s9244_s17  ;;  %796 = vrot.lane.b32.xlu1 %v9677_v41, %s9244_s17 }
  0xff   : > { %v598_v42 = vpop.permute.xlu2 %597  ;;  %806 = vrot.lane.b32.xlu0 %v9750_v24, %s9244_s17  ;;  %v455_v63 = vpop.permute.xlu1 %454 }
 0x100   : > { %694 = vst.msk [vmem:[#allocation3] sm:$0xff] %vm693_vm3, %v598_v42 }
 0x101   : > { %526 = vst.msk [vmem:[#allocation3 + $0xc8] sm:$0xff] %vm500_vm2, %v455_v63  ;;  %v465_v25 = vpop.permute.xlu0 %464 }
 0x102   : > { %531 = vst.msk [vmem:[#allocation3 + $0xf0] sm:$0xff] %vm500_vm2, %v465_v25  ;;  %v9986_v25 = vld [vmem:[%s9386_s15 + $0xf0] sm:$0xff] }
 0x103   : > { %15506 = vst [vmem:[#allocation64_spill] sm:$0xff] %v9986_v25 }
 0x104   : > { %274 = vst.msk [vmem:[#allocation2 + $0x181] sm:$0xff] %vm144_vm0, %v9986_v25  ;;  %v2705_v25 = vld [vmem:[#allocation2 + $0x2] sm:$0xff] }
 0x105   : > { %798 = vrot.lane.b32.xlu2 %v9695_v35, %s9244_s17  ;;  %802 = vrot.lane.b32.xlu1 %v9697_v61, %s9244_s17 }
 0x107   : > { %v604_v37 = vpop.permute.xlu2 %603  ;;  %812 = vrot.lane.b32.xlu0 %v9783_v18, %s9244_s17  ;;  %v461_v41 = vpop.permute.xlu1 %460 }
 0x108   : > { %697 = vst.msk [vmem:[#allocation3 + $0x18] sm:$0xff] %vm693_vm3, %v604_v37 }
 0x109   : > { %529 = vst.msk [vmem:[#allocation3 + $0xe0] sm:$0xff] %vm500_vm2, %v461_v41  ;;  %v600_v62 = vpop.permute.xlu0 %599  ;;  %v9996_v41 = vld [vmem:[%s9386_s15 + $0xf8] sm:$0xff] }
 0x10a   : > { %695 = vst.msk [vmem:[#allocation3 + $0x8] sm:$0xff] %vm693_vm3, %v600_v62 }
 0x10b   : > { %15507 = vst [vmem:[#allocation65_spill] sm:$0xff] %v9996_v41 }
 0x10c   : > { %275 = vst.msk [vmem:[#allocation2 + $0x189] sm:$0xff] %vm144_vm0, %v9996_v41  ;;  %v2706_v41 = vld [vmem:[#allocation2 + $0xa] sm:$0xff] }
 0x10d   : > { %804 = vrot.lane.b32.xlu2 %v9720_v23, %s9244_s17  ;;  %808 = vrot.lane.b32.xlu1 %v9722_v36, %s9244_s17 }
 0x10f   : > { %v610_v52 = vpop.permute.xlu2 %609  ;;  %818 = vrot.lane.b32.xlu0 %v9810_v5, %s9244_s17  ;;  %v467_v35 = vpop.permute.xlu1 %466 }
 0x110   : > { %700 = vst.msk [vmem:[#allocation3 + $0x30] sm:$0xff] %vm693_vm3, %v610_v52 }
 0x111   : > { %532 = vst.msk [vmem:[#allocation3 + $0xf8] sm:$0xff] %vm500_vm2, %v467_v35  ;;  %v606_v61 = vpop.permute.xlu0 %605 }
 0x112   : > { %698 = vst.msk [vmem:[#allocation3 + $0x20] sm:$0xff] %vm693_vm3, %v606_v61 }
 0x115   : > { %810 = vrot.lane.b32.xlu2 %v9746_v31, %s9244_s17  ;;  %814 = vrot.lane.b32.xlu1 %v9748_v12, %s9244_s17 }
 0x117   : > { %v616_v0 = vpop.permute.xlu2 %615  ;;  %824 = vrot.lane.b32.xlu0 %v9837_v20, %s9244_s17  ;;  %v602_v36 = vpop.permute.xlu1 %601 }
 0x118   : > { %703 = vst.msk [vmem:[#allocation3 + $0x48] sm:$0xff] %vm693_vm3, %v616_v0 }
 0x119   : > { %696 = vst.msk [vmem:[#allocation3 + $0x10] sm:$0xff] %vm693_vm3, %v602_v36  ;;  %v612_v42 = vpop.permute.xlu0 %611 }
 0x11a   : > { %701 = vst.msk [vmem:[#allocation3 + $0x38] sm:$0xff] %vm693_vm3, %v612_v42 }
 0x11d   : > { %816 = vrot.lane.b32.xlu2 %v9771_v11, %s9244_s17  ;;  %820 = vrot.lane.b32.xlu1 %v9773_v6, %s9244_s17 }
 0x11f   : > { %v622_v63 = vpop.permute.xlu2 %621  ;;  %830 = vrot.lane.b32.xlu0 %v9864_v14, %s9244_s17  ;;  %v608_v12 = vpop.permute.xlu1 %607 }
 0x120   : > { %706 = vst.msk [vmem:[#allocation3 + $0x60] sm:$0xff] %vm693_vm3, %v622_v63 }
 0x121   : > { %699 = vst.msk [vmem:[#allocation3 + $0x28] sm:$0xff] %vm693_vm3, %v608_v12  ;;  %v618_v37 = vpop.permute.xlu0 %617  ;;  %v10039_v12 = vld [vmem:[#allocation2 + $0x180] sm:$0xff] }
 0x122   : > { %704 = vst.msk [vmem:[#allocation3 + $0x50] sm:$0xff] %vm693_vm3, %v618_v37 }
 0x125   : > { %822 = vrot.lane.b32.xlu2 %v9798_v8, %s9244_s17  ;;  %826 = vrot.lane.b32.xlu1 %v9800_v3, %s9244_s17 }
 0x127   : > { %v628_v6 = vpop.permute.xlu2 %627  ;;  %836 = vrot.lane.b32.xlu0 %v9891_v16, %s9244_s17  ;;  %v614_v62 = vpop.permute.xlu1 %613 }
 0x128   : > { %709 = vst.msk [vmem:[#allocation3 + $0x78] sm:$0xff] %vm693_vm3, %v628_v6 }
 0x129   : > { %702 = vst.msk [vmem:[#allocation3 + $0x40] sm:$0xff] %vm693_vm3, %v614_v62  ;;  %v624_v52 = vpop.permute.xlu0 %623 }
 0x12a   : > { %707 = vst.msk [vmem:[#allocation3 + $0x68] sm:$0xff] %vm693_vm3, %v624_v52 }
 0x12d   : > { %828 = vrot.lane.b32.xlu2 %v9825_v9, %s9244_s17  ;;  %832 = vrot.lane.b32.xlu1 %v9827_v29, %s9244_s17 }
 0x12f   : > { %v634_v35 = vpop.permute.xlu2 %633  ;;  %842 = vrot.lane.b32.xlu0 %v9908_v2, %s9244_s17  ;;  %v620_v3 = vpop.permute.xlu1 %619 }
 0x130   : > { %712 = vst.msk [vmem:[#allocation3 + $0x90] sm:$0xff] %vm693_vm3, %v634_v35 }
 0x131   : > { %705 = vst.msk [vmem:[#allocation3 + $0x58] sm:$0xff] %vm693_vm3, %v620_v3  ;;  %v630_v61 = vpop.permute.xlu0 %629 }
 0x132   : > { %710 = vst.msk [vmem:[#allocation3 + $0x80] sm:$0xff] %vm693_vm3, %v630_v61 }
 0x135   : > { %834 = vrot.lane.b32.xlu2 %v9852_v4, %s9244_s17  ;;  %838 = vrot.lane.b32.xlu1 %v9854_v43, %s9244_s17 }
 0x137   : > { %v640_v0 = vpop.permute.xlu2 %639  ;;  %848 = vrot.lane.b32.xlu0 %v9927_v47, %s9244_s17  ;;  %v626_v29 = vpop.permute.xlu1 %625 }
 0x138   : > { %715 = vst.msk [vmem:[#allocation3 + $0xa8] sm:$0xff] %vm693_vm3, %v640_v0 }
 0x139   : > { %708 = vst.msk [vmem:[#allocation3 + $0x70] sm:$0xff] %vm693_vm3, %v626_v29  ;;  %v636_v36 = vpop.permute.xlu0 %635 }
 0x13a   : > { %713 = vst.msk [vmem:[#allocation3 + $0x98] sm:$0xff] %vm693_vm3, %v636_v36  ;;  %v15509_v36 = vld [vmem:[#allocation34_spill] sm:$0xff] }
 0x13d   : > { %840 = vrot.lane.b32.xlu2 %v9879_v10, %s9244_s17  ;;  %844 = vrot.lane.b32.xlu1 %v9881_v48, %s9244_s17 }
 0x13f   : > { %v646_v42 = vpop.permute.xlu2 %645  ;;  %983 = vrot.lane.b32.xlu0 %v9442_v13, %s9245_s18  ;;  %v632_v43 = vpop.permute.xlu1 %631  ;;  %v10046_v13 = vld [vmem:[#allocation2 + $0x188] sm:$0xff] }
 0x140   : > { %718 = vst.msk [vmem:[#allocation3 + $0xc0] sm:$0xff] %vm693_vm3, %v646_v42 }
 0x141   : > { %711 = vst.msk [vmem:[#allocation3 + $0x88] sm:$0xff] %vm693_vm3, %v632_v43  ;;  %v642_v63 = vpop.permute.xlu0 %641 }
 0x142   : > { %716 = vst.msk [vmem:[#allocation3 + $0xb0] sm:$0xff] %vm693_vm3, %v642_v63 }
 0x145   : > { %846 = vrot.lane.b32.xlu2 %v9906_v7, %s9244_s17  ;;  %850 = vrot.lane.b32.xlu1 %v10039_v12, %s9244_s17 }
 0x147   : > { %v652_v37 = vpop.permute.xlu2 %651  ;;  %989 = vrot.lane.b32.xlu0 %v9504_v26, %s9245_s18  ;;  %v638_v6 = vpop.permute.xlu1 %637 }
 0x148   : > { %721 = vst.msk [vmem:[#allocation3 + $0xd8] sm:$0xff] %vm693_vm3, %v652_v37  ;;  %v15511_v37 = vld [vmem:[#allocation36_spill] sm:$0xff] }
 0x149   : > { %714 = vst.msk [vmem:[#allocation3 + $0xa0] sm:$0xff] %vm693_vm3, %v638_v6  ;;  %v648_v62 = vpop.permute.xlu0 %647 }
 0x14a   : > { %719 = vst.msk [vmem:[#allocation3 + $0xc8] sm:$0xff] %vm693_vm3, %v648_v62  ;;  %v15512_v62 = vld [vmem:[#allocation35_spill] sm:$0xff] }
 0x14d   : > { %852 = vrot.lane.b32.xlu2 %v10046_v13, %s9244_s17  ;;  %985 = vrot.lane.b32.xlu1 %v9481_v21, %s9245_s18 }
 0x14f   : > { %v658_v52 = vpop.permute.xlu2 %657  ;;  %995 = vrot.lane.b32.xlu0 %v9531_v32, %s9245_s18  ;;  %v644_v26 = vpop.permute.xlu1 %643 }
 0x150   : > { %724 = vst.msk [vmem:[#allocation3 + $0xf0] sm:$0xff] %vm693_vm3, %v658_v52  ;;  %v15513_v52 = vld [vmem:[#allocation44_spill] sm:$0xff] }
 0x151   : > { %717 = vst.msk [vmem:[#allocation3 + $0xb8] sm:$0xff] %vm693_vm3, %v644_v26  ;;  %v654_v35 = vpop.permute.xlu0 %653 }
 0x152   : > { %722 = vst.msk [vmem:[#allocation3 + $0xe0] sm:$0xff] %vm693_vm3, %v654_v35 }
 0x155   : > { %987 = vrot.lane.b32.xlu2 %v9470_v19, %s9245_s18  ;;  %991 = vrot.lane.b32.xlu1 %v9451_v15, %s9245_s18 }
 0x157   : > { %v793_v3 = vpop.permute.xlu2 %792  ;;  %1001 = vrot.lane.b32.xlu0 %v9558_v38, %s9245_s18  ;;  %v650_v21 = vpop.permute.xlu1 %649 }
 0x158   : > { %888 = vst.msk [vmem:[#allocation3 + $0x8] sm:$0xff] %vm886_vm4, %v793_v3  ;;  %v15514_v3 = vld [vmem:[#allocation39_spill] sm:$0xff] }
 0x159   : > { %720 = vst.msk [vmem:[#allocation3 + $0xd0] sm:$0xff] %vm693_vm3, %v650_v21  ;;  %v660_v32 = vpop.permute.xlu0 %659 }
 0x15a   : > { %725 = vst.msk [vmem:[#allocation3 + $0xf8] sm:$0xff] %vm693_vm3, %v660_v32  ;;  %v15515_v32 = vld [vmem:[#allocation37_spill] sm:$0xff] }
 0x15d   : > { %993 = vrot.lane.b32.xlu2 %v9512_v27, %s9245_s18  ;;  %997 = vrot.lane.b32.xlu1 %v9485_v22, %s9245_s18 }
 0x15f   : > { %v799_v19 = vpop.permute.xlu2 %798  ;;  %1007 = vrot.lane.b32.xlu0 %v9585_v44, %s9245_s18  ;;  %v656_v15 = vpop.permute.xlu1 %655 }
 0x160   : > { %891 = vst.msk [vmem:[#allocation3 + $0x20] sm:$0xff] %vm886_vm4, %v799_v19  ;;  %v15516_v19 = vld [vmem:[#allocation47_spill] sm:$0xff] }
 0x161   : > { %723 = vst.msk [vmem:[#allocation3 + $0xe8] sm:$0xff] %vm693_vm3, %v656_v15  ;;  %v795_v38 = vpop.permute.xlu0 %794 }
 0x162   : > { %889 = vst.msk [vmem:[#allocation3 + $0x10] sm:$0xff] %vm886_vm4, %v795_v38 }
 0x165   : > { %999 = vrot.lane.b32.xlu2 %v9539_v33, %s9245_s18  ;;  %1003 = vrot.lane.b32.xlu1 %v9514_v28, %s9245_s18 }
 0x167   : > { %v805_v61 = vpop.permute.xlu2 %804  ;;  %1013 = vrot.lane.b32.xlu0 %v9609_v49, %s9245_s18  ;;  %v791_v22 = vpop.permute.xlu1 %790 }
 0x168   : > { %894 = vst.msk [vmem:[#allocation3 + $0x38] sm:$0xff] %vm886_vm4, %v805_v61  ;;  %v15517_v61 = vld [vmem:[#allocation42_spill] sm:$0xff] }
 0x169   : > { %887 = vst.msk [vmem:[#allocation3] sm:$0xff] %vm886_vm4, %v791_v22  ;;  %v801_v27 = vpop.permute.xlu0 %800 }
 0x16a   : > { %892 = vst.msk [vmem:[#allocation3 + $0x28] sm:$0xff] %vm886_vm4, %v801_v27  ;;  %v15518_v27 = vld [vmem:[#allocation40_spill] sm:$0xff] }
 0x16d   : > { %1005 = vrot.lane.b32.xlu2 %v9566_v39, %s9245_s18  ;;  %1009 = vrot.lane.b32.xlu1 %v9541_v34, %s9245_s18 }
 0x16f   : > { %v811_v44 = vpop.permute.xlu2 %810  ;;  %1019 = vrot.lane.b32.xlu0 %v9628_v53, %s9245_s18  ;;  %v797_v28 = vpop.permute.xlu1 %796 }
 0x170   : > { %897 = vst.msk [vmem:[#allocation3 + $0x50] sm:$0xff] %vm886_vm4, %v811_v44  ;;  %v15519_v44 = vld [vmem:[#allocation50_spill] sm:$0xff] }
 0x171   : > { %890 = vst.msk [vmem:[#allocation3 + $0x18] sm:$0xff] %vm886_vm4, %v797_v28  ;;  %v807_v33 = vpop.permute.xlu0 %806 }
 0x172   : > { %895 = vst.msk [vmem:[#allocation3 + $0x40] sm:$0xff] %vm886_vm4, %v807_v33 }
 0x175   : > { %1011 = vrot.lane.b32.xlu2 %v9593_v45, %s9245_s18  ;;  %1015 = vrot.lane.b32.xlu1 %v9568_v40, %s9245_s18 }
 0x177   : > { %v817_v49 = vpop.permute.xlu2 %816  ;;  %1025 = vrot.lane.b32.xlu0 %v9640_v56, %s9245_s18  ;;  %v803_v34 = vpop.permute.xlu1 %802 }
 0x178   : > { %900 = vst.msk [vmem:[#allocation3 + $0x68] sm:$0xff] %vm886_vm4, %v817_v49  ;;  %v15520_v49 = vld [vmem:[#allocation45_spill] sm:$0xff] }
 0x179   : > { %893 = vst.msk [vmem:[#allocation3 + $0x30] sm:$0xff] %vm886_vm4, %v803_v34  ;;  %v813_v39 = vpop.permute.xlu0 %812 }
 0x17a   : > { %898 = vst.msk [vmem:[#allocation3 + $0x58] sm:$0xff] %vm886_vm4, %v813_v39  ;;  %v15521_v39 = vld [vmem:[#allocation43_spill] sm:$0xff] }
 0x17d   : > { %1017 = vrot.lane.b32.xlu2 %v9615_v50, %s9245_s18  ;;  %1021 = vrot.lane.b32.xlu1 %v9595_v46, %s9245_s18 }
 0x17f   : > { %v823_v53 = vpop.permute.xlu2 %822  ;;  %1031 = vrot.lane.b32.xlu0 %v9652_v59, %s9245_s18  ;;  %v809_v40 = vpop.permute.xlu1 %808  ;;  %v10124_v59 = vld [vmem:[#allocation2 + $0x181] sm:$0xff] }
 0x180   : > { %903 = vst.msk [vmem:[#allocation3 + $0x80] sm:$0xff] %vm886_vm4, %v823_v53  ;;  %v15522_v53 = vld [vmem:[#allocation53_spill] sm:$0xff] }
 0x181   : > { %896 = vst.msk [vmem:[#allocation3 + $0x48] sm:$0xff] %vm886_vm4, %v809_v40  ;;  %v819_v45 = vpop.permute.xlu0 %818 }
 0x182   : > { %901 = vst.msk [vmem:[#allocation3 + $0x70] sm:$0xff] %vm886_vm4, %v819_v45 }
 0x185   : > { %1023 = vrot.lane.b32.xlu2 %v9632_v54, %s9245_s18  ;;  %1027 = vrot.lane.b32.xlu1 %v9617_v51, %s9245_s18 }
 0x187   : > { %v829_v56 = vpop.permute.xlu2 %828  ;;  %1037 = vrot.lane.b32.xlu0 %v9663_v1, %s9245_s18  ;;  %v815_v46 = vpop.permute.xlu1 %814 }
 0x188   : > { %906 = vst.msk [vmem:[#allocation3 + $0x98] sm:$0xff] %vm886_vm4, %v829_v56  ;;  %v15523_v56 = vld [vmem:[#allocation48_spill] sm:$0xff] }
 0x189   : > { %899 = vst.msk [vmem:[#allocation3 + $0x60] sm:$0xff] %vm886_vm4, %v815_v46  ;;  %v825_v50 = vpop.permute.xlu0 %824 }
 0x18a   : > { %904 = vst.msk [vmem:[#allocation3 + $0x88] sm:$0xff] %vm886_vm4, %v825_v50  ;;  %v15524_v50 = vld [vmem:[#allocation46_spill] sm:$0xff] }
 0x18d   : > { %1029 = vrot.lane.b32.xlu2 %v9644_v57, %s9245_s18  ;;  %1033 = vrot.lane.b32.xlu1 %v9634_v55, %s9245_s18  ;;  %v15508_v55 = vld [vmem:[#allocation38_spill] sm:$0xff] }
 0x18f   : > { %v835_v54 = vpop.permute.xlu2 %834  ;;  %1043 = vrot.lane.b32.xlu0 %v10124_v59, %s9245_s18  ;;  %v821_v51 = vpop.permute.xlu1 %820 }
 0x190   : > { %909 = vst.msk [vmem:[#allocation3 + $0xb0] sm:$0xff] %vm886_vm4, %v835_v54  ;;  %v15525_v54 = vld [vmem:[#allocation56_spill] sm:$0xff] }
 0x191   : > { %902 = vst.msk [vmem:[#allocation3 + $0x78] sm:$0xff] %vm886_vm4, %v821_v51  ;;  %v831_v1 = vpop.permute.xlu0 %830 }
 0x192   : > { %907 = vst.msk [vmem:[#allocation3 + $0xa0] sm:$0xff] %vm886_vm4, %v831_v1 }
 0x195   : > { %1035 = vrot.lane.b32.xlu2 %v9656_v60, %s9245_s18  ;;  %1039 = vrot.lane.b32.xlu1 %v9646_v58, %s9245_s18  ;;  %v10144_v60 = vld [vmem:[#allocation2 + $0x189] sm:$0xff]  ;;  %v15510_v58 = vld [vmem:[#allocation41_spill] sm:$0xff] }
 0x197   : > { %v841_v57 = vpop.permute.xlu2 %840  ;;  %1178 = vrot.lane.b32.xlu0 %v15508_v55, %s9246_s19  ;;  %v827_v0 = vpop.permute.xlu1 %826 }
 0x198   : > { %912 = vst.msk [vmem:[#allocation3 + $0xc8] sm:$0xff] %vm886_vm4, %v841_v57  ;;  %v15526_v57 = vld [vmem:[#allocation51_spill] sm:$0xff] }
 0x199   : > { %905 = vst.msk [vmem:[#allocation3 + $0x90] sm:$0xff] %vm886_vm4, %v827_v0  ;;  %v837_v29 = vpop.permute.xlu0 %836  ;;  %v15527_v0 = vld [vmem:[#allocation49_spill] sm:$0xff] }
 0x19a   : > { %910 = vst.msk [vmem:[#allocation3 + $0xb8] sm:$0xff] %vm886_vm4, %v837_v29  ;;  %v15528_v29 = vld [vmem:[#allocation59_spill] sm:$0xff] }
 0x19d   : > { %1041 = vrot.lane.b32.xlu2 %v15509_v36, %s9245_s18  ;;  %1045 = vrot.lane.b32.xlu1 %v10144_v60, %s9245_s18 }
 0x19f   : > { %v847_v42 = vpop.permute.xlu2 %846  ;;  %1184 = vrot.lane.b32.xlu0 %v15510_v58, %s9246_s19  ;;  %v833_v43 = vpop.permute.xlu1 %832  ;;  %v15529_v58 = vld [vmem:[#allocation54_spill] sm:$0xff] }
 0x1a0   : > { %915 = vst.msk [vmem:[#allocation3 + $0xe0] sm:$0xff] %vm886_vm4, %v847_v42 }
 0x1a1   : > { %908 = vst.msk [vmem:[#allocation3 + $0xa8] sm:$0xff] %vm886_vm4, %v833_v43  ;;  %v843_v63 = vpop.permute.xlu0 %842 }
 0x1a2   : > { %913 = vst.msk [vmem:[#allocation3 + $0xd0] sm:$0xff] %vm886_vm4, %v843_v63  ;;  %v15530_v63 = vld [vmem:[#allocation52_spill] sm:$0xff] }
 0x1a5   : > { %1176 = vrot.lane.b32.xlu2 %v15511_v37, %s9246_s19  ;;  %1180 = vrot.lane.b32.xlu1 %v15512_v62, %s9246_s19  ;;  %v15531_v37 = vld [vmem:[#allocation62_spill] sm:$0xff] }
 0x1a7   : > { %v853_v6 = vpop.permute.xlu2 %852  ;;  %1190 = vrot.lane.b32.xlu0 %v15513_v52, %s9246_s19  ;;  %v839_v26 = vpop.permute.xlu1 %838  ;;  %v15532_v52 = vld [vmem:[#allocation57_spill] sm:$0xff] }
 0x1a8   : > { %918 = vst.msk [vmem:[#allocation3 + $0xf8] sm:$0xff] %vm886_vm4, %v853_v6 }
 0x1a9   : > { %911 = vst.msk [vmem:[#allocation3 + $0xc0] sm:$0xff] %vm886_vm4, %v839_v26  ;;  %v849_v35 = vpop.permute.xlu0 %848 }
 0x1aa   : > { %916 = vst.msk [vmem:[#allocation3 + $0xe8] sm:$0xff] %vm886_vm4, %v849_v35  ;;  %v15533_v35 = vld [vmem:[#allocation55_spill] sm:$0xff] }
 0x1ad   : > { %1182 = vrot.lane.b32.xlu2 %v15514_v3, %s9246_s19  ;;  %1186 = vrot.lane.b32.xlu1 %v15515_v32, %s9246_s19  ;;  %v15534_v32 = vld [vmem:[#allocation60_spill] sm:$0xff] }
 0x1af   : > { %v988_v21 = vpop.permute.xlu2 %987  ;;  %1196 = vrot.lane.b32.xlu0 %v15516_v19, %s9246_s19  ;;  %v845_v15 = vpop.permute.xlu1 %844  ;;  %v10227_v19 = vld [vmem:[#allocation2 + $0x18a] sm:$0xff] }
 0x1b0   : > { %1082 = vst.msk [vmem:[#allocation3 + $0x10] sm:$0xff] %vm1079_vm5, %v988_v21 }
 0x1b1   : > { %914 = vst.msk [vmem:[#allocation3 + $0xd8] sm:$0xff] %vm886_vm4, %v845_v15  ;;  %v984_v38 = vpop.permute.xlu0 %983 }
 0x1b2   : > { %1080 = vst.msk [vmem:[#allocation3] sm:$0xff] %vm1079_vm5, %v984_v38  ;;  %v15535_v38 = vld [vmem:[#allocation58_spill] sm:$0xff] }
 0x1b5   : > { %1188 = vrot.lane.b32.xlu2 %v15517_v61, %s9246_s19  ;;  %1192 = vrot.lane.b32.xlu1 %v15518_v27, %s9246_s19  ;;  %v1308_v27 = vld [vmem:[#allocation2 + $0x48] sm:$0xff] }
 0x1b7   : > { %v994_v22 = vpop.permute.xlu2 %993  ;;  %1202 = vrot.lane.b32.xlu0 %v15519_v44, %s9246_s19  ;;  %v851_v28 = vpop.permute.xlu1 %850 }
 0x1b8   : > { %1085 = vst.msk [vmem:[#allocation3 + $0x28] sm:$0xff] %vm1079_vm5, %v994_v22  ;;  %v15536_v22 = vld [vmem:[#allocation63_spill] sm:$0xff] }
 0x1b9   : > { %917 = vst.msk [vmem:[#allocation3 + $0xf0] sm:$0xff] %vm886_vm4, %v851_v28  ;;  %v990_v33 = vpop.permute.xlu0 %989  ;;  %v15537_v28 = vld [vmem:[#allocation61_spill] sm:$0xff] }
 0x1ba   : > { %1083 = vst.msk [vmem:[#allocation3 + $0x18] sm:$0xff] %vm1079_vm5, %v990_v33  ;;  %v10242_v33 = vld [vmem:[#allocation2 + $0x182] sm:$0xff] }
 0x1bd   : > { %1194 = vrot.lane.b32.xlu2 %v15520_v49, %s9246_s19  ;;  %1198 = vrot.lane.b32.xlu1 %v15521_v39, %s9246_s19  ;;  %v1306_v39 = vld [vmem:[#allocation2 + $0x30] sm:$0xff] }
 0x1bf   : > { %v1000_v34 = vpop.permute.xlu2 %999  ;;  %1208 = vrot.lane.b32.xlu0 %v15522_v53, %s9246_s19  ;;  %v986_v40 = vpop.permute.xlu1 %985 }
 0x1c0   : > { %1088 = vst.msk [vmem:[#allocation3 + $0x40] sm:$0xff] %vm1079_vm5, %v1000_v34 }
 0x1c1   : > { %1081 = vst.msk [vmem:[#allocation3 + $0x8] sm:$0xff] %vm1079_vm5, %v986_v40  ;;  %v996_v45 = vpop.permute.xlu0 %995  ;;  %v1307_v40 = vld [vmem:[#allocation2 + $0x38] sm:$0xff] }
 0x1c2   : > { %1086 = vst.msk [vmem:[#allocation3 + $0x30] sm:$0xff] %vm1079_vm5, %v996_v45 }
 0x1c5   : > { %1200 = vrot.lane.b32.xlu2 %v15523_v56, %s9246_s19  ;;  %1204 = vrot.lane.b32.xlu1 %v15524_v50, %s9246_s19 }
 0x1c7   : > { %v1006_v46 = vpop.permute.xlu2 %1005  ;;  %1214 = vrot.lane.b32.xlu0 %v15525_v54, %s9246_s19  ;;  %v992_v51 = vpop.permute.xlu1 %991 }
 0x1c8   : > { %1091 = vst.msk [vmem:[#allocation3 + $0x58] sm:$0xff] %vm1079_vm5, %v1006_v46 }
 0x1c9   : > { %1084 = vst.msk [vmem:[#allocation3 + $0x20] sm:$0xff] %vm1079_vm5, %v992_v51  ;;  %v1002_v1 = vpop.permute.xlu0 %1001 }
 0x1ca   : > { %1089 = vst.msk [vmem:[#allocation3 + $0x48] sm:$0xff] %vm1079_vm5, %v1002_v1 }
 0x1cd   : > { %1206 = vrot.lane.b32.xlu2 %v15526_v57, %s9246_s19  ;;  %1210 = vrot.lane.b32.xlu1 %v15527_v0, %s9246_s19 }
 0x1cf   : > { %v1012_v55 = vpop.permute.xlu2 %1011  ;;  %1220 = vrot.lane.b32.xlu0 %v15528_v29, %s9246_s19  ;;  %v998_v36 = vpop.permute.xlu1 %997 }
 0x1d0   : > { %1094 = vst.msk [vmem:[#allocation3 + $0x70] sm:$0xff] %vm1079_vm5, %v1012_v55 }
 0x1d1   : > { %1087 = vst.msk [vmem:[#allocation3 + $0x38] sm:$0xff] %vm1079_vm5, %v998_v36  ;;  %v1008_v42 = vpop.permute.xlu0 %1007 }
 0x1d2   : > { %1092 = vst.msk [vmem:[#allocation3 + $0x60] sm:$0xff] %vm1079_vm5, %v1008_v42 }
 0x1d5   : > { %1212 = vrot.lane.b32.xlu2 %v15529_v58, %s9246_s19  ;;  %1216 = vrot.lane.b32.xlu1 %v15530_v63, %s9246_s19 }
 0x1d7   : > { %v1018_v43 = vpop.permute.xlu2 %1017  ;;  %1226 = vrot.lane.b32.xlu0 %v15531_v37, %s9246_s19  ;;  %v1004_v6 = vpop.permute.xlu1 %1003 }
 0x1d8   : > { %1097 = vst.msk [vmem:[#allocation3 + $0x88] sm:$0xff] %vm1079_vm5, %v1018_v43 }
 0x1d9   : > { %1090 = vst.msk [vmem:[#allocation3 + $0x50] sm:$0xff] %vm1079_vm5, %v1004_v6  ;;  %v1014_v62 = vpop.permute.xlu0 %1013 }
 0x1da   : > { %1095 = vst.msk [vmem:[#allocation3 + $0x78] sm:$0xff] %vm1079_vm5, %v1014_v62  ;;  %v1499_v62 = vld [vmem:[#allocation2 + $0x31] sm:$0xff] }
 0x1dd   : > { %1218 = vrot.lane.b32.xlu2 %v15532_v52, %s9246_s19  ;;  %1222 = vrot.lane.b32.xlu1 %v15533_v35, %s9246_s19 }
 0x1df   : > { %v1024_v26 = vpop.permute.xlu2 %1023  ;;  %1232 = vrot.lane.b32.xlu0 %v9931_v30, %s9246_s19  ;;  %v1010_v3 = vpop.permute.xlu1 %1009 }
 0x1e0   : > { %1100 = vst.msk [vmem:[#allocation3 + $0xa0] sm:$0xff] %vm1079_vm5, %v1024_v26  ;;  %v1502_v26 = vld [vmem:[#allocation2 + $0x51] sm:$0xff] }
 0x1e1   : > { %1093 = vst.msk [vmem:[#allocation3 + $0x68] sm:$0xff] %vm1079_vm5, %v1010_v3  ;;  %v1020_v21 = vpop.permute.xlu0 %1019 }
 0x1e2   : > { %1098 = vst.msk [vmem:[#allocation3 + $0x90] sm:$0xff] %vm1079_vm5, %v1020_v21 }
 0x1e5   : > { %1224 = vrot.lane.b32.xlu2 %v15534_v32, %s9246_s19  ;;  %1228 = vrot.lane.b32.xlu1 %v15535_v38, %s9246_s19  ;;  %v1500_v32 = vld [vmem:[#allocation2 + $0x39] sm:$0xff]  ;;  %v1501_v38 = vld [vmem:[#allocation2 + $0x49] sm:$0xff] }
 0x1e7   : > { %v1030_v15 = vpop.permute.xlu2 %1029  ;;  %1238 = vrot.lane.b32.xlu0 %v10227_v19, %s9246_s19  ;;  %v1016_v30 = vpop.permute.xlu1 %1015 }
 0x1e8   : > { %1103 = vst.msk [vmem:[#allocation3 + $0xb8] sm:$0xff] %vm1079_vm5, %v1030_v15 }
 0x1e9   : > { %1096 = vst.msk [vmem:[#allocation3 + $0x80] sm:$0xff] %vm1079_vm5, %v1016_v30  ;;  %v1026_v61 = vpop.permute.xlu0 %1025 }
 0x1ea   : > { %1101 = vst.msk [vmem:[#allocation3 + $0xa8] sm:$0xff] %vm1079_vm5, %v1026_v61 }
 0x1ed   : > { %1230 = vrot.lane.b32.xlu2 %v15536_v22, %s9246_s19  ;;  %1234 = vrot.lane.b32.xlu1 %v15537_v28, %s9246_s19  ;;  %v1503_v22 = vld [vmem:[#allocation2 + $0x61] sm:$0xff]  ;;  %v1504_v28 = vld [vmem:[#allocation2 + $0x69] sm:$0xff] }
 0x1ef   : > { %v1036_v44 = vpop.permute.xlu2 %1035  ;;  %1374 = vrot.lane.b32.xlu0 %v1308_v27, %s9247_s20  ;;  %v1022_v49 = vpop.permute.xlu1 %1021  ;;  %v1508_v27 = vld [vmem:[#allocation2 + $0x99] sm:$0xff] }
 0x1f0   : > { %1106 = vst.msk [vmem:[#allocation3 + $0xd0] sm:$0xff] %vm1079_vm5, %v1036_v44 }
 0x1f1   : > { %1099 = vst.msk [vmem:[#allocation3 + $0x98] sm:$0xff] %vm1079_vm5, %v1022_v49  ;;  %v1032_v34 = vpop.permute.xlu0 %1031 }
 0x1f2   : > { %1104 = vst.msk [vmem:[#allocation3 + $0xc0] sm:$0xff] %vm1079_vm5, %v1032_v34 }
 0x1f5   : > { %1236 = vrot.lane.b32.xlu2 %v10242_v33, %s9246_s19  ;;  %1370 = vrot.lane.b32.xlu1 %v1306_v39, %s9247_s20  ;;  %v1506_v39 = vld [vmem:[#allocation2 + $0x81] sm:$0xff] }
 0x1f7   : > { %v1042_v53 = vpop.permute.xlu2 %1041  ;;  %1380 = vrot.lane.b32.xlu0 %v9720_v23, %s9247_s20  ;;  %v1028_v45 = vpop.permute.xlu1 %1027  ;;  %v1310_v23 = vld [vmem:[#allocation2 + $0x60] sm:$0xff] }
 0x1f8   : > { %1109 = vst.msk [vmem:[#allocation3 + $0xe8] sm:$0xff] %vm1079_vm5, %v1042_v53  ;;  %v1511_v53 = vld [vmem:[#allocation2 + $0xc1] sm:$0xff] }
 0x1f9   : > { %1102 = vst.msk [vmem:[#allocation3 + $0xb0] sm:$0xff] %vm1079_vm5, %v1028_v45  ;;  %v1038_v56 = vpop.permute.xlu0 %1037  ;;  %v1507_v45 = vld [vmem:[#allocation2 + $0x91] sm:$0xff] }
 0x1fa   : > { %1107 = vst.msk [vmem:[#allocation3 + $0xd8] sm:$0xff] %vm1079_vm5, %v1038_v56 }
 0x1fd   : > { %1372 = vrot.lane.b32.xlu2 %v1307_v40, %s9247_s20  ;;  %1376 = vrot.lane.b32.xlu1 %v9729_v17, %s9247_s20  ;;  %v1313_v17 = vld [vmem:[#allocation2 + $0x80] sm:$0xff] }
 0x1ff   : > { %v1177_v46 = vpop.permute.xlu2 %1176  ;;  %1386 = vrot.lane.b32.xlu0 %v9746_v31, %s9247_s20  ;;  %v1034_v50 = vpop.permute.xlu1 %1033 }
 0x200   : > { %1273 = vst.msk [vmem:[#allocation3] sm:$0xff] %vm1272_vm6, %v1177_v46 }
 0x201   : > { %1105 = vst.msk [vmem:[#allocation3 + $0xc8] sm:$0xff] %vm1079_vm5, %v1034_v50  ;;  %v1044_v54 = vpop.permute.xlu0 %1043  ;;  %v1514_v50 = vld [vmem:[#allocation2 + $0xe1] sm:$0xff] }
 0x202   : > { %1110 = vst.msk [vmem:[#allocation3 + $0xf0] sm:$0xff] %vm1079_vm5, %v1044_v54 }
 0x205   : > { %1378 = vrot.lane.b32.xlu2 %v1310_v23, %s9247_s20  ;;  %1382 = vrot.lane.b32.xlu1 %v9750_v24, %s9247_s20  ;;  %v1316_v24 = vld [vmem:[#allocation2 + $0xa8] sm:$0xff] }
 0x206   : > { %v1509_v23 = vld [vmem:[#allocation2 + $0xa9] sm:$0xff] }
 0x207   : > { %v1183_v51 = vpop.permute.xlu2 %1182  ;;  %1392 = vrot.lane.b32.xlu0 %v9771_v11, %s9247_s20  ;;  %v1040_v31 = vpop.permute.xlu1 %1039 }
 0x208   : > { %1276 = vst.msk [vmem:[#allocation3 + $0x18] sm:$0xff] %vm1272_vm6, %v1183_v51  ;;  %v1510_v51 = vld [vmem:[#allocation2 + $0xb1] sm:$0xff] }
 0x209   : > { %1108 = vst.msk [vmem:[#allocation3 + $0xe0] sm:$0xff] %vm1079_vm5, %v1040_v31  ;;  %v1179_v1 = vpop.permute.xlu0 %1178 }
 0x20a   : > { %1274 = vst.msk [vmem:[#allocation3 + $0x8] sm:$0xff] %vm1272_vm6, %v1179_v1  ;;  %v1512_v1 = vld [vmem:[#allocation2 + $0xc9] sm:$0xff] }
 0x20d   : > { %1384 = vrot.lane.b32.xlu2 %v1313_v17, %s9247_s20  ;;  %1388 = vrot.lane.b32.xlu1 %v9783_v18, %s9247_s20  ;;  %v1319_v18 = vld [vmem:[#allocation2 + $0xc8] sm:$0xff] }
 0x20f   : > { %v1189_v57 = vpop.permute.xlu2 %1188  ;;  %1398 = vrot.lane.b32.xlu0 %v9798_v8, %s9247_s20  ;;  %v1046_v11 = vpop.permute.xlu1 %1045 }
 0x210   : > { %1279 = vst.msk [vmem:[#allocation3 + $0x30] sm:$0xff] %vm1272_vm6, %v1189_v57  ;;  %v1517_v57 = vld [vmem:[#allocation2 + $0x109] sm:$0xff] }
 0x211   : > { %1111 = vst.msk [vmem:[#allocation3 + $0xf8] sm:$0xff] %vm1079_vm5, %v1046_v11  ;;  %v1185_v55 = vpop.permute.xlu0 %1184  ;;  %v1513_v11 = vld [vmem:[#allocation2 + $0xd9] sm:$0xff] }
 0x212   : > { %1277 = vst.msk [vmem:[#allocation3 + $0x20] sm:$0xff] %vm1272_vm6, %v1185_v55 }
 0x215   : > { %1390 = vrot.lane.b32.xlu2 %v1316_v24, %s9247_s20  ;;  %1394 = vrot.lane.b32.xlu1 %v9810_v5, %s9247_s20  ;;  %v1322_v5 = vld [vmem:[#allocation2 + $0xf0] sm:$0xff] }
 0x217   : > { %v1195_v0 = vpop.permute.xlu2 %1194  ;;  %1404 = vrot.lane.b32.xlu0 %v9825_v9, %s9247_s20  ;;  %v1181_v8 = vpop.permute.xlu1 %1180 }
 0x218   : > { %1282 = vst.msk [vmem:[#allocation3 + $0x48] sm:$0xff] %vm1272_vm6, %v1195_v0 }
 0x219   : > { %1275 = vst.msk [vmem:[#allocation3 + $0x10] sm:$0xff] %vm1272_vm6, %v1181_v8  ;;  %v1191_v29 = vpop.permute.xlu0 %1190  ;;  %v1520_v8 = vld [vmem:[#allocation2 + $0x129] sm:$0xff] }
 0x21a   : > { %1280 = vst.msk [vmem:[#allocation3 + $0x38] sm:$0xff] %vm1272_vm6, %v1191_v29 }
 0x21d   : > { %1396 = vrot.lane.b32.xlu2 %v1319_v18, %s9247_s20  ;;  %1400 = vrot.lane.b32.xlu1 %v9837_v20, %s9247_s20  ;;  %v1325_v20 = vld [vmem:[#allocation2 + $0x110] sm:$0xff] }
 0x21e   : > { %v1515_v18 = vld [vmem:[#allocation2 + $0xf1] sm:$0xff] }
 0x21f   : > { %v1201_v36 = vpop.permute.xlu2 %1200  ;;  %1410 = vrot.lane.b32.xlu0 %v9852_v4, %s9247_s20  ;;  %v1187_v9 = vpop.permute.xlu1 %1186 }
 0x220   : > { %1285 = vst.msk [vmem:[#allocation3 + $0x60] sm:$0xff] %vm1272_vm6, %v1201_v36  ;;  %v1516_v36 = vld [vmem:[#allocation2 + $0xf9] sm:$0xff] }
 0x221   : > { %1278 = vst.msk [vmem:[#allocation3 + $0x28] sm:$0xff] %vm1272_vm6, %v1187_v9  ;;  %v1197_v42 = vpop.permute.xlu0 %1196 }
 0x222   : > { %1283 = vst.msk [vmem:[#allocation3 + $0x50] sm:$0xff] %vm1272_vm6, %v1197_v42  ;;  %v1518_v42 = vld [vmem:[#allocation2 + $0x111] sm:$0xff] }
 0x225   : > { %1402 = vrot.lane.b32.xlu2 %v1322_v5, %s9247_s20  ;;  %1406 = vrot.lane.b32.xlu1 %v9864_v14, %s9247_s20  ;;  %v1328_v14 = vld [vmem:[#allocation2 + $0x138] sm:$0xff] }
 0x227   : > { %v1207_v58 = vpop.permute.xlu2 %1206  ;;  %1416 = vrot.lane.b32.xlu0 %v9879_v10, %s9247_s20  ;;  %v1193_v4 = vpop.permute.xlu1 %1192 }
 0x228   : > { %1288 = vst.msk [vmem:[#allocation3 + $0x78] sm:$0xff] %vm1272_vm6, %v1207_v58  ;;  %v1523_v58 = vld [vmem:[#allocation2 + $0x151] sm:$0xff] }
 0x229   : > { %1281 = vst.msk [vmem:[#allocation3 + $0x40] sm:$0xff] %vm1272_vm6, %v1193_v4  ;;  %v1203_v43 = vpop.permute.xlu0 %1202  ;;  %v1519_v4 = vld [vmem:[#allocation2 + $0x121] sm:$0xff] }
 0x22a   : > { %1286 = vst.msk [vmem:[#allocation3 + $0x68] sm:$0xff] %vm1272_vm6, %v1203_v43 }
 0x22d   : > { %1408 = vrot.lane.b32.xlu2 %v1325_v20, %s9247_s20  ;;  %1412 = vrot.lane.b32.xlu1 %v9891_v16, %s9247_s20 }
 0x22f   : > { %v1213_v63 = vpop.permute.xlu2 %1212  ;;  %1422 = vrot.lane.b32.xlu0 %v9906_v7, %s9247_s20  ;;  %v1199_v10 = vpop.permute.xlu1 %1198 }
 0x230   : > { %1291 = vst.msk [vmem:[#allocation3 + $0x90] sm:$0xff] %vm1272_vm6, %v1213_v63 }
 0x231   : > { %1284 = vst.msk [vmem:[#allocation3 + $0x58] sm:$0xff] %vm1272_vm6, %v1199_v10  ;;  %v1209_v37 = vpop.permute.xlu0 %1208  ;;  %v1526_v10 = vld [vmem:[#allocation2 + $0x171] sm:$0xff] }
 0x232   : > { %1289 = vst.msk [vmem:[#allocation3 + $0x80] sm:$0xff] %vm1272_vm6, %v1209_v37 }
 0x235   : > { %1414 = vrot.lane.b32.xlu2 %v1328_v14, %s9247_s20  ;;  %1418 = vrot.lane.b32.xlu1 %v9908_v2, %s9247_s20  ;;  %v1521_v14 = vld [vmem:[#allocation2 + $0x139] sm:$0xff] }
 0x237   : > { %v1219_v6 = vpop.permute.xlu2 %1218  ;;  %1428 = vrot.lane.b32.xlu0 %v10046_v13, %s9247_s20  ;;  %v1205_v16 = vpop.permute.xlu1 %1204 }
 0x238   : > { %1294 = vst.msk [vmem:[#allocation3 + $0xa8] sm:$0xff] %vm1272_vm6, %v1219_v6  ;;  %v1522_v6 = vld [vmem:[#allocation2 + $0x141] sm:$0xff] }
 0x239   : > { %1287 = vst.msk [vmem:[#allocation3 + $0x70] sm:$0xff] %vm1272_vm6, %v1205_v16  ;;  %v1215_v7 = vpop.permute.xlu0 %1214 }
 0x23a   : > { %1292 = vst.msk [vmem:[#allocation3 + $0x98] sm:$0xff] %vm1272_vm6, %v1215_v7 }
 0x23d   : > { %1420 = vrot.lane.b32.xlu2 %v9881_v48, %s9247_s20  ;;  %1424 = vrot.lane.b32.xlu1 %v9927_v47, %s9247_s20  ;;  %v1336_v48 = vld [vmem:[#allocation2 + $0x198] sm:$0xff]  ;;  %v1337_v47 = vld [vmem:[#allocation2 + $0x1a0] sm:$0xff] }
 0x23f   : > { %v1225_v52 = vpop.permute.xlu2 %1224  ;;  %1563 = vrot.lane.b32.xlu0 %v1499_v62, %s9248_s21  ;;  %v1211_v2 = vpop.permute.xlu1 %1210  ;;  %v1524_v62 = vld [vmem:[#allocation2 + $0x159] sm:$0xff] }
 0x240   : > { %1297 = vst.msk [vmem:[#allocation3 + $0xc0] sm:$0xff] %vm1272_vm6, %v1225_v52  ;;  %v1529_v52 = vld [vmem:[#allocation2 + $0x199] sm:$0xff] }
 0x241   : > { %1290 = vst.msk [vmem:[#allocation3 + $0x88] sm:$0xff] %vm1272_vm6, %v1211_v2  ;;  %v1221_v13 = vpop.permute.xlu0 %1220 }
 0x242   : > { %1295 = vst.msk [vmem:[#allocation3 + $0xb0] sm:$0xff] %vm1272_vm6, %v1221_v13  ;;  %v1525_v13 = vld [vmem:[#allocation2 + $0x169] sm:$0xff] }
 0x245   : > { %1426 = vrot.lane.b32.xlu2 %v10039_v12, %s9247_s20  ;;  %1430 = vrot.lane.b32.xlu1 %v1336_v48, %s9247_s20  ;;  %v1505_v12 = vld [vmem:[#allocation2 + $0x79] sm:$0xff] }
 0x247   : > { %v1231_v35 = vpop.permute.xlu2 %1230  ;;  %1569 = vrot.lane.b32.xlu0 %v1502_v26, %s9248_s21  ;;  %v1217_v3 = vpop.permute.xlu1 %1216 }
 0x248   : > { %1300 = vst.msk [vmem:[#allocation3 + $0xd8] sm:$0xff] %vm1272_vm6, %v1231_v35  ;;  %v1693_v35 = vld [vmem:[#allocation2 + $0x3a] sm:$0xff] }
 0x249   : > { %1293 = vst.msk [vmem:[#allocation3 + $0xa0] sm:$0xff] %vm1272_vm6, %v1217_v3  ;;  %v1227_v21 = vpop.permute.xlu0 %1226 }
 0x24a   : > { %1298 = vst.msk [vmem:[#allocation3 + $0xc8] sm:$0xff] %vm1272_vm6, %v1227_v21 }
 0x24d   : > { %1432 = vrot.lane.b32.xlu2 %v1337_v47, %s9247_s20  ;;  %1565 = vrot.lane.b32.xlu1 %v1500_v32, %s9248_s21  ;;  %v1530_v32 = vld [vmem:[#allocation2 + $0x1a1] sm:$0xff] }
 0x24f   : > { %v1237_v15 = vpop.permute.xlu2 %1236  ;;  %1575 = vrot.lane.b32.xlu0 %v1505_v12, %s9248_s21  ;;  %v1223_v30 = vpop.permute.xlu1 %1222 }
 0x250   : > { %1303 = vst.msk [vmem:[#allocation3 + $0xf0] sm:$0xff] %vm1272_vm6, %v1237_v15  ;;  %v1696_v15 = vld [vmem:[#allocation2 + $0x62] sm:$0xff] }
 0x251   : > { %1296 = vst.msk [vmem:[#allocation3 + $0xb8] sm:$0xff] %vm1272_vm6, %v1223_v30  ;;  %v1233_v61 = vpop.permute.xlu0 %1232 }
 0x252   : > { %1301 = vst.msk [vmem:[#allocation3 + $0xe0] sm:$0xff] %vm1272_vm6, %v1233_v61  ;;  %v1694_v61 = vld [vmem:[#allocation2 + $0x4a] sm:$0xff] }
 0x255   : > { %1567 = vrot.lane.b32.xlu2 %v1501_v38, %s9248_s21  ;;  %1571 = vrot.lane.b32.xlu1 %v1503_v22, %s9248_s21  ;;  %v1695_v22 = vld [vmem:[#allocation2 + $0x52] sm:$0xff] }
 0x257   : > { %v1373_v44 = vpop.permute.xlu2 %1372  ;;  %1581 = vrot.lane.b32.xlu0 %v1508_v27, %s9248_s21  ;;  %v1229_v49 = vpop.permute.xlu1 %1228 }
 0x258   : > { %1468 = vst.msk [vmem:[#allocation3 + $0x8] sm:$0xff] %vm1466_vm7, %v1373_v44 }
 0x259   : > { %1299 = vst.msk [vmem:[#allocation3 + $0xd0] sm:$0xff] %vm1272_vm6, %v1229_v49  ;;  %v1239_v34 = vpop.permute.xlu0 %1238  ;;  %v1697_v49 = vld [vmem:[#allocation2 + $0x6a] sm:$0xff] }
 0x25a   : > { %1304 = vst.msk [vmem:[#allocation3 + $0xf8] sm:$0xff] %vm1272_vm6, %v1239_v34 }
 0x25d   : > { %1573 = vrot.lane.b32.xlu2 %v1504_v28, %s9248_s21  ;;  %1577 = vrot.lane.b32.xlu1 %v1506_v39, %s9248_s21  ;;  %v1699_v28 = vld [vmem:[#allocation2 + $0x82] sm:$0xff] }
 0x25f   : > { %v1379_v40 = vpop.permute.xlu2 %1378  ;;  %1587 = vrot.lane.b32.xlu0 %v1511_v53, %s9248_s21  ;;  %v1235_v56 = vpop.permute.xlu1 %1234 }
 0x260   : > { %1471 = vst.msk [vmem:[#allocation3 + $0x20] sm:$0xff] %vm1466_vm7, %v1379_v40  ;;  %v1700_v40 = vld [vmem:[#allocation2 + $0x92] sm:$0xff] }
 0x261   : > { %1302 = vst.msk [vmem:[#allocation3 + $0xe8] sm:$0xff] %vm1272_vm6, %v1235_v56  ;;  %v1375_v46 = vpop.permute.xlu0 %1374 }
 0x262   : > { %1469 = vst.msk [vmem:[#allocation3 + $0x10] sm:$0xff] %vm1466_vm7, %v1375_v46 }
 0x265   : > { %1579 = vrot.lane.b32.xlu2 %v1507_v45, %s9248_s21  ;;  %1583 = vrot.lane.b32.xlu1 %v1509_v23, %s9248_s21  ;;  %v1698_v23 = vld [vmem:[#allocation2 + $0x7a] sm:$0xff] }
 0x267   : > { %v1385_v54 = vpop.permute.xlu2 %1384  ;;  %1593 = vrot.lane.b32.xlu0 %v1514_v50, %s9248_s21  ;;  %v1371_v17 = vpop.permute.xlu1 %1370 }
 0x268   : > { %1474 = vst.msk [vmem:[#allocation3 + $0x38] sm:$0xff] %vm1466_vm7, %v1385_v54 }
 0x269   : > { %1467 = vst.msk [vmem:[#allocation3] sm:$0xff] %vm1466_vm7, %v1371_v17  ;;  %v1381_v31 = vpop.permute.xlu0 %1380  ;;  %v1702_v17 = vld [vmem:[#allocation2 + $0xaa] sm:$0xff] }
 0x26a   : > { %1472 = vst.msk [vmem:[#allocation3 + $0x28] sm:$0xff] %vm1466_vm7, %v1381_v31 }
 0x26d   : > { %1585 = vrot.lane.b32.xlu2 %v1510_v51, %s9248_s21  ;;  %1589 = vrot.lane.b32.xlu1 %v1512_v1, %s9248_s21 }
 0x26f   : > { %v1391_v24 = vpop.permute.xlu2 %1390  ;;  %1599 = vrot.lane.b32.xlu0 %v1517_v57, %s9248_s21  ;;  %v1377_v55 = vpop.permute.xlu1 %1376 }
 0x270   : > { %1477 = vst.msk [vmem:[#allocation3 + $0x50] sm:$0xff] %vm1466_vm7, %v1391_v24  ;;  %v1703_v24 = vld [vmem:[#allocation2 + $0xb2] sm:$0xff] }
 0x271   : > { %1470 = vst.msk [vmem:[#allocation3 + $0x18] sm:$0xff] %vm1466_vm7, %v1377_v55  ;;  %v1387_v0 = vpop.permute.xlu0 %1386 }
 0x272   : > { %1475 = vst.msk [vmem:[#allocation3 + $0x40] sm:$0xff] %vm1466_vm7, %v1387_v0 }
 0x275   : > { %1591 = vrot.lane.b32.xlu2 %v1513_v11, %s9248_s21  ;;  %1595 = vrot.lane.b32.xlu1 %v1515_v18, %s9248_s21  ;;  %v1701_v18 = vld [vmem:[#allocation2 + $0x9a] sm:$0xff] }
 0x277   : > { %v1397_v29 = vpop.permute.xlu2 %1396  ;;  %1605 = vrot.lane.b32.xlu0 %v1520_v8, %s9248_s21  ;;  %v1383_v5 = vpop.permute.xlu1 %1382 }
 0x278   : > { %1480 = vst.msk [vmem:[#allocation3 + $0x68] sm:$0xff] %vm1466_vm7, %v1397_v29 }
 0x279   : > { %1473 = vst.msk [vmem:[#allocation3 + $0x30] sm:$0xff] %vm1466_vm7, %v1383_v5  ;;  %v1393_v9 = vpop.permute.xlu0 %1392  ;;  %v1705_v5 = vld [vmem:[#allocation2 + $0xca] sm:$0xff] }
 0x27a   : > { %1478 = vst.msk [vmem:[#allocation3 + $0x58] sm:$0xff] %vm1466_vm7, %v1393_v9 }
 0x27d   : > { %1597 = vrot.lane.b32.xlu2 %v1516_v36, %s9248_s21  ;;  %1601 = vrot.lane.b32.xlu1 %v1518_v42, %s9248_s21 }
 0x27f   : > { %v1403_v20 = vpop.permute.xlu2 %1402  ;;  %1611 = vrot.lane.b32.xlu0 %v1523_v58, %s9248_s21  ;;  %v1389_v43 = vpop.permute.xlu1 %1388 }
 0x280   : > { %1483 = vst.msk [vmem:[#allocation3 + $0x80] sm:$0xff] %vm1466_vm7, %v1403_v20  ;;  %v1706_v20 = vld [vmem:[#allocation2 + $0xda] sm:$0xff] }
 0x281   : > { %1476 = vst.msk [vmem:[#allocation3 + $0x48] sm:$0xff] %vm1466_vm7, %v1389_v43  ;;  %v1399_v63 = vpop.permute.xlu0 %1398 }
 0x282   : > { %1481 = vst.msk [vmem:[#allocation3 + $0x70] sm:$0xff] %vm1466_vm7, %v1399_v63 }
 0x285   : > { %1603 = vrot.lane.b32.xlu2 %v1519_v4, %s9248_s21  ;;  %1607 = vrot.lane.b32.xlu1 %v1521_v14, %s9248_s21  ;;  %v236_v4 = vld [vmem:[%s15297_s1 + $0x20] sm:$0xf] }
 0x286   : > { %9059 = vmatpush.msk.msra.mxu0 %vm2014_vm9, %v236_v4 }
 0x287   : > { %v1409_v37 = vpop.permute.xlu2 %1408  ;;  %1617 = vrot.lane.b32.xlu0 %v1526_v10, %s9248_s21  ;;  %v1395_v16 = vpop.permute.xlu1 %1394  ;;  %v235_v10 = vld [vmem:[%s15297_s1 + $0x18] sm:$0xff] }
 0x288   : > { %1486 = vst.msk [vmem:[#allocation3 + $0x98] sm:$0xff] %vm1466_vm7, %v1409_v37  ;;  %v234_v37 = vld [vmem:[%s15297_s1 + $0x10] sm:$0xff]  ;;  %2030 = vmatpush.msra.mxu0 %v235_v10  ;;  %v1722_v10 = vld [vmem:[#allocation2 + $0x19a] sm:$0xff] }
 0x289   : > { %1479 = vst.msk [vmem:[#allocation3 + $0x60] sm:$0xff] %vm1466_vm7, %v1395_v16  ;;  %v1405_v7 = vpop.permute.xlu0 %1404  ;;  %v233_v16 = vld [vmem:[%s15297_s1 + $0x8] sm:$0xff] }
 0x28a   : > { %1484 = vst.msk [vmem:[#allocation3 + $0x88] sm:$0xff] %vm1466_vm7, %v1405_v7  ;;  %2031 = vmatpush.msra.mxu0 %v234_v37 }
 0x28c   : > { %2032 = vmatpush.msra.mxu0 %v233_v16 }
 0x28d   : > { %1609 = vrot.lane.b32.xlu2 %v1522_v6, %s9248_s21  ;;  %1613 = vrot.lane.b32.xlu1 %v1524_v62, %s9248_s21  ;;  %v1704_v6 = vld [vmem:[#allocation2 + $0xc2] sm:$0xff] }
 0x28e   : > { %v232_v62 = vld [vmem:[%s15297_s1] sm:$0xff] }
 0x28f   : > { %v1415_v2 = vpop.permute.xlu2 %1414  ;;  %1623 = vrot.lane.b32.xlu0 %v1529_v52, %s9248_s21  ;;  %v1401_v48 = vpop.permute.xlu1 %1400  ;;  %2033 = vmatpush.msra.mxu0 %v232_v62 }
 0x290   : > { %1489 = vst.msk [vmem:[#allocation3 + $0xb0] sm:$0xff] %vm1466_vm7, %v1415_v2 }
 0x291   : > { %1482 = vst.msk [vmem:[#allocation3 + $0x78] sm:$0xff] %vm1466_vm7, %v1401_v48  ;;  %v1411_v26 = vpop.permute.xlu0 %1410 }
 0x292   : > { %1487 = vst.msk [vmem:[#allocation3 + $0xa0] sm:$0xff] %vm1466_vm7, %v1411_v26 }
 0x295   : > { %1615 = vrot.lane.b32.xlu2 %v1525_v13, %s9248_s21  ;;  %1619 = vrot.lane.b32.xlu1 %v10124_v59, %s9248_s21  ;;  %v1692_v59 = vld [vmem:[#allocation2 + $0x32] sm:$0xff] }
 0x296   : > { %v1708_v13 = vld [vmem:[#allocation2 + $0xf2] sm:$0xff] }
 0x297   : > { %v1421_v47 = vpop.permute.xlu2 %1420  ;;  %1758 = vrot.lane.b32.xlu0 %v1693_v35, %s9249_s22  ;;  %v1407_v3 = vpop.permute.xlu1 %1406 }
 0x298   : > { %1492 = vst.msk [vmem:[#allocation3 + $0xc8] sm:$0xff] %vm1466_vm7, %v1421_v47  ;;  %v1709_v47 = vld [vmem:[#allocation2 + $0xfa] sm:$0xff] }
 0x299   : > { %1485 = vst.msk [vmem:[#allocation3 + $0x90] sm:$0xff] %vm1466_vm7, %v1407_v3  ;;  %v1417_v21 = vpop.permute.xlu0 %1416 }
 0x29a   : > { %1490 = vst.msk [vmem:[#allocation3 + $0xb8] sm:$0xff] %vm1466_vm7, %v1417_v21 }
 0x29d   : > { %1621 = vrot.lane.b32.xlu2 %v10144_v60, %s9248_s21  ;;  %1625 = vrot.lane.b32.xlu1 %v1530_v32, %s9248_s21 }
 0x29f   : > { %v1427_v12 = vpop.permute.xlu2 %1426  ;;  %1764 = vrot.lane.b32.xlu0 %v1696_v15, %s9249_s22  ;;  %v1413_v38 = vpop.permute.xlu1 %1412 }
 0x2a0   : > { %1495 = vst.msk [vmem:[#allocation3 + $0xe0] sm:$0xff] %vm1466_vm7, %v1427_v12  ;;  %v1707_v12 = vld [vmem:[#allocation2 + $0xe2] sm:$0xff] }
 0x2a1   : > { %1488 = vst.msk [vmem:[#allocation3 + $0xa8] sm:$0xff] %vm1466_vm7, %v1413_v38  ;;  %v1423_v30 = vpop.permute.xlu0 %1422 }
 0x2a2   : > { %1493 = vst.msk [vmem:[#allocation3 + $0xd0] sm:$0xff] %vm1466_vm7, %v1423_v30 }
 0x2a5   : > { %1756 = vrot.lane.b32.xlu2 %v1692_v59, %s9249_s22  ;;  %1760 = vrot.lane.b32.xlu1 %v1694_v61, %s9249_s22  ;;  %v1711_v61 = vld [vmem:[#allocation2 + $0x112] sm:$0xff] }
 0x2a7   : > { %v1433_v60 = vpop.permute.xlu2 %1432  ;;  %v1419_v27 = vpop.permute.xlu1 %1418  ;;  %1770 = vrot.lane.b32.xlu0 %v1699_v28, %s9249_s22 }
 0x2a8   : > { %1498 = vst.msk [vmem:[#allocation3 + $0xf8] sm:$0xff] %vm1466_vm7, %v1433_v60 }
 0x2a9   : > { %1491 = vst.msk [vmem:[#allocation3 + $0xc0] sm:$0xff] %vm1466_vm7, %v1419_v27  ;;  %v1429_v44 = vpop.permute.xlu0 %1428 }
 0x2aa   : > { %1496 = vst.msk [vmem:[#allocation3 + $0xe8] sm:$0xff] %vm1466_vm7, %v1429_v44  ;;  %v1712_v44 = vld [vmem:[#allocation2 + $0x122] sm:$0xff] }
 0x2ad   : > { %1762 = vrot.lane.b32.xlu2 %v1695_v22, %s9249_s22  ;;  %1766 = vrot.lane.b32.xlu1 %v1697_v49, %s9249_s22 }
 0x2af   : > { %v1568_v34 = vpop.permute.xlu2 %1567  ;;  %v1425_v39 = vpop.permute.xlu1 %1424  ;;  %1776 = vrot.lane.b32.xlu0 %v1702_v17, %s9249_s22 }
 0x2b0   : > { %1662 = vst.msk [vmem:[#allocation3 + $0x10] sm:$0xff] %vm1659_vm8, %v1568_v34  ;;  %v1710_v34 = vld [vmem:[#allocation2 + $0x10a] sm:$0xff] }
 0x2b1   : > { %1494 = vst.msk [vmem:[#allocation3 + $0xd8] sm:$0xff] %vm1466_vm7, %v1425_v39  ;;  %v1564_v53 = vpop.permute.xlu0 %1563 }
 0x2b2   : > { %1660 = vst.msk [vmem:[#allocation3] sm:$0xff] %vm1659_vm8, %v1564_v53 }
 0x2b5   : > { %1772 = vrot.lane.b32.xlu1 %v1700_v40, %s9249_s22  ;;  %1768 = vrot.lane.b32.xlu2 %v1698_v23, %s9249_s22  ;;  %v1715_v23 = vld [vmem:[#allocation2 + $0x142] sm:$0xff] }
 0x2b7   : > { %v1574_v45 = vpop.permute.xlu2 %1573  ;;  %v1431_v56 = vpop.permute.xlu1 %1430  ;;  %1782 = vrot.lane.b32.xlu0 %v1705_v5, %s9249_s22 }
 0x2b8   : > { %1665 = vst.msk [vmem:[#allocation3 + $0x28] sm:$0xff] %vm1659_vm8, %v1574_v45  ;;  %v1714_v45 = vld [vmem:[#allocation2 + $0x13a] sm:$0xff] }
 0x2b9   : > { %1497 = vst.msk [vmem:[#allocation3 + $0xf0] sm:$0xff] %vm1466_vm7, %v1431_v56  ;;  %v1570_v46 = vpop.permute.xlu0 %1569 }
 0x2ba   : > { %1663 = vst.msk [vmem:[#allocation3 + $0x18] sm:$0xff] %vm1659_vm8, %v1570_v46 }
 0x2bd   : > { %1778 = vrot.lane.b32.xlu1 %v1703_v24, %s9249_s22  ;;  %1774 = vrot.lane.b32.xlu2 %v1701_v18, %s9249_s22  ;;  %v1716_v18 = vld [vmem:[#allocation2 + $0x152] sm:$0xff] }
 0x2bf   : > { %v1580_v50 = vpop.permute.xlu2 %1579  ;;  %v1566_v54 = vpop.permute.xlu1 %1565  ;;  %1788 = vrot.lane.b32.xlu0 %v1708_v13, %s9249_s22 }
 0x2c0   : > { %1668 = vst.msk [vmem:[#allocation3 + $0x40] sm:$0xff] %vm1659_vm8, %v1580_v50 }
 0x2c1   : > { %1661 = vst.msk [vmem:[#allocation3 + $0x8] sm:$0xff] %vm1659_vm8, %v1566_v54  ;;  %v1576_v51 = vpop.permute.xlu0 %1575 }
 0x2c2   : > { %1666 = vst.msk [vmem:[#allocation3 + $0x30] sm:$0xff] %vm1659_vm8, %v1576_v51  ;;  %v1713_v51 = vld [vmem:[#allocation2 + $0x12a] sm:$0xff] }
 0x2c5   : > { %1784 = vrot.lane.b32.xlu1 %v1706_v20, %s9249_s22  ;;  %1780 = vrot.lane.b32.xlu2 %v1704_v6, %s9249_s22  ;;  %v1723_v20 = vld [vmem:[#allocation2 + $0x1a2] sm:$0xff] }
 0x2c7   : > { %v1586_v31 = vpop.permute.xlu2 %1585  ;;  %v1572_v1 = vpop.permute.xlu1 %1571  ;;  %1794 = vrot.lane.b32.xlu0 %v1711_v61, %s9249_s22 }
 0x2c8   : > { %1671 = vst.msk [vmem:[#allocation3 + $0x58] sm:$0xff] %vm1659_vm8, %v1586_v31 }
 0x2c9   : > { %1664 = vst.msk [vmem:[#allocation3 + $0x20] sm:$0xff] %vm1659_vm8, %v1572_v1  ;;  %v1582_v57 = vpop.permute.xlu0 %1581  ;;  %v1717_v1 = vld [vmem:[#allocation2 + $0x15a] sm:$0xff] }
 0x2ca   : > { %1669 = vst.msk [vmem:[#allocation3 + $0x48] sm:$0xff] %vm1659_vm8, %v1582_v57 }
 0x2cd   : > { %1790 = vrot.lane.b32.xlu1 %v1709_v47, %s9249_s22  ;;  %1786 = vrot.lane.b32.xlu2 %v1707_v12, %s9249_s22 }
 0x2cf   : > { %v1592_v11 = vpop.permute.xlu2 %1591  ;;  %v1578_v55 = vpop.permute.xlu1 %1577  ;;  %1800 = vrot.lane.b32.xlu0 %v1714_v45, %s9249_s22 }
 0x2d0   : > { %1674 = vst.msk [vmem:[#allocation3 + $0x70] sm:$0xff] %vm1659_vm8, %v1592_v11  ;;  %v1718_v11 = vld [vmem:[#allocation2 + $0x16a] sm:$0xff] }
 0x2d1   : > { %1667 = vst.msk [vmem:[#allocation3 + $0x38] sm:$0xff] %vm1659_vm8, %v1578_v55  ;;  %v1588_v0 = vpop.permute.xlu0 %1587 }
 0x2d2   : > { %1672 = vst.msk [vmem:[#allocation3 + $0x60] sm:$0xff] %vm1659_vm8, %v1588_v0 }
 0x2d5   : > { %1796 = vrot.lane.b32.xlu1 %v1712_v44, %s9249_s22  ;;  %1792 = vrot.lane.b32.xlu2 %v1710_v34, %s9249_s22 }
 0x2d7   : > { %v1598_v8 = vpop.permute.xlu2 %1597  ;;  %v1584_v29 = vpop.permute.xlu1 %1583  ;;  %1806 = vrot.lane.b32.xlu0 %v1717_v1, %s9249_s22 }
 0x2d8   : > { %1677 = vst.msk [vmem:[#allocation3 + $0x88] sm:$0xff] %vm1659_vm8, %v1598_v8 }
 0x2d9   : > { %1670 = vst.msk [vmem:[#allocation3 + $0x50] sm:$0xff] %vm1659_vm8, %v1584_v29  ;;  %v1594_v36 = vpop.permute.xlu0 %1593 }
 0x2da   : > { %1675 = vst.msk [vmem:[#allocation3 + $0x78] sm:$0xff] %vm1659_vm8, %v1594_v36 }
 0x2dd   : > { %1802 = vrot.lane.b32.xlu1 %v1715_v23, %s9249_s22  ;;  %1798 = vrot.lane.b32.xlu2 %v1713_v51, %s9249_s22 }
 0x2df   : > { %v1604_v9 = vpop.permute.xlu2 %1603  ;;  %v1590_v42 = vpop.permute.xlu1 %1589  ;;  %1812 = vrot.lane.b32.xlu0 %v10242_v33, %s9249_s22 }
 0x2e0   : > { %1680 = vst.msk [vmem:[#allocation3 + $0xa0] sm:$0xff] %vm1659_vm8, %v1604_v9 }
 0x2e1   : > { %1673 = vst.msk [vmem:[#allocation3 + $0x68] sm:$0xff] %vm1659_vm8, %v1590_v42  ;;  %v1600_v58 = vpop.permute.xlu0 %1599  ;;  %v1719_v42 = vld [vmem:[#allocation2 + $0x172] sm:$0xff] }
 0x2e2   : > { %1678 = vst.msk [vmem:[#allocation3 + $0x90] sm:$0xff] %vm1659_vm8, %v1600_v58 }
 0x2e5   : > { %1808 = vrot.lane.b32.xlu1 %v1718_v11, %s9249_s22  ;;  %1804 = vrot.lane.b32.xlu2 %v1716_v18, %s9249_s22 }
 0x2e7   : > { %v1610_v43 = vpop.permute.xlu2 %1609  ;;  %v1596_v63 = vpop.permute.xlu1 %1595  ;;  %1818 = vrot.lane.b32.xlu0 %v1723_v20, %s9249_s22 }
 0x2e8   : > { %1683 = vst.msk [vmem:[#allocation3 + $0xb8] sm:$0xff] %vm1659_vm8, %v1610_v43 }
 0x2e9   : > { %1676 = vst.msk [vmem:[#allocation3 + $0x80] sm:$0xff] %vm1659_vm8, %v1596_v63  ;;  %v1606_v14 = vpop.permute.xlu0 %1605 }
 0x2ea   : > { %1681 = vst.msk [vmem:[#allocation3 + $0xa8] sm:$0xff] %vm1659_vm8, %v1606_v14 }
 0x2ed   : > { %1814 = vrot.lane.b32.xlu1 %v10227_v19, %s9249_s22  ;;  %1810 = vrot.lane.b32.xlu2 %v1719_v42, %s9249_s22 }
 0x2ef   : > { %v1616_v7 = vpop.permute.xlu2 %1615  ;;  %v1602_v52 = vpop.permute.xlu1 %1601 }
 0x2f0   : > { %1686 = vst.msk [vmem:[#allocation3 + $0xd0] sm:$0xff] %vm1659_vm8, %v1616_v7 }
 0x2f1   : > { %1679 = vst.msk [vmem:[#allocation3 + $0x98] sm:$0xff] %vm1659_vm8, %v1602_v52  ;;  %v1612_v2 = vpop.permute.xlu0 %1611 }
 0x2f2   : > { %1684 = vst.msk [vmem:[#allocation3 + $0xc0] sm:$0xff] %vm1659_vm8, %v1612_v2 }
 0x2f5   : > { %1816 = vrot.lane.b32.xlu2 %v1722_v10, %s9249_s22 }
 0x2f7   : > { %v1622_v48 = vpop.permute.xlu2 %1621  ;;  %v1608_v26 = vpop.permute.xlu1 %1607 }
 0x2f8   : > { %1689 = vst.msk [vmem:[#allocation3 + $0xe8] sm:$0xff] %vm1659_vm8, %v1622_v48 }
 0x2f9   : > { %1682 = vst.msk [vmem:[#allocation3 + $0xb0] sm:$0xff] %vm1659_vm8, %v1608_v26  ;;  %v1618_v35 = vpop.permute.xlu0 %1617 }
 0x2fa   : > { %1687 = vst.msk [vmem:[#allocation3 + $0xd8] sm:$0xff] %vm1659_vm8, %v1618_v35 }
 0x2ff   : > { %v1757_v3 = vpop.permute.xlu2 %1756  ;;  %v1614_v21 = vpop.permute.xlu1 %1613 }
 0x300   : > { %1853 = vst.msk [vmem:[#allocation3] sm:$0xff] %vm1852_vm10, %v1757_v3 }
 0x301   : > { %1685 = vst.msk [vmem:[#allocation3 + $0xc8] sm:$0xff] %vm1659_vm8, %v1614_v21  ;;  %v1624_v32 = vpop.permute.xlu0 %1623 }
 0x302   : > { %1690 = vst.msk [vmem:[#allocation3 + $0xf0] sm:$0xff] %vm1659_vm8, %v1624_v32 }
 0x307   : > { %v1885_v15 = vld [vmem:[#allocation3] sm:$0xff]  ;;  %v1763_v59 = vpop.permute.xlu2 %1762  ;;  %v1620_v38 = vpop.permute.xlu1 %1619 }
 0x308   : > { %9060 = vmatmul.msk.f32.vlgmr.msra.gmra.mxu0 %vm1917_vm11, %v1885_v15  ;;  %1856 = vst.msk [vmem:[#allocation3 + $0x18] sm:$0xff] %vm1852_vm10, %v1763_v59 }
 0x309   : > { %1688 = vst.msk [vmem:[#allocation3 + $0xe0] sm:$0xff] %vm1659_vm8, %v1620_v38  ;;  %v1759_v30 = vpop.permute.xlu0 %1758 }
 0x30a   : > { %1854 = vst.msk [vmem:[#allocation3 + $0x8] sm:$0xff] %vm1852_vm10, %v1759_v30 }
 0x30f   : > { %v1626_v60 = vpop.permute.xlu1 %1625  ;;  %v1769_v28 = vpop.permute.xlu2 %1768  ;;  %v1888_v56 = vld [vmem:[#allocation3 + $0x18] sm:$0xff] }
 0x310   : > { %1691 = vst.msk [vmem:[#allocation3 + $0xf8] sm:$0xff] %vm1659_vm8, %v1626_v60 }
 0x311   : > { %v1886_v22 = vld [vmem:[#allocation3 + $0x8] sm:$0xff]  ;;  %v1765_v27 = vpop.permute.xlu0 %1764  ;;  %1859 = vst.msk [vmem:[#allocation3 + $0x30] sm:$0xff] %vm1852_vm10, %v1769_v28 }
 0x312   : > { %9061 = vmatmul.msk.f32.gmra.mxu0 %vm1917_vm11, %v1886_v22  ;;  %1857 = vst.msk [vmem:[#allocation3 + $0x20] sm:$0xff] %vm1852_vm10, %v1765_v27 }
 0x317   : > { %v1761_v49 = vpop.permute.xlu1 %1760  ;;  %v1775_v50 = vpop.permute.xlu2 %1774 }
 0x318   : > { %1855 = vst.msk [vmem:[#allocation3 + $0x10] sm:$0xff] %vm1852_vm10, %v1761_v49  ;;  %v1891_v24 = vld [vmem:[#allocation3 + $0x30] sm:$0xff] }
 0x319   : > { %v1771_v39 = vpop.permute.xlu0 %1770  ;;  %1862 = vst.msk [vmem:[#allocation3 + $0x48] sm:$0xff] %vm1852_vm10, %v1775_v50  ;;  %v1889_v54 = vld [vmem:[#allocation3 + $0x20] sm:$0xff] }
 0x31a   : > { %1860 = vst.msk [vmem:[#allocation3 + $0x38] sm:$0xff] %vm1852_vm10, %v1771_v39 }
 0x31f   : > { %v1887_v53 = vld [vmem:[#allocation3 + $0x10] sm:$0xff]  ;;  %v1767_v40 = vpop.permute.xlu1 %1766  ;;  %v1781_v55 = vpop.permute.xlu2 %1780 }
 0x320   : > { %9062 = vmatmul.msk.f32.gmra.mxu0 %vm1917_vm11, %v1887_v53  ;;  %1858 = vst.msk [vmem:[#allocation3 + $0x28] sm:$0xff] %vm1852_vm10, %v1767_v40  ;;  %v1894_v33 = vld [vmem:[#allocation3 + $0x48] sm:$0xff] }
 0x321   : > { %v1777_v17 = vpop.permute.xlu0 %1776  ;;  %v1892_v0 = vld [vmem:[#allocation3 + $0x38] sm:$0xff]  ;;  %1865 = vst.msk [vmem:[#allocation3 + $0x60] sm:$0xff] %vm1852_vm10, %v1781_v55 }
 0x322   : > { %1863 = vst.msk [vmem:[#allocation3 + $0x50] sm:$0xff] %vm1852_vm10, %v1777_v17 }
 0x327   : > { %v1773_v46 = vpop.permute.xlu1 %1772  ;;  %v1890_v31 = vld [vmem:[#allocation3 + $0x28] sm:$0xff]  ;;  %v1787_v5 = vpop.permute.xlu2 %1786 }
 0x328   : > { %9063 = vmatmul.msk.f32.gmra.mxu0 %vm1917_vm11, %v1888_v56  ;;  %1861 = vst.msk [vmem:[#allocation3 + $0x40] sm:$0xff] %vm1852_vm10, %v1773_v46  ;;  %v1897_v43 = vld [vmem:[#allocation3 + $0x60] sm:$0xff] }
 0x329   : > { %v1783_v8 = vpop.permute.xlu0 %1782  ;;  %1868 = vst.msk [vmem:[#allocation3 + $0x78] sm:$0xff] %vm1852_vm10, %v1787_v5  ;;  %v1895_v9 = vld [vmem:[#allocation3 + $0x50] sm:$0xff] }
 0x32a   : > { %1866 = vst.msk [vmem:[#allocation3 + $0x68] sm:$0xff] %vm1852_vm10, %v1783_v8 }
 0x32f   : > { %v1779_v57 = vpop.permute.xlu1 %1778  ;;  %v1893_v29 = vld [vmem:[#allocation3 + $0x40] sm:$0xff]  ;;  %v1793_v63 = vpop.permute.xlu2 %1792 }
 0x330   : > { %9064 = vmatmul.msk.f32.gmra.mxu0 %vm1917_vm11, %v1889_v54  ;;  %1864 = vst.msk [vmem:[#allocation3 + $0x58] sm:$0xff] %vm1852_vm10, %v1779_v57  ;;  %v1900_v16 = vld [vmem:[#allocation3 + $0x78] sm:$0xff] }
 0x331   : > { %v1789_v19 = vpop.permute.xlu0 %1788  ;;  %1871 = vst.msk [vmem:[#allocation3 + $0x90] sm:$0xff] %vm1852_vm10, %v1793_v63  ;;  %v1898_v14 = vld [vmem:[#allocation3 + $0x68] sm:$0xff] }
 0x332   : > { %1869 = vst.msk [vmem:[#allocation3 + $0x80] sm:$0xff] %vm1852_vm10, %v1789_v19 }
 0x337   : > { %v1785_v36 = vpop.permute.xlu1 %1784  ;;  %v1896_v58 = vld [vmem:[#allocation3 + $0x58] sm:$0xff]  ;;  %v1799_v2 = vpop.permute.xlu2 %1798 }
 0x338   : > { %9065 = vmatmul.msk.f32.gmra.mxu0 %vm1917_vm11, %v1890_v31  ;;  %1867 = vst.msk [vmem:[#allocation3 + $0x70] sm:$0xff] %vm1852_vm10, %v1785_v36  ;;  %v1903_v47 = vld [vmem:[#allocation3 + $0x90] sm:$0xff] }
 0x339   : > { %v1795_v6 = vpop.permute.xlu0 %1794  ;;  %v1901_v52 = vld [vmem:[#allocation3 + $0x80] sm:$0xff]  ;;  %1874 = vst.msk [vmem:[#allocation3 + $0xa8] sm:$0xff] %vm1852_vm10, %v1799_v2 }
 0x33a   : > { %1872 = vst.msk [vmem:[#allocation3 + $0x98] sm:$0xff] %vm1852_vm10, %v1795_v6 }
 0x33f   : > { %v1791_v4 = vpop.permute.xlu1 %1790  ;;  %v1899_v37 = vld [vmem:[#allocation3 + $0x70] sm:$0xff]  ;;  %v1805_v12 = vpop.permute.xlu2 %1804 }
 0x340   : > { %9066 = vmatmul.msk.f32.gmra.mxu0 %vm1917_vm11, %v1891_v24  ;;  %1870 = vst.msk [vmem:[#allocation3 + $0x88] sm:$0xff] %vm1852_vm10, %v1791_v4  ;;  %v1906_v61 = vld [vmem:[#allocation3 + $0xa8] sm:$0xff] }
 0x341   : > { %v1801_v26 = vpop.permute.xlu0 %1800  ;;  %v1904_v32 = vld [vmem:[#allocation3 + $0x98] sm:$0xff]  ;;  %1877 = vst.msk [vmem:[#allocation3 + $0xc0] sm:$0xff] %vm1852_vm10, %v1805_v12 }
 0x342   : > { %1875 = vst.msk [vmem:[#allocation3 + $0xb0] sm:$0xff] %vm1852_vm10, %v1801_v26 }
 0x347   : > { %v1797_v7 = vpop.permute.xlu1 %1796  ;;  %v1902_v48 = vld [vmem:[#allocation3 + $0x88] sm:$0xff]  ;;  %v1811_v44 = vpop.permute.xlu2 %1810 }
 0x348   : > { %9067 = vmatmul.msk.f32.gmra.mxu0 %vm1917_vm11, %v1892_v0  ;;  %1873 = vst.msk [vmem:[#allocation3 + $0xa0] sm:$0xff] %vm1852_vm10, %v1797_v7  ;;  %v1909_v53 = vld [vmem:[#allocation3 + $0xc0] sm:$0xff] }
 0x349   : > { %v1807_v38 = vpop.permute.xlu0 %1806  ;;  %v1907_v27 = vld [vmem:[#allocation3 + $0xb0] sm:$0xff]  ;;  %1880 = vst.msk [vmem:[#allocation3 + $0xd8] sm:$0xff] %vm1852_vm10, %v1811_v44 }
 0x34a   : > { %1878 = vst.msk [vmem:[#allocation3 + $0xc8] sm:$0xff] %vm1852_vm10, %v1807_v38 }
 0x34f   : > { %v1803_v3 = vpop.permute.xlu1 %1802  ;;  %v1905_v59 = vld [vmem:[#allocation3 + $0xa0] sm:$0xff]  ;;  %v1817_v46 = vpop.permute.xlu2 %1816 }
 0x350   : > { %9068 = vmatmul.msk.f32.gmra.mxu0 %vm1917_vm11, %v1893_v29  ;;  %1876 = vst.msk [vmem:[#allocation3 + $0xb8] sm:$0xff] %vm1852_vm10, %v1803_v3  ;;  %v1912_v17 = vld [vmem:[#allocation3 + $0xd8] sm:$0xff] }
 0x351   : > { %v1813_v34 = vpop.permute.xlu0 %1812  ;;  %v1910_v56 = vld [vmem:[#allocation3 + $0xc8] sm:$0xff]  ;;  %1883 = vst.msk [vmem:[#allocation3 + $0xf0] sm:$0xff] %vm1852_vm10, %v1817_v46 }
 0x352   : > { %1881 = vst.msk [vmem:[#allocation3 + $0xe0] sm:$0xff] %vm1852_vm10, %v1813_v34 }
 0x357   : > { %v1809_v60 = vpop.permute.xlu1 %1808  ;;  %v1908_v49 = vld [vmem:[#allocation3 + $0xb8] sm:$0xff] }
 0x358   : > { %9069 = vmatmul.msk.f32.gmra.mxu0 %vm1917_vm11, %v1894_v33  ;;  %1879 = vst.msk [vmem:[#allocation3 + $0xd0] sm:$0xff] %vm1852_vm10, %v1809_v60  ;;  %v1915_v55 = vld [vmem:[#allocation3 + $0xf0] sm:$0xff] }
 0x359   : > { %v1819_v54 = vpop.permute.xlu0 %1818  ;;  %v1913_v1 = vld [vmem:[#allocation3 + $0xe0] sm:$0xff] }
 0x35a   : > { %1884 = vst.msk [vmem:[#allocation3 + $0xf8] sm:$0xff] %vm1852_vm10, %v1819_v54 }
 0x35f   : > { %v1815_v40 = vpop.permute.xlu1 %1814  ;;  %v1911_v50 = vld [vmem:[#allocation3 + $0xd0] sm:$0xff] }
 0x360   : > { %9070 = vmatmul.msk.f32.gmra.mxu0 %vm1917_vm11, %v1895_v9  ;;  %1882 = vst.msk [vmem:[#allocation3 + $0xe8] sm:$0xff] %vm1852_vm10, %v1815_v40 }
 0x361   : > { %v1916_v18 = vld [vmem:[#allocation3 + $0xf8] sm:$0xff] }
 0x367   : > { %v1914_v24 = vld [vmem:[#allocation3 + $0xe8] sm:$0xff] }
 0x368   : > { %9071 = vmatmul.msk.f32.gmra.mxu0 %vm1917_vm11, %v1896_v58 }
 0x370   : > { %9072 = vmatmul.msk.f32.gmra.mxu0 %vm1917_vm11, %v1897_v43 }
 0x378   : > { %9073 = vmatmul.msk.f32.gmra.mxu0 %vm1917_vm11, %v1898_v14 }
 0x380   : > { %9074 = vmatmul.msk.f32.gmra.mxu0 %vm1917_vm11, %v1899_v37 }
 0x385   : > { %v10523_v62 = vpop.f32.mrf.mxu0 }
 0x386   : > { %v2131_v20 = vsel %vm144_vm0, %v10523_v62, 0.0 }
 0x388   : > { %9075 = vmatmul.msk.f32.gmra.mxu0 %vm1917_vm11, %v1900_v16 }
 0x38f   : > { %v10527_v13 = vpop.f32.mrf.mxu0 }
 0x390   : > { %9076 = vmatmul.msk.f32.gmra.mxu0 %vm1917_vm11, %v1901_v52  ;;  %v2132_v58 = vsel %vm144_vm0, %v10527_v13, 0.0 }
 0x391   : > { %v2133_v43 = vadd.f32 %v2132_v58, %v2131_v20 }
 0x398   : > { %9077 = vmatmul.msk.f32.gmra.mxu0 %vm1917_vm11, %v1902_v48 }
 0x39d   : > { %v10531_v35 = vpop.f32.mrf.mxu0 }
 0x39e   : > { %v2134_v4 = vsel %vm144_vm0, %v10531_v35, 0.0 }
 0x39f   : > { %v2135_v14 = vadd.f32 %v2134_v4, %v2133_v43 }
 0x3a0   : > { %9078 = vmatmul.msk.f32.gmra.mxu0 %vm1917_vm11, %v1903_v47 }
 0x3a5   : > { %v10535_v21 = vpop.f32.mrf.mxu0 }
 0x3a6   : > { %v2136_v63 = vsel %vm144_vm0, %v10535_v21, 0.0 }
 0x3a7   : > { %v2137_v6 = vadd.f32 %v2136_v63, %v2135_v14 }
 0x3a8   : > { %9079 = vmatmul.msk.f32.gmra.mxu0 %vm1917_vm11, %v1904_v32 }
 0x3ad   : > { %v10539_v15 = vpop.f32.mrf.mxu0 }
 0x3ae   : > { %v2138_v37 = vsel %vm144_vm0, %v10539_v15, 0.0 }
 0x3af   : > { %v2139_v7 = vadd.f32 %v2138_v37, %v2137_v6 }
 0x3b0   : > { %9080 = vmatmul.msk.f32.gmra.mxu0 %vm1917_vm11, %v1905_v59 }
 0x3b5   : > { %v10543_v30 = vpop.f32.mrf.mxu0 }
 0x3b6   : > { %v2140_v16 = vsel %vm144_vm0, %v10543_v30, 0.0 }
 0x3b7   : > { %v2141_v2 = vadd.f32 %v2140_v16, %v2139_v7 }
 0x3b8   : > { %9081 = vmatmul.msk.f32.gmra.mxu0 %vm1917_vm11, %v1906_v61 }
 0x3bd   : > { %v10547_v22 = vpop.f32.mrf.mxu0 }
 0x3be   : > { %v2142_v52 = vsel %vm144_vm0, %v10547_v22, 0.0 }
 0x3bf   : > { %v2143_v26 = vadd.f32 %v2142_v52, %v2141_v2 }
 0x3c0   : > { %9082 = vmatmul.msk.f32.gmra.mxu0 %vm1917_vm11, %v1907_v27 }
 0x3c5   : > { %v10551_v28 = vpop.f32.mrf.mxu0 }
 0x3c6   : > { %v2144_v48 = vsel %vm144_vm0, %v10551_v28, 0.0 }
 0x3c7   : > { %v2145_v32 = vadd.f32 %v2144_v48, %v2143_v26 }
 0x3c8   : > { %9083 = vmatmul.msk.f32.gmra.mxu0 %vm1917_vm11, %v1908_v49 }
 0x3cd   : > { %v10555_v39 = vpop.f32.mrf.mxu0 }
 0x3ce   : > { %v2146_v3 = vsel %vm144_vm0, %v10555_v39, 0.0 }
 0x3cf   : > { %v2147_v59 = vadd.f32 %v2146_v3, %v2145_v32 }
 0x3d0   : > { %9084 = vmatmul.msk.f32.gmra.mxu0 %vm1917_vm11, %v1909_v53 }
 0x3d5   : > { %v10559_v45 = vpop.f32.mrf.mxu0 }
 0x3d6   : > { %v2148_v12 = vsel %vm144_vm0, %v10559_v45, 0.0 }
 0x3d7   : > { %v2149_v61 = vadd.f32 %v2148_v12, %v2147_v59 }
 0x3d8   : > { %9085 = vmatmul.msk.f32.gmra.mxu0 %vm1917_vm11, %v1910_v56 }
 0x3dd   : > { %v10563_v23 = vpop.f32.mrf.mxu0 }
 0x3de   : > { %v2150_v38 = vsel %vm144_vm0, %v10563_v23, 0.0 }
 0x3df   : > { %v2151_v27 = vadd.f32 %v2150_v38, %v2149_v61 }
 0x3e0   : > { %9086 = vmatmul.msk.f32.gmra.mxu0 %vm1917_vm11, %v1911_v50 }
 0x3e5   : > { %v10567_v51 = vpop.f32.mrf.mxu0 }
 0x3e6   : > { %v2152_v60 = vsel %vm144_vm0, %v10567_v51, 0.0 }
 0x3e7   : > { %v2153_v34 = vadd.f32 %v2152_v60, %v2151_v27 }
 0x3e8   : > { %9087 = vmatmul.msk.f32.gmra.mxu0 %vm1917_vm11, %v1912_v17 }
 0x3ed   : > { %v10570_v31 = vpop.f32.mrf.mxu0 }
 0x3ee   : > { %v2154_v49 = vsel %vm144_vm0, %v10570_v31, 0.0 }
 0x3ef   : > { %v2155_v40 = vadd.f32 %v2154_v49, %v2153_v34 }
 0x3f0   : > { %9088 = vmatmul.msk.f32.gmra.mxu0 %vm1917_vm11, %v1913_v1 }
 0x3f5   : > { %v10573_v57 = vpop.f32.mrf.mxu0 }
 0x3f6   : > { %v2156_v53 = vsel %vm144_vm0, %v10573_v57, 0.0 }
 0x3f7   : > { %v2157_v46 = vadd.f32 %v2156_v53, %v2155_v40  ;;  %v9250_v40 = vmov 256.0  }
 0x3f8   : > { %9089 = vmatmul.msk.f32.gmra.mxu0 %vm1917_vm11, %v1914_v24  ;;  %9223 = vrcp.f32 %v9250_v40 }
 0x3fd   : > { %v10576_v11 = vpop.f32.mrf.mxu0 }
 0x3fe   : > { %v2158_v56 = vsel %vm144_vm0, %v10576_v11, 0.0 }
 0x3ff   : > { %v2159_v54 = vadd.f32 %v2158_v56, %v2157_v46 }
 0x400   : > { %9090 = vmatmul.msk.f32.gmra.mxu0 %vm1917_vm11, %v1915_v55 }
 0x405   : > { %v10579_v0 = vpop.f32.mrf.mxu0 }
 0x406   : > { %v2160_v50 = vsel %vm144_vm0, %v10579_v0, 0.0 }
 0x407   : > { %v2161_v24 = vadd.f32 %v2160_v50, %v2159_v54 }
 0x408   : > { %9091 = vmatmul.msk.f32.gmra.mxu0 %vm1917_vm11, %v1916_v18 }
 0x40d   : > { %v10582_v8 = vpop.f32.mrf.mxu0 }
 0x40e   : > { %v2162_v1 = vsel %vm144_vm0, %v10582_v8, 0.0 }
 0x40f   : > { %v2163_v18 = vadd.f32 %v2162_v1, %v2161_v24  ;;  %v9224_v1 = vpop.eup %9223 }
 0x410   : > { %vm2205_vm12 = vweird.f32 %v9224_v1 }
 0x415   : > { %v10584_v29 = vpop.f32.mrf.mxu0 }
 0x416   : > { %v2164_v55 = vsel %vm144_vm0, %v10584_v29, 0.0 }
 0x417   : > { %v2165_v20 = vadd.f32 %v2164_v55, %v2163_v18 }
 0x41d   : > { %v10586_v36 = vpop.f32.mrf.mxu0 }
 0x41e   : > { %v2166_v58 = vsel %vm144_vm0, %v10586_v36, 0.0 }
 0x41f   : > { %v2167_v43 = vadd.f32 %v2166_v58, %v2165_v20  ;;  %v2201_v20 = vmul.f32 256.0, %v9224_v1 }
 0x425   : > { %v10588_v33 = vpop.f32.mrf.mxu0 }
 0x426   : > { %v2168_v4 = vsel %vm144_vm0, %v10588_v33, 0.0 }
 0x427   : > { %v2169_v37 = vadd.f32 %v2168_v4, %v2167_v43 }
 0x42d   : > { %v10590_v5 = vpop.f32.mrf.mxu0 }
 0x42e   : > { %v2170_v14 = vsel %vm144_vm0, %v10590_v5, 0.0 }
 0x42f   : > { %v2171_v16 = vadd.f32 %v2170_v14, %v2169_v37  ;;  %v2202_v14 = vsub.f32 1.0, %v2201_v20 }
 0x435   : > { %v10592_v9 = vpop.f32.mrf.mxu0 }
 0x436   : > { %v2172_v6 = vsel %vm144_vm0, %v10592_v9, 0.0 }
 0x437   : > { %v2173_v52 = vadd.f32 %v2172_v6, %v2171_v16  ;;  %v2203_v16 = vmul.f32 %v9224_v1, %v2202_v14 }
 0x43d   : > { %v10594_v42 = vpop.f32.mrf.mxu0 }
 0x43e   : > { %v2174_v7 = vsel %vm144_vm0, %v10594_v42, 0.0 }
 0x43f   : > { %v2175_v48 = vadd.f32 %v2174_v7, %v2173_v52  ;;  %v2204_v52 = vadd.f32 %v9224_v1, %v2203_v16 }
 0x445   : > { %v10596_v19 = vpop.f32.mrf.mxu0 }
 0x446   : > { %v2176_v2 = vsel %vm144_vm0, %v10596_v19, 0.0 }
 0x447   : > { %v2177_v32 = vadd.f32 %v2176_v2, %v2175_v48  ;;  %v10678_v48 = vsel %vm2205_vm12, %v9224_v1, %v2204_v52 }
 0x448   : > { %15538 = vst [vmem:[#allocation38_spill] sm:$0xff] %v10678_v48 }
 0x44d   : > { %v10606_v10 = vpop.f32.mrf.mxu0 }
 0x44e   : > { %v2178_v3 = vsel %vm144_vm0, %v10606_v10, 0.0 }
 0x44f   : > { %v2179_v59 = vadd.f32 %v2178_v3, %v2177_v32 }
 0x455   : > { %v10616_v47 = vpop.f32.mrf.mxu0 }
 0x456   : > { %v2180_v12 = vsel %vm144_vm0, %v10616_v47, 0.0 }
 0x457   : > { %v2181_v61 = vadd.f32 %v2180_v12, %v2179_v59 }
 0x45d   : > { %v10626_v44 = vpop.f32.mrf.mxu0 }
 0x45e   : > { %v2182_v38 = vsel %vm144_vm0, %v10626_v44, 0.0 }
 0x45f   : > { %v2183_v27 = vadd.f32 %v2182_v38, %v2181_v61 }
 0x465   : > { %v10636_v17 = vpop.f32.mrf.mxu0 }
 0x466   : > { %v2184_v60 = vsel %vm144_vm0, %v10636_v17, 0.0 }
 0x467   : > { %v2185_v53 = vadd.f32 %v2184_v60, %v2183_v27 }
 0x46d   : > { %v10646_v63 = vpop.f32.mrf.mxu0 }
 0x46e   : > { %v2186_v34 = vsel %vm144_vm0, %v10646_v63, 0.0 }
 0x46f   : > { %v2187_v46 = vadd.f32 %v2186_v34, %v2185_v53 }
 0x475   : > { %v10656_v26 = vpop.f32.mrf.mxu0 }
 0x476   : > { %v2188_v56 = vsel %vm144_vm0, %v10656_v26, 0.0 }
 0x477   : > { %v2189_v54 = vadd.f32 %v2188_v56, %v2187_v46 }
 0x47d   : > { %v10666_v49 = vpop.f32.mrf.mxu0 }
 0x47e   : > { %v2190_v50 = vsel %vm144_vm0, %v10666_v49, 0.0 }
 0x47f   : > { %v2191_v24 = vadd.f32 %v2190_v50, %v2189_v54 }
 0x485   : > { %v10674_v55 = vpop.f32.mrf.mxu0 }
 0x486   : > { %v2192_v18 = vsel %vm144_vm0, %v10674_v55, 0.0 }
 0x487   : > { %v2193_v58 = vadd.f32 %v2192_v18, %v2191_v24 }
 0x489   : > { %v2194_v4 = vrot.slane %v2193_v58, 4 }
 0x48b   : > { %v2195_v43 = vadd.f32 %v2194_v4, %v2193_v58 }
 0x48d   : > { %v2196_v37 = vrot.slane %v2195_v43, 2 }
 0x48f   : > { %v2197_v6 = vadd.f32 %v2196_v37, %v2195_v43 }
 0x491   : > { %v2198_v7 = vrot.slane %v2197_v6, 1 }
 0x493   : > { %v2199_v2 = vadd.f32 %v2198_v7, %v2197_v6 }
 0x495   : > { %v10681_v3 = vmul.f32 %v10678_v48, %v2199_v2 }
 0x497   : > { %v10685_v32 = vsub.f32 %v10523_v62, %v10681_v3  ;;  %v10689_v12 = vsub.f32 %v10527_v13, %v10681_v3  ;;  %v10693_v59 = vsub.f32 %v10531_v35, %v10681_v3  ;;  %v10697_v38 = vsub.f32 %v10535_v21, %v10681_v3 }
 0x498   : > { %v10705_v62 = vsub.f32 %v10539_v15, %v10681_v3  ;;  %v10711_v35 = vsub.f32 %v10543_v30, %v10681_v3  ;;  %v10719_v40 = vsub.f32 %v10547_v22, %v10681_v3  ;;  %v10726_v30 = vsub.f32 %v10551_v28, %v10681_v3 }
 0x499   : > { %v2240_v61 = vmul.f32 %v10685_v32, %v10685_v32  ;;  %v2241_v60 = vmul.f32 %v10689_v12, %v10689_v12  ;;  %v2242_v13 = vmul.f32 %v10693_v59, %v10693_v59  ;;  %v2243_v21 = vmul.f32 %v10697_v38, %v10697_v38 }
 0x49a   : > { %v2244_v15 = vmul.f32 %v10705_v62, %v10705_v62  ;;  %v2245_v50 = vmul.f32 %v10711_v35, %v10711_v35  ;;  %v10733_v22 = vsub.f32 %v10555_v39, %v10681_v3  ;;  %v2246_v24 = vmul.f32 %v10719_v40, %v10719_v40 }
 0x49b   : > { %v2272_v27 = vsel %vm144_vm0, %v2240_v61, 0.0  ;;  %v2273_v34 = vsel %vm144_vm0, %v2241_v60, 0.0  ;;  %v2275_v56 = vsel %vm144_vm0, %v2242_v13, 0.0  ;;  %v2277_v54 = vsel %vm144_vm0, %v2243_v21, 0.0 }
 0x49c   : > { %v2274_v53 = vadd.f32 %v2273_v34, %v2272_v27  ;;  %v2279_v18 = vsel %vm144_vm0, %v2244_v15, 0.0  ;;  %v10740_v28 = vsub.f32 %v10559_v45, %v10681_v3  ;;  %v2247_v20 = vmul.f32 %v10726_v30, %v10726_v30 }
 0x49d   : > { %v2281_v4 = vsel %vm144_vm0, %v2245_v50, 0.0  ;;  %v10747_v39 = vsub.f32 %v10563_v23, %v10681_v3  ;;  %v2248_v14 = vmul.f32 %v10733_v22, %v10733_v22  ;;  %v2283_v37 = vsel %vm144_vm0, %v2246_v24, 0.0 }
 0x49e   : > { %v2276_v46 = vadd.f32 %v2275_v56, %v2274_v53  ;;  %v10754_v45 = vsub.f32 %v10567_v51, %v10681_v3  ;;  %v2249_v16 = vmul.f32 %v10740_v28, %v10740_v28  ;;  %v2285_v7 = vsel %vm144_vm0, %v2247_v20, 0.0 }
 0x49f   : > { %v10761_v23 = vsub.f32 %v10570_v31, %v10681_v3  ;;  %v2250_v2 = vmul.f32 %v10747_v39, %v10747_v39  ;;  %v2287_v61 = vsel %vm144_vm0, %v2248_v14, 0.0  ;;  %v10768_v51 = vsub.f32 %v10573_v57, %v10681_v3 }
 0x4a0   : > { %v2278_v1 = vadd.f32 %v2277_v54, %v2276_v46  ;;  %v2251_v13 = vmul.f32 %v10754_v45, %v10754_v45  ;;  %v2289_v21 = vsel %vm144_vm0, %v2249_v16, 0.0  ;;  %v10775_v31 = vsub.f32 %v10576_v11, %v10681_v3 }
 0x4a1   : > { %v2252_v34 = vmul.f32 %v10761_v23, %v10761_v23  ;;  %v2291_v53 = vsel %vm144_vm0, %v2250_v2, 0.0  ;;  %v10782_v57 = vsub.f32 %v10579_v0, %v10681_v3  ;;  %v2253_v56 = vmul.f32 %v10768_v51, %v10768_v51 }
 0x4a2   : > { %v2280_v58 = vadd.f32 %v2279_v18, %v2278_v1  ;;  %v2293_v46 = vsel %vm144_vm0, %v2251_v13, 0.0  ;;  %v10789_v11 = vsub.f32 %v10582_v8, %v10681_v3  ;;  %v2254_v54 = vmul.f32 %v10775_v31, %v10775_v31 }
 0x4a3   : > { %v2295_v1 = vsel %vm144_vm0, %v2252_v34, 0.0  ;;  %v10796_v0 = vsub.f32 %v10584_v29, %v10681_v3  ;;  %v2255_v18 = vmul.f32 %v10782_v57, %v10782_v57  ;;  %v10803_v8 = vsub.f32 %v10586_v36, %v10681_v3 }
 0x4a4   : > { %v2282_v43 = vadd.f32 %v2281_v4, %v2280_v58  ;;  %v2297_v58 = vsel %vm144_vm0, %v2253_v56, 0.0  ;;  %v2256_v4 = vmul.f32 %v10789_v11, %v10789_v11  ;;  %v10810_v29 = vsub.f32 %v10588_v33, %v10681_v3 }
 0x4a5   : > { %v10817_v36 = vsub.f32 %v10590_v5, %v10681_v3  ;;  %v10824_v33 = vsub.f32 %v10592_v9, %v10681_v3  ;;  %v10831_v5 = vsub.f32 %v10594_v42, %v10681_v3  ;;  %v10838_v9 = vsub.f32 %v10596_v19, %v10681_v3 }
 0x4a6   : > { %v2284_v6 = vadd.f32 %v2283_v37, %v2282_v43  ;;  %v2299_v43 = vsel %vm144_vm0, %v2254_v54, 0.0  ;;  %v2257_v37 = vmul.f32 %v10796_v0, %v10796_v0  ;;  %v10845_v42 = vsub.f32 %v10606_v10, %v10681_v3 }
 0x4a7   : > { %v10852_v19 = vsub.f32 %v10616_v47, %v10681_v3  ;;  %v10859_v10 = vsub.f32 %v10626_v44, %v10681_v3  ;;  %v10866_v47 = vsub.f32 %v10636_v17, %v10681_v3  ;;  %v10873_v44 = vsub.f32 %v10646_v63, %v10681_v3 }
 0x4a8   : > { %v2286_v52 = vadd.f32 %v2285_v7, %v2284_v6  ;;  %v2301_v6 = vsel %vm144_vm0, %v2255_v18, 0.0  ;;  %v2258_v7 = vmul.f32 %v10803_v8, %v10803_v8  ;;  %v10880_v17 = vsub.f32 %v10656_v26, %v10681_v3 }
 0x4a9   : > { %v10887_v63 = vsub.f32 %v10666_v49, %v10681_v3  ;;  %v2239_v26 = vsub.f32 %v10674_v55, %v10681_v3 }
 0x4aa   : > { %v2288_v60 = vadd.f32 %v2287_v61, %v2286_v52  ;;  %v2303_v52 = vsel %vm144_vm0, %v2256_v4, 0.0  ;;  %v2259_v61 = vmul.f32 %v10810_v29, %v10810_v29 }
 0x4ac   : > { %v2290_v27 = vadd.f32 %v2289_v21, %v2288_v60  ;;  %v2305_v60 = vsel %vm144_vm0, %v2257_v37, 0.0  ;;  %v2260_v21 = vmul.f32 %v10817_v36, %v10817_v36 }
 0x4ae   : > { %v2292_v15 = vadd.f32 %v2291_v53, %v2290_v27  ;;  %v2307_v27 = vsel %vm144_vm0, %v2258_v7, 0.0  ;;  %v2261_v53 = vmul.f32 %v10824_v33, %v10824_v33 }
 0x4b0   : > { %v2294_v50 = vadd.f32 %v2293_v46, %v2292_v15  ;;  %v2309_v15 = vsel %vm144_vm0, %v2259_v61, 0.0  ;;  %v2262_v46 = vmul.f32 %v10831_v5, %v10831_v5 }
 0x4b2   : > { %v2296_v24 = vadd.f32 %v2295_v1, %v2294_v50  ;;  %v2311_v50 = vsel %vm144_vm0, %v2260_v21, 0.0  ;;  %v2263_v1 = vmul.f32 %v10838_v9, %v10838_v9 }
 0x4b4   : > { %v2298_v20 = vadd.f32 %v2297_v58, %v2296_v24  ;;  %v2313_v24 = vsel %vm144_vm0, %v2261_v53, 0.0  ;;  %v2264_v58 = vmul.f32 %v10845_v42, %v10845_v42 }
 0x4b6   : > { %v2300_v14 = vadd.f32 %v2299_v43, %v2298_v20  ;;  %v2315_v20 = vsel %vm144_vm0, %v2262_v46, 0.0  ;;  %v2265_v43 = vmul.f32 %v10852_v19, %v10852_v19  ;;  %v2271_v46 = vmul.f32 %v2239_v26, %v2239_v26 }
 0x4b8   : > { %v2302_v16 = vadd.f32 %v2301_v6, %v2300_v14  ;;  %v2317_v14 = vsel %vm144_vm0, %v2263_v1, 0.0  ;;  %v2266_v6 = vmul.f32 %v10859_v10, %v10859_v10  ;;  %v2333_v55 = vsel %vm144_vm0, %v2271_v46, 0.0 }
 0x4ba   : > { %v2304_v2 = vadd.f32 %v2303_v52, %v2302_v16  ;;  %v2319_v16 = vsel %vm144_vm0, %v2264_v58, 0.0  ;;  %v2267_v52 = vmul.f32 %v10866_v47, %v10866_v47 }
 0x4bc   : > { %v2306_v13 = vadd.f32 %v2305_v60, %v2304_v2  ;;  %v2321_v2 = vsel %vm144_vm0, %v2265_v43, 0.0  ;;  %v2268_v60 = vmul.f32 %v10873_v44, %v10873_v44 }
 0x4be   : > { %v2308_v34 = vadd.f32 %v2307_v27, %v2306_v13  ;;  %v2323_v13 = vsel %vm144_vm0, %v2266_v6, 0.0  ;;  %v2269_v27 = vmul.f32 %v10880_v17, %v10880_v17  ;;  %v2327_v49 = vsel %vm144_vm0, %v2268_v60, 0.0 }
 0x4c0   : > { %v2310_v56 = vadd.f32 %v2309_v15, %v2308_v34  ;;  %v2325_v34 = vsel %vm144_vm0, %v2267_v52, 0.0  ;;  %v2270_v15 = vmul.f32 %v10887_v63, %v10887_v63 }
 0x4c2   : > { %v2312_v54 = vadd.f32 %v2311_v50, %v2310_v56  ;;  %v2329_v50 = vsel %vm144_vm0, %v2269_v27, 0.0  ;;  %v2331_v1 = vsel %vm144_vm0, %v2270_v15, 0.0 }
 0x4c4   : > { %v2314_v18 = vadd.f32 %v2313_v24, %v2312_v54 }
 0x4c6   : > { %v2316_v4 = vadd.f32 %v2315_v20, %v2314_v18 }
 0x4c8   : > { %v2318_v37 = vadd.f32 %v2317_v14, %v2316_v4 }
 0x4ca   : > { %v2320_v7 = vadd.f32 %v2319_v16, %v2318_v37  ;;  %v2514_v37 = vld [vmem:[#allocation2 + $0x9] sm:$0xff] }
 0x4cb   : > { %2579 = vrot.lane.b32.xlu2 %v2514_v37, %s9242_s11 }
 0x4cc   : > { %v2322_v61 = vadd.f32 %v2321_v2, %v2320_v7  ;;  %v2513_v7 = vld [vmem:[#allocation2 + $0x1] sm:$0xff] }
 0x4cd   : > { %2577 = vrot.lane.b32.xlu1 %v2513_v7, %s9242_s11 }
 0x4ce   : > { %v2324_v21 = vadd.f32 %v2323_v13, %v2322_v61 }
 0x4d0   : > { %v2326_v53 = vadd.f32 %v2325_v34, %v2324_v21 }
 0x4d2   : > { %v2328_v56 = vadd.f32 %v2327_v49, %v2326_v53 }
 0x4d4   : > { %v2330_v54 = vadd.f32 %v2329_v50, %v2328_v56 }
 0x4d6   : > { %v2332_v24 = vadd.f32 %v2331_v1, %v2330_v54 }
 0x4d8   : > { %v2334_v3 = vadd.f32 %v2333_v55, %v2332_v24 }
 0x4da   : > { %v2335_v18 = vrot.slane %v2334_v3, 4 }
 0x4dc   : > { %v2336_v58 = vadd.f32 %v2335_v18, %v2334_v3 }
 0x4de   : > { %v2337_v20 = vrot.slane %v2336_v58, 2 }
 0x4e0   : > { %v2338_v4 = vadd.f32 %v2337_v20, %v2336_v58 }
 0x4e2   : > { %v2339_v43 = vrot.slane %v2338_v4, 1 }
 0x4e4   : > { %v2340_v14 = vadd.f32 %v2339_v43, %v2338_v4 }
 0x4e6   : > { %v2341_v6 = vmul.f32 %v2340_v14, %v10678_v48 }
 0x4e8   : > { %v2342_v16 = vadd.f32 1e-05, %v2341_v6 }
 0x4ea   : > { %9225 = vrsqrt.f32 %v2342_v16  ;;  %vm2349_vm14 = vweird.f32 %v2342_v16 }
 0x4f0   : > { %v9226_v52 = vpop.eup %9225 }
 0x4f1   : > { %v2344_v2 = vmul.f32 %v9226_v52, %v2342_v16  ;;  %vm2350_vm13 = vweird.f32 %v9226_v52 }
 0x4f2   : > { %vm2351_vm15 = vmor %vm2349_vm14, %vm2350_vm13 }
 0x4f3   : > { %v2345_v61 = vmul.f32 %v9226_v52, %v2344_v2 }
 0x4f5   : > { %v2346_v60 = vmul.f32 0.5, %v2345_v61 }
 0x4f7   : > { %v2347_v13 = vsub.f32 1.5, %v2346_v60 }
 0x4f9   : > { %v2348_v21 = vmul.f32 %v9226_v52, %v2347_v13 }
 0x4fb   : > { %v10906_v27 = vsel %vm2351_vm15, %v9226_v52, %v2348_v21 }
 0x4fc   : > { %v2384_v34 = vmul.f32 %v10906_v27, %v2239_v26  ;;  %v2353_v15 = vmul.f32 %v10906_v27, %v10685_v32  ;;  %v2354_v49 = vmul.f32 %v10906_v27, %v10689_v12  ;;  %v2355_v56 = vmul.f32 %v10906_v27, %v10693_v59 }
 0x4fd   : > { %v2356_v46 = vmul.f32 %v10906_v27, %v10697_v38  ;;  %v2357_v50 = vmul.f32 %v10906_v27, %v10705_v62  ;;  %v2358_v26 = vmul.f32 %v10906_v27, %v10711_v35  ;;  %v2359_v32 = vmul.f32 %v10906_v27, %v10719_v40 }
 0x4fe   : > { %v2416_v53 = vmax.f32 %v2384_v34, 0.0  ;;  %v2385_v54 = vmax.f32 %v2353_v15, 0.0  ;;  %v2386_v1 = vmax.f32 %v2354_v49, 0.0  ;;  %v2387_v12 = vmax.f32 %v2355_v56, 0.0 }
 0x4ff   : > { %v2360_v59 = vmul.f32 %v10906_v27, %v10726_v30  ;;  %v2388_v24 = vmax.f32 %v2356_v46, 0.0  ;;  %v2361_v55 = vmul.f32 %v10906_v27, %v10733_v22  ;;  %v2389_v38 = vmax.f32 %v2357_v50, 0.0 }
 0x500   : > { %2448 = vst.msk [vmem:[#allocation2 + $0x189] sm:$0xff] %vm144_vm0, %v2416_v53  ;;  %v2362_v62 = vmul.f32 %v10906_v27, %v10740_v28  ;;  %v2390_v35 = vmax.f32 %v2358_v26, 0.0  ;;  %v2363_v40 = vmul.f32 %v10906_v27, %v10747_v39  ;;  %v2391_v3 = vmax.f32 %v2359_v32, 0.0 }
 0x501   : > { %2417 = vst.msk [vmem:[#allocation2 + $0x19] sm:$0xff] %vm144_vm0, %v2385_v54  ;;  %v2364_v30 = vmul.f32 %v10906_v27, %v10754_v45  ;;  %v2392_v18 = vmax.f32 %v2360_v59, 0.0  ;;  %v2365_v22 = vmul.f32 %v10906_v27, %v10761_v23  ;;  %v2393_v58 = vmax.f32 %v2361_v55, 0.0 }
 0x502   : > { %2418 = vst.msk [vmem:[#allocation2 + $0x21] sm:$0xff] %vm144_vm0, %v2386_v1  ;;  %v2366_v28 = vmul.f32 %v10906_v27, %v10768_v51  ;;  %v2394_v20 = vmax.f32 %v2362_v62, 0.0  ;;  %v2367_v39 = vmul.f32 %v10906_v27, %v10775_v31  ;;  %v2395_v4 = vmax.f32 %v2363_v40, 0.0 }
 0x503   : > { %2419 = vst.msk [vmem:[#allocation2 + $0x31] sm:$0xff] %vm144_vm0, %v2387_v12  ;;  %v2368_v45 = vmul.f32 %v10906_v27, %v10782_v57  ;;  %v2396_v43 = vmax.f32 %v2364_v30, 0.0  ;;  %v2369_v51 = vmul.f32 %v10906_v27, %v10789_v11  ;;  %v2397_v14 = vmax.f32 %v2365_v22, 0.0 }
 0x504   : > { %2420 = vst.msk [vmem:[#allocation2 + $0x39] sm:$0xff] %vm144_vm0, %v2388_v24  ;;  %v2370_v31 = vmul.f32 %v10906_v27, %v10796_v0  ;;  %v2398_v57 = vmax.f32 %v2366_v28, 0.0  ;;  %v2371_v11 = vmul.f32 %v10906_v27, %v10803_v8  ;;  %v2399_v16 = vmax.f32 %v2367_v39, 0.0 }
 0x505   : > { %2421 = vst.msk [vmem:[#allocation2 + $0x49] sm:$0xff] %vm144_vm0, %v2389_v38  ;;  %v2372_v0 = vmul.f32 %v10906_v27, %v10810_v29  ;;  %v2400_v7 = vmax.f32 %v2368_v45, 0.0  ;;  %v2373_v52 = vmul.f32 %v10906_v27, %v10817_v36  ;;  %v2401_v2 = vmax.f32 %v2369_v51, 0.0 }
 0x506   : > { %2422 = vst.msk [vmem:[#allocation2 + $0x51] sm:$0xff] %vm144_vm0, %v2390_v35  ;;  %v2374_v8 = vmul.f32 %v10906_v27, %v10824_v33  ;;  %v2402_v61 = vmax.f32 %v2370_v31, 0.0  ;;  %v2375_v60 = vmul.f32 %v10906_v27, %v10831_v5  ;;  %v2403_v13 = vmax.f32 %v2371_v11, 0.0 }
 0x507   : > { %2423 = vst.msk [vmem:[#allocation2 + $0x61] sm:$0xff] %vm144_vm0, %v2391_v3  ;;  %v2376_v29 = vmul.f32 %v10906_v27, %v10838_v9  ;;  %v2404_v21 = vmax.f32 %v2372_v0, 0.0  ;;  %v2377_v33 = vmul.f32 %v10906_v27, %v10845_v42  ;;  %v2405_v34 = vmax.f32 %v2373_v52, 0.0 }
 0x508   : > { %2424 = vst.msk [vmem:[#allocation2 + $0x69] sm:$0xff] %vm144_vm0, %v2392_v18  ;;  %v10950_v23 = vld [vmem:[#allocation2 + $0x19] sm:$0xff]  ;;  %v2378_v5 = vmul.f32 %v10906_v27, %v10852_v19  ;;  %v2406_v9 = vmax.f32 %v2374_v8, 0.0  ;;  %v2379_v42 = vmul.f32 %v10906_v27, %v10859_v10  ;;  %v2407_v49 = vmax.f32 %v2375_v60, 0.0 }
 0x509   : > { %2425 = vst.msk [vmem:[#allocation2 + $0x79] sm:$0xff] %vm144_vm0, %v2393_v58  ;;  %v10955_v37 = vld [vmem:[#allocation2 + $0x21] sm:$0xff]  ;;  %2581 = vrot.lane.b32.xlu0 %v10950_v23, %s9242_s11  ;;  %v2380_v19 = vmul.f32 %v10906_v27, %v10866_v47  ;;  %v2408_v56 = vmax.f32 %v2376_v29, 0.0  ;;  %v2381_v46 = vmul.f32 %v10906_v27, %v10873_v44  ;;  %v2409_v50 = vmax.f32 %v2377_v33, 0.0  ;;  %v11065_v30 = vld [vmem:[#allocation2 + $0x18] sm:$0xff] }
 0x50a   : > { %2426 = vst.msk [vmem:[#allocation2 + $0x81] sm:$0xff] %vm144_vm0, %v2394_v20  ;;  %v10962_v6 = vld [vmem:[#allocation2 + $0x31] sm:$0xff]  ;;  %2583 = vrot.lane.b32.xlu1 %v10955_v37, %s9242_s11  ;;  %v2382_v10 = vmul.f32 %v10906_v27, %v10880_v17  ;;  %v2410_v26 = vmax.f32 %v2378_v5, 0.0  ;;  %v2383_v32 = vmul.f32 %v10906_v27, %v10887_v63  ;;  %v2411_v54 = vmax.f32 %v2379_v42, 0.0  ;;  %v11057_v40 = vld [vmem:[#allocation2 + $0x20] sm:$0xff] }
 0x50b   : > { %2427 = vst.msk [vmem:[#allocation2 + $0x91] sm:$0xff] %vm144_vm0, %v2395_v4  ;;  %2585 = vrot.lane.b32.xlu2 %v10962_v6, %s9242_s11  ;;  %v10986_v36 = vld [vmem:[#allocation2 + $0x39] sm:$0xff]  ;;  %v2412_v47 = vmax.f32 %v2380_v19, 0.0  ;;  %v2413_v44 = vmax.f32 %v2381_v46, 0.0  ;;  %v11037_v59 = vld [vmem:[#allocation2 + $0x30] sm:$0xff]  ;;  %v2450_v19 = vld [vmem:[#allocation2 + $0x8] sm:$0xff] }
 0x50c   : > { %2428 = vst.msk [vmem:[#allocation2 + $0x99] sm:$0xff] %vm144_vm0, %v2396_v43  ;;  %v10991_v53 = vld [vmem:[#allocation2 + $0x49] sm:$0xff]  ;;  %v2414_v17 = vmax.f32 %v2382_v10, 0.0  ;;  %v2415_v27 = vmax.f32 %v2383_v32, 0.0  ;;  %v11079_v58 = vld [vmem:[#allocation2 + $0x38] sm:$0xff] }
 0x50d   : > { %2429 = vst.msk [vmem:[#allocation2 + $0xa9] sm:$0xff] %vm144_vm0, %v2397_v14  ;;  %v10998_v15 = vld [vmem:[#allocation2 + $0x51] sm:$0xff]  ;;  %v11075_v22 = vld [vmem:[#allocation2 + $0x48] sm:$0xff] }
 0x50e   : > { %2430 = vst.msk [vmem:[#allocation2 + $0xb1] sm:$0xff] %vm144_vm0, %v2398_v57  ;;  %v11020_v1 = vld [vmem:[#allocation2 + $0x61] sm:$0xff]  ;;  %v11040_v24 = vld [vmem:[#allocation2 + $0x50] sm:$0xff] }
 0x50f   : > { %2431 = vst.msk [vmem:[#allocation2 + $0xc1] sm:$0xff] %vm144_vm0, %v2399_v16  ;;  %v11023_v12 = vld [vmem:[#allocation2 + $0x69] sm:$0xff]  ;;  %v11093_v4 = vld [vmem:[#allocation2 + $0x60] sm:$0xff] }
 0x510   : > { %2432 = vst.msk [vmem:[#allocation2 + $0xc9] sm:$0xff] %vm144_vm0, %v2400_v7  ;;  %v11028_v63 = vld [vmem:[#allocation2 + $0x79] sm:$0xff]  ;;  %v11087_v20 = vld [vmem:[#allocation2 + $0x68] sm:$0xff] }
 0x511   : > { %2433 = vst.msk [vmem:[#allocation2 + $0xd9] sm:$0xff] %vm144_vm0, %v2401_v2  ;;  %2587 = vrot.lane.b32.xlu0 %v10986_v36, %s9242_s11  ;;  %v11043_v55 = vld [vmem:[#allocation2 + $0x78] sm:$0xff]  ;;  %v11045_v38 = vld [vmem:[#allocation2 + $0x81] sm:$0xff] }
 0x512   : > { %2434 = vst.msk [vmem:[#allocation2 + $0xe1] sm:$0xff] %vm144_vm0, %v2402_v61  ;;  %2589 = vrot.lane.b32.xlu1 %v10991_v53, %s9242_s11  ;;  %v11051_v35 = vld [vmem:[#allocation2 + $0x91] sm:$0xff]  ;;  %v11115_v31 = vld [vmem:[#allocation2 + $0x80] sm:$0xff] }
 0x513   : > { %2435 = vst.msk [vmem:[#allocation2 + $0xf1] sm:$0xff] %vm144_vm0, %v2403_v13  ;;  %2591 = vrot.lane.b32.xlu2 %v10998_v15, %s9242_s11  ;;  %v11049_v62 = vld [vmem:[#allocation2 + $0x98] sm:$0xff]  ;;  %v11109_v14 = vld [vmem:[#allocation2 + $0x90] sm:$0xff] }
 0x514   : > { %2436 = vst.msk [vmem:[#allocation2 + $0xf9] sm:$0xff] %vm144_vm0, %v2404_v21  ;;  %v11059_v3 = vld [vmem:[#allocation2 + $0x99] sm:$0xff]  ;;  %v11089_v39 = vld [vmem:[#allocation2 + $0xa9] sm:$0xff] }
 0x515   : > { %2437 = vst.msk [vmem:[#allocation2 + $0x109] sm:$0xff] %vm144_vm0, %v2405_v34  ;;  %v11095_v45 = vld [vmem:[#allocation2 + $0xb1] sm:$0xff]  ;;  %v11127_v16 = vld [vmem:[#allocation2 + $0xa8] sm:$0xff] }
 0x516   : > { %2438 = vst.msk [vmem:[#allocation2 + $0x111] sm:$0xff] %vm144_vm0, %v2406_v9  ;;  %v11071_v18 = vld [vmem:[#allocation2 + $0xc0] sm:$0xff]  ;;  %v11123_v11 = vld [vmem:[#allocation2 + $0xb0] sm:$0xff] }
 0x517   : > { %2439 = vst.msk [vmem:[#allocation2 + $0x121] sm:$0xff] %vm144_vm0, %v2407_v49  ;;  %v11103_v51 = vld [vmem:[#allocation2 + $0xc1] sm:$0xff]  ;;  %v11133_v7 = vld [vmem:[#allocation2 + $0xc9] sm:$0xff] }
 0x518   : > { %2440 = vst.msk [vmem:[#allocation2 + $0x129] sm:$0xff] %vm144_vm0, %v2408_v56  ;;  %v11137_v52 = vld [vmem:[#allocation2 + $0xd8] sm:$0xff]  ;;  %v11145_v8 = vld [vmem:[#allocation2 + $0xc8] sm:$0xff] }
 0x519   : > { %2441 = vst.msk [vmem:[#allocation2 + $0x139] sm:$0xff] %vm144_vm0, %v2409_v50  ;;  %2593 = vrot.lane.b32.xlu0 %v11020_v1, %s9242_s11  ;;  %v11083_v28 = vld [vmem:[#allocation2 + $0xe0] sm:$0xff] }
 0x51a   : > { %2442 = vst.msk [vmem:[#allocation2 + $0x141] sm:$0xff] %vm144_vm0, %v2410_v26  ;;  %2595 = vrot.lane.b32.xlu1 %v11023_v12, %s9242_s11  ;;  %v11139_v2 = vld [vmem:[#allocation2 + $0xd9] sm:$0xff]  ;;  %v11147_v61 = vld [vmem:[#allocation2 + $0xe1] sm:$0xff]  ;;  %v11163_v29 = vld [vmem:[#allocation2 + $0xf0] sm:$0xff] }
 0x51b   : > { %2443 = vst.msk [vmem:[#allocation2 + $0x151] sm:$0xff] %vm144_vm0, %v2411_v54  ;;  %2597 = vrot.lane.b32.xlu2 %v11028_v63, %s9242_s11  ;;  %v11159_v13 = vld [vmem:[#allocation2 + $0xf8] sm:$0xff] }
 0x51c   : > { %2444 = vst.msk [vmem:[#allocation2 + $0x159] sm:$0xff] %vm144_vm0, %v2412_v47  ;;  %v11101_v43 = vld [vmem:[#allocation2 + $0x108] sm:$0xff]  ;;  %v11177_v5 = vld [vmem:[#allocation2 + $0xf1] sm:$0xff]  ;;  %v11183_v42 = vld [vmem:[#allocation2 + $0xf9] sm:$0xff] }
 0x51d   : > { %2445 = vst.msk [vmem:[#allocation2 + $0x169] sm:$0xff] %vm144_vm0, %v2413_v44  ;;  %v11171_v33 = vld [vmem:[#allocation2 + $0x110] sm:$0xff] }
 0x51e   : > { %2446 = vst.msk [vmem:[#allocation2 + $0x171] sm:$0xff] %vm144_vm0, %v2414_v17  ;;  %v11167_v21 = vld [vmem:[#allocation2 + $0x120] sm:$0xff]  ;;  %v11189_v49 = vld [vmem:[#allocation2 + $0x109] sm:$0xff]  ;;  %v11209_v10 = vld [vmem:[#allocation2 + $0x111] sm:$0xff] }
 0x51f   : > { %2447 = vst.msk [vmem:[#allocation2 + $0x181] sm:$0xff] %vm144_vm0, %v2415_v27  ;;  %v11119_v57 = vld [vmem:[#allocation2 + $0x128] sm:$0xff] }
 0x520   : > { %2485 = vst.msk [vmem:[#allocation3 + $0x20] sm:$0xff] %vm144_vm0, %v11037_v59  ;;  %v11181_v9 = vld [vmem:[#allocation2 + $0x138] sm:$0xff]  ;;  %v11211_v26 = vld [vmem:[#allocation2 + $0x121] sm:$0xff]  ;;  %v11215_v32 = vld [vmem:[#allocation2 + $0x129] sm:$0xff] }
 0x521   : > { %2599 = vrot.lane.b32.xlu0 %v11045_v38, %s9242_s11  ;;  %2488 = vst.msk [vmem:[#allocation3 + $0x38] sm:$0xff] %vm144_vm0, %v11040_v24  ;;  %v11175_v34 = vld [vmem:[#allocation2 + $0x140] sm:$0xff] }
 0x522   : > { %2601 = vrot.lane.b32.xlu1 %v11051_v35, %s9242_s11  ;;  %2491 = vst.msk [vmem:[#allocation3 + $0x50] sm:$0xff] %vm144_vm0, %v11043_v55  ;;  %v11131_v0 = vld [vmem:[#allocation2 + $0x150] sm:$0xff]  ;;  %v11221_v54 = vld [vmem:[#allocation2 + $0x139] sm:$0xff]  ;;  %v11223_v47 = vld [vmem:[#allocation2 + $0x141] sm:$0xff] }
 0x523   : > { %2603 = vrot.lane.b32.xlu2 %v11059_v3, %s9242_s11  ;;  %2494 = vst.msk [vmem:[#allocation3 + $0x68] sm:$0xff] %vm144_vm0, %v11049_v62  ;;  %v11202_v50 = vld [vmem:[#allocation2 + $0x158] sm:$0xff] }
 0x524   : > { %2484 = vst.msk [vmem:[#allocation3 + $0x18] sm:$0xff] %vm144_vm0, %v11057_v40  ;;  %v11199_v56 = vld [vmem:[#allocation2 + $0x168] sm:$0xff]  ;;  %v11227_v44 = vld [vmem:[#allocation2 + $0x151] sm:$0xff]  ;;  %v11233_v17 = vld [vmem:[#allocation2 + $0x159] sm:$0xff] }
 0x525   : > { %2483 = vst.msk [vmem:[#allocation3 + $0x10] sm:$0xff] %vm144_vm0, %v11065_v30  ;;  %v11153_v60 = vld [vmem:[#allocation2 + $0x170] sm:$0xff]  ;;  %v2580_v46 = vpop.permute.xlu2 %2579 }
 0x526   : > { %2497 = vst.msk [vmem:[#allocation3 + $0x80] sm:$0xff] %vm144_vm0, %v11071_v18  ;;  %v11235_v27 = vld [vmem:[#allocation2 + $0x169] sm:$0xff] }
 0x527   : > { %2487 = vst.msk [vmem:[#allocation3 + $0x30] sm:$0xff] %vm144_vm0, %v11075_v22 }
 0x528   : > { %2486 = vst.msk [vmem:[#allocation3 + $0x28] sm:$0xff] %vm144_vm0, %v11079_v58 }
 0x529   : > { %2605 = vrot.lane.b32.xlu0 %v11089_v39, %s9242_s11  ;;  %2500 = vst.msk [vmem:[#allocation3 + $0x98] sm:$0xff] %vm144_vm0, %v11083_v28 }
 0x52a   : > { %2607 = vrot.lane.b32.xlu1 %v11095_v45, %s9242_s11  ;;  %2490 = vst.msk [vmem:[#allocation3 + $0x48] sm:$0xff] %vm144_vm0, %v11087_v20 }
 0x52b   : > { %2609 = vrot.lane.b32.xlu2 %v11103_v51, %s9242_s11  ;;  %2489 = vst.msk [vmem:[#allocation3 + $0x40] sm:$0xff] %vm144_vm0, %v11093_v4 }
 0x52c   : > { %2503 = vst.msk [vmem:[#allocation3 + $0xb0] sm:$0xff] %vm144_vm0, %v11101_v43 }
 0x52d   : > { %2493 = vst.msk [vmem:[#allocation3 + $0x60] sm:$0xff] %vm144_vm0, %v11109_v14 }
 0x52e   : > { %2492 = vst.msk [vmem:[#allocation3 + $0x58] sm:$0xff] %vm144_vm0, %v11115_v31 }
 0x52f   : > { %2506 = vst.msk [vmem:[#allocation3 + $0xc8] sm:$0xff] %vm144_vm0, %v11119_v57 }
 0x530   : > { %2496 = vst.msk [vmem:[#allocation3 + $0x78] sm:$0xff] %vm144_vm0, %v11123_v11 }
 0x531   : > { %2611 = vrot.lane.b32.xlu0 %v11133_v7, %s9242_s11  ;;  %2495 = vst.msk [vmem:[#allocation3 + $0x70] sm:$0xff] %vm144_vm0, %v11127_v16 }
 0x532   : > { %2613 = vrot.lane.b32.xlu1 %v11139_v2, %s9242_s11  ;;  %2509 = vst.msk [vmem:[#allocation3 + $0xe0] sm:$0xff] %vm144_vm0, %v11131_v0 }
 0x533   : > { %2615 = vrot.lane.b32.xlu2 %v11147_v61, %s9242_s11  ;;  %2499 = vst.msk [vmem:[#allocation3 + $0x90] sm:$0xff] %vm144_vm0, %v11137_v52 }
 0x534   : > { %2498 = vst.msk [vmem:[#allocation3 + $0x88] sm:$0xff] %vm144_vm0, %v11145_v8 }
 0x535   : > { %2512 = vst.msk [vmem:[#allocation3 + $0xf8] sm:$0xff] %vm144_vm0, %v11153_v60 }
 0x536   : > { %2502 = vst.msk [vmem:[#allocation3 + $0xa8] sm:$0xff] %vm144_vm0, %v11159_v13 }
 0x537   : > { %2501 = vst.msk [vmem:[#allocation3 + $0xa0] sm:$0xff] %vm144_vm0, %v11163_v29 }
 0x538   : > { %2505 = vst.msk [vmem:[#allocation3 + $0xc0] sm:$0xff] %vm144_vm0, %v11167_v21 }
 0x539   : > { %2617 = vrot.lane.b32.xlu0 %v11177_v5, %s9242_s11  ;;  %2504 = vst.msk [vmem:[#allocation3 + $0xb8] sm:$0xff] %vm144_vm0, %v11171_v33 }
 0x53a   : > { %2619 = vrot.lane.b32.xlu1 %v11183_v42, %s9242_s11  ;;  %2508 = vst.msk [vmem:[#allocation3 + $0xd8] sm:$0xff] %vm144_vm0, %v11175_v34 }
 0x53b   : > { %2621 = vrot.lane.b32.xlu2 %v11189_v49, %s9242_s11  ;;  %2507 = vst.msk [vmem:[#allocation3 + $0xd0] sm:$0xff] %vm144_vm0, %v11181_v9 }
 0x53c   : > { %2482 = vst.msk [vmem:[#allocation3 + $0x8] sm:$0xff] %vm144_vm0, %v2450_v19  ;;  %v11239_v19 = vld [vmem:[#allocation2 + $0x171] sm:$0xff] }
 0x53d   : > { %2674 = vst.msk [vmem:[#allocation3 + $0x8] sm:$0xff] %vm500_vm2, %v2580_v46  ;;  %v2449_v46 = vld [vmem:[#allocation2] sm:$0xff] }
 0x53e   : > { %2511 = vst.msk [vmem:[#allocation3 + $0xf0] sm:$0xff] %vm144_vm0, %v11199_v56 }
 0x53f   : > { %2510 = vst.msk [vmem:[#allocation3 + $0xe8] sm:$0xff] %vm144_vm0, %v11202_v50  ;;  %v2578_v48 = vpop.permute.xlu1 %2577 }
 0x540   : > { %15539 = vst [vmem:[#allocation34_spill] sm:$0xff] %v11227_v44 }
 0x541   : > { %2623 = vrot.lane.b32.xlu0 %v11209_v10, %s9242_s11  ;;  %15540 = vst [vmem:[#allocation41_spill] sm:$0xff] %v11235_v27 }
 0x542   : > { %2625 = vrot.lane.b32.xlu1 %v11211_v26, %s9242_s11  ;;  %15541 = vst [vmem:[#allocation36_spill] sm:$0xff] %v11239_v19 }
 0x543   : > { %2627 = vrot.lane.b32.xlu2 %v11215_v32, %s9242_s11  ;;  %2481 = vst.msk [vmem:[#allocation3] sm:$0xff] %vm144_vm0, %v2449_v46  ;;  %v11268_v46 = vld [vmem:[#allocation2 + $0x52] sm:$0xff] }
 0x544   : > { %2673 = vst.msk [vmem:[#allocation3] sm:$0xff] %vm500_vm2, %v2578_v48  ;;  %v11266_v48 = vld [vmem:[#allocation2 + $0x4a] sm:$0xff] }
 0x545   : > { %15546 = vst [vmem:[#allocation47_spill] sm:$0xff] %v11266_v48 }
 0x546   : > { %15547 = vst [vmem:[#allocation42_spill] sm:$0xff] %v11268_v46 }
 0x549   : > { %2629 = vrot.lane.b32.xlu0 %v11221_v54, %s9242_s11 }
 0x54a   : > { %2631 = vrot.lane.b32.xlu1 %v11223_v47, %s9242_s11 }
 0x54b   : > { %2633 = vrot.lane.b32.xlu2 %v11227_v44, %s9242_s11  ;;  %v11248_v44 = vld [vmem:[#allocation2 + $0x1a] sm:$0xff] }
 0x54c   : > { %15542 = vst [vmem:[#allocation35_spill] sm:$0xff] %v11248_v44 }
 0x551   : > { %2635 = vrot.lane.b32.xlu0 %v11233_v17, %s9242_s11 }
 0x552   : > { %2637 = vrot.lane.b32.xlu1 %v11235_v27, %s9242_s11  ;;  %v11253_v27 = vld [vmem:[#allocation2 + $0x22] sm:$0xff] }
 0x553   : > { %2639 = vrot.lane.b32.xlu2 %v11239_v19, %s9242_s11  ;;  %15543 = vst [vmem:[#allocation44_spill] sm:$0xff] %v11253_v27  ;;  %v11255_v19 = vld [vmem:[#allocation2 + $0x32] sm:$0xff] }
 0x554   : > { %15544 = vst [vmem:[#allocation39_spill] sm:$0xff] %v11255_v19 }
 0x559   : > { %2769 = vrot.lane.b32.xlu0 %v2705_v25, %s9243_s16  ;;  %v11261_v25 = vld [vmem:[#allocation2 + $0x3a] sm:$0xff] }
 0x55a   : > { %2771 = vrot.lane.b32.xlu1 %v2706_v41, %s9243_s16  ;;  %15545 = vst [vmem:[#allocation37_spill] sm:$0xff] %v11261_v25 }
 0x55b   : > { %2773 = vrot.lane.b32.xlu2 %v11248_v44, %s9243_s16  ;;  %v11307_v44 = vld [vmem:[#allocation2 + $0xb2] sm:$0xff] }
 0x55c   : > { %15555 = vst [vmem:[#allocation56_spill] sm:$0xff] %v11307_v44 }
 0x561   : > { %2775 = vrot.lane.b32.xlu0 %v11253_v27, %s9243_s16  ;;  %v11274_v27 = vld [vmem:[#allocation2 + $0x62] sm:$0xff] }
 0x562   : > { %2777 = vrot.lane.b32.xlu1 %v11255_v19, %s9243_s16  ;;  %15548 = vst [vmem:[#allocation40_spill] sm:$0xff] %v11274_v27 }
 0x563   : > { %2779 = vrot.lane.b32.xlu2 %v11261_v25, %s9243_s16  ;;  %v11279_v25 = vld [vmem:[#allocation2 + $0x6a] sm:$0xff] }
 0x564   : > { %15549 = vst [vmem:[#allocation50_spill] sm:$0xff] %v11279_v25 }
 0x565   : > { %v2586_v41 = vpop.permute.xlu2 %2585 }
 0x566   : > { %2677 = vst.msk [vmem:[#allocation3 + $0x20] sm:$0xff] %vm500_vm2, %v2586_v41  ;;  %v11281_v41 = vld [vmem:[#allocation2 + $0x7a] sm:$0xff] }
 0x567   : > { %15550 = vst [vmem:[#allocation45_spill] sm:$0xff] %v11281_v41 }
 0x569   : > { %2781 = vrot.lane.b32.xlu0 %v11266_v48, %s9243_s16  ;;  %v11287_v48 = vld [vmem:[#allocation2 + $0x82] sm:$0xff] }
 0x56a   : > { %2783 = vrot.lane.b32.xlu1 %v11268_v46, %s9243_s16  ;;  %15551 = vst [vmem:[#allocation43_spill] sm:$0xff] %v11287_v48 }
 0x56b   : > { %2785 = vrot.lane.b32.xlu2 %v11274_v27, %s9243_s16  ;;  %v11292_v27 = vld [vmem:[#allocation2 + $0x92] sm:$0xff] }
 0x56c   : > { %15552 = vst [vmem:[#allocation53_spill] sm:$0xff] %v11292_v27 }
 0x56d   : > { %v2592_v19 = vpop.permute.xlu2 %2591 }
 0x56e   : > { %2680 = vst.msk [vmem:[#allocation3 + $0x38] sm:$0xff] %vm500_vm2, %v2592_v19  ;;  %v11294_v19 = vld [vmem:[#allocation2 + $0x9a] sm:$0xff] }
 0x56f   : > { %15553 = vst [vmem:[#allocation48_spill] sm:$0xff] %v11294_v19 }
 0x571   : > { %2787 = vrot.lane.b32.xlu0 %v11279_v25, %s9243_s16  ;;  %v11300_v25 = vld [vmem:[#allocation2 + $0xaa] sm:$0xff] }
 0x572   : > { %2789 = vrot.lane.b32.xlu1 %v11281_v41, %s9243_s16  ;;  %15554 = vst [vmem:[#allocation46_spill] sm:$0xff] %v11300_v25 }
 0x573   : > { %2791 = vrot.lane.b32.xlu2 %v11287_v48, %s9243_s16 }
 0x575   : > { %v2598_v46 = vpop.permute.xlu2 %2597 }
 0x576   : > { %2683 = vst.msk [vmem:[#allocation3 + $0x50] sm:$0xff] %vm500_vm2, %v2598_v46 }
 0x579   : > { %2793 = vrot.lane.b32.xlu0 %v11292_v27, %s9243_s16  ;;  %v11309_v27 = vld [vmem:[#allocation2 + $0xc2] sm:$0xff] }
 0x57a   : > { %2795 = vrot.lane.b32.xlu1 %v11294_v19, %s9243_s16  ;;  %15556 = vst [vmem:[#allocation51_spill] sm:$0xff] %v11309_v27 }
 0x57b   : > { %2797 = vrot.lane.b32.xlu2 %v11300_v25, %s9243_s16  ;;  %v2582_v41 = vpop.permute.xlu0 %2581  ;;  %v11315_v25 = vld [vmem:[#allocation2 + $0xca] sm:$0xff] }
 0x57c   : > { %v2584_v48 = vpop.permute.xlu1 %2583  ;;  %2675 = vst.msk [vmem:[#allocation3 + $0x10] sm:$0xff] %vm500_vm2, %v2582_v41 }
 0x57d   : > { %v2604_v46 = vpop.permute.xlu2 %2603  ;;  %2676 = vst.msk [vmem:[#allocation3 + $0x18] sm:$0xff] %vm500_vm2, %v2584_v48 }
 0x57e   : > { %2686 = vst.msk [vmem:[#allocation3 + $0x68] sm:$0xff] %vm500_vm2, %v2604_v46  ;;  %v11322_v46 = vld [vmem:[#allocation2 + $0xda] sm:$0xff] }
 0x57f   : > { %15557 = vst [vmem:[#allocation49_spill] sm:$0xff] %v11315_v25 }
 0x580   : > { %15558 = vst [vmem:[#allocation59_spill] sm:$0xff] %v11322_v46 }
 0x581   : > { %2799 = vrot.lane.b32.xlu0 %v11307_v44, %s9243_s16  ;;  %v11324_v44 = vld [vmem:[#allocation2 + $0xe2] sm:$0xff] }
 0x582   : > { %2801 = vrot.lane.b32.xlu1 %v11309_v27, %s9243_s16  ;;  %15559 = vst [vmem:[#allocation54_spill] sm:$0xff] %v11324_v44 }
 0x583   : > { %2803 = vrot.lane.b32.xlu2 %v11315_v25, %s9243_s16  ;;  %v2588_v41 = vpop.permute.xlu0 %2587  ;;  %v11330_v25 = vld [vmem:[#allocation2 + $0xf2] sm:$0xff] }
 0x584   : > { %v2590_v19 = vpop.permute.xlu1 %2589  ;;  %2678 = vst.msk [vmem:[#allocation3 + $0x28] sm:$0xff] %vm500_vm2, %v2588_v41 }
 0x585   : > { %v2610_v48 = vpop.permute.xlu2 %2609  ;;  %2679 = vst.msk [vmem:[#allocation3 + $0x30] sm:$0xff] %vm500_vm2, %v2590_v19 }
 0x586   : > { %2689 = vst.msk [vmem:[#allocation3 + $0x80] sm:$0xff] %vm500_vm2, %v2610_v48  ;;  %v11337_v48 = vld [vmem:[#allocation2 + $0xfa] sm:$0xff] }
 0x587   : > { %15560 = vst [vmem:[#allocation52_spill] sm:$0xff] %v11330_v25 }
 0x588   : > { %15561 = vst [vmem:[#allocation62_spill] sm:$0xff] %v11337_v48 }
 0x589   : > { %2805 = vrot.lane.b32.xlu0 %v11322_v46, %s9243_s16  ;;  %v11339_v46 = vld [vmem:[#allocation2 + $0x10a] sm:$0xff] }
 0x58a   : > { %2807 = vrot.lane.b32.xlu1 %v11324_v44, %s9243_s16  ;;  %15562 = vst [vmem:[#allocation57_spill] sm:$0xff] %v11339_v46 }
 0x58b   : > { %2809 = vrot.lane.b32.xlu2 %v11330_v25, %s9243_s16  ;;  %v2594_v41 = vpop.permute.xlu0 %2593  ;;  %v11345_v25 = vld [vmem:[#allocation2 + $0x112] sm:$0xff] }
 0x58c   : > { %v2596_v27 = vpop.permute.xlu1 %2595  ;;  %2681 = vst.msk [vmem:[#allocation3 + $0x40] sm:$0xff] %vm500_vm2, %v2594_v41 }
 0x58d   : > { %v2616_v19 = vpop.permute.xlu2 %2615  ;;  %2682 = vst.msk [vmem:[#allocation3 + $0x48] sm:$0xff] %vm500_vm2, %v2596_v27 }
 0x58e   : > { %2692 = vst.msk [vmem:[#allocation3 + $0x98] sm:$0xff] %vm500_vm2, %v2616_v19  ;;  %v11352_v19 = vld [vmem:[#allocation2 + $0x122] sm:$0xff] }
 0x58f   : > { %15563 = vst [vmem:[#allocation55_spill] sm:$0xff] %v11345_v25 }
 0x590   : > { %15564 = vst [vmem:[#allocation60_spill] sm:$0xff] %v11352_v19 }
 0x591   : > { %2811 = vrot.lane.b32.xlu0 %v11337_v48, %s9243_s16  ;;  %v11354_v48 = vld [vmem:[#allocation2 + $0x12a] sm:$0xff] }
 0x592   : > { %2813 = vrot.lane.b32.xlu1 %v11339_v46, %s9243_s16  ;;  %15565 = vst [vmem:[#allocation58_spill] sm:$0xff] %v11354_v48 }
 0x593   : > { %2815 = vrot.lane.b32.xlu2 %v11345_v25, %s9243_s16  ;;  %v2600_v41 = vpop.permute.xlu0 %2599  ;;  %v11360_v25 = vld [vmem:[#allocation2 + $0x13a] sm:$0xff] }
 0x594   : > { %v2602_v44 = vpop.permute.xlu1 %2601  ;;  %2684 = vst.msk [vmem:[#allocation3 + $0x58] sm:$0xff] %vm500_vm2, %v2600_v41 }
 0x595   : > { %v2622_v27 = vpop.permute.xlu2 %2621  ;;  %2685 = vst.msk [vmem:[#allocation3 + $0x60] sm:$0xff] %vm500_vm2, %v2602_v44 }
 0x596   : > { %2695 = vst.msk [vmem:[#allocation3 + $0xb0] sm:$0xff] %vm500_vm2, %v2622_v27  ;;  %v11367_v27 = vld [vmem:[#allocation2 + $0x142] sm:$0xff] }
 0x597   : > { %15566 = vst [vmem:[#allocation63_spill] sm:$0xff] %v11360_v25 }
 0x598   : > { %15567 = vst [vmem:[#allocation61_spill] sm:$0xff] %v11367_v27 }
 0x599   : > { %2817 = vrot.lane.b32.xlu0 %v11352_v19, %s9243_s16  ;;  %v11369_v19 = vld [vmem:[#allocation2 + $0x152] sm:$0xff] }
 0x59a   : > { %2819 = vrot.lane.b32.xlu1 %v11354_v48, %s9243_s16 }
 0x59b   : > { %2821 = vrot.lane.b32.xlu2 %v11360_v25, %s9243_s16  ;;  %v2606_v41 = vpop.permute.xlu0 %2605  ;;  %v11375_v25 = vld [vmem:[#allocation2 + $0x15a] sm:$0xff] }
 0x59c   : > { %v2608_v46 = vpop.permute.xlu1 %2607  ;;  %2687 = vst.msk [vmem:[#allocation3 + $0x70] sm:$0xff] %vm500_vm2, %v2606_v41 }
 0x59d   : > { %v2628_v44 = vpop.permute.xlu2 %2627  ;;  %2688 = vst.msk [vmem:[#allocation3 + $0x78] sm:$0xff] %vm500_vm2, %v2608_v46 }
 0x59e   : > { %2698 = vst.msk [vmem:[#allocation3 + $0xc8] sm:$0xff] %vm500_vm2, %v2628_v44  ;;  %v11382_v44 = vld [vmem:[#allocation2 + $0x16a] sm:$0xff] }
 0x59f   : > { %15568 = vst [vmem:[#allocation66_spill] sm:$0xff] %v11375_v25 }
 0x5a1   : > { %2823 = vrot.lane.b32.xlu0 %v11367_v27, %s9243_s16  ;;  %v11384_v27 = vld [vmem:[#allocation2 + $0x172] sm:$0xff] }
 0x5a2   : > { %2825 = vrot.lane.b32.xlu1 %v11369_v19, %s9243_s16 }
 0x5a3   : > { %2827 = vrot.lane.b32.xlu2 %v11375_v25, %s9243_s16  ;;  %v2612_v41 = vpop.permute.xlu0 %2611 }
 0x5a4   : > { %v2614_v48 = vpop.permute.xlu1 %2613  ;;  %2690 = vst.msk [vmem:[#allocation3 + $0x88] sm:$0xff] %vm500_vm2, %v2612_v41 }
 0x5a5   : > { %v2634_v46 = vpop.permute.xlu2 %2633  ;;  %2691 = vst.msk [vmem:[#allocation3 + $0x90] sm:$0xff] %vm500_vm2, %v2614_v48 }
 0x5a6   : > { %2701 = vst.msk [vmem:[#allocation3 + $0xe0] sm:$0xff] %vm500_vm2, %v2634_v46 }
 0x5a9   : > { %2829 = vrot.lane.b32.xlu0 %v11382_v44, %s9243_s16 }
 0x5aa   : > { %2831 = vrot.lane.b32.xlu1 %v11384_v27, %s9243_s16 }
 0x5ab   : > { %2961 = vrot.lane.b32.xlu2 %v11065_v30, %s9244_s17  ;;  %v2618_v25 = vpop.permute.xlu0 %2617 }
 0x5ac   : > { %v2620_v41 = vpop.permute.xlu1 %2619  ;;  %2693 = vst.msk [vmem:[#allocation3 + $0xa0] sm:$0xff] %vm500_vm2, %v2618_v25 }
 0x5ad   : > { %v2640_v48 = vpop.permute.xlu2 %2639  ;;  %2694 = vst.msk [vmem:[#allocation3 + $0xa8] sm:$0xff] %vm500_vm2, %v2620_v41 }
 0x5ae   : > { %2704 = vst.msk [vmem:[#allocation3 + $0xf8] sm:$0xff] %vm500_vm2, %v2640_v48 }
 0x5b1   : > { %2963 = vrot.lane.b32.xlu0 %v11057_v40, %s9244_s17 }
 0x5b2   : > { %2965 = vrot.lane.b32.xlu1 %v11037_v59, %s9244_s17 }
 0x5b3   : > { %2967 = vrot.lane.b32.xlu2 %v11079_v58, %s9244_s17  ;;  %v2624_v46 = vpop.permute.xlu0 %2623 }
 0x5b4   : > { %v2626_v30 = vpop.permute.xlu1 %2625  ;;  %2696 = vst.msk [vmem:[#allocation3 + $0xb8] sm:$0xff] %vm500_vm2, %v2624_v46 }
 0x5b5   : > { %2697 = vst.msk [vmem:[#allocation3 + $0xc0] sm:$0xff] %vm500_vm2, %v2626_v30  ;;  %v2774_v25 = vpop.permute.xlu2 %2773 }
 0x5b6   : > { %2867 = vst.msk [vmem:[#allocation3 + $0x10] sm:$0xff] %vm693_vm3, %v2774_v25 }
 0x5b9   : > { %2969 = vrot.lane.b32.xlu0 %v11075_v22, %s9244_s17 }
 0x5ba   : > { %2971 = vrot.lane.b32.xlu1 %v11040_v24, %s9244_s17 }
 0x5bb   : > { %2973 = vrot.lane.b32.xlu2 %v11093_v4, %s9244_s17  ;;  %v2630_v59 = vpop.permute.xlu0 %2629 }
 0x5bc   : > { %v2632_v40 = vpop.permute.xlu1 %2631  ;;  %2699 = vst.msk [vmem:[#allocation3 + $0xd0] sm:$0xff] %vm500_vm2, %v2630_v59 }
 0x5bd   : > { %2700 = vst.msk [vmem:[#allocation3 + $0xd8] sm:$0xff] %vm500_vm2, %v2632_v40  ;;  %v2780_v41 = vpop.permute.xlu2 %2779 }
 0x5be   : > { %2870 = vst.msk [vmem:[#allocation3 + $0x28] sm:$0xff] %vm693_vm3, %v2780_v41 }
 0x5c1   : > { %2975 = vrot.lane.b32.xlu0 %v11087_v20, %s9244_s17 }
 0x5c2   : > { %2977 = vrot.lane.b32.xlu1 %v11043_v55, %s9244_s17 }
 0x5c3   : > { %2979 = vrot.lane.b32.xlu2 %v11115_v31, %s9244_s17  ;;  %v2636_v24 = vpop.permute.xlu0 %2635 }
 0x5c4   : > { %v2638_v48 = vpop.permute.xlu1 %2637  ;;  %2702 = vst.msk [vmem:[#allocation3 + $0xe8] sm:$0xff] %vm500_vm2, %v2636_v24 }
 0x5c5   : > { %2703 = vst.msk [vmem:[#allocation3 + $0xf0] sm:$0xff] %vm500_vm2, %v2638_v48  ;;  %v2786_v46 = vpop.permute.xlu2 %2785 }
 0x5c6   : > { %2873 = vst.msk [vmem:[#allocation3 + $0x40] sm:$0xff] %vm693_vm3, %v2786_v46 }
 0x5c9   : > { %2981 = vrot.lane.b32.xlu0 %v11109_v14, %s9244_s17 }
 0x5ca   : > { %2983 = vrot.lane.b32.xlu1 %v11049_v62, %s9244_s17 }
 0x5cb   : > { %2985 = vrot.lane.b32.xlu2 %v11127_v16, %s9244_s17  ;;  %v2770_v55 = vpop.permute.xlu0 %2769 }
 0x5cc   : > { %v2772_v30 = vpop.permute.xlu1 %2771  ;;  %2865 = vst.msk [vmem:[#allocation3] sm:$0xff] %vm693_vm3, %v2770_v55 }
 0x5cd   : > { %2866 = vst.msk [vmem:[#allocation3 + $0x8] sm:$0xff] %vm693_vm3, %v2772_v30  ;;  %v2792_v25 = vpop.permute.xlu2 %2791 }
 0x5ce   : > { %2876 = vst.msk [vmem:[#allocation3 + $0x58] sm:$0xff] %vm693_vm3, %v2792_v25 }
 0x5d1   : > { %2987 = vrot.lane.b32.xlu0 %v11123_v11, %s9244_s17 }
 0x5d2   : > { %2989 = vrot.lane.b32.xlu1 %v11071_v18, %s9244_s17 }
 0x5d3   : > { %2991 = vrot.lane.b32.xlu2 %v11145_v8, %s9244_s17  ;;  %v2776_v62 = vpop.permute.xlu0 %2775 }
 0x5d4   : > { %v2778_v59 = vpop.permute.xlu1 %2777  ;;  %2868 = vst.msk [vmem:[#allocation3 + $0x18] sm:$0xff] %vm693_vm3, %v2776_v62 }
 0x5d5   : > { %2869 = vst.msk [vmem:[#allocation3 + $0x20] sm:$0xff] %vm693_vm3, %v2778_v59  ;;  %v2798_v40 = vpop.permute.xlu2 %2797  ;;  %v11480_v59 = vld [vmem:[#allocation2 + $0x180] sm:$0xff] }
 0x5d6   : > { %2879 = vst.msk [vmem:[#allocation3 + $0x70] sm:$0xff] %vm693_vm3, %v2798_v40 }
 0x5d9   : > { %2993 = vrot.lane.b32.xlu0 %v11137_v52, %s9244_s17 }
 0x5da   : > { %2995 = vrot.lane.b32.xlu1 %v11083_v28, %s9244_s17 }
 0x5db   : > { %2997 = vrot.lane.b32.xlu2 %v11163_v29, %s9244_s17  ;;  %v2782_v18 = vpop.permute.xlu0 %2781 }
 0x5dc   : > { %v2784_v41 = vpop.permute.xlu1 %2783  ;;  %2871 = vst.msk [vmem:[#allocation3 + $0x30] sm:$0xff] %vm693_vm3, %v2782_v18 }
 0x5dd   : > { %2872 = vst.msk [vmem:[#allocation3 + $0x38] sm:$0xff] %vm693_vm3, %v2784_v41  ;;  %v2804_v24 = vpop.permute.xlu2 %2803 }
 0x5de   : > { %2882 = vst.msk [vmem:[#allocation3 + $0x88] sm:$0xff] %vm693_vm3, %v2804_v24  ;;  %v11487_v24 = vld [vmem:[#allocation2 + $0x188] sm:$0xff] }
 0x5e1   : > { %2999 = vrot.lane.b32.xlu0 %v11159_v13, %s9244_s17 }
 0x5e2   : > { %3001 = vrot.lane.b32.xlu1 %v11101_v43, %s9244_s17 }
 0x5e3   : > { %3003 = vrot.lane.b32.xlu2 %v11171_v33, %s9244_s17  ;;  %v2788_v28 = vpop.permute.xlu0 %2787 }
 0x5e4   : > { %v2790_v48 = vpop.permute.xlu1 %2789  ;;  %2874 = vst.msk [vmem:[#allocation3 + $0x48] sm:$0xff] %vm693_vm3, %v2788_v28 }
 0x5e5   : > { %2875 = vst.msk [vmem:[#allocation3 + $0x50] sm:$0xff] %vm693_vm3, %v2790_v48  ;;  %v2810_v46 = vpop.permute.xlu2 %2809 }
 0x5e6   : > { %2885 = vst.msk [vmem:[#allocation3 + $0xa0] sm:$0xff] %vm693_vm3, %v2810_v46 }
 0x5e9   : > { %3005 = vrot.lane.b32.xlu0 %v11167_v21, %s9244_s17 }
 0x5ea   : > { %3007 = vrot.lane.b32.xlu1 %v11119_v57, %s9244_s17 }
 0x5eb   : > { %3009 = vrot.lane.b32.xlu2 %v11181_v9, %s9244_s17  ;;  %v2794_v43 = vpop.permute.xlu0 %2793 }
 0x5ec   : > { %v2796_v55 = vpop.permute.xlu1 %2795  ;;  %2877 = vst.msk [vmem:[#allocation3 + $0x60] sm:$0xff] %vm693_vm3, %v2794_v43 }
 0x5ed   : > { %2878 = vst.msk [vmem:[#allocation3 + $0x68] sm:$0xff] %vm693_vm3, %v2796_v55  ;;  %v2816_v30 = vpop.permute.xlu2 %2815  ;;  %v15569_v55 = vld [vmem:[#allocation34_spill] sm:$0xff] }
 0x5ee   : > { %2888 = vst.msk [vmem:[#allocation3 + $0xb8] sm:$0xff] %vm693_vm3, %v2816_v30 }
 0x5f1   : > { %3011 = vrot.lane.b32.xlu0 %v11175_v34, %s9244_s17 }
 0x5f2   : > { %3013 = vrot.lane.b32.xlu1 %v11131_v0, %s9244_s17 }
 0x5f3   : > { %3015 = vrot.lane.b32.xlu2 %v11202_v50, %s9244_s17  ;;  %v2800_v57 = vpop.permute.xlu0 %2799 }
 0x5f4   : > { %v2802_v25 = vpop.permute.xlu1 %2801  ;;  %2880 = vst.msk [vmem:[#allocation3 + $0x78] sm:$0xff] %vm693_vm3, %v2800_v57  ;;  %v11579_v57 = vld [vmem:[#allocation2 + $0x181] sm:$0xff] }
 0x5f5   : > { %2881 = vst.msk [vmem:[#allocation3 + $0x80] sm:$0xff] %vm693_vm3, %v2802_v25  ;;  %v2822_v62 = vpop.permute.xlu2 %2821  ;;  %v15571_v25 = vld [vmem:[#allocation36_spill] sm:$0xff] }
 0x5f6   : > { %2891 = vst.msk [vmem:[#allocation3 + $0xd0] sm:$0xff] %vm693_vm3, %v2822_v62 }
 0x5f9   : > { %3017 = vrot.lane.b32.xlu0 %v11199_v56, %s9244_s17 }
 0x5fa   : > { %3019 = vrot.lane.b32.xlu1 %v11153_v60, %s9244_s17 }
 0x5fb   : > { %3021 = vrot.lane.b32.xlu2 %v11480_v59, %s9244_s17  ;;  %v2806_v40 = vpop.permute.xlu0 %2805 }
 0x5fc   : > { %v2808_v18 = vpop.permute.xlu1 %2807  ;;  %2883 = vst.msk [vmem:[#allocation3 + $0x90] sm:$0xff] %vm693_vm3, %v2806_v40 }
 0x5fd   : > { %2884 = vst.msk [vmem:[#allocation3 + $0x98] sm:$0xff] %vm693_vm3, %v2808_v18  ;;  %v2828_v41 = vpop.permute.xlu2 %2827 }
 0x5fe   : > { %2894 = vst.msk [vmem:[#allocation3 + $0xe8] sm:$0xff] %vm693_vm3, %v2828_v41  ;;  %v15572_v41 = vld [vmem:[#allocation35_spill] sm:$0xff] }
 0x601   : > { %3023 = vrot.lane.b32.xlu0 %v11487_v24, %s9244_s17 }
 0x602   : > { %3153 = vrot.lane.b32.xlu1 %v10950_v23, %s9245_s18 }
 0x603   : > { %3155 = vrot.lane.b32.xlu2 %v10955_v37, %s9245_s18  ;;  %v2812_v28 = vpop.permute.xlu0 %2811 }
 0x604   : > { %v2814_v48 = vpop.permute.xlu1 %2813  ;;  %2886 = vst.msk [vmem:[#allocation3 + $0xa8] sm:$0xff] %vm693_vm3, %v2812_v28  ;;  %v15573_v28 = vld [vmem:[#allocation44_spill] sm:$0xff] }
 0x605   : > { %2887 = vst.msk [vmem:[#allocation3 + $0xb0] sm:$0xff] %vm693_vm3, %v2814_v48  ;;  %v2962_v46 = vpop.permute.xlu2 %2961  ;;  %v15574_v48 = vld [vmem:[#allocation39_spill] sm:$0xff] }
 0x606   : > { %3057 = vst.msk [vmem:[#allocation3] sm:$0xff] %vm886_vm4, %v2962_v46 }
 0x609   : > { %3157 = vrot.lane.b32.xlu0 %v10962_v6, %s9245_s18 }
 0x60a   : > { %3159 = vrot.lane.b32.xlu1 %v10986_v36, %s9245_s18 }
 0x60b   : > { %3161 = vrot.lane.b32.xlu2 %v10991_v53, %s9245_s18  ;;  %v2818_v23 = vpop.permute.xlu0 %2817 }
 0x60c   : > { %v2820_v37 = vpop.permute.xlu1 %2819  ;;  %2889 = vst.msk [vmem:[#allocation3 + $0xc0] sm:$0xff] %vm693_vm3, %v2818_v23 }
 0x60d   : > { %2890 = vst.msk [vmem:[#allocation3 + $0xc8] sm:$0xff] %vm693_vm3, %v2820_v37  ;;  %v2968_v43 = vpop.permute.xlu2 %2967 }
 0x60e   : > { %3060 = vst.msk [vmem:[#allocation3 + $0x18] sm:$0xff] %vm886_vm4, %v2968_v43  ;;  %v15575_v43 = vld [vmem:[#allocation37_spill] sm:$0xff] }
 0x611   : > { %3163 = vrot.lane.b32.xlu0 %v10998_v15, %s9245_s18 }
 0x612   : > { %3165 = vrot.lane.b32.xlu1 %v11020_v1, %s9245_s18 }
 0x613   : > { %3167 = vrot.lane.b32.xlu2 %v11023_v12, %s9245_s18  ;;  %v2824_v6 = vpop.permute.xlu0 %2823 }
 0x614   : > { %v2826_v36 = vpop.permute.xlu1 %2825  ;;  %2892 = vst.msk [vmem:[#allocation3 + $0xd8] sm:$0xff] %vm693_vm3, %v2824_v6  ;;  %v15576_v6 = vld [vmem:[#allocation47_spill] sm:$0xff] }
 0x615   : > { %2893 = vst.msk [vmem:[#allocation3 + $0xe0] sm:$0xff] %vm693_vm3, %v2826_v36  ;;  %v2974_v53 = vpop.permute.xlu2 %2973  ;;  %v15577_v36 = vld [vmem:[#allocation42_spill] sm:$0xff] }
 0x616   : > { %3063 = vst.msk [vmem:[#allocation3 + $0x30] sm:$0xff] %vm886_vm4, %v2974_v53 }
 0x619   : > { %3169 = vrot.lane.b32.xlu0 %v11028_v63, %s9245_s18 }
 0x61a   : > { %3171 = vrot.lane.b32.xlu1 %v11045_v38, %s9245_s18 }
 0x61b   : > { %3173 = vrot.lane.b32.xlu2 %v11051_v35, %s9245_s18  ;;  %v2830_v15 = vpop.permute.xlu0 %2829 }
 0x61c   : > { %v2832_v1 = vpop.permute.xlu1 %2831  ;;  %2895 = vst.msk [vmem:[#allocation3 + $0xf0] sm:$0xff] %vm693_vm3, %v2830_v15 }
 0x61d   : > { %2896 = vst.msk [vmem:[#allocation3 + $0xf8] sm:$0xff] %vm693_vm3, %v2832_v1  ;;  %v2980_v12 = vpop.permute.xlu2 %2979 }
 0x61e   : > { %3066 = vst.msk [vmem:[#allocation3 + $0x48] sm:$0xff] %vm886_vm4, %v2980_v12  ;;  %v15578_v12 = vld [vmem:[#allocation40_spill] sm:$0xff] }
 0x621   : > { %3175 = vrot.lane.b32.xlu0 %v11059_v3, %s9245_s18 }
 0x622   : > { %3177 = vrot.lane.b32.xlu1 %v11089_v39, %s9245_s18 }
 0x623   : > { %3179 = vrot.lane.b32.xlu2 %v11095_v45, %s9245_s18  ;;  %v2964_v63 = vpop.permute.xlu0 %2963 }
 0x624   : > { %v2966_v38 = vpop.permute.xlu1 %2965  ;;  %3058 = vst.msk [vmem:[#allocation3 + $0x8] sm:$0xff] %vm886_vm4, %v2964_v63  ;;  %v15579_v63 = vld [vmem:[#allocation50_spill] sm:$0xff] }
 0x625   : > { %3059 = vst.msk [vmem:[#allocation3 + $0x10] sm:$0xff] %vm886_vm4, %v2966_v38  ;;  %v2986_v35 = vpop.permute.xlu2 %2985  ;;  %v15580_v38 = vld [vmem:[#allocation45_spill] sm:$0xff] }
 0x626   : > { %3069 = vst.msk [vmem:[#allocation3 + $0x60] sm:$0xff] %vm886_vm4, %v2986_v35 }
 0x629   : > { %3181 = vrot.lane.b32.xlu0 %v11103_v51, %s9245_s18 }
 0x62a   : > { %3183 = vrot.lane.b32.xlu1 %v11133_v7, %s9245_s18 }
 0x62b   : > { %3185 = vrot.lane.b32.xlu2 %v11139_v2, %s9245_s18  ;;  %v2970_v3 = vpop.permute.xlu0 %2969 }
 0x62c   : > { %v2972_v39 = vpop.permute.xlu1 %2971  ;;  %3061 = vst.msk [vmem:[#allocation3 + $0x20] sm:$0xff] %vm886_vm4, %v2970_v3 }
 0x62d   : > { %3062 = vst.msk [vmem:[#allocation3 + $0x28] sm:$0xff] %vm886_vm4, %v2972_v39  ;;  %v2992_v45 = vpop.permute.xlu2 %2991 }
 0x62e   : > { %3072 = vst.msk [vmem:[#allocation3 + $0x78] sm:$0xff] %vm886_vm4, %v2992_v45  ;;  %v15581_v45 = vld [vmem:[#allocation43_spill] sm:$0xff] }
 0x631   : > { %3187 = vrot.lane.b32.xlu0 %v11147_v61, %s9245_s18 }
 0x632   : > { %3189 = vrot.lane.b32.xlu1 %v11177_v5, %s9245_s18 }
 0x633   : > { %3191 = vrot.lane.b32.xlu2 %v11183_v42, %s9245_s18  ;;  %v2976_v51 = vpop.permute.xlu0 %2975 }
 0x634   : > { %v2978_v7 = vpop.permute.xlu1 %2977  ;;  %3064 = vst.msk [vmem:[#allocation3 + $0x38] sm:$0xff] %vm886_vm4, %v2976_v51  ;;  %v15582_v51 = vld [vmem:[#allocation53_spill] sm:$0xff] }
 0x635   : > { %3065 = vst.msk [vmem:[#allocation3 + $0x40] sm:$0xff] %vm886_vm4, %v2978_v7  ;;  %v2998_v2 = vpop.permute.xlu2 %2997  ;;  %v15583_v7 = vld [vmem:[#allocation48_spill] sm:$0xff] }
 0x636   : > { %3075 = vst.msk [vmem:[#allocation3 + $0x90] sm:$0xff] %vm886_vm4, %v2998_v2 }
 0x639   : > { %3193 = vrot.lane.b32.xlu0 %v11189_v49, %s9245_s18 }
 0x63a   : > { %3195 = vrot.lane.b32.xlu1 %v11209_v10, %s9245_s18 }
 0x63b   : > { %3197 = vrot.lane.b32.xlu2 %v11211_v26, %s9245_s18  ;;  %v2982_v61 = vpop.permute.xlu0 %2981 }
 0x63c   : > { %v2984_v5 = vpop.permute.xlu1 %2983  ;;  %3067 = vst.msk [vmem:[#allocation3 + $0x50] sm:$0xff] %vm886_vm4, %v2982_v61 }
 0x63d   : > { %3068 = vst.msk [vmem:[#allocation3 + $0x58] sm:$0xff] %vm886_vm4, %v2984_v5  ;;  %v3004_v42 = vpop.permute.xlu2 %3003 }
 0x63e   : > { %3078 = vst.msk [vmem:[#allocation3 + $0xa8] sm:$0xff] %vm886_vm4, %v3004_v42  ;;  %v15584_v42 = vld [vmem:[#allocation46_spill] sm:$0xff] }
 0x641   : > { %3199 = vrot.lane.b32.xlu0 %v11215_v32, %s9245_s18  ;;  %v15570_v32 = vld [vmem:[#allocation41_spill] sm:$0xff] }
 0x642   : > { %3201 = vrot.lane.b32.xlu1 %v11221_v54, %s9245_s18 }
 0x643   : > { %3203 = vrot.lane.b32.xlu2 %v11223_v47, %s9245_s18  ;;  %v2988_v49 = vpop.permute.xlu0 %2987 }
 0x644   : > { %v2990_v10 = vpop.permute.xlu1 %2989  ;;  %3070 = vst.msk [vmem:[#allocation3 + $0x68] sm:$0xff] %vm886_vm4, %v2988_v49  ;;  %v15585_v49 = vld [vmem:[#allocation56_spill] sm:$0xff] }
 0x645   : > { %3071 = vst.msk [vmem:[#allocation3 + $0x70] sm:$0xff] %vm886_vm4, %v2990_v10  ;;  %v3010_v26 = vpop.permute.xlu2 %3009  ;;  %v15586_v10 = vld [vmem:[#allocation51_spill] sm:$0xff] }
 0x646   : > { %3081 = vst.msk [vmem:[#allocation3 + $0xc0] sm:$0xff] %vm886_vm4, %v3010_v26 }
 0x649   : > { %3205 = vrot.lane.b32.xlu0 %v15569_v55, %s9245_s18 }
 0x64a   : > { %3207 = vrot.lane.b32.xlu1 %v11233_v17, %s9245_s18  ;;  %v11585_v17 = vld [vmem:[#allocation2 + $0x189] sm:$0xff] }
 0x64b   : > { %3209 = vrot.lane.b32.xlu2 %v15570_v32, %s9245_s18  ;;  %v2994_v54 = vpop.permute.xlu0 %2993 }
 0x64c   : > { %v2996_v47 = vpop.permute.xlu1 %2995  ;;  %3073 = vst.msk [vmem:[#allocation3 + $0x80] sm:$0xff] %vm886_vm4, %v2994_v54  ;;  %v15587_v54 = vld [vmem:[#allocation49_spill] sm:$0xff] }
 0x64d   : > { %3074 = vst.msk [vmem:[#allocation3 + $0x88] sm:$0xff] %vm886_vm4, %v2996_v47  ;;  %v3016_v30 = vpop.permute.xlu2 %3015  ;;  %v15588_v47 = vld [vmem:[#allocation59_spill] sm:$0xff] }
 0x64e   : > { %3084 = vst.msk [vmem:[#allocation3 + $0xd8] sm:$0xff] %vm886_vm4, %v3016_v30  ;;  %v15589_v30 = vld [vmem:[#allocation54_spill] sm:$0xff] }
 0x651   : > { %3211 = vrot.lane.b32.xlu0 %v15571_v25, %s9245_s18 }
 0x652   : > { %3213 = vrot.lane.b32.xlu1 %v11579_v57, %s9245_s18 }
 0x653   : > { %3215 = vrot.lane.b32.xlu2 %v11585_v17, %s9245_s18  ;;  %v3000_v62 = vpop.permute.xlu0 %2999 }
 0x654   : > { %v3002_v40 = vpop.permute.xlu1 %3001  ;;  %3076 = vst.msk [vmem:[#allocation3 + $0x98] sm:$0xff] %vm886_vm4, %v3000_v62 }
 0x655   : > { %3077 = vst.msk [vmem:[#allocation3 + $0xa0] sm:$0xff] %vm886_vm4, %v3002_v40  ;;  %v3022_v18 = vpop.permute.xlu2 %3021 }
 0x656   : > { %3087 = vst.msk [vmem:[#allocation3 + $0xf0] sm:$0xff] %vm886_vm4, %v3022_v18  ;;  %v15590_v18 = vld [vmem:[#allocation52_spill] sm:$0xff] }
 0x659   : > { %3345 = vrot.lane.b32.xlu0 %v15572_v41, %s9246_s19  ;;  %v15591_v41 = vld [vmem:[#allocation62_spill] sm:$0xff] }
 0x65a   : > { %3347 = vrot.lane.b32.xlu1 %v15573_v28, %s9246_s19  ;;  %v15592_v28 = vld [vmem:[#allocation57_spill] sm:$0xff] }
 0x65b   : > { %3349 = vrot.lane.b32.xlu2 %v15574_v48, %s9246_s19  ;;  %v3006_v46 = vpop.permute.xlu0 %3005 }
 0x65c   : > { %v3008_v23 = vpop.permute.xlu1 %3007  ;;  %3079 = vst.msk [vmem:[#allocation3 + $0xb0] sm:$0xff] %vm886_vm4, %v3006_v46 }
 0x65d   : > { %3080 = vst.msk [vmem:[#allocation3 + $0xb8] sm:$0xff] %vm886_vm4, %v3008_v23  ;;  %v3156_v37 = vpop.permute.xlu2 %3155 }
 0x65e   : > { %3250 = vst.msk [vmem:[#allocation3 + $0x8] sm:$0xff] %vm1079_vm5, %v3156_v37  ;;  %v15593_v37 = vld [vmem:[#allocation55_spill] sm:$0xff] }
 0x661   : > { %3351 = vrot.lane.b32.xlu0 %v15575_v43, %s9246_s19  ;;  %v15594_v43 = vld [vmem:[#allocation60_spill] sm:$0xff] }
 0x662   : > { %3353 = vrot.lane.b32.xlu1 %v15576_v6, %s9246_s19  ;;  %v15595_v6 = vld [vmem:[#allocation58_spill] sm:$0xff] }
 0x663   : > { %3355 = vrot.lane.b32.xlu2 %v15577_v36, %s9246_s19  ;;  %v3012_v53 = vpop.permute.xlu0 %3011 }
 0x664   : > { %v3014_v15 = vpop.permute.xlu1 %3013  ;;  %3082 = vst.msk [vmem:[#allocation3 + $0xc8] sm:$0xff] %vm886_vm4, %v3012_v53 }
 0x665   : > { %3083 = vst.msk [vmem:[#allocation3 + $0xd0] sm:$0xff] %vm886_vm4, %v3014_v15  ;;  %v3162_v1 = vpop.permute.xlu2 %3161 }
 0x666   : > { %3253 = vst.msk [vmem:[#allocation3 + $0x20] sm:$0xff] %vm1079_vm5, %v3162_v1  ;;  %v15596_v1 = vld [vmem:[#allocation63_spill] sm:$0xff] }
 0x669   : > { %3357 = vrot.lane.b32.xlu0 %v15578_v12, %s9246_s19  ;;  %v15597_v12 = vld [vmem:[#allocation61_spill] sm:$0xff] }
 0x66a   : > { %3359 = vrot.lane.b32.xlu1 %v15579_v63, %s9246_s19 }
 0x66b   : > { %3361 = vrot.lane.b32.xlu2 %v15580_v38, %s9246_s19  ;;  %v3018_v35 = vpop.permute.xlu0 %3017 }
 0x66c   : > { %v3020_v3 = vpop.permute.xlu1 %3019  ;;  %3085 = vst.msk [vmem:[#allocation3 + $0xe0] sm:$0xff] %vm886_vm4, %v3018_v35 }
 0x66d   : > { %3086 = vst.msk [vmem:[#allocation3 + $0xe8] sm:$0xff] %vm886_vm4, %v3020_v3  ;;  %v3168_v39 = vpop.permute.xlu2 %3167  ;;  %v15598_v3 = vld [vmem:[#allocation66_spill] sm:$0xff] }
 0x66e   : > { %3256 = vst.msk [vmem:[#allocation3 + $0x38] sm:$0xff] %vm1079_vm5, %v3168_v39 }
 0x671   : > { %3363 = vrot.lane.b32.xlu0 %v15581_v45, %s9246_s19 }
 0x672   : > { %3365 = vrot.lane.b32.xlu1 %v15582_v51, %s9246_s19  ;;  %v11682_v51 = vld [vmem:[#allocation2 + $0x182] sm:$0xff] }
 0x673   : > { %3367 = vrot.lane.b32.xlu2 %v15583_v7, %s9246_s19  ;;  %v3024_v2 = vpop.permute.xlu0 %3023  ;;  %v11684_v7 = vld [vmem:[#allocation2 + $0x18a] sm:$0xff] }
 0x674   : > { %v3154_v61 = vpop.permute.xlu1 %3153  ;;  %3088 = vst.msk [vmem:[#allocation3 + $0xf8] sm:$0xff] %vm886_vm4, %v3024_v2 }
 0x675   : > { %3249 = vst.msk [vmem:[#allocation3] sm:$0xff] %vm1079_vm5, %v3154_v61  ;;  %v3174_v5 = vpop.permute.xlu2 %3173 }
 0x676   : > { %3259 = vst.msk [vmem:[#allocation3 + $0x50] sm:$0xff] %vm1079_vm5, %v3174_v5  ;;  %v3476_v5 = vld [vmem:[#allocation2 + $0x50] sm:$0xff] }
 0x679   : > { %3369 = vrot.lane.b32.xlu0 %v15584_v42, %s9246_s19 }
 0x67a   : > { %3371 = vrot.lane.b32.xlu1 %v15585_v49, %s9246_s19 }
 0x67b   : > { %3373 = vrot.lane.b32.xlu2 %v15586_v10, %s9246_s19  ;;  %v3158_v26 = vpop.permute.xlu0 %3157 }
 0x67c   : > { %v3160_v55 = vpop.permute.xlu1 %3159  ;;  %3251 = vst.msk [vmem:[#allocation3 + $0x10] sm:$0xff] %vm1079_vm5, %v3158_v26 }
 0x67d   : > { %3252 = vst.msk [vmem:[#allocation3 + $0x18] sm:$0xff] %vm1079_vm5, %v3160_v55  ;;  %v3180_v32 = vpop.permute.xlu2 %3179 }
 0x67e   : > { %3262 = vst.msk [vmem:[#allocation3 + $0x68] sm:$0xff] %vm1079_vm5, %v3180_v32 }
 0x681   : > { %3375 = vrot.lane.b32.xlu0 %v15587_v54, %s9246_s19 }
 0x682   : > { %3377 = vrot.lane.b32.xlu1 %v15588_v47, %s9246_s19 }
 0x683   : > { %3379 = vrot.lane.b32.xlu2 %v15589_v30, %s9246_s19  ;;  %v3164_v25 = vpop.permute.xlu0 %3163 }
 0x684   : > { %v3166_v62 = vpop.permute.xlu1 %3165  ;;  %3254 = vst.msk [vmem:[#allocation3 + $0x28] sm:$0xff] %vm1079_vm5, %v3164_v25 }
 0x685   : > { %3255 = vst.msk [vmem:[#allocation3 + $0x30] sm:$0xff] %vm1079_vm5, %v3166_v62  ;;  %v3186_v40 = vpop.permute.xlu2 %3185 }
 0x686   : > { %3265 = vst.msk [vmem:[#allocation3 + $0x80] sm:$0xff] %vm1079_vm5, %v3186_v40 }
 0x689   : > { %3381 = vrot.lane.b32.xlu0 %v15590_v18, %s9246_s19 }
 0x68a   : > { %3383 = vrot.lane.b32.xlu1 %v15591_v41, %s9246_s19 }
 0x68b   : > { %3385 = vrot.lane.b32.xlu2 %v15592_v28, %s9246_s19  ;;  %v3170_v48 = vpop.permute.xlu0 %3169 }
 0x68c   : > { %v3172_v46 = vpop.permute.xlu1 %3171  ;;  %3257 = vst.msk [vmem:[#allocation3 + $0x40] sm:$0xff] %vm1079_vm5, %v3170_v48 }
 0x68d   : > { %3258 = vst.msk [vmem:[#allocation3 + $0x48] sm:$0xff] %vm1079_vm5, %v3172_v46  ;;  %v3192_v23 = vpop.permute.xlu2 %3191  ;;  %v3503_v46 = vld [vmem:[#allocation2 + $0x198] sm:$0xff] }
 0x68e   : > { %3268 = vst.msk [vmem:[#allocation3 + $0x98] sm:$0xff] %vm1079_vm5, %v3192_v23  ;;  %v3504_v23 = vld [vmem:[#allocation2 + $0x1a0] sm:$0xff] }
 0x691   : > { %3387 = vrot.lane.b32.xlu0 %v15593_v37, %s9246_s19  ;;  %v3665_v37 = vld [vmem:[#allocation2 + $0x31] sm:$0xff] }
 0x692   : > { %3389 = vrot.lane.b32.xlu1 %v15594_v43, %s9246_s19 }
 0x693   : > { %3391 = vrot.lane.b32.xlu2 %v15595_v6, %s9246_s19  ;;  %v3176_v36 = vpop.permute.xlu0 %3175 }
 0x694   : > { %v3178_v53 = vpop.permute.xlu1 %3177  ;;  %3260 = vst.msk [vmem:[#allocation3 + $0x58] sm:$0xff] %vm1079_vm5, %v3176_v36  ;;  %v3667_v36 = vld [vmem:[#allocation2 + $0x49] sm:$0xff] }
 0x695   : > { %3261 = vst.msk [vmem:[#allocation3 + $0x60] sm:$0xff] %vm1079_vm5, %v3178_v53  ;;  %v3198_v15 = vpop.permute.xlu2 %3197  ;;  %v3668_v53 = vld [vmem:[#allocation2 + $0x51] sm:$0xff] }
 0x696   : > { %3271 = vst.msk [vmem:[#allocation3 + $0xb0] sm:$0xff] %vm1079_vm5, %v3198_v15  ;;  %v3669_v15 = vld [vmem:[#allocation2 + $0x61] sm:$0xff] }
 0x699   : > { %3393 = vrot.lane.b32.xlu0 %v15596_v1, %s9246_s19 }
 0x69a   : > { %3395 = vrot.lane.b32.xlu1 %v15597_v12, %s9246_s19 }
 0x69b   : > { %3397 = vrot.lane.b32.xlu2 %v11369_v19, %s9246_s19  ;;  %v3182_v63 = vpop.permute.xlu0 %3181 }
 0x69c   : > { %v3184_v38 = vpop.permute.xlu1 %3183  ;;  %3263 = vst.msk [vmem:[#allocation3 + $0x70] sm:$0xff] %vm1079_vm5, %v3182_v63 }
 0x69d   : > { %3264 = vst.msk [vmem:[#allocation3 + $0x78] sm:$0xff] %vm1079_vm5, %v3184_v38  ;;  %v3204_v35 = vpop.permute.xlu2 %3203  ;;  %v3670_v38 = vld [vmem:[#allocation2 + $0x69] sm:$0xff] }
 0x69e   : > { %3274 = vst.msk [vmem:[#allocation3 + $0xc8] sm:$0xff] %vm1079_vm5, %v3204_v35  ;;  %v3671_v35 = vld [vmem:[#allocation2 + $0x79] sm:$0xff] }
 0x6a1   : > { %3399 = vrot.lane.b32.xlu0 %v15598_v3, %s9246_s19  ;;  %v3672_v3 = vld [vmem:[#allocation2 + $0x81] sm:$0xff] }
 0x6a2   : > { %3401 = vrot.lane.b32.xlu1 %v11382_v44, %s9246_s19 }
 0x6a3   : > { %3403 = vrot.lane.b32.xlu2 %v11384_v27, %s9246_s19  ;;  %v3188_v39 = vpop.permute.xlu0 %3187  ;;  %v3473_v27 = vld [vmem:[#allocation2 + $0x30] sm:$0xff] }
 0x6a4   : > { %v3190_v19 = vpop.permute.xlu1 %3189  ;;  %3266 = vst.msk [vmem:[#allocation3 + $0x88] sm:$0xff] %vm1079_vm5, %v3188_v39 }
 0x6a5   : > { %3267 = vst.msk [vmem:[#allocation3 + $0x90] sm:$0xff] %vm1079_vm5, %v3190_v19  ;;  %v3210_v45 = vpop.permute.xlu2 %3209 }
 0x6a6   : > { %3277 = vst.msk [vmem:[#allocation3 + $0xe0] sm:$0xff] %vm1079_vm5, %v3210_v45 }
 0x6a9   : > { %3405 = vrot.lane.b32.xlu0 %v11682_v51, %s9246_s19 }
 0x6aa   : > { %3407 = vrot.lane.b32.xlu1 %v11684_v7, %s9246_s19 }
 0x6ab   : > { %3537 = vrot.lane.b32.xlu2 %v3473_v27, %s9247_s20  ;;  %v3194_v44 = vpop.permute.xlu0 %3193  ;;  %v3673_v27 = vld [vmem:[#allocation2 + $0x91] sm:$0xff] }
 0x6ac   : > { %v3196_v2 = vpop.permute.xlu1 %3195  ;;  %3269 = vst.msk [vmem:[#allocation3 + $0xa0] sm:$0xff] %vm1079_vm5, %v3194_v44  ;;  %v3674_v44 = vld [vmem:[#allocation2 + $0x99] sm:$0xff] }
 0x6ad   : > { %3270 = vst.msk [vmem:[#allocation3 + $0xa8] sm:$0xff] %vm1079_vm5, %v3196_v2  ;;  %v3216_v61 = vpop.permute.xlu2 %3215  ;;  %v3675_v2 = vld [vmem:[#allocation2 + $0xa9] sm:$0xff] }
 0x6ae   : > { %3280 = vst.msk [vmem:[#allocation3 + $0xf8] sm:$0xff] %vm1079_vm5, %v3216_v61 }
 0x6b1   : > { %3539 = vrot.lane.b32.xlu0 %v11079_v58, %s9247_s20  ;;  %v3479_v58 = vld [vmem:[#allocation2 + $0x78] sm:$0xff] }
 0x6b2   : > { %3541 = vrot.lane.b32.xlu1 %v11075_v22, %s9247_s20 }
 0x6b3   : > { %3543 = vrot.lane.b32.xlu2 %v3476_v5, %s9247_s20  ;;  %v3200_v42 = vpop.permute.xlu0 %3199 }
 0x6b4   : > { %v3202_v49 = vpop.permute.xlu1 %3201  ;;  %3272 = vst.msk [vmem:[#allocation3 + $0xb8] sm:$0xff] %vm1079_vm5, %v3200_v42 }
 0x6b5   : > { %3273 = vst.msk [vmem:[#allocation3 + $0xc0] sm:$0xff] %vm1079_vm5, %v3202_v49  ;;  %v3350_v10 = vpop.permute.xlu2 %3349  ;;  %v3676_v49 = vld [vmem:[#allocation2 + $0xb1] sm:$0xff] }
 0x6b6   : > { %3443 = vst.msk [vmem:[#allocation3 + $0x10] sm:$0xff] %vm1272_vm6, %v3350_v10  ;;  %v3677_v10 = vld [vmem:[#allocation2 + $0xc1] sm:$0xff] }
 0x6b9   : > { %3545 = vrot.lane.b32.xlu0 %v11093_v4, %s9247_s20  ;;  %v3482_v4 = vld [vmem:[#allocation2 + $0x98] sm:$0xff] }
 0x6ba   : > { %3547 = vrot.lane.b32.xlu1 %v11087_v20, %s9247_s20 }
 0x6bb   : > { %3549 = vrot.lane.b32.xlu2 %v3479_v58, %s9247_s20  ;;  %v3206_v22 = vpop.permute.xlu0 %3205  ;;  %v3678_v58 = vld [vmem:[#allocation2 + $0xc9] sm:$0xff] }
 0x6bc   : > { %v3208_v26 = vpop.permute.xlu1 %3207  ;;  %3275 = vst.msk [vmem:[#allocation3 + $0xd0] sm:$0xff] %vm1079_vm5, %v3206_v22 }
 0x6bd   : > { %3276 = vst.msk [vmem:[#allocation3 + $0xd8] sm:$0xff] %vm1079_vm5, %v3208_v26  ;;  %v3356_v55 = vpop.permute.xlu2 %3355 }
 0x6be   : > { %3446 = vst.msk [vmem:[#allocation3 + $0x28] sm:$0xff] %vm1272_vm6, %v3356_v55 }
 0x6c1   : > { %3551 = vrot.lane.b32.xlu0 %v11115_v31, %s9247_s20  ;;  %v3485_v31 = vld [vmem:[#allocation2 + $0xc0] sm:$0xff] }
 0x6c2   : > { %3553 = vrot.lane.b32.xlu1 %v11109_v14, %s9247_s20 }
 0x6c3   : > { %3555 = vrot.lane.b32.xlu2 %v3482_v4, %s9247_s20  ;;  %v3212_v20 = vpop.permute.xlu0 %3211  ;;  %v3679_v4 = vld [vmem:[#allocation2 + $0xd9] sm:$0xff] }
 0x6c4   : > { %v3214_v32 = vpop.permute.xlu1 %3213  ;;  %3278 = vst.msk [vmem:[#allocation3 + $0xe8] sm:$0xff] %vm1079_vm5, %v3212_v20  ;;  %v3680_v20 = vld [vmem:[#allocation2 + $0xe1] sm:$0xff] }
 0x6c5   : > { %3279 = vst.msk [vmem:[#allocation3 + $0xf0] sm:$0xff] %vm1079_vm5, %v3214_v32  ;;  %v3362_v54 = vpop.permute.xlu2 %3361  ;;  %v3681_v32 = vld [vmem:[#allocation2 + $0xf1] sm:$0xff] }
 0x6c6   : > { %3449 = vst.msk [vmem:[#allocation3 + $0x40] sm:$0xff] %vm1272_vm6, %v3362_v54 }
 0x6c9   : > { %3557 = vrot.lane.b32.xlu0 %v11127_v16, %s9247_s20  ;;  %v3488_v16 = vld [vmem:[#allocation2 + $0xe0] sm:$0xff] }
 0x6ca   : > { %3559 = vrot.lane.b32.xlu1 %v11123_v11, %s9247_s20 }
 0x6cb   : > { %3561 = vrot.lane.b32.xlu2 %v3485_v31, %s9247_s20  ;;  %v3346_v14 = vpop.permute.xlu0 %3345 }
 0x6cc   : > { %v3348_v47 = vpop.permute.xlu1 %3347  ;;  %3441 = vst.msk [vmem:[#allocation3] sm:$0xff] %vm1272_vm6, %v3346_v14 }
 0x6cd   : > { %3442 = vst.msk [vmem:[#allocation3 + $0x8] sm:$0xff] %vm1272_vm6, %v3348_v47  ;;  %v3368_v30 = vpop.permute.xlu2 %3367  ;;  %v3682_v47 = vld [vmem:[#allocation2 + $0xf9] sm:$0xff] }
 0x6ce   : > { %3452 = vst.msk [vmem:[#allocation3 + $0x58] sm:$0xff] %vm1272_vm6, %v3368_v30  ;;  %v3683_v30 = vld [vmem:[#allocation2 + $0x109] sm:$0xff] }
 0x6d1   : > { %3563 = vrot.lane.b32.xlu0 %v11145_v8, %s9247_s20  ;;  %v3491_v8 = vld [vmem:[#allocation2 + $0x108] sm:$0xff] }
 0x6d2   : > { %3565 = vrot.lane.b32.xlu1 %v11137_v52, %s9247_s20 }
 0x6d3   : > { %3567 = vrot.lane.b32.xlu2 %v3488_v16, %s9247_s20  ;;  %v3352_v11 = vpop.permute.xlu0 %3351  ;;  %v3857_v16 = vld [vmem:[#allocation2 + $0x32] sm:$0xff] }
 0x6d4   : > { %v3354_v25 = vpop.permute.xlu1 %3353  ;;  %3444 = vst.msk [vmem:[#allocation3 + $0x18] sm:$0xff] %vm1272_vm6, %v3352_v11 }
 0x6d5   : > { %3445 = vst.msk [vmem:[#allocation3 + $0x20] sm:$0xff] %vm1272_vm6, %v3354_v25  ;;  %v3374_v62 = vpop.permute.xlu2 %3373 }
 0x6d6   : > { %3455 = vst.msk [vmem:[#allocation3 + $0x70] sm:$0xff] %vm1272_vm6, %v3374_v62 }
 0x6d9   : > { %3569 = vrot.lane.b32.xlu0 %v11163_v29, %s9247_s20  ;;  %v3494_v29 = vld [vmem:[#allocation2 + $0x128] sm:$0xff] }
 0x6da   : > { %3571 = vrot.lane.b32.xlu1 %v11159_v13, %s9247_s20 }
 0x6db   : > { %3573 = vrot.lane.b32.xlu2 %v3491_v8, %s9247_s20  ;;  %v3358_v52 = vpop.permute.xlu0 %3357  ;;  %v3684_v8 = vld [vmem:[#allocation2 + $0x111] sm:$0xff] }
 0x6dc   : > { %v3360_v40 = vpop.permute.xlu1 %3359  ;;  %3447 = vst.msk [vmem:[#allocation3 + $0x30] sm:$0xff] %vm1272_vm6, %v3358_v52  ;;  %v3685_v52 = vld [vmem:[#allocation2 + $0x121] sm:$0xff] }
 0x6dd   : > { %3448 = vst.msk [vmem:[#allocation3 + $0x38] sm:$0xff] %vm1272_vm6, %v3360_v40  ;;  %v3380_v18 = vpop.permute.xlu2 %3379  ;;  %v3858_v40 = vld [vmem:[#allocation2 + $0x3a] sm:$0xff] }
 0x6de   : > { %3458 = vst.msk [vmem:[#allocation3 + $0x88] sm:$0xff] %vm1272_vm6, %v3380_v18 }
 0x6e1   : > { %3575 = vrot.lane.b32.xlu0 %v11171_v33, %s9247_s20 }
 0x6e2   : > { %3577 = vrot.lane.b32.xlu1 %v11167_v21, %s9247_s20 }
 0x6e3   : > { %3579 = vrot.lane.b32.xlu2 %v3494_v29, %s9247_s20  ;;  %v3364_v13 = vpop.permute.xlu0 %3363 }
 0x6e4   : > { %v3366_v41 = vpop.permute.xlu1 %3365  ;;  %3450 = vst.msk [vmem:[#allocation3 + $0x48] sm:$0xff] %vm1272_vm6, %v3364_v13 }
 0x6e5   : > { %3451 = vst.msk [vmem:[#allocation3 + $0x50] sm:$0xff] %vm1272_vm6, %v3366_v41  ;;  %v3386_v28 = vpop.permute.xlu2 %3385  ;;  %v3686_v41 = vld [vmem:[#allocation2 + $0x129] sm:$0xff] }
 0x6e6   : > { %3461 = vst.msk [vmem:[#allocation3 + $0xa0] sm:$0xff] %vm1272_vm6, %v3386_v28  ;;  %v3687_v28 = vld [vmem:[#allocation2 + $0x139] sm:$0xff] }
 0x6e9   : > { %3581 = vrot.lane.b32.xlu0 %v11181_v9, %s9247_s20 }
 0x6ea   : > { %3583 = vrot.lane.b32.xlu1 %v11175_v34, %s9247_s20 }
 0x6eb   : > { %3585 = vrot.lane.b32.xlu2 %v11131_v0, %s9247_s20  ;;  %v3370_v21 = vpop.permute.xlu0 %3369 }
 0x6ec   : > { %v3372_v33 = vpop.permute.xlu1 %3371  ;;  %3453 = vst.msk [vmem:[#allocation3 + $0x60] sm:$0xff] %vm1272_vm6, %v3370_v21  ;;  %v3859_v21 = vld [vmem:[#allocation2 + $0x4a] sm:$0xff] }
 0x6ed   : > { %3454 = vst.msk [vmem:[#allocation3 + $0x68] sm:$0xff] %vm1272_vm6, %v3372_v33  ;;  %v3392_v48 = vpop.permute.xlu2 %3391 }
 0x6ee   : > { %3464 = vst.msk [vmem:[#allocation3 + $0xb8] sm:$0xff] %vm1272_vm6, %v3392_v48 }
 0x6f1   : > { %3587 = vrot.lane.b32.xlu0 %v11202_v50, %s9247_s20 }
 0x6f2   : > { %3589 = vrot.lane.b32.xlu1 %v11199_v56, %s9247_s20 }
 0x6f3   : > { %3591 = vrot.lane.b32.xlu2 %v11153_v60, %s9247_s20  ;;  %v3376_v34 = vpop.permute.xlu0 %3375 }
 0x6f4   : > { %v3378_v0 = vpop.permute.xlu1 %3377  ;;  %3456 = vst.msk [vmem:[#allocation3 + $0x78] sm:$0xff] %vm1272_vm6, %v3376_v34 }
 0x6f5   : > { %3457 = vst.msk [vmem:[#allocation3 + $0x80] sm:$0xff] %vm1272_vm6, %v3378_v0  ;;  %v3398_v9 = vpop.permute.xlu2 %3397  ;;  %v3688_v0 = vld [vmem:[#allocation2 + $0x141] sm:$0xff] }
 0x6f6   : > { %3467 = vst.msk [vmem:[#allocation3 + $0xd0] sm:$0xff] %vm1272_vm6, %v3398_v9  ;;  %v3860_v9 = vld [vmem:[#allocation2 + $0x52] sm:$0xff] }
 0x6f9   : > { %3593 = vrot.lane.b32.xlu0 %v11480_v59, %s9247_s20  ;;  %v3666_v59 = vld [vmem:[#allocation2 + $0x39] sm:$0xff] }
 0x6fa   : > { %3595 = vrot.lane.b32.xlu1 %v11487_v24, %s9247_s20 }
 0x6fb   : > { %3597 = vrot.lane.b32.xlu2 %v3503_v46, %s9247_s20  ;;  %v3382_v56 = vpop.permute.xlu0 %3381  ;;  %v3689_v46 = vld [vmem:[#allocation2 + $0x151] sm:$0xff] }
 0x6fc   : > { %v3384_v60 = vpop.permute.xlu1 %3383  ;;  %3459 = vst.msk [vmem:[#allocation3 + $0x90] sm:$0xff] %vm1272_vm6, %v3382_v56 }
 0x6fd   : > { %3460 = vst.msk [vmem:[#allocation3 + $0x98] sm:$0xff] %vm1272_vm6, %v3384_v60  ;;  %v3404_v50 = vpop.permute.xlu2 %3403 }
 0x6fe   : > { %3470 = vst.msk [vmem:[#allocation3 + $0xe8] sm:$0xff] %vm1272_vm6, %v3404_v50 }
 0x701   : > { %3599 = vrot.lane.b32.xlu0 %v3504_v23, %s9247_s20  ;;  %v3690_v23 = vld [vmem:[#allocation2 + $0x159] sm:$0xff] }
 0x702   : > { %3729 = vrot.lane.b32.xlu1 %v3665_v37, %s9248_s21  ;;  %v3861_v37 = vld [vmem:[#allocation2 + $0x62] sm:$0xff] }
 0x703   : > { %3731 = vrot.lane.b32.xlu2 %v3666_v59, %s9248_s21  ;;  %v3388_v24 = vpop.permute.xlu0 %3387  ;;  %v3691_v59 = vld [vmem:[#allocation2 + $0x169] sm:$0xff] }
 0x704   : > { %v3390_v43 = vpop.permute.xlu1 %3389  ;;  %3462 = vst.msk [vmem:[#allocation3 + $0xa8] sm:$0xff] %vm1272_vm6, %v3388_v24 }
 0x705   : > { %3463 = vst.msk [vmem:[#allocation3 + $0xb0] sm:$0xff] %vm1272_vm6, %v3390_v43  ;;  %v3538_v6 = vpop.permute.xlu2 %3537 }
 0x706   : > { %3633 = vst.msk [vmem:[#allocation3] sm:$0xff] %vm1466_vm7, %v3538_v6 }
 0x709   : > { %3733 = vrot.lane.b32.xlu0 %v3667_v36, %s9248_s21  ;;  %v3692_v36 = vld [vmem:[#allocation2 + $0x171] sm:$0xff] }
 0x70a   : > { %3735 = vrot.lane.b32.xlu1 %v3668_v53, %s9248_s21  ;;  %v3862_v53 = vld [vmem:[#allocation2 + $0x6a] sm:$0xff] }
 0x70b   : > { %3737 = vrot.lane.b32.xlu2 %v3669_v15, %s9248_s21  ;;  %v3394_v1 = vpop.permute.xlu0 %3393 }
 0x70c   : > { %v3396_v12 = vpop.permute.xlu1 %3395  ;;  %3465 = vst.msk [vmem:[#allocation3 + $0xc0] sm:$0xff] %vm1272_vm6, %v3394_v1 }
 0x70d   : > { %3466 = vst.msk [vmem:[#allocation3 + $0xc8] sm:$0xff] %vm1272_vm6, %v3396_v12  ;;  %v3544_v63 = vpop.permute.xlu2 %3543 }
 0x70e   : > { %3636 = vst.msk [vmem:[#allocation3 + $0x18] sm:$0xff] %vm1466_vm7, %v3544_v63  ;;  %v3695_v63 = vld [vmem:[#allocation2 + $0x199] sm:$0xff] }
 0x711   : > { %3739 = vrot.lane.b32.xlu0 %v3670_v38, %s9248_s21  ;;  %v3863_v38 = vld [vmem:[#allocation2 + $0x7a] sm:$0xff] }
 0x712   : > { %3741 = vrot.lane.b32.xlu1 %v3671_v35, %s9248_s21 }
 0x713   : > { %3743 = vrot.lane.b32.xlu2 %v3672_v3, %s9248_s21  ;;  %v3400_v39 = vpop.permute.xlu0 %3399 }
 0x714   : > { %v3402_v19 = vpop.permute.xlu1 %3401  ;;  %3468 = vst.msk [vmem:[#allocation3 + $0xd8] sm:$0xff] %vm1272_vm6, %v3400_v39  ;;  %v3696_v39 = vld [vmem:[#allocation2 + $0x1a1] sm:$0xff] }
 0x715   : > { %3469 = vst.msk [vmem:[#allocation3 + $0xe0] sm:$0xff] %vm1272_vm6, %v3402_v19  ;;  %v3550_v45 = vpop.permute.xlu2 %3549  ;;  %v3864_v19 = vld [vmem:[#allocation2 + $0x82] sm:$0xff] }
 0x716   : > { %3639 = vst.msk [vmem:[#allocation3 + $0x30] sm:$0xff] %vm1466_vm7, %v3550_v45  ;;  %v3865_v45 = vld [vmem:[#allocation2 + $0x92] sm:$0xff] }
 0x719   : > { %3745 = vrot.lane.b32.xlu0 %v3673_v27, %s9248_s21  ;;  %v9058_v27 = vld [vmem:[%s15297_s1 + $0x48] sm:$0xf] }
 0x71a   : > { %3747 = vrot.lane.b32.xlu1 %v3674_v44, %s9248_s21  ;;  %9092 = vmatpush.msk.msra.mxu1 %vm2014_vm9, %v9058_v27 }
 0x71b   : > { %3749 = vrot.lane.b32.xlu2 %v3675_v2, %s9248_s21  ;;  %v3406_v61 = vpop.permute.xlu0 %3405 }
 0x71c   : > { %v3408_v5 = vpop.permute.xlu1 %3407  ;;  %3471 = vst.msk [vmem:[#allocation3 + $0xf0] sm:$0xff] %vm1272_vm6, %v3406_v61  ;;  %v9057_v61 = vld [vmem:[%s15297_s1 + $0x40] sm:$0xff] }
 0x71d   : > { %3472 = vst.msk [vmem:[#allocation3 + $0xf8] sm:$0xff] %vm1272_vm6, %v3408_v5  ;;  %v3556_v42 = vpop.permute.xlu2 %3555  ;;  %v9056_v5 = vld [vmem:[%s15297_s1 + $0x38] sm:$0xff]  ;;  %4192 = vmatpush.msra.mxu1 %v9057_v61 }
 0x71e   : > { %3642 = vst.msk [vmem:[#allocation3 + $0x48] sm:$0xff] %vm1466_vm7, %v3556_v42  ;;  %v3866_v42 = vld [vmem:[#allocation2 + $0x9a] sm:$0xff] }
 0x71f   : > { %4193 = vmatpush.msra.mxu1 %v9056_v5 }
 0x721   : > { %3751 = vrot.lane.b32.xlu0 %v3676_v49, %s9248_s21  ;;  %v9055_v49 = vld [vmem:[%s15297_s1 + $0x30] sm:$0xff] }
 0x722   : > { %3753 = vrot.lane.b32.xlu1 %v3677_v10, %s9248_s21  ;;  %v3867_v10 = vld [vmem:[#allocation2 + $0xaa] sm:$0xff]  ;;  %4194 = vmatpush.msra.mxu1 %v9055_v49 }
 0x723   : > { %3755 = vrot.lane.b32.xlu2 %v3678_v58, %s9248_s21  ;;  %v3540_v22 = vpop.permute.xlu0 %3539  ;;  %v3868_v58 = vld [vmem:[#allocation2 + $0xb2] sm:$0xff] }
 0x724   : > { %v3542_v26 = vpop.permute.xlu1 %3541  ;;  %3634 = vst.msk [vmem:[#allocation3 + $0x8] sm:$0xff] %vm1466_vm7, %v3540_v22 }
 0x725   : > { %3635 = vst.msk [vmem:[#allocation3 + $0x10] sm:$0xff] %vm1466_vm7, %v3542_v26  ;;  %v3562_v55 = vpop.permute.xlu2 %3561  ;;  %v9054_v26 = vld [vmem:[%s15297_s1 + $0x28] sm:$0xff] }
 0x726   : > { %3645 = vst.msk [vmem:[#allocation3 + $0x60] sm:$0xff] %vm1466_vm7, %v3562_v55  ;;  %4195 = vmatpush.msra.mxu1 %v9054_v26 }
 0x729   : > { %3757 = vrot.lane.b32.xlu0 %v3679_v4, %s9248_s21 }
 0x72a   : > { %3759 = vrot.lane.b32.xlu1 %v3680_v20, %s9248_s21  ;;  %v3869_v20 = vld [vmem:[#allocation2 + $0xc2] sm:$0xff] }
 0x72b   : > { %3761 = vrot.lane.b32.xlu2 %v3681_v32, %s9248_s21  ;;  %v3546_v54 = vpop.permute.xlu0 %3545  ;;  %v3870_v32 = vld [vmem:[#allocation2 + $0xca] sm:$0xff] }
 0x72c   : > { %v3548_v31 = vpop.permute.xlu1 %3547  ;;  %3637 = vst.msk [vmem:[#allocation3 + $0x20] sm:$0xff] %vm1466_vm7, %v3546_v54  ;;  %v3871_v54 = vld [vmem:[#allocation2 + $0xda] sm:$0xff] }
 0x72d   : > { %3638 = vst.msk [vmem:[#allocation3 + $0x28] sm:$0xff] %vm1466_vm7, %v3548_v31  ;;  %v3568_v14 = vpop.permute.xlu2 %3567 }
 0x72e   : > { %3648 = vst.msk [vmem:[#allocation3 + $0x78] sm:$0xff] %vm1466_vm7, %v3568_v14 }
 0x731   : > { %3763 = vrot.lane.b32.xlu0 %v3682_v47, %s9248_s21 }
 0x732   : > { %3765 = vrot.lane.b32.xlu1 %v3683_v30, %s9248_s21  ;;  %v3872_v30 = vld [vmem:[#allocation2 + $0xe2] sm:$0xff] }
 0x733   : > { %3921 = vrot.lane.b32.xlu2 %v3857_v16, %s9249_s22  ;;  %v3552_v11 = vpop.permute.xlu0 %3551  ;;  %v3873_v16 = vld [vmem:[#allocation2 + $0xf2] sm:$0xff] }
 0x734   : > { %v3554_v25 = vpop.permute.xlu1 %3553  ;;  %3640 = vst.msk [vmem:[#allocation3 + $0x38] sm:$0xff] %vm1466_vm7, %v3552_v11  ;;  %v3874_v11 = vld [vmem:[#allocation2 + $0xfa] sm:$0xff] }
 0x735   : > { %3641 = vst.msk [vmem:[#allocation3 + $0x40] sm:$0xff] %vm1466_vm7, %v3554_v25  ;;  %v3574_v62 = vpop.permute.xlu2 %3573 }
 0x736   : > { %3651 = vst.msk [vmem:[#allocation3 + $0x90] sm:$0xff] %vm1466_vm7, %v3574_v62 }
 0x739   : > { %3767 = vrot.lane.b32.xlu0 %v3684_v8, %s9248_s21 }
 0x73a   : > { %3769 = vrot.lane.b32.xlu1 %v3685_v52, %s9248_s21  ;;  %v3875_v52 = vld [vmem:[#allocation2 + $0x10a] sm:$0xff] }
 0x73b   : > { %3923 = vrot.lane.b32.xlu2 %v3858_v40, %s9249_s22  ;;  %v3558_v18 = vpop.permute.xlu0 %3557  ;;  %v3876_v40 = vld [vmem:[#allocation2 + $0x112] sm:$0xff] }
 0x73c   : > { %v3560_v29 = vpop.permute.xlu1 %3559  ;;  %3643 = vst.msk [vmem:[#allocation3 + $0x50] sm:$0xff] %vm1466_vm7, %v3558_v18  ;;  %v3877_v18 = vld [vmem:[#allocation2 + $0x122] sm:$0xff] }
 0x73d   : > { %3644 = vst.msk [vmem:[#allocation3 + $0x58] sm:$0xff] %vm1466_vm7, %v3560_v29  ;;  %v3580_v13 = vpop.permute.xlu2 %3579 }
 0x73e   : > { %3654 = vst.msk [vmem:[#allocation3 + $0xa8] sm:$0xff] %vm1466_vm7, %v3580_v13 }
 0x741   : > { %3771 = vrot.lane.b32.xlu0 %v3686_v41, %s9248_s21 }
 0x742   : > { %3773 = vrot.lane.b32.xlu1 %v3687_v28, %s9248_s21  ;;  %v3878_v28 = vld [vmem:[#allocation2 + $0x12a] sm:$0xff] }
 0x743   : > { %3925 = vrot.lane.b32.xlu2 %v3859_v21, %s9249_s22  ;;  %v3564_v33 = vpop.permute.xlu0 %3563  ;;  %v3879_v21 = vld [vmem:[#allocation2 + $0x13a] sm:$0xff] }
 0x744   : > { %v3566_v48 = vpop.permute.xlu1 %3565  ;;  %3646 = vst.msk [vmem:[#allocation3 + $0x68] sm:$0xff] %vm1466_vm7, %v3564_v33  ;;  %v3880_v33 = vld [vmem:[#allocation2 + $0x142] sm:$0xff] }
 0x745   : > { %3647 = vst.msk [vmem:[#allocation3 + $0x70] sm:$0xff] %vm1466_vm7, %v3566_v48  ;;  %v3586_v34 = vpop.permute.xlu2 %3585 }
 0x746   : > { %3657 = vst.msk [vmem:[#allocation3 + $0xc0] sm:$0xff] %vm1466_vm7, %v3586_v34 }
 0x749   : > { %3775 = vrot.lane.b32.xlu0 %v3688_v0, %s9248_s21 }
 0x74a   : > { %3927 = vrot.lane.b32.xlu1 %v3860_v9, %s9249_s22 }
 0x74b   : > { %3777 = vrot.lane.b32.xlu2 %v3689_v46, %s9248_s21  ;;  %v3570_v56 = vpop.permute.xlu0 %3569  ;;  %v3881_v46 = vld [vmem:[#allocation2 + $0x152] sm:$0xff] }
 0x74c   : > { %v3572_v60 = vpop.permute.xlu1 %3571  ;;  %3649 = vst.msk [vmem:[#allocation3 + $0x80] sm:$0xff] %vm1466_vm7, %v3570_v56  ;;  %v3882_v56 = vld [vmem:[#allocation2 + $0x15a] sm:$0xff] }
 0x74d   : > { %3650 = vst.msk [vmem:[#allocation3 + $0x88] sm:$0xff] %vm1466_vm7, %v3572_v60  ;;  %v3592_v50 = vpop.permute.xlu2 %3591  ;;  %v3883_v60 = vld [vmem:[#allocation2 + $0x16a] sm:$0xff] }
 0x74e   : > { %3660 = vst.msk [vmem:[#allocation3 + $0xd8] sm:$0xff] %vm1466_vm7, %v3592_v50 }
 0x751   : > { %3779 = vrot.lane.b32.xlu0 %v3690_v23, %s9248_s21 }
 0x752   : > { %3929 = vrot.lane.b32.xlu1 %v3861_v37, %s9249_s22 }
 0x753   : > { %3781 = vrot.lane.b32.xlu2 %v3691_v59, %s9248_s21  ;;  %v3576_v24 = vpop.permute.xlu0 %3575 }
 0x754   : > { %v3578_v43 = vpop.permute.xlu1 %3577  ;;  %3652 = vst.msk [vmem:[#allocation3 + $0x98] sm:$0xff] %vm1466_vm7, %v3576_v24  ;;  %v3884_v24 = vld [vmem:[#allocation2 + $0x172] sm:$0xff] }
 0x755   : > { %3653 = vst.msk [vmem:[#allocation3 + $0xa0] sm:$0xff] %vm1466_vm7, %v3578_v43  ;;  %v3598_v6 = vpop.permute.xlu2 %3597 }
 0x756   : > { %3663 = vst.msk [vmem:[#allocation3 + $0xf0] sm:$0xff] %vm1466_vm7, %v3598_v6 }
 0x759   : > { %3783 = vrot.lane.b32.xlu0 %v3692_v36, %s9248_s21 }
 0x75a   : > { %3931 = vrot.lane.b32.xlu1 %v3862_v53, %s9249_s22 }
 0x75b   : > { %3785 = vrot.lane.b32.xlu2 %v11579_v57, %s9248_s21  ;;  %v3582_v15 = vpop.permute.xlu0 %3581 }
 0x75c   : > { %v3584_v1 = vpop.permute.xlu1 %3583  ;;  %3655 = vst.msk [vmem:[#allocation3 + $0xb0] sm:$0xff] %vm1466_vm7, %v3582_v15 }
 0x75d   : > { %3656 = vst.msk [vmem:[#allocation3 + $0xb8] sm:$0xff] %vm1466_vm7, %v3584_v1  ;;  %v3732_v12 = vpop.permute.xlu2 %3731 }
 0x75e   : > { %3826 = vst.msk [vmem:[#allocation3 + $0x8] sm:$0xff] %vm1659_vm8, %v3732_v12 }
 0x761   : > { %3933 = vrot.lane.b32.xlu0 %v3863_v38, %s9249_s22 }
 0x762   : > { %3787 = vrot.lane.b32.xlu1 %v11585_v17, %s9248_s21 }
 0x763   : > { %3789 = vrot.lane.b32.xlu2 %v3695_v63, %s9248_s21  ;;  %v3588_v35 = vpop.permute.xlu0 %3587 }
 0x764   : > { %v3590_v57 = vpop.permute.xlu1 %3589  ;;  %3658 = vst.msk [vmem:[#allocation3 + $0xc8] sm:$0xff] %vm1466_vm7, %v3588_v35 }
 0x765   : > { %3659 = vst.msk [vmem:[#allocation3 + $0xd0] sm:$0xff] %vm1466_vm7, %v3590_v57  ;;  %v3738_v3 = vpop.permute.xlu2 %3737 }
 0x766   : > { %3829 = vst.msk [vmem:[#allocation3 + $0x20] sm:$0xff] %vm1659_vm8, %v3738_v3 }
 0x769   : > { %3935 = vrot.lane.b32.xlu0 %v3864_v19, %s9249_s22 }
 0x76a   : > { %3791 = vrot.lane.b32.xlu1 %v3696_v39, %s9248_s21 }
 0x76b   : > { %3937 = vrot.lane.b32.xlu2 %v3865_v45, %s9249_s22  ;;  %v3594_v17 = vpop.permute.xlu0 %3593 }
 0x76c   : > { %v3596_v44 = vpop.permute.xlu1 %3595  ;;  %3661 = vst.msk [vmem:[#allocation3 + $0xe0] sm:$0xff] %vm1466_vm7, %v3594_v17 }
 0x76d   : > { %3662 = vst.msk [vmem:[#allocation3 + $0xe8] sm:$0xff] %vm1466_vm7, %v3596_v44  ;;  %v3744_v2 = vpop.permute.xlu2 %3743 }
 0x76e   : > { %3832 = vst.msk [vmem:[#allocation3 + $0x38] sm:$0xff] %vm1659_vm8, %v3744_v2 }
 0x771   : > { %3939 = vrot.lane.b32.xlu0 %v3866_v42, %s9249_s22 }
 0x772   : > { %3941 = vrot.lane.b32.xlu1 %v3867_v10, %s9249_s22 }
 0x773   : > { %3943 = vrot.lane.b32.xlu2 %v3868_v58, %s9249_s22  ;;  %v3600_v22 = vpop.permute.xlu0 %3599 }
 0x774   : > { %v3730_v55 = vpop.permute.xlu1 %3729  ;;  %3664 = vst.msk [vmem:[#allocation3 + $0xf8] sm:$0xff] %vm1466_vm7, %v3600_v22 }
 0x775   : > { %3825 = vst.msk [vmem:[#allocation3] sm:$0xff] %vm1659_vm8, %v3730_v55  ;;  %v3750_v4 = vpop.permute.xlu2 %3749 }
 0x776   : > { %3835 = vst.msk [vmem:[#allocation3 + $0x50] sm:$0xff] %vm1659_vm8, %v3750_v4 }
 0x779   : > { %3945 = vrot.lane.b32.xlu0 %v3869_v20, %s9249_s22 }
 0x77a   : > { %3947 = vrot.lane.b32.xlu1 %v3870_v32, %s9249_s22 }
 0x77b   : > { %3949 = vrot.lane.b32.xlu2 %v3871_v54, %s9249_s22  ;;  %v3734_v31 = vpop.permute.xlu0 %3733 }
 0x77c   : > { %v3736_v14 = vpop.permute.xlu1 %3735  ;;  %3827 = vst.msk [vmem:[#allocation3 + $0x10] sm:$0xff] %vm1659_vm8, %v3734_v31 }
 0x77d   : > { %3828 = vst.msk [vmem:[#allocation3 + $0x18] sm:$0xff] %vm1659_vm8, %v3736_v14  ;;  %v3756_v47 = vpop.permute.xlu2 %3755 }
 0x77e   : > { %3838 = vst.msk [vmem:[#allocation3 + $0x68] sm:$0xff] %vm1659_vm8, %v3756_v47 }
 0x781   : > { %3951 = vrot.lane.b32.xlu0 %v3872_v30, %s9249_s22 }
 0x782   : > { %3953 = vrot.lane.b32.xlu1 %v3873_v16, %s9249_s22 }
 0x783   : > { %3955 = vrot.lane.b32.xlu2 %v3874_v11, %s9249_s22  ;;  %v3740_v25 = vpop.permute.xlu0 %3739 }
 0x784   : > { %v3742_v62 = vpop.permute.xlu1 %3741  ;;  %3830 = vst.msk [vmem:[#allocation3 + $0x28] sm:$0xff] %vm1659_vm8, %v3740_v25 }
 0x785   : > { %3831 = vst.msk [vmem:[#allocation3 + $0x30] sm:$0xff] %vm1659_vm8, %v3742_v62  ;;  %v3762_v8 = vpop.permute.xlu2 %3761 }
 0x786   : > { %3841 = vst.msk [vmem:[#allocation3 + $0x80] sm:$0xff] %vm1659_vm8, %v3762_v8 }
 0x789   : > { %3957 = vrot.lane.b32.xlu0 %v3875_v52, %s9249_s22 }
 0x78a   : > { %3959 = vrot.lane.b32.xlu1 %v3876_v40, %s9249_s22 }
 0x78b   : > { %3961 = vrot.lane.b32.xlu2 %v3877_v18, %s9249_s22  ;;  %v3746_v29 = vpop.permute.xlu0 %3745  ;;  %v3887_v18 = vld [vmem:[#allocation2 + $0x19a] sm:$0xff] }
 0x78c   : > { %v3748_v13 = vpop.permute.xlu1 %3747  ;;  %3833 = vst.msk [vmem:[#allocation3 + $0x40] sm:$0xff] %vm1659_vm8, %v3746_v29 }
 0x78d   : > { %3834 = vst.msk [vmem:[#allocation3 + $0x48] sm:$0xff] %vm1659_vm8, %v3748_v13  ;;  %v3922_v41 = vpop.permute.xlu2 %3921 }
 0x78e   : > { %4017 = vst.msk [vmem:[#allocation3] sm:$0xff] %vm1852_vm10, %v3922_v41 }
 0x791   : > { %3963 = vrot.lane.b32.xlu0 %v3878_v28, %s9249_s22  ;;  %v3888_v28 = vld [vmem:[#allocation2 + $0x1a2] sm:$0xff] }
 0x792   : > { %3965 = vrot.lane.b32.xlu1 %v3879_v21, %s9249_s22 }
 0x793   : > { %3967 = vrot.lane.b32.xlu2 %v3880_v33, %s9249_s22  ;;  %v3752_v48 = vpop.permute.xlu0 %3751 }
 0x794   : > { %v3754_v34 = vpop.permute.xlu1 %3753  ;;  %3836 = vst.msk [vmem:[#allocation3 + $0x58] sm:$0xff] %vm1659_vm8, %v3752_v48 }
 0x795   : > { %3837 = vst.msk [vmem:[#allocation3 + $0x60] sm:$0xff] %vm1659_vm8, %v3754_v34  ;;  %v3924_v0 = vpop.permute.xlu2 %3923  ;;  %v4049_v9 = vld [vmem:[#allocation3] sm:$0xff] }
 0x796   : > { %4018 = vst.msk [vmem:[#allocation3 + $0x8] sm:$0xff] %vm1852_vm10, %v3924_v0  ;;  %9093 = vmatmul.msk.f32.vlgmr.msra.gmra.mxu1 %vm1917_vm11, %v4049_v9 }
 0x799   : > { %3969 = vrot.lane.b32.xlu0 %v3881_v46, %s9249_s22 }
 0x79a   : > { %3971 = vrot.lane.b32.xlu1 %v3882_v56, %s9249_s22 }
 0x79b   : > { %3973 = vrot.lane.b32.xlu2 %v3883_v60, %s9249_s22  ;;  %v3758_v50 = vpop.permute.xlu0 %3757 }
 0x79c   : > { %v3760_v23 = vpop.permute.xlu1 %3759  ;;  %3839 = vst.msk [vmem:[#allocation3 + $0x70] sm:$0xff] %vm1659_vm8, %v3758_v50 }
 0x79d   : > { %3840 = vst.msk [vmem:[#allocation3 + $0x78] sm:$0xff] %vm1659_vm8, %v3760_v23  ;;  %v3926_v37 = vpop.permute.xlu2 %3925  ;;  %v4050_v59 = vld [vmem:[#allocation3 + $0x8] sm:$0xff] }
 0x79e   : > { %4019 = vst.msk [vmem:[#allocation3 + $0x10] sm:$0xff] %vm1852_vm10, %v3926_v37  ;;  %9094 = vmatmul.msk.f32.gmra.mxu1 %vm1917_vm11, %v4050_v59 }
 0x7a1   : > { %3975 = vrot.lane.b32.xlu0 %v3884_v24, %s9249_s22 }
 0x7a2   : > { %3977 = vrot.lane.b32.xlu1 %v11682_v51, %s9249_s22 }
 0x7a3   : > { %3979 = vrot.lane.b32.xlu2 %v11684_v7, %s9249_s22  ;;  %v3764_v43 = vpop.permute.xlu0 %3763 }
 0x7a4   : > { %v3766_v6 = vpop.permute.xlu1 %3765  ;;  %3842 = vst.msk [vmem:[#allocation3 + $0x88] sm:$0xff] %vm1659_vm8, %v3764_v43 }
 0x7a5   : > { %3843 = vst.msk [vmem:[#allocation3 + $0x90] sm:$0xff] %vm1659_vm8, %v3766_v6  ;;  %v3778_v36 = vpop.permute.xlu2 %3777  ;;  %v4051_v53 = vld [vmem:[#allocation3 + $0x10] sm:$0xff] }
 0x7a6   : > { %3849 = vst.msk [vmem:[#allocation3 + $0xc0] sm:$0xff] %vm1659_vm8, %v3778_v36  ;;  %9095 = vmatmul.msk.f32.gmra.mxu1 %vm1917_vm11, %v4051_v53 }
 0x7a9   : > { %3981 = vrot.lane.b32.xlu0 %v3887_v18, %s9249_s22 }
 0x7aa   : > { %3983 = vrot.lane.b32.xlu1 %v3888_v28, %s9249_s22 }
 0x7ab   : > { %v3768_v15 = vpop.permute.xlu0 %3767 }
 0x7ac   : > { %v3770_v1 = vpop.permute.xlu1 %3769  ;;  %3844 = vst.msk [vmem:[#allocation3 + $0x98] sm:$0xff] %vm1659_vm8, %v3768_v15 }
 0x7ad   : > { %3845 = vst.msk [vmem:[#allocation3 + $0xa0] sm:$0xff] %vm1659_vm8, %v3770_v1  ;;  %v3782_v51 = vpop.permute.xlu2 %3781 }
 0x7ae   : > { %3851 = vst.msk [vmem:[#allocation3 + $0xd0] sm:$0xff] %vm1659_vm8, %v3782_v51 }
 0x7b3   : > { %v3772_v7 = vpop.permute.xlu0 %3771 }
 0x7b4   : > { %v3774_v12 = vpop.permute.xlu1 %3773  ;;  %3846 = vst.msk [vmem:[#allocation3 + $0xa8] sm:$0xff] %vm1659_vm8, %v3772_v7 }
 0x7b5   : > { %3847 = vst.msk [vmem:[#allocation3 + $0xb0] sm:$0xff] %vm1659_vm8, %v3774_v12  ;;  %v3786_v63 = vpop.permute.xlu2 %3785 }
 0x7b6   : > { %3853 = vst.msk [vmem:[#allocation3 + $0xe0] sm:$0xff] %vm1659_vm8, %v3786_v63 }
 0x7bb   : > { %v3776_v38 = vpop.permute.xlu0 %3775 }
 0x7bc   : > { %v3928_v35 = vpop.permute.xlu1 %3927  ;;  %3848 = vst.msk [vmem:[#allocation3 + $0xb8] sm:$0xff] %vm1659_vm8, %v3776_v38 }
 0x7bd   : > { %4020 = vst.msk [vmem:[#allocation3 + $0x18] sm:$0xff] %vm1852_vm10, %v3928_v35  ;;  %v3790_v57 = vpop.permute.xlu2 %3789 }
 0x7be   : > { %3855 = vst.msk [vmem:[#allocation3 + $0xf0] sm:$0xff] %vm1659_vm8, %v3790_v57 }
 0x7c3   : > { %v3780_v3 = vpop.permute.xlu0 %3779 }
 0x7c4   : > { %v3930_v39 = vpop.permute.xlu1 %3929  ;;  %3850 = vst.msk [vmem:[#allocation3 + $0xc8] sm:$0xff] %vm1659_vm8, %v3780_v3  ;;  %v4052_v19 = vld [vmem:[#allocation3 + $0x18] sm:$0xff] }
 0x7c5   : > { %4021 = vst.msk [vmem:[#allocation3 + $0x20] sm:$0xff] %vm1852_vm10, %v3930_v39  ;;  %v3938_v45 = vpop.permute.xlu2 %3937  ;;  %9096 = vmatmul.msk.f32.gmra.mxu1 %vm1917_vm11, %v4052_v19 }
 0x7c6   : > { %4025 = vst.msk [vmem:[#allocation3 + $0x40] sm:$0xff] %vm1852_vm10, %v3938_v45 }
 0x7cb   : > { %v3784_v17 = vpop.permute.xlu0 %3783 }
 0x7cc   : > { %v3932_v27 = vpop.permute.xlu1 %3931  ;;  %3852 = vst.msk [vmem:[#allocation3 + $0xd8] sm:$0xff] %vm1659_vm8, %v3784_v17  ;;  %v4053_v44 = vld [vmem:[#allocation3 + $0x20] sm:$0xff] }
 0x7cd   : > { %4022 = vst.msk [vmem:[#allocation3 + $0x28] sm:$0xff] %vm1852_vm10, %v3932_v27  ;;  %v3944_v2 = vpop.permute.xlu2 %3943  ;;  %9097 = vmatmul.msk.f32.gmra.mxu1 %vm1917_vm11, %v4053_v44  ;;  %v4057_v14 = vld [vmem:[#allocation3 + $0x40] sm:$0xff] }
 0x7ce   : > { %4028 = vst.msk [vmem:[#allocation3 + $0x58] sm:$0xff] %vm1852_vm10, %v3944_v2 }
 0x7d3   : > { %v3934_v61 = vpop.permute.xlu0 %3933 }
 0x7d4   : > { %v3788_v5 = vpop.permute.xlu1 %3787  ;;  %4023 = vst.msk [vmem:[#allocation3 + $0x30] sm:$0xff] %vm1852_vm10, %v3934_v61  ;;  %v4054_v42 = vld [vmem:[#allocation3 + $0x28] sm:$0xff] }
 0x7d5   : > { %3854 = vst.msk [vmem:[#allocation3 + $0xe8] sm:$0xff] %vm1659_vm8, %v3788_v5  ;;  %v3950_v49 = vpop.permute.xlu2 %3949  ;;  %9098 = vmatmul.msk.f32.gmra.mxu1 %vm1917_vm11, %v4054_v42  ;;  %v4060_v41 = vld [vmem:[#allocation3 + $0x58] sm:$0xff] }
 0x7d6   : > { %4031 = vst.msk [vmem:[#allocation3 + $0x70] sm:$0xff] %vm1852_vm10, %v3950_v49 }
 0x7db   : > { %v3936_v10 = vpop.permute.xlu0 %3935  ;;  %v4055_v58 = vld [vmem:[#allocation3 + $0x30] sm:$0xff] }
 0x7dc   : > { %v3792_v22 = vpop.permute.xlu1 %3791  ;;  %4024 = vst.msk [vmem:[#allocation3 + $0x38] sm:$0xff] %vm1852_vm10, %v3936_v10 }
 0x7dd   : > { %3856 = vst.msk [vmem:[#allocation3 + $0xf8] sm:$0xff] %vm1659_vm8, %v3792_v22  ;;  %v3956_v26 = vpop.permute.xlu2 %3955  ;;  %9099 = vmatmul.msk.f32.gmra.mxu1 %vm1917_vm11, %v4055_v58  ;;  %v4063_v46 = vld [vmem:[#allocation3 + $0x70] sm:$0xff] }
 0x7de   : > { %4034 = vst.msk [vmem:[#allocation3 + $0x88] sm:$0xff] %vm1852_vm10, %v3956_v26 }
 0x7e3   : > { %v3940_v55 = vpop.permute.xlu0 %3939  ;;  %v4056_v4 = vld [vmem:[#allocation3 + $0x38] sm:$0xff] }
 0x7e4   : > { %v3942_v20 = vpop.permute.xlu1 %3941  ;;  %4026 = vst.msk [vmem:[#allocation3 + $0x48] sm:$0xff] %vm1852_vm10, %v3940_v55 }
 0x7e5   : > { %4027 = vst.msk [vmem:[#allocation3 + $0x50] sm:$0xff] %vm1852_vm10, %v3942_v20  ;;  %v3962_v32 = vpop.permute.xlu2 %3961  ;;  %9100 = vmatmul.msk.f32.gmra.mxu1 %vm1917_vm11, %v4056_v4  ;;  %v4066_v37 = vld [vmem:[#allocation3 + $0x88] sm:$0xff] }
 0x7e6   : > { %4037 = vst.msk [vmem:[#allocation3 + $0xa0] sm:$0xff] %vm1852_vm10, %v3962_v32 }
 0x7eb   : > { %v3946_v54 = vpop.permute.xlu0 %3945  ;;  %v4058_v11 = vld [vmem:[#allocation3 + $0x48] sm:$0xff] }
 0x7ec   : > { %v3948_v31 = vpop.permute.xlu1 %3947  ;;  %4029 = vst.msk [vmem:[#allocation3 + $0x60] sm:$0xff] %vm1852_vm10, %v3946_v54  ;;  %v4059_v52 = vld [vmem:[#allocation3 + $0x50] sm:$0xff] }
 0x7ed   : > { %4030 = vst.msk [vmem:[#allocation3 + $0x68] sm:$0xff] %vm1852_vm10, %v3948_v31  ;;  %v3968_v47 = vpop.permute.xlu2 %3967  ;;  %9101 = vmatmul.msk.f32.gmra.mxu1 %vm1917_vm11, %v4057_v14  ;;  %v4069_v53 = vld [vmem:[#allocation3 + $0xa0] sm:$0xff] }
 0x7ee   : > { %4040 = vst.msk [vmem:[#allocation3 + $0xb8] sm:$0xff] %vm1852_vm10, %v3968_v47 }
 0x7f3   : > { %v3952_v30 = vpop.permute.xlu0 %3951  ;;  %v4061_v48 = vld [vmem:[#allocation3 + $0x60] sm:$0xff] }
 0x7f4   : > { %v3954_v16 = vpop.permute.xlu1 %3953  ;;  %4032 = vst.msk [vmem:[#allocation3 + $0x78] sm:$0xff] %vm1852_vm10, %v3952_v30  ;;  %v4062_v9 = vld [vmem:[#allocation3 + $0x68] sm:$0xff] }
 0x7f5   : > { %4033 = vst.msk [vmem:[#allocation3 + $0x80] sm:$0xff] %vm1852_vm10, %v3954_v16  ;;  %v3974_v25 = vpop.permute.xlu2 %3973  ;;  %9102 = vmatmul.msk.f32.gmra.mxu1 %vm1917_vm11, %v4058_v11  ;;  %v4072_v63 = vld [vmem:[#allocation3 + $0xb8] sm:$0xff] }
 0x7f6   : > { %4043 = vst.msk [vmem:[#allocation3 + $0xd0] sm:$0xff] %vm1852_vm10, %v3974_v25 }
 0x7fb   : > { %v3958_v62 = vpop.permute.xlu0 %3957  ;;  %v4064_v56 = vld [vmem:[#allocation3 + $0x78] sm:$0xff] }
 0x7fc   : > { %v3960_v8 = vpop.permute.xlu1 %3959  ;;  %4035 = vst.msk [vmem:[#allocation3 + $0x90] sm:$0xff] %vm1852_vm10, %v3958_v62  ;;  %v4065_v50 = vld [vmem:[#allocation3 + $0x80] sm:$0xff] }
 0x7fd   : > { %4036 = vst.msk [vmem:[#allocation3 + $0x98] sm:$0xff] %vm1852_vm10, %v3960_v8  ;;  %v3980_v40 = vpop.permute.xlu2 %3979  ;;  %9103 = vmatmul.msk.f32.gmra.mxu1 %vm1917_vm11, %v4059_v52  ;;  %v4075_v45 = vld [vmem:[#allocation3 + $0xd0] sm:$0xff] }
 0x7fe   : > { %4046 = vst.msk [vmem:[#allocation3 + $0xe8] sm:$0xff] %vm1852_vm10, %v3980_v40 }
 0x803   : > { %v3964_v29 = vpop.permute.xlu0 %3963  ;;  %v4067_v24 = vld [vmem:[#allocation3 + $0x90] sm:$0xff] }
 0x804   : > { %v3966_v13 = vpop.permute.xlu1 %3965  ;;  %4038 = vst.msk [vmem:[#allocation3 + $0xa8] sm:$0xff] %vm1852_vm10, %v3964_v29  ;;  %v4068_v6 = vld [vmem:[#allocation3 + $0x98] sm:$0xff] }
 0x805   : > { %4039 = vst.msk [vmem:[#allocation3 + $0xb0] sm:$0xff] %vm1852_vm10, %v3966_v13  ;;  %9104 = vmatmul.msk.f32.gmra.mxu1 %vm1917_vm11, %v4060_v41  ;;  %v4078_v42 = vld [vmem:[#allocation3 + $0xe8] sm:$0xff] }
 0x80b   : > { %v3970_v21 = vpop.permute.xlu0 %3969  ;;  %v4070_v1 = vld [vmem:[#allocation3 + $0xa8] sm:$0xff] }
 0x80c   : > { %v3972_v33 = vpop.permute.xlu1 %3971  ;;  %4041 = vst.msk [vmem:[#allocation3 + $0xc0] sm:$0xff] %vm1852_vm10, %v3970_v21  ;;  %v4071_v7 = vld [vmem:[#allocation3 + $0xb0] sm:$0xff] }
 0x80d   : > { %4042 = vst.msk [vmem:[#allocation3 + $0xc8] sm:$0xff] %vm1852_vm10, %v3972_v33  ;;  %9105 = vmatmul.msk.f32.gmra.mxu1 %vm1917_vm11, %v4061_v48 }
 0x813   : > { %v3976_v34 = vpop.permute.xlu0 %3975  ;;  %v11979_v60 = vpop.f32.mrf.mxu1  ;;  %v4073_v35 = vld [vmem:[#allocation3 + $0xc0] sm:$0xff] }
 0x814   : > { %v3978_v0 = vpop.permute.xlu1 %3977  ;;  %4044 = vst.msk [vmem:[#allocation3 + $0xd8] sm:$0xff] %vm1852_vm10, %v3976_v34  ;;  %v4074_v3 = vld [vmem:[#allocation3 + $0xc8] sm:$0xff]  ;;  %v4293_v30 = vsel %vm144_vm0, %v11979_v60, 0.0 }
 0x815   : > { %4045 = vst.msk [vmem:[#allocation3 + $0xe0] sm:$0xff] %vm1852_vm10, %v3978_v0  ;;  %9106 = vmatmul.msk.f32.gmra.mxu1 %vm1917_vm11, %v4062_v9 }
 0x81b   : > { %v11982_v23 = vpop.f32.mrf.mxu1  ;;  %v3982_v39 = vpop.permute.xlu0 %3981  ;;  %v4076_v44 = vld [vmem:[#allocation3 + $0xd8] sm:$0xff] }
 0x81c   : > { %4047 = vst.msk [vmem:[#allocation3 + $0xf0] sm:$0xff] %vm1852_vm10, %v3982_v39  ;;  %v3984_v17 = vpop.permute.xlu1 %3983  ;;  %v4077_v61 = vld [vmem:[#allocation3 + $0xe0] sm:$0xff]  ;;  %v4294_v47 = vsel %vm144_vm0, %v11982_v23, 0.0 }
 0x81d   : > { %9107 = vmatmul.msk.f32.gmra.mxu1 %vm1917_vm11, %v4063_v46  ;;  %4048 = vst.msk [vmem:[#allocation3 + $0xf8] sm:$0xff] %vm1852_vm10, %v3984_v17  ;;  %v4295_v11 = vadd.f32 %v4294_v47, %v4293_v30 }
 0x823   : > { %v11985_v59 = vpop.f32.mrf.mxu1  ;;  %v4079_v10 = vld [vmem:[#allocation3 + $0xf0] sm:$0xff] }
 0x824   : > { %v4080_v22 = vld [vmem:[#allocation3 + $0xf8] sm:$0xff]  ;;  %v4296_v16 = vsel %vm144_vm0, %v11985_v59, 0.0 }
 0x825   : > { %9108 = vmatmul.msk.f32.gmra.mxu1 %vm1917_vm11, %v4064_v56  ;;  %v4297_v62 = vadd.f32 %v4296_v16, %v4295_v11 }
 0x82d   : > { %9109 = vmatmul.msk.f32.gmra.mxu1 %vm1917_vm11, %v4065_v50 }
 0x835   : > { %9110 = vmatmul.msk.f32.gmra.mxu1 %vm1917_vm11, %v4066_v37 }
 0x83d   : > { %9111 = vmatmul.msk.f32.gmra.mxu1 %vm1917_vm11, %v4067_v24 }
 0x842   : > { %v11988_v43 = vpop.f32.mrf.mxu1 }
 0x843   : > { %v4298_v25 = vsel %vm144_vm0, %v11988_v43, 0.0 }
 0x844   : > { %v4299_v40 = vadd.f32 %v4298_v25, %v4297_v62 }
 0x845   : > { %9112 = vmatmul.msk.f32.gmra.mxu1 %vm1917_vm11, %v4068_v6 }
 0x84a   : > { %v11991_v36 = vpop.f32.mrf.mxu1 }
 0x84b   : > { %v4300_v52 = vsel %vm144_vm0, %v11991_v36, 0.0 }
 0x84c   : > { %v4301_v29 = vadd.f32 %v4300_v52, %v4299_v40 }
 0x84d   : > { %9113 = vmatmul.msk.f32.gmra.mxu1 %vm1917_vm11, %v4069_v53 }
 0x852   : > { %v11994_v15 = vpop.f32.mrf.mxu1 }
 0x853   : > { %v4302_v18 = vsel %vm144_vm0, %v11994_v15, 0.0 }
 0x854   : > { %v4303_v41 = vadd.f32 %v4302_v18, %v4301_v29 }
 0x855   : > { %9114 = vmatmul.msk.f32.gmra.mxu1 %vm1917_vm11, %v4070_v1 }
 0x85a   : > { %v11997_v51 = vpop.f32.mrf.mxu1 }
 0x85b   : > { %v4304_v13 = vsel %vm144_vm0, %v11997_v51, 0.0 }
 0x85c   : > { %v4305_v21 = vadd.f32 %v4304_v13, %v4303_v41 }
 0x85d   : > { %9115 = vmatmul.msk.f32.gmra.mxu1 %vm1917_vm11, %v4071_v7 }
 0x862   : > { %v12000_v12 = vpop.f32.mrf.mxu1 }
 0x863   : > { %v4306_v28 = vsel %vm144_vm0, %v12000_v12, 0.0 }
 0x864   : > { %v4307_v34 = vadd.f32 %v4306_v28, %v4305_v21 }
 0x865   : > { %9116 = vmatmul.msk.f32.gmra.mxu1 %vm1917_vm11, %v4072_v63 }
 0x86a   : > { %v12003_v38 = vpop.f32.mrf.mxu1 }
 0x86b   : > { %v4308_v48 = vsel %vm144_vm0, %v12003_v38, 0.0 }
 0x86c   : > { %v4309_v9 = vadd.f32 %v4308_v48, %v4307_v34 }
 0x86d   : > { %9117 = vmatmul.msk.f32.gmra.mxu1 %vm1917_vm11, %v4073_v35 }
 0x872   : > { %v12006_v57 = vpop.f32.mrf.mxu1 }
 0x873   : > { %v4310_v0 = vsel %vm144_vm0, %v12006_v57, 0.0 }
 0x874   : > { %v4311_v56 = vadd.f32 %v4310_v0, %v4309_v9 }
 0x875   : > { %9118 = vmatmul.msk.f32.gmra.mxu1 %vm1917_vm11, %v4074_v3 }
 0x87a   : > { %v12010_v19 = vpop.f32.mrf.mxu1 }
 0x87b   : > { %v4312_v46 = vsel %vm144_vm0, %v12010_v19, 0.0 }
 0x87c   : > { %v4313_v37 = vadd.f32 %v4312_v46, %v4311_v56 }
 0x87d   : > { %9119 = vmatmul.msk.f32.gmra.mxu1 %vm1917_vm11, %v4075_v45 }
 0x882   : > { %v12014_v27 = vpop.f32.mrf.mxu1 }
 0x883   : > { %v4314_v50 = vsel %vm144_vm0, %v12014_v27, 0.0 }
 0x884   : > { %v4315_v53 = vadd.f32 %v4314_v50, %v4313_v37 }
 0x885   : > { %9120 = vmatmul.msk.f32.gmra.mxu1 %vm1917_vm11, %v4076_v44 }
 0x88a   : > { %v12017_v2 = vpop.f32.mrf.mxu1 }
 0x88b   : > { %v4316_v6 = vsel %vm144_vm0, %v12017_v2, 0.0 }
 0x88c   : > { %v4317_v7 = vadd.f32 %v4316_v6, %v4315_v53 }
 0x88d   : > { %9121 = vmatmul.msk.f32.gmra.mxu1 %vm1917_vm11, %v4077_v61 }
 0x892   : > { %v12020_v5 = vpop.f32.mrf.mxu1 }
 0x893   : > { %v4318_v1 = vsel %vm144_vm0, %v12020_v5, 0.0 }
 0x894   : > { %v4319_v35 = vadd.f32 %v4318_v1, %v4317_v7 }
 0x895   : > { %9122 = vmatmul.msk.f32.gmra.mxu1 %vm1917_vm11, %v4078_v42 }
 0x89a   : > { %v12023_v49 = vpop.f32.mrf.mxu1 }
 0x89b   : > { %v4320_v63 = vsel %vm144_vm0, %v12023_v49, 0.0 }
 0x89c   : > { %v4321_v39 = vadd.f32 %v4320_v63, %v4319_v35 }
 0x89d   : > { %9123 = vmatmul.msk.f32.gmra.mxu1 %vm1917_vm11, %v4079_v10 }
 0x8a2   : > { %v12026_v58 = vpop.f32.mrf.mxu1 }
 0x8a3   : > { %v4322_v3 = vsel %vm144_vm0, %v12026_v58, 0.0 }
 0x8a4   : > { %v4323_v44 = vadd.f32 %v4322_v3, %v4321_v39 }
 0x8a5   : > { %9124 = vmatmul.msk.f32.gmra.mxu1 %vm1917_vm11, %v4080_v22 }
 0x8aa   : > { %v12029_v26 = vpop.f32.mrf.mxu1 }
 0x8ab   : > { %v4324_v17 = vsel %vm144_vm0, %v12029_v26, 0.0 }
 0x8ac   : > { %v4325_v42 = vadd.f32 %v4324_v17, %v4323_v44 }
 0x8b2   : > { %v12031_v55 = vpop.f32.mrf.mxu1 }
 0x8b3   : > { %v4326_v61 = vsel %vm144_vm0, %v12031_v55, 0.0 }
 0x8b4   : > { %v4327_v22 = vadd.f32 %v4326_v61, %v4325_v42 }
 0x8ba   : > { %v12033_v4 = vpop.f32.mrf.mxu1 }
 0x8bb   : > { %v4328_v10 = vsel %vm144_vm0, %v12033_v4, 0.0 }
 0x8bc   : > { %v4329_v30 = vadd.f32 %v4328_v10, %v4327_v22 }
 0x8c2   : > { %v12035_v20 = vpop.f32.mrf.mxu1 }
 0x8c3   : > { %v4330_v47 = vsel %vm144_vm0, %v12035_v20, 0.0 }
 0x8c4   : > { %v4331_v25 = vadd.f32 %v4330_v47, %v4329_v30  ;;  %v15599_v30 = vld [vmem:[#allocation38_spill] sm:$0xff] }
 0x8ca   : > { %v12037_v32 = vpop.f32.mrf.mxu1 }
 0x8cb   : > { %v4332_v11 = vsel %vm144_vm0, %v12037_v32, 0.0 }
 0x8cc   : > { %v4333_v52 = vadd.f32 %v4332_v11, %v4331_v25 }
 0x8d2   : > { %v12039_v54 = vpop.f32.mrf.mxu1 }
 0x8d3   : > { %v4334_v62 = vsel %vm144_vm0, %v12039_v54, 0.0 }
 0x8d4   : > { %v4335_v18 = vadd.f32 %v4334_v62, %v4333_v52 }
 0x8da   : > { %v12041_v31 = vpop.f32.mrf.mxu1 }
 0x8db   : > { %v4336_v40 = vsel %vm144_vm0, %v12041_v31, 0.0 }
 0x8dc   : > { %v4337_v13 = vadd.f32 %v4336_v40, %v4335_v18 }
 0x8e2   : > { %v12043_v14 = vpop.f32.mrf.mxu1 }
 0x8e3   : > { %v4338_v29 = vsel %vm144_vm0, %v12043_v14, 0.0 }
 0x8e4   : > { %v4339_v21 = vadd.f32 %v4338_v29, %v4337_v13 }
 0x8ea   : > { %v12053_v8 = vpop.f32.mrf.mxu1 }
 0x8eb   : > { %v4340_v28 = vsel %vm144_vm0, %v12053_v8, 0.0 }
 0x8ec   : > { %v4341_v34 = vadd.f32 %v4340_v28, %v4339_v21 }
 0x8f2   : > { %v12063_v33 = vpop.f32.mrf.mxu1 }
 0x8f3   : > { %v4342_v48 = vsel %vm144_vm0, %v12063_v33, 0.0 }
 0x8f4   : > { %v4343_v9 = vadd.f32 %v4342_v48, %v4341_v34 }
 0x8fa   : > { %v12073_v24 = vpop.f32.mrf.mxu1 }
 0x8fb   : > { %v4344_v0 = vsel %vm144_vm0, %v12073_v24, 0.0 }
 0x8fc   : > { %v4345_v56 = vadd.f32 %v4344_v0, %v4343_v9 }
 0x902   : > { %v12083_v45 = vpop.f32.mrf.mxu1 }
 0x903   : > { %v4346_v46 = vsel %vm144_vm0, %v12083_v45, 0.0 }
 0x904   : > { %v4347_v6 = vadd.f32 %v4346_v46, %v4345_v56 }
 0x90a   : > { %v12093_v16 = vpop.f32.mrf.mxu1 }
 0x90b   : > { %v4348_v37 = vsel %vm144_vm0, %v12093_v16, 0.0 }
 0x90c   : > { %v4349_v1 = vadd.f32 %v4348_v37, %v4347_v6 }
 0x912   : > { %v12103_v41 = vpop.f32.mrf.mxu1 }
 0x913   : > { %v4350_v53 = vsel %vm144_vm0, %v12103_v41, 0.0 }
 0x914   : > { %v4351_v63 = vadd.f32 %v4350_v53, %v4349_v1 }
 0x91a   : > { %v12113_v50 = vpop.f32.mrf.mxu1 }
 0x91b   : > { %v4352_v7 = vsel %vm144_vm0, %v12113_v50, 0.0 }
 0x91c   : > { %v4353_v35 = vadd.f32 %v4352_v7, %v4351_v63 }
 0x922   : > { %v12121_v3 = vpop.f32.mrf.mxu1 }
 0x923   : > { %v4354_v39 = vsel %vm144_vm0, %v12121_v3, 0.0 }
 0x924   : > { %v4355_v17 = vadd.f32 %v4354_v39, %v4353_v35 }
 0x926   : > { %v4356_v44 = vrot.slane %v4355_v17, 4 }
 0x928   : > { %v4357_v61 = vadd.f32 %v4356_v44, %v4355_v17 }
 0x92a   : > { %v4358_v42 = vrot.slane %v4357_v61, 2 }
 0x92c   : > { %v4359_v10 = vadd.f32 %v4358_v42, %v4357_v61 }
 0x92e   : > { %v4360_v22 = vrot.slane %v4359_v10, 1 }
 0x930   : > { %v4361_v47 = vadd.f32 %v4360_v22, %v4359_v10 }
 0x932   : > { %v12126_v11 = vmul.f32 %v4361_v47, %v15599_v30 }
 0x934   : > { %v12130_v25 = vsub.f32 %v11979_v60, %v12126_v11  ;;  %v12134_v62 = vsub.f32 %v11982_v23, %v12126_v11  ;;  %v12138_v52 = vsub.f32 %v11985_v59, %v12126_v11  ;;  %v12142_v40 = vsub.f32 %v11988_v43, %v12126_v11 }
 0x935   : > { %v12150_v60 = vsub.f32 %v11991_v36, %v12126_v11  ;;  %v12156_v59 = vsub.f32 %v11994_v15, %v12126_v11  ;;  %v12164_v48 = vsub.f32 %v11997_v51, %v12126_v11  ;;  %v12171_v15 = vsub.f32 %v12000_v12, %v12126_v11 }
 0x936   : > { %v4395_v18 = vmul.f32 %v12130_v25, %v12130_v25  ;;  %v4396_v29 = vmul.f32 %v12134_v62, %v12134_v62  ;;  %v4397_v23 = vmul.f32 %v12138_v52, %v12138_v52  ;;  %v4398_v43 = vmul.f32 %v12142_v40, %v12142_v40 }
 0x937   : > { %v4399_v36 = vmul.f32 %v12150_v60, %v12150_v60  ;;  %v4400_v9 = vmul.f32 %v12156_v59, %v12156_v59  ;;  %v12178_v51 = vsub.f32 %v12003_v38, %v12126_v11  ;;  %v4401_v37 = vmul.f32 %v12164_v48, %v12164_v48 }
 0x938   : > { %v4427_v13 = vsel %vm144_vm0, %v4395_v18, 0.0  ;;  %v4428_v28 = vsel %vm144_vm0, %v4396_v29, 0.0  ;;  %v4430_v34 = vsel %vm144_vm0, %v4397_v23, 0.0  ;;  %v4432_v46 = vsel %vm144_vm0, %v4398_v43, 0.0 }
 0x939   : > { %v4429_v21 = vadd.f32 %v4428_v28, %v4427_v13  ;;  %v4434_v6 = vsel %vm144_vm0, %v4399_v36, 0.0  ;;  %v12185_v12 = vsub.f32 %v12006_v57, %v12126_v11  ;;  %v4402_v1 = vmul.f32 %v12171_v15, %v12171_v15 }
 0x93a   : > { %v4436_v7 = vsel %vm144_vm0, %v4400_v9, 0.0  ;;  %v12192_v38 = vsub.f32 %v12010_v19, %v12126_v11  ;;  %v4403_v35 = vmul.f32 %v12178_v51, %v12178_v51  ;;  %v4438_v39 = vsel %vm144_vm0, %v4401_v37, 0.0 }
 0x93b   : > { %v4431_v0 = vadd.f32 %v4430_v34, %v4429_v21  ;;  %v12199_v57 = vsub.f32 %v12014_v27, %v12126_v11  ;;  %v4404_v44 = vmul.f32 %v12185_v12, %v12185_v12  ;;  %v4440_v61 = vsel %vm144_vm0, %v4402_v1, 0.0 }
 0x93c   : > { %v12206_v19 = vsub.f32 %v12017_v2, %v12126_v11  ;;  %v4405_v10 = vmul.f32 %v12192_v38, %v12192_v38  ;;  %v4442_v22 = vsel %vm144_vm0, %v4403_v35, 0.0  ;;  %v12213_v27 = vsub.f32 %v12020_v5, %v12126_v11 }
 0x93d   : > { %v4433_v56 = vadd.f32 %v4432_v46, %v4431_v0  ;;  %v4406_v18 = vmul.f32 %v12199_v57, %v12199_v57  ;;  %v4444_v29 = vsel %vm144_vm0, %v4404_v44, 0.0  ;;  %v12220_v2 = vsub.f32 %v12023_v49, %v12126_v11 }
 0x93e   : > { %v4407_v43 = vmul.f32 %v12206_v19, %v12206_v19  ;;  %v4446_v13 = vsel %vm144_vm0, %v4405_v10, 0.0  ;;  %v12227_v5 = vsub.f32 %v12026_v58, %v12126_v11  ;;  %v4408_v21 = vmul.f32 %v12213_v27, %v12213_v27 }
 0x93f   : > { %v4435_v53 = vadd.f32 %v4434_v6, %v4433_v56  ;;  %v4448_v36 = vsel %vm144_vm0, %v4406_v18, 0.0  ;;  %v12234_v49 = vsub.f32 %v12029_v26, %v12126_v11  ;;  %v4409_v0 = vmul.f32 %v12220_v2, %v12220_v2 }
 0x940   : > { %v4450_v9 = vsel %vm144_vm0, %v4407_v43, 0.0  ;;  %v12241_v58 = vsub.f32 %v12031_v55, %v12126_v11  ;;  %v4410_v56 = vmul.f32 %v12227_v5, %v12227_v5  ;;  %v4452_v37 = vsel %vm144_vm0, %v4408_v21, 0.0 }
 0x941   : > { %v4437_v63 = vadd.f32 %v4436_v7, %v4435_v53  ;;  %v12248_v26 = vsub.f32 %v12033_v4, %v12126_v11  ;;  %v4411_v53 = vmul.f32 %v12234_v49, %v12234_v49  ;;  %v4454_v1 = vsel %vm144_vm0, %v4409_v0, 0.0 }
 0x942   : > { %v12255_v55 = vsub.f32 %v12035_v20, %v12126_v11  ;;  %v4456_v35 = vsel %vm144_vm0, %v4410_v56, 0.0  ;;  %v12262_v4 = vsub.f32 %v12037_v32, %v12126_v11  ;;  %v12269_v20 = vsub.f32 %v12039_v54, %v12126_v11 }
 0x943   : > { %v4439_v17 = vadd.f32 %v4438_v39, %v4437_v63  ;;  %v4412_v63 = vmul.f32 %v12241_v58, %v12241_v58  ;;  %v4458_v44 = vsel %vm144_vm0, %v4411_v53, 0.0  ;;  %v12276_v32 = vsub.f32 %v12041_v31, %v12126_v11 }
 0x944   : > { %v12283_v54 = vsub.f32 %v12043_v14, %v12126_v11  ;;  %v12290_v31 = vsub.f32 %v12053_v8, %v12126_v11  ;;  %v12297_v14 = vsub.f32 %v12063_v33, %v12126_v11  ;;  %v12304_v8 = vsub.f32 %v12073_v24, %v12126_v11 }
 0x945   : > { %v4441_v42 = vadd.f32 %v4440_v61, %v4439_v17  ;;  %v4413_v17 = vmul.f32 %v12248_v26, %v12248_v26  ;;  %v4460_v10 = vsel %vm144_vm0, %v4412_v63, 0.0  ;;  %v12311_v33 = vsub.f32 %v12083_v45, %v12126_v11 }
 0x946   : > { %v12318_v24 = vsub.f32 %v12093_v16, %v12126_v11  ;;  %v12325_v45 = vsub.f32 %v12103_v41, %v12126_v11  ;;  %v12332_v16 = vsub.f32 %v12113_v50, %v12126_v11  ;;  %v4394_v41 = vsub.f32 %v12121_v3, %v12126_v11 }
 0x947   : > { %v4443_v47 = vadd.f32 %v4442_v22, %v4441_v42  ;;  %v4414_v42 = vmul.f32 %v12255_v55, %v12255_v55  ;;  %v4462_v18 = vsel %vm144_vm0, %v4413_v17, 0.0 }
 0x949   : > { %v4445_v23 = vadd.f32 %v4444_v29, %v4443_v47  ;;  %v4415_v47 = vmul.f32 %v12262_v4, %v12262_v4  ;;  %v4464_v43 = vsel %vm144_vm0, %v4414_v42, 0.0 }
 0x94b   : > { %v4447_v28 = vadd.f32 %v4446_v13, %v4445_v23  ;;  %v4416_v23 = vmul.f32 %v12269_v20, %v12269_v20  ;;  %v4466_v21 = vsel %vm144_vm0, %v4415_v47, 0.0 }
 0x94d   : > { %v4449_v34 = vadd.f32 %v4448_v36, %v4447_v28  ;;  %v4417_v28 = vmul.f32 %v12276_v32, %v12276_v32  ;;  %v4468_v0 = vsel %vm144_vm0, %v4416_v23, 0.0 }
 0x94f   : > { %v4451_v46 = vadd.f32 %v4450_v9, %v4449_v34  ;;  %v4418_v34 = vmul.f32 %v12283_v54, %v12283_v54  ;;  %v4470_v56 = vsel %vm144_vm0, %v4417_v28, 0.0 }
 0x951   : > { %v4453_v6 = vadd.f32 %v4452_v37, %v4451_v46  ;;  %v4419_v46 = vmul.f32 %v12290_v31, %v12290_v31  ;;  %v4472_v53 = vsel %vm144_vm0, %v4418_v34, 0.0 }
 0x953   : > { %v4455_v7 = vadd.f32 %v4454_v1, %v4453_v6  ;;  %v4420_v6 = vmul.f32 %v12297_v14, %v12297_v14  ;;  %v4474_v63 = vsel %vm144_vm0, %v4419_v46, 0.0 }
 0x955   : > { %v4457_v39 = vadd.f32 %v4456_v35, %v4455_v7  ;;  %v4421_v7 = vmul.f32 %v12304_v8, %v12304_v8  ;;  %v4476_v17 = vsel %vm144_vm0, %v4420_v6, 0.0  ;;  %v4712_v6 = vld [vmem:[#allocation2 + $0x1] sm:$0xff] }
 0x956   : > { %4776 = vrot.lane.b32.xlu2 %v4712_v6, %s9242_s11  ;;  %v15608_v6 = vld [vmem:[#allocation11_spill] sm:$0xff] }
 0x957   : > { %v4459_v61 = vadd.f32 %v4458_v44, %v4457_v39  ;;  %v4422_v39 = vmul.f32 %v12311_v33, %v12311_v33  ;;  %v4478_v42 = vsel %vm144_vm0, %v4421_v7, 0.0  ;;  %v4713_v7 = vld [vmem:[#allocation2 + $0x9] sm:$0xff] }
 0x958   : > { %4778 = vrot.lane.b32.xlu0 %v4713_v7, %s9242_s11 }
 0x959   : > { %v4461_v22 = vadd.f32 %v4460_v10, %v4459_v61  ;;  %v4423_v61 = vmul.f32 %v12318_v24, %v12318_v24  ;;  %v4480_v47 = vsel %vm144_vm0, %v4422_v39, 0.0 }
 0x95b   : > { %v4463_v29 = vadd.f32 %v4462_v18, %v4461_v22  ;;  %v4424_v22 = vmul.f32 %v12325_v45, %v12325_v45  ;;  %v4482_v50 = vsel %vm144_vm0, %v4423_v61, 0.0 }
 0x95d   : > { %v4465_v13 = vadd.f32 %v4464_v43, %v4463_v29  ;;  %v4425_v29 = vmul.f32 %v12332_v16, %v12332_v16  ;;  %v4426_v43 = vmul.f32 %v4394_v41, %v4394_v41 }
 0x95f   : > { %v4467_v36 = vadd.f32 %v4466_v21, %v4465_v13  ;;  %v4484_v13 = vsel %vm144_vm0, %v4424_v22, 0.0  ;;  %v4486_v21 = vsel %vm144_vm0, %v4425_v29, 0.0  ;;  %v4488_v3 = vsel %vm144_vm0, %v4426_v43, 0.0 }
 0x961   : > { %v4469_v9 = vadd.f32 %v4468_v0, %v4467_v36 }
 0x963   : > { %v4471_v37 = vadd.f32 %v4470_v56, %v4469_v9 }
 0x965   : > { %v4473_v1 = vadd.f32 %v4472_v53, %v4471_v37 }
 0x967   : > { %v4475_v35 = vadd.f32 %v4474_v63, %v4473_v1 }
 0x969   : > { %v4477_v44 = vadd.f32 %v4476_v17, %v4475_v35 }
 0x96b   : > { %v4479_v10 = vadd.f32 %v4478_v42, %v4477_v44 }
 0x96d   : > { %v4481_v18 = vadd.f32 %v4480_v47, %v4479_v10  ;;  %v15600_v47 = vld [vmem:[#allocation65_spill] sm:$0xff] }
 0x96f   : > { %v4483_v23 = vadd.f32 %v4482_v50, %v4481_v18 }
 0x971   : > { %v4485_v28 = vadd.f32 %v4484_v13, %v4483_v23 }
 0x973   : > { %v4487_v36 = vadd.f32 %v4486_v21, %v4485_v28 }
 0x975   : > { %v4489_v11 = vadd.f32 %v4488_v3, %v4487_v36 }
 0x977   : > { %v4490_v34 = vrot.slane %v4489_v11, 4 }
 0x979   : > { %v4491_v0 = vadd.f32 %v4490_v34, %v4489_v11 }
 0x97b   : > { %v4492_v9 = vrot.slane %v4491_v0, 2 }
 0x97d   : > { %v4493_v46 = vadd.f32 %v4492_v9, %v4491_v0  ;;  %v15604_v9 = vld [vmem:[#allocation6_spill] sm:$0xff] }
 0x97f   : > { %v4494_v56 = vrot.slane %v4493_v46, 1 }
 0x981   : > { %v4495_v37 = vadd.f32 %v4494_v56, %v4493_v46 }
 0x983   : > { %v4496_v53 = vmul.f32 %v4495_v37, %v15599_v30  ;;  %v4905_v30 = vld [vmem:[#allocation2 + $0xa] sm:$0xff] }
 0x985   : > { %v4497_v1 = vadd.f32 1e-05, %v4496_v53 }
 0x987   : > { %9227 = vrsqrt.f32 %v4497_v1  ;;  %vm4504_vm12 = vweird.f32 %v4497_v1 }
 0x98d   : > { %v9228_v63 = vpop.eup %9227 }
 0x98e   : > { %v4499_v35 = vmul.f32 %v9228_v63, %v4497_v1  ;;  %vm4505_vm1 = vweird.f32 %v9228_v63  ;;  %v15610_v1 = vld [vmem:[#allocation5_spill] sm:$0xff] }
 0x98f   : > { %vm4506_vm13 = vmor %vm4504_vm12, %vm4505_vm1 }
 0x990   : > { %v4500_v39 = vmul.f32 %v9228_v63, %v4499_v35 }
 0x992   : > { %v4501_v17 = vmul.f32 0.5, %v4500_v39  ;;  %v15612_v39 = vld [vmem:[#allocation9_spill] sm:$0xff] }
 0x994   : > { %v4502_v44 = vsub.f32 1.5, %v4501_v17 }
 0x996   : > { %v4503_v61 = vmul.f32 %v9228_v63, %v4502_v44  ;;  %v15614_v44 = vld [vmem:[#allocation14_spill] sm:$0xff] }
 0x998   : > { %v12351_v42 = vsel %vm4506_vm13, %v9228_v63, %v4503_v61 }
 0x999   : > { %v4539_v10 = vmul.f32 %v12351_v42, %v4394_v41  ;;  %v4508_v29 = vmul.f32 %v12351_v42, %v12130_v25  ;;  %v4509_v50 = vmul.f32 %v12351_v42, %v12134_v62  ;;  %v4510_v23 = vmul.f32 %v12351_v42, %v12138_v52 }
 0x99a   : > { %v4511_v43 = vmul.f32 %v12351_v42, %v12142_v40  ;;  %v4512_v41 = vmul.f32 %v12351_v42, %v12150_v60  ;;  %v4513_v13 = vmul.f32 %v12351_v42, %v12156_v59  ;;  %v4514_v28 = vmul.f32 %v12351_v42, %v12164_v48  ;;  %v15602_v48 = vld [vmem:[#allocation4_spill] sm:$0xff] }
 0x99b   : > { %v4571_v22 = vmax.f32 %v4539_v10, 0.0  ;;  %v4540_v21 = vmax.f32 %v4508_v29, 0.0  ;;  %v4541_v25 = vmax.f32 %v4509_v50, 0.0  ;;  %v4542_v36 = vmax.f32 %v4510_v23, 0.0  ;;  %v15618_v50 = vld [vmem:[#allocation12_spill] sm:$0xff] }
 0x99c   : > { %v4515_v62 = vmul.f32 %v12351_v42, %v12171_v15  ;;  %v4543_v3 = vmax.f32 %v4511_v43, 0.0  ;;  %v4516_v52 = vmul.f32 %v12351_v42, %v12178_v51  ;;  %v4544_v40 = vmax.f32 %v4512_v41, 0.0  ;;  %v15606_v15 = vld [vmem:[#allocation8_spill] sm:$0xff]  ;;  %v15620_v41 = vld [vmem:[#allocation17_spill] sm:$0xff] }
 0x99d   : > { %v12355_v18 = vadd.f32 %v4571_v22, %v15600_v47  ;;  %v4517_v60 = vmul.f32 %v12351_v42, %v12185_v12  ;;  %v4518_v59 = vmul.f32 %v12351_v42, %v12192_v38  ;;  %v4545_v11 = vmax.f32 %v4513_v13, 0.0  ;;  %v15616_v22 = vld [vmem:[#allocation7_spill] sm:$0xff] }
 0x99e   : > { %v4546_v34 = vmax.f32 %v4514_v28, 0.0  ;;  %v12382_v0 = vadd.f32 %v4540_v21, %v15602_v48  ;;  %v12385_v46 = vadd.f32 %v4541_v25, %v15604_v9  ;;  %v12388_v56 = vadd.f32 %v4542_v36, %v15606_v15  ;;  %v15622_v21 = vld [vmem:[#allocation10_spill] sm:$0xff]  ;;  %v15628_v48 = vld [vmem:[#allocation13_spill] sm:$0xff] }
 0x99f   : > { %15601 = vst [vmem:[#allocation34_spill] sm:$0xff] %v12355_v18  ;;  %v4519_v51 = vmul.f32 %v12351_v42, %v12199_v57  ;;  %v4547_v37 = vmax.f32 %v4515_v62, 0.0  ;;  %v12393_v12 = vadd.f32 %v4543_v3, %v15608_v6  ;;  %v4520_v38 = vmul.f32 %v12351_v42, %v12206_v19  ;;  %v15624_v62 = vld [vmem:[#allocation15_spill] sm:$0xff] }
 0x9a0   : > { %4647 = vst.msk [vmem:[#allocation2 + $0x189] sm:$0xff] %vm144_vm0, %v12355_v18  ;;  %v4548_v53 = vmax.f32 %v4516_v52, 0.0  ;;  %v12398_v7 = vadd.f32 %v4544_v40, %v15610_v1  ;;  %v4521_v63 = vmul.f32 %v12351_v42, %v12213_v27  ;;  %v4549_v35 = vmax.f32 %v4517_v60, 0.0  ;;  %v15626_v60 = vld [vmem:[#allocation20_spill] sm:$0xff] }
 0x9a1   : > { %15603 = vst [vmem:[#allocation41_spill] sm:$0xff] %v12382_v0  ;;  %v12405_v57 = vadd.f32 %v4545_v11, %v15612_v39  ;;  %v4522_v19 = vmul.f32 %v12351_v42, %v12220_v2  ;;  %v4550_v17 = vmax.f32 %v4518_v59, 0.0  ;;  %v12412_v61 = vadd.f32 %v4546_v34, %v15614_v44 }
 0x9a2   : > { %15605 = vst [vmem:[#allocation36_spill] sm:$0xff] %v12385_v46  ;;  %v4523_v27 = vmul.f32 %v12351_v42, %v12227_v5  ;;  %v4551_v10 = vmax.f32 %v4519_v51, 0.0  ;;  %v12419_v47 = vadd.f32 %v4547_v37, %v15616_v22  ;;  %v4524_v2 = vmul.f32 %v12351_v42, %v12234_v49  ;;  %v15630_v37 = vld [vmem:[#allocation18_spill] sm:$0xff] }
 0x9a3   : > { %15607 = vst [vmem:[#allocation35_spill] sm:$0xff] %v12388_v56  ;;  %v4552_v29 = vmax.f32 %v4520_v38, 0.0  ;;  %v12426_v23 = vadd.f32 %v4548_v53, %v15618_v50  ;;  %v4525_v5 = vmul.f32 %v12351_v42, %v12241_v58  ;;  %v4553_v43 = vmax.f32 %v4521_v63, 0.0  ;;  %v15632_v53 = vld [vmem:[#allocation23_spill] sm:$0xff] }
 0x9a4   : > { %15609 = vst [vmem:[#allocation44_spill] sm:$0xff] %v12393_v12  ;;  %v12433_v13 = vadd.f32 %v4549_v35, %v15620_v41  ;;  %v4526_v49 = vmul.f32 %v12351_v42, %v12248_v26  ;;  %v4554_v28 = vmax.f32 %v4522_v19, 0.0  ;;  %v12440_v25 = vadd.f32 %v4550_v17, %v15622_v21  ;;  %v15634_v35 = vld [vmem:[#allocation16_spill] sm:$0xff]  ;;  %v15636_v17 = vld [vmem:[#allocation21_spill] sm:$0xff] }
 0x9a5   : > { %15611 = vst [vmem:[#allocation39_spill] sm:$0xff] %v12398_v7  ;;  %v4527_v58 = vmul.f32 %v12351_v42, %v12255_v55  ;;  %v4555_v36 = vmax.f32 %v4523_v27, 0.0  ;;  %v12447_v3 = vadd.f32 %v4551_v10, %v15624_v62  ;;  %v4528_v26 = vmul.f32 %v12351_v42, %v12262_v4  ;;  %v15638_v10 = vld [vmem:[#allocation26_spill] sm:$0xff]  ;;  %v15642_v41 = vld [vmem:[#allocation24_spill] sm:$0xff] }
 0x9a6   : > { %4618 = vst.msk [vmem:[#allocation2 + $0x31] sm:$0xff] %vm144_vm0, %v12388_v56  ;;  %v4556_v40 = vmax.f32 %v4524_v2, 0.0  ;;  %v12456_v59 = vadd.f32 %v4552_v29, %v15626_v60  ;;  %v4529_v11 = vmul.f32 %v12351_v42, %v12269_v20  ;;  %v4557_v34 = vmax.f32 %v4525_v5, 0.0  ;;  %v15640_v29 = vld [vmem:[#allocation19_spill] sm:$0xff] }
 0x9a7   : > { %15613 = vst [vmem:[#allocation37_spill] sm:$0xff] %v12405_v57  ;;  %v12467_v9 = vadd.f32 %v4553_v43, %v15628_v48  ;;  %v4530_v15 = vmul.f32 %v12351_v42, %v12276_v32  ;;  %v4558_v51 = vmax.f32 %v4526_v49, 0.0  ;;  %v12478_v6 = vadd.f32 %v4554_v28, %v15630_v37  ;;  %v4649_v56 = vld [vmem:[#allocation2 + $0x8] sm:$0xff] }
 0x9a8   : > { %4616 = vst.msk [vmem:[#allocation2 + $0x19] sm:$0xff] %vm144_vm0, %v12382_v0  ;;  %v4531_v20 = vmul.f32 %v12351_v42, %v12283_v54  ;;  %v4559_v38 = vmax.f32 %v4527_v58, 0.0  ;;  %v12487_v1 = vadd.f32 %v4555_v36, %v15632_v53  ;;  %v4532_v32 = vmul.f32 %v12351_v42, %v12290_v31  ;;  %v15644_v58 = vld [vmem:[#allocation29_spill] sm:$0xff]  ;;  %v4904_v0 = vld [vmem:[#allocation2 + $0x2] sm:$0xff] }
 0x9a9   : > { %15615 = vst [vmem:[#allocation47_spill] sm:$0xff] %v12412_v61  ;;  %v4560_v63 = vmax.f32 %v4528_v26, 0.0  ;;  %v12494_v39 = vadd.f32 %v4556_v40, %v15634_v35  ;;  %v4533_v54 = vmul.f32 %v12351_v42, %v12297_v14  ;;  %v4561_v19 = vmax.f32 %v4529_v11, 0.0  ;;  %v15646_v40 = vld [vmem:[#allocation22_spill] sm:$0xff]  ;;  %v15648_v11 = vld [vmem:[#allocation27_spill] sm:$0xff] }
 0x9aa   : > { %4617 = vst.msk [vmem:[#allocation2 + $0x21] sm:$0xff] %vm144_vm0, %v12385_v46  ;;  %v12501_v44 = vadd.f32 %v4557_v34, %v15636_v17  ;;  %v4534_v31 = vmul.f32 %v12351_v42, %v12304_v8  ;;  %v4562_v27 = vmax.f32 %v4530_v15, 0.0  ;;  %v12508_v22 = vadd.f32 %v4558_v51, %v15638_v10  ;;  %v15650_v15 = vld [vmem:[#allocation31_spill] sm:$0xff]  ;;  %v15652_v51 = vld [vmem:[#allocation25_spill] sm:$0xff] }
 0x9ab   : > { %15617 = vst [vmem:[#allocation42_spill] sm:$0xff] %v12419_v47  ;;  %v4535_v14 = vmul.f32 %v12351_v42, %v12311_v33  ;;  %v4563_v2 = vmax.f32 %v4531_v20, 0.0  ;;  %v12515_v50 = vadd.f32 %v4559_v38, %v15640_v29  ;;  %v4536_v8 = vmul.f32 %v12351_v42, %v12318_v24  ;;  %v15654_v38 = vld [vmem:[#allocation30_spill] sm:$0xff] }
 0x9ac   : > { %4619 = vst.msk [vmem:[#allocation2 + $0x39] sm:$0xff] %vm144_vm0, %v12393_v12  ;;  %v4564_v43 = vmax.f32 %v4532_v32, 0.0  ;;  %v12524_v49 = vadd.f32 %v4560_v63, %v15642_v41  ;;  %v4537_v28 = vmul.f32 %v12351_v42, %v12325_v45  ;;  %v4565_v21 = vmax.f32 %v4533_v54, 0.0  ;;  %v15656_v32 = vld [vmem:[#allocation33_spill] sm:$0xff]  ;;  %v15658_v54 = vld [vmem:[#allocation28_spill] sm:$0xff] }
 0x9ad   : > { %15619 = vst [vmem:[#allocation40_spill] sm:$0xff] %v12426_v23  ;;  %v12449_v52 = vld [vmem:[#allocation2 + $0x31] sm:$0xff]  ;;  %v12535_v36 = vadd.f32 %v4561_v19, %v15644_v58  ;;  %v4538_v62 = vmul.f32 %v12351_v42, %v12332_v16  ;;  %v4566_v26 = vmax.f32 %v4534_v31, 0.0  ;;  %v12546_v60 = vadd.f32 %v4562_v27, %v15646_v40 }
 0x9ae   : > { %4620 = vst.msk [vmem:[#allocation2 + $0x49] sm:$0xff] %vm144_vm0, %v12398_v7  ;;  %4784 = vrot.lane.b32.xlu0 %v12449_v52, %s9242_s11  ;;  %v4567_v45 = vmax.f32 %v4535_v14, 0.0  ;;  %v12553_v34 = vadd.f32 %v4563_v2, %v15648_v11  ;;  %v4568_v48 = vmax.f32 %v4536_v8, 0.0  ;;  %v12558_v16 = vadd.f32 %v4564_v43, %v15650_v15  ;;  %v15660_v31 = vld [vmem:[#allocation32_spill] sm:$0xff] }
 0x9af   : > { %15621 = vst [vmem:[#allocation50_spill] sm:$0xff] %v12433_v13  ;;  %v12462_v55 = vld [vmem:[#allocation2 + $0x19] sm:$0xff]  ;;  %v4569_v42 = vmax.f32 %v4537_v28, 0.0  ;;  %v12563_v37 = vadd.f32 %v4565_v21, %v15652_v51  ;;  %v4570_v20 = vmax.f32 %v4538_v62, 0.0  ;;  %v12568_v53 = vadd.f32 %v4566_v26, %v15654_v38  ;;  %v15662_v14 = vld [vmem:[#allocation64_spill] sm:$0xff] }
 0x9b0   : > { %4621 = vst.msk [vmem:[#allocation2 + $0x51] sm:$0xff] %vm144_vm0, %v12405_v57  ;;  %4780 = vrot.lane.b32.xlu1 %v12462_v55, %s9242_s11  ;;  %v12573_v63 = vadd.f32 %v4567_v45, %v15656_v32  ;;  %v12580_v19 = vadd.f32 %v4568_v48, %v15658_v54  ;;  %v12622_v28 = vld [vmem:[#allocation2 + $0x30] sm:$0xff]  ;;  %v12638_v26 = vld [vmem:[#allocation2 + $0x18] sm:$0xff] }
 0x9b1   : > { %15623 = vst [vmem:[#allocation45_spill] sm:$0xff] %v12440_v25  ;;  %v12471_v4 = vld [vmem:[#allocation2 + $0x21] sm:$0xff]  ;;  %v12589_v27 = vadd.f32 %v4569_v42, %v15660_v31  ;;  %v12598_v2 = vadd.f32 %v4570_v20, %v15662_v14 }
 0x9b2   : > { %4622 = vst.msk [vmem:[#allocation2 + $0x61] sm:$0xff] %vm144_vm0, %v12412_v61  ;;  %4782 = vrot.lane.b32.xlu2 %v12471_v4, %s9242_s11  ;;  %v12608_v29 = vld [vmem:[#allocation2 + $0x20] sm:$0xff] }
 0x9b3   : > { %15625 = vst [vmem:[#allocation43_spill] sm:$0xff] %v12447_v3  ;;  %v12530_v33 = vld [vmem:[#allocation2 + $0x39] sm:$0xff] }
 0x9b4   : > { %4623 = vst.msk [vmem:[#allocation2 + $0x69] sm:$0xff] %vm144_vm0, %v12419_v47  ;;  %v12652_v11 = vld [vmem:[#allocation2 + $0x38] sm:$0xff] }
 0x9b5   : > { %15627 = vst [vmem:[#allocation53_spill] sm:$0xff] %v12456_v59  ;;  %v12539_v24 = vld [vmem:[#allocation2 + $0x49] sm:$0xff] }
 0x9b6   : > { %4624 = vst.msk [vmem:[#allocation2 + $0x79] sm:$0xff] %vm144_vm0, %v12426_v23  ;;  %v12612_v8 = vld [vmem:[#allocation2 + $0x48] sm:$0xff] }
 0x9b7   : > { %15629 = vst [vmem:[#allocation48_spill] sm:$0xff] %v12467_v9  ;;  %v12519_v5 = vld [vmem:[#allocation2 + $0x51] sm:$0xff] }
 0x9b8   : > { %4625 = vst.msk [vmem:[#allocation2 + $0x81] sm:$0xff] %vm144_vm0, %v12433_v13  ;;  %4790 = vrot.lane.b32.xlu0 %v12519_v5, %s9242_s11  ;;  %4786 = vrot.lane.b32.xlu1 %v12530_v33, %s9242_s11  ;;  %v12644_v40 = vld [vmem:[#allocation2 + $0x50] sm:$0xff] }
 0x9b9   : > { %15631 = vst [vmem:[#allocation46_spill] sm:$0xff] %v12478_v6  ;;  %v12586_v17 = vld [vmem:[#allocation2 + $0x61] sm:$0xff] }
 0x9ba   : > { %4626 = vst.msk [vmem:[#allocation2 + $0x91] sm:$0xff] %vm144_vm0, %v12440_v25  ;;  %4788 = vrot.lane.b32.xlu2 %v12539_v24, %s9242_s11  ;;  %v12666_v51 = vld [vmem:[#allocation2 + $0x60] sm:$0xff] }
 0x9bb   : > { %15633 = vst [vmem:[#allocation56_spill] sm:$0xff] %v12487_v1  ;;  %v12593_v10 = vld [vmem:[#allocation2 + $0x69] sm:$0xff] }
 0x9bc   : > { %4627 = vst.msk [vmem:[#allocation2 + $0x99] sm:$0xff] %vm144_vm0, %v12447_v3  ;;  %v12616_v43 = vld [vmem:[#allocation2 + $0x68] sm:$0xff]  ;;  %v4777_v3 = vpop.permute.xlu2 %4776 }
 0x9bd   : > { %15635 = vst [vmem:[#allocation51_spill] sm:$0xff] %v12494_v39  ;;  %v12577_v35 = vld [vmem:[#allocation2 + $0x79] sm:$0xff] }
 0x9be   : > { %4628 = vst.msk [vmem:[#allocation2 + $0xa9] sm:$0xff] %vm144_vm0, %v12456_v59  ;;  %v12656_v48 = vld [vmem:[#allocation2 + $0x78] sm:$0xff] }
 0x9bf   : > { %15637 = vst [vmem:[#allocation49_spill] sm:$0xff] %v12501_v44  ;;  %v12626_v21 = vld [vmem:[#allocation2 + $0x81] sm:$0xff] }
 0x9c0   : > { %4629 = vst.msk [vmem:[#allocation2 + $0xb1] sm:$0xff] %vm144_vm0, %v12467_v9  ;;  %4796 = vrot.lane.b32.xlu0 %v12577_v35, %s9242_s11  ;;  %4792 = vrot.lane.b32.xlu1 %v12586_v17, %s9242_s11  ;;  %v12688_v31 = vld [vmem:[#allocation2 + $0x80] sm:$0xff] }
 0x9c1   : > { %15639 = vst [vmem:[#allocation59_spill] sm:$0xff] %v12508_v22  ;;  %v12630_v58 = vld [vmem:[#allocation2 + $0x90] sm:$0xff]  ;;  %v4648_v9 = vld [vmem:[#allocation2] sm:$0xff] }
 0x9c2   : > { %4630 = vst.msk [vmem:[#allocation2 + $0xc1] sm:$0xff] %vm144_vm0, %v12478_v6  ;;  %4794 = vrot.lane.b32.xlu2 %v12593_v10, %s9242_s11  ;;  %v12632_v62 = vld [vmem:[#allocation2 + $0x91] sm:$0xff] }
 0x9c3   : > { %15641 = vst [vmem:[#allocation54_spill] sm:$0xff] %v12515_v50  ;;  %v12618_v41 = vld [vmem:[#allocation2 + $0x99] sm:$0xff] }
 0x9c4   : > { %4631 = vst.msk [vmem:[#allocation2 + $0xc9] sm:$0xff] %vm144_vm0, %v12487_v1  ;;  %v12674_v38 = vld [vmem:[#allocation2 + $0x98] sm:$0xff] }
 0x9c5   : > { %15643 = vst [vmem:[#allocation52_spill] sm:$0xff] %v12524_v49  ;;  %v12670_v20 = vld [vmem:[#allocation2 + $0xa9] sm:$0xff] }
 0x9c6   : > { %4632 = vst.msk [vmem:[#allocation2 + $0xd9] sm:$0xff] %vm144_vm0, %v12494_v39 }
 0x9c7   : > { %15645 = vst [vmem:[#allocation62_spill] sm:$0xff] %v12535_v36  ;;  %v12648_v45 = vld [vmem:[#allocation2 + $0xb0] sm:$0xff] }
 0x9c8   : > { %4633 = vst.msk [vmem:[#allocation2 + $0xe1] sm:$0xff] %vm144_vm0, %v12501_v44  ;;  %4802 = vrot.lane.b32.xlu0 %v12618_v41, %s9242_s11  ;;  %4798 = vrot.lane.b32.xlu1 %v12626_v21, %s9242_s11  ;;  %v12676_v32 = vld [vmem:[#allocation2 + $0xb1] sm:$0xff] }
 0x9c9   : > { %15647 = vst [vmem:[#allocation57_spill] sm:$0xff] %v12546_v60  ;;  %v12662_v42 = vld [vmem:[#allocation2 + $0xc1] sm:$0xff] }
 0x9ca   : > { %4634 = vst.msk [vmem:[#allocation2 + $0xf1] sm:$0xff] %vm144_vm0, %v12508_v22  ;;  %4800 = vrot.lane.b32.xlu2 %v12632_v62, %s9242_s11  ;;  %v12692_v14 = vld [vmem:[#allocation2 + $0xc0] sm:$0xff]  ;;  %v4779_v46 = vpop.permute.xlu0 %4778 }
 0x9cb   : > { %15649 = vst [vmem:[#allocation55_spill] sm:$0xff] %v12553_v34 }
 0x9cc   : > { %4635 = vst.msk [vmem:[#allocation2 + $0xf9] sm:$0xff] %vm144_vm0, %v12515_v50 }
 0x9cd   : > { %15651 = vst [vmem:[#allocation60_spill] sm:$0xff] %v12558_v16  ;;  %v12660_v15 = vld [vmem:[#allocation2 + $0xd8] sm:$0xff] }
 0x9ce   : > { %4636 = vst.msk [vmem:[#allocation2 + $0x109] sm:$0xff] %vm144_vm0, %v12524_v49 }
 0x9cf   : > { %15653 = vst [vmem:[#allocation58_spill] sm:$0xff] %v12563_v37 }
 0x9d0   : > { %4637 = vst.msk [vmem:[#allocation2 + $0x111] sm:$0xff] %vm144_vm0, %v12535_v36  ;;  %4808 = vrot.lane.b32.xlu0 %v12662_v42, %s9242_s11  ;;  %4804 = vrot.lane.b32.xlu1 %v12670_v20, %s9242_s11 }
 0x9d1   : > { %15655 = vst [vmem:[#allocation63_spill] sm:$0xff] %v12568_v53  ;;  %v12736_v36 = vld [vmem:[#allocation2 + $0xf0] sm:$0xff] }
 0x9d2   : > { %4638 = vst.msk [vmem:[#allocation2 + $0x121] sm:$0xff] %vm144_vm0, %v12546_v60  ;;  %4806 = vrot.lane.b32.xlu2 %v12676_v32, %s9242_s11  ;;  %v12758_v1 = vld [vmem:[#allocation2 + $0xf1] sm:$0xff] }
 0x9d3   : > { %15657 = vst [vmem:[#allocation61_spill] sm:$0xff] %v12573_v63  ;;  %v12682_v54 = vld [vmem:[#allocation2 + $0xf8] sm:$0xff] }
 0x9d4   : > { %4639 = vst.msk [vmem:[#allocation2 + $0x129] sm:$0xff] %vm144_vm0, %v12553_v34  ;;  %v12762_v6 = vld [vmem:[#allocation2 + $0xf9] sm:$0xff] }
 0x9d5   : > { %15659 = vst [vmem:[#allocation66_spill] sm:$0xff] %v12580_v19  ;;  %v12726_v34 = vld [vmem:[#allocation2 + $0x108] sm:$0xff] }
 0x9d6   : > { %4640 = vst.msk [vmem:[#allocation2 + $0x139] sm:$0xff] %vm144_vm0, %v12558_v16  ;;  %v12720_v16 = vld [vmem:[#allocation2 + $0xd9] sm:$0xff]  ;;  %v12750_v44 = vld [vmem:[#allocation2 + $0x109] sm:$0xff] }
 0x9d7   : > { %15661 = vst [vmem:[#allocation65_spill] sm:$0xff] %v12589_v27  ;;  %v12744_v50 = vld [vmem:[#allocation2 + $0x110] sm:$0xff] }
 0x9d8   : > { %4641 = vst.msk [vmem:[#allocation2 + $0x141] sm:$0xff] %vm144_vm0, %v12563_v37  ;;  %v12718_v37 = vld [vmem:[#allocation2 + $0xc8] sm:$0xff]  ;;  %v12786_v23 = vld [vmem:[#allocation2 + $0x111] sm:$0xff] }
 0x9d9   : > { %15663 = vst [vmem:[#allocation4_spill] sm:$0xff] %v12598_v2  ;;  %v12696_v18 = vld [vmem:[#allocation2 + $0x120] sm:$0xff] }
 0x9da   : > { %4642 = vst.msk [vmem:[#allocation2 + $0x151] sm:$0xff] %vm144_vm0, %v12568_v53  ;;  %v12714_v53 = vld [vmem:[#allocation2 + $0xc9] sm:$0xff]  ;;  %4812 = vrot.lane.b32.xlu2 %v12720_v16, %s9242_s11  ;;  %v12788_v47 = vld [vmem:[#allocation2 + $0x121] sm:$0xff] }
 0x9db   : > { %4643 = vst.msk [vmem:[#allocation2 + $0x159] sm:$0xff] %vm144_vm0, %v12573_v63  ;;  %4810 = vrot.lane.b32.xlu1 %v12714_v53, %s9242_s11  ;;  %v12740_v49 = vld [vmem:[#allocation2 + $0x128] sm:$0xff] }
 0x9dc   : > { %4644 = vst.msk [vmem:[#allocation2 + $0x169] sm:$0xff] %vm144_vm0, %v12580_v19  ;;  %v12706_v19 = vld [vmem:[#allocation2 + $0xe1] sm:$0xff]  ;;  %v12782_v13 = vld [vmem:[#allocation2 + $0x129] sm:$0xff] }
 0x9dd   : > { %4645 = vst.msk [vmem:[#allocation2 + $0x171] sm:$0xff] %vm144_vm0, %v12589_v27  ;;  %v12704_v27 = vld [vmem:[#allocation2 + $0xe0] sm:$0xff]  ;;  %4814 = vrot.lane.b32.xlu0 %v12706_v19, %s9242_s11  ;;  %v12754_v39 = vld [vmem:[#allocation2 + $0x138] sm:$0xff] }
 0x9de   : > { %4646 = vst.msk [vmem:[#allocation2 + $0x181] sm:$0xff] %vm144_vm0, %v12598_v2  ;;  %v12700_v2 = vld [vmem:[#allocation2 + $0xa8] sm:$0xff] }
 0x9df   : > { %4683 = vst.msk [vmem:[#allocation3 + $0x18] sm:$0xff] %vm144_vm0, %v12608_v29  ;;  %v12710_v63 = vld [vmem:[#allocation2 + $0x140] sm:$0xff] }
 0x9e0   : > { %4686 = vst.msk [vmem:[#allocation3 + $0x30] sm:$0xff] %vm144_vm0, %v12612_v8  ;;  %v12800_v61 = vld [vmem:[#allocation2 + $0x141] sm:$0xff] }
 0x9e1   : > { %4689 = vst.msk [vmem:[#allocation3 + $0x48] sm:$0xff] %vm144_vm0, %v12616_v43  ;;  %v12748_v22 = vld [vmem:[#allocation2 + $0x150] sm:$0xff] }
 0x9e2   : > { %4684 = vst.msk [vmem:[#allocation3 + $0x20] sm:$0xff] %vm144_vm0, %v12622_v28  ;;  %4818 = vrot.lane.b32.xlu2 %v12762_v6, %s9242_s11  ;;  %v12775_v25 = vld [vmem:[#allocation2 + $0x158] sm:$0xff] }
 0x9e3   : > { %4692 = vst.msk [vmem:[#allocation3 + $0x60] sm:$0xff] %vm144_vm0, %v12630_v58  ;;  %v12732_v60 = vld [vmem:[#allocation2 + $0x168] sm:$0xff]  ;;  %4816 = vrot.lane.b32.xlu1 %v12758_v1, %s9242_s11  ;;  %v12810_v7 = vld [vmem:[#allocation2 + $0x159] sm:$0xff] }
 0x9e4   : > { %4682 = vst.msk [vmem:[#allocation3 + $0x10] sm:$0xff] %vm144_vm0, %v12638_v26  ;;  %v12772_v59 = vld [vmem:[#allocation2 + $0x170] sm:$0xff] }
 0x9e5   : > { %4687 = vst.msk [vmem:[#allocation3 + $0x38] sm:$0xff] %vm144_vm0, %v12644_v40  ;;  %4820 = vrot.lane.b32.xlu0 %v12750_v44, %s9242_s11  ;;  %v12806_v57 = vld [vmem:[#allocation2 + $0x171] sm:$0xff]  ;;  %v12812_v12 = vld [vmem:[#allocation2 + $0x169] sm:$0xff] }
 0x9e6   : > { %4695 = vst.msk [vmem:[#allocation3 + $0x78] sm:$0xff] %vm144_vm0, %v12648_v45 }
 0x9e7   : > { %4685 = vst.msk [vmem:[#allocation3 + $0x28] sm:$0xff] %vm144_vm0, %v12652_v11 }
 0x9e8   : > { %4690 = vst.msk [vmem:[#allocation3 + $0x50] sm:$0xff] %vm144_vm0, %v12656_v48 }
 0x9e9   : > { %4698 = vst.msk [vmem:[#allocation3 + $0x90] sm:$0xff] %vm144_vm0, %v12660_v15 }
 0x9ea   : > { %4688 = vst.msk [vmem:[#allocation3 + $0x40] sm:$0xff] %vm144_vm0, %v12666_v51  ;;  %4824 = vrot.lane.b32.xlu2 %v12788_v47, %s9242_s11 }
 0x9eb   : > { %4693 = vst.msk [vmem:[#allocation3 + $0x68] sm:$0xff] %vm144_vm0, %v12674_v38  ;;  %4822 = vrot.lane.b32.xlu1 %v12786_v23, %s9242_s11 }
 0x9ec   : > { %4701 = vst.msk [vmem:[#allocation3 + $0xa8] sm:$0xff] %vm144_vm0, %v12682_v54 }
 0x9ed   : > { %4691 = vst.msk [vmem:[#allocation3 + $0x58] sm:$0xff] %vm144_vm0, %v12688_v31  ;;  %4826 = vrot.lane.b32.xlu0 %v12782_v13, %s9242_s11 }
 0x9ee   : > { %4696 = vst.msk [vmem:[#allocation3 + $0x80] sm:$0xff] %vm144_vm0, %v12692_v14 }
 0x9ef   : > { %4704 = vst.msk [vmem:[#allocation3 + $0xc0] sm:$0xff] %vm144_vm0, %v12696_v18 }
 0x9f0   : > { %4694 = vst.msk [vmem:[#allocation3 + $0x70] sm:$0xff] %vm144_vm0, %v12700_v2 }
 0x9f1   : > { %4699 = vst.msk [vmem:[#allocation3 + $0x98] sm:$0xff] %vm144_vm0, %v12704_v27 }
 0x9f2   : > { %4707 = vst.msk [vmem:[#allocation3 + $0xd8] sm:$0xff] %vm144_vm0, %v12710_v63  ;;  %4830 = vrot.lane.b32.xlu2 %v12800_v61, %s9242_s11 }
 0x9f3   : > { %4697 = vst.msk [vmem:[#allocation3 + $0x88] sm:$0xff] %vm144_vm0, %v12718_v37 }
 0x9f4   : > { %4702 = vst.msk [vmem:[#allocation3 + $0xb0] sm:$0xff] %vm144_vm0, %v12726_v34 }
 0x9f5   : > { %4710 = vst.msk [vmem:[#allocation3 + $0xf0] sm:$0xff] %vm144_vm0, %v12732_v60 }
 0x9f6   : > { %4700 = vst.msk [vmem:[#allocation3 + $0xa0] sm:$0xff] %vm144_vm0, %v12736_v36 }
 0x9f7   : > { %4705 = vst.msk [vmem:[#allocation3 + $0xc8] sm:$0xff] %vm144_vm0, %v12740_v49 }
 0x9f8   : > { %4703 = vst.msk [vmem:[#allocation3 + $0xb8] sm:$0xff] %vm144_vm0, %v12744_v50 }
 0x9f9   : > { %4708 = vst.msk [vmem:[#allocation3 + $0xe0] sm:$0xff] %vm144_vm0, %v12748_v22 }
 0x9fa   : > { %4706 = vst.msk [vmem:[#allocation3 + $0xd0] sm:$0xff] %vm144_vm0, %v12754_v39  ;;  %4836 = vrot.lane.b32.xlu2 %v12812_v12, %s9242_s11 }
 0x9fb   : > { %4680 = vst.msk [vmem:[#allocation3] sm:$0xff] %vm144_vm0, %v4648_v9  ;;  %v12798_v9 = vld [vmem:[#allocation2 + $0x139] sm:$0xff] }
 0x9fc   : > { %4872 = vst.msk [vmem:[#allocation3] sm:$0xff] %vm500_vm2, %v4777_v3  ;;  %v12794_v3 = vld [vmem:[#allocation2 + $0x151] sm:$0xff]  ;;  %4828 = vrot.lane.b32.xlu1 %v12798_v9, %s9242_s11 }
 0x9fd   : > { %4711 = vst.msk [vmem:[#allocation3 + $0xf8] sm:$0xff] %vm144_vm0, %v12772_v59  ;;  %4832 = vrot.lane.b32.xlu0 %v12794_v3, %s9242_s11 }
 0x9fe   : > { %4709 = vst.msk [vmem:[#allocation3 + $0xe8] sm:$0xff] %vm144_vm0, %v12775_v25 }
 0x9ff   : > { %15664 = vst [vmem:[#allocation6_spill] sm:$0xff] %v12794_v3  ;;  %v12820_v3 = vld [vmem:[#allocation2 + $0x1a] sm:$0xff] }
 0xa00   : > { %15665 = vst [vmem:[#allocation8_spill] sm:$0xff] %v12806_v57 }
 0xa01   : > { %15666 = vst [vmem:[#allocation11_spill] sm:$0xff] %v12810_v7 }
 0xa02   : > { %15667 = vst [vmem:[#allocation5_spill] sm:$0xff] %v12812_v12  ;;  %4970 = vrot.lane.b32.xlu2 %v4905_v30, %s9243_s16  ;;  %v12843_v30 = vld [vmem:[#allocation2 + $0x4a] sm:$0xff]  ;;  %v4920_v12 = vld [vmem:[#allocation2 + $0xc2] sm:$0xff] }
 0xa03   : > { %4681 = vst.msk [vmem:[#allocation3 + $0x8] sm:$0xff] %vm144_vm0, %v4649_v56  ;;  %v12830_v56 = vld [vmem:[#allocation2 + $0x22] sm:$0xff] }
 0xa04   : > { %4834 = vrot.lane.b32.xlu1 %v12810_v7, %s9242_s11  ;;  %4873 = vst.msk [vmem:[#allocation3 + $0x8] sm:$0xff] %vm500_vm2, %v4779_v46  ;;  %v12832_v7 = vld [vmem:[#allocation2 + $0x32] sm:$0xff] }
 0xa05   : > { %4838 = vrot.lane.b32.xlu0 %v12806_v57, %s9242_s11  ;;  %15668 = vst [vmem:[#allocation9_spill] sm:$0xff] %v12820_v3  ;;  %v12826_v57 = vld [vmem:[#allocation2 + $0x3a] sm:$0xff] }
 0xa06   : > { %15669 = vst [vmem:[#allocation14_spill] sm:$0xff] %v12826_v57 }
 0xa07   : > { %15670 = vst [vmem:[#allocation7_spill] sm:$0xff] %v12830_v56 }
 0xa08   : > { %15671 = vst [vmem:[#allocation12_spill] sm:$0xff] %v12832_v7 }
 0xa09   : > { %15673 = vst [vmem:[#allocation10_spill] sm:$0xff] %v12843_v30 }
 0xa0a   : > { %4976 = vrot.lane.b32.xlu2 %v12832_v7, %s9243_s16  ;;  %v4919_v7 = vld [vmem:[#allocation2 + $0xb2] sm:$0xff] }
 0xa0c   : > { %4968 = vrot.lane.b32.xlu1 %v4904_v0, %s9243_s16  ;;  %v4783_v46 = vpop.permute.xlu2 %4782  ;;  %v12839_v0 = vld [vmem:[#allocation2 + $0x62] sm:$0xff] }
 0xa0d   : > { %4972 = vrot.lane.b32.xlu0 %v12820_v3, %s9243_s16  ;;  %4875 = vst.msk [vmem:[#allocation3 + $0x18] sm:$0xff] %vm500_vm2, %v4783_v46  ;;  %v12852_v3 = vld [vmem:[#allocation2 + $0x82] sm:$0xff]  ;;  %v12856_v46 = vld [vmem:[#allocation2 + $0x6a] sm:$0xff] }
 0xa0e   : > { %15672 = vst [vmem:[#allocation17_spill] sm:$0xff] %v12839_v0 }
 0xa0f   : > { %15675 = vst [vmem:[#allocation20_spill] sm:$0xff] %v12852_v3 }
 0xa10   : > { %15676 = vst [vmem:[#allocation13_spill] sm:$0xff] %v12856_v46 }
 0xa14   : > { %4974 = vrot.lane.b32.xlu1 %v12830_v56, %s9243_s16  ;;  %v4789_v56 = vpop.permute.xlu2 %4788 }
 0xa15   : > { %4978 = vrot.lane.b32.xlu0 %v12826_v57, %s9243_s16  ;;  %v12845_v57 = vld [vmem:[#allocation2 + $0x52] sm:$0xff]  ;;  %4878 = vst.msk [vmem:[#allocation3 + $0x30] sm:$0xff] %vm500_vm2, %v4789_v56 }
 0xa16   : > { %15674 = vst [vmem:[#allocation15_spill] sm:$0xff] %v12845_v57  ;;  %4982 = vrot.lane.b32.xlu2 %v12845_v57, %s9243_s16  ;;  %v12865_v57 = vld [vmem:[#allocation2 + $0xaa] sm:$0xff]  ;;  %v12869_v56 = vld [vmem:[#allocation2 + $0x92] sm:$0xff] }
 0xa17   : > { %15678 = vst [vmem:[#allocation23_spill] sm:$0xff] %v12865_v57 }
 0xa18   : > { %15679 = vst [vmem:[#allocation16_spill] sm:$0xff] %v12869_v56 }
 0xa1c   : > { %4980 = vrot.lane.b32.xlu1 %v12843_v30, %s9243_s16  ;;  %v4795_v30 = vpop.permute.xlu2 %4794 }
 0xa1d   : > { %4984 = vrot.lane.b32.xlu0 %v12839_v0, %s9243_s16  ;;  %v12858_v0 = vld [vmem:[#allocation2 + $0x7a] sm:$0xff]  ;;  %4881 = vst.msk [vmem:[#allocation3 + $0x48] sm:$0xff] %vm500_vm2, %v4795_v30 }
 0xa1e   : > { %15677 = vst [vmem:[#allocation18_spill] sm:$0xff] %v12858_v0  ;;  %4988 = vrot.lane.b32.xlu2 %v12858_v0, %s9243_s16 }
 0xa22   : > { %v4781_v0 = vpop.permute.xlu1 %4780 }
 0xa23   : > { %4874 = vst.msk [vmem:[#allocation3 + $0x10] sm:$0xff] %vm500_vm2, %v4781_v0  ;;  %v4924_v0 = vld [vmem:[#allocation2 + $0xf2] sm:$0xff] }
 0xa24   : > { %4986 = vrot.lane.b32.xlu1 %v12856_v46, %s9243_s16  ;;  %v4785_v46 = vpop.permute.xlu0 %4784  ;;  %v4801_v30 = vpop.permute.xlu2 %4800 }
 0xa25   : > { %4990 = vrot.lane.b32.xlu0 %v12852_v3, %s9243_s16  ;;  %v12871_v3 = vld [vmem:[#allocation2 + $0x9a] sm:$0xff]  ;;  %4876 = vst.msk [vmem:[#allocation3 + $0x20] sm:$0xff] %vm500_vm2, %v4785_v46 }
 0xa26   : > { %15680 = vst [vmem:[#allocation21_spill] sm:$0xff] %v12871_v3  ;;  %4994 = vrot.lane.b32.xlu2 %v12871_v3, %s9243_s16 }
 0xa27   : > { %4884 = vst.msk [vmem:[#allocation3 + $0x60] sm:$0xff] %vm500_vm2, %v4801_v30  ;;  %v4922_v30 = vld [vmem:[#allocation2 + $0xda] sm:$0xff] }
 0xa2a   : > { %v4787_v3 = vpop.permute.xlu1 %4786 }
 0xa2b   : > { %4877 = vst.msk [vmem:[#allocation3 + $0x28] sm:$0xff] %vm500_vm2, %v4787_v3  ;;  %v4927_v3 = vld [vmem:[#allocation2 + $0x112] sm:$0xff] }
 0xa2c   : > { %4992 = vrot.lane.b32.xlu1 %v12869_v56, %s9243_s16  ;;  %v4791_v56 = vpop.permute.xlu0 %4790  ;;  %v4807_v46 = vpop.permute.xlu2 %4806 }
 0xa2d   : > { %4996 = vrot.lane.b32.xlu0 %v12865_v57, %s9243_s16  ;;  %v4921_v57 = vld [vmem:[#allocation2 + $0xca] sm:$0xff]  ;;  %4879 = vst.msk [vmem:[#allocation3 + $0x38] sm:$0xff] %vm500_vm2, %v4791_v56 }
 0xa2e   : > { %5000 = vrot.lane.b32.xlu2 %v4920_v12, %s9243_s16  ;;  %4887 = vst.msk [vmem:[#allocation3 + $0x78] sm:$0xff] %vm500_vm2, %v4807_v46  ;;  %v4925_v46 = vld [vmem:[#allocation2 + $0xfa] sm:$0xff] }
 0xa32   : > { %v4793_v12 = vpop.permute.xlu1 %4792 }
 0xa33   : > { %4880 = vst.msk [vmem:[#allocation3 + $0x40] sm:$0xff] %vm500_vm2, %v4793_v12  ;;  %v4930_v12 = vld [vmem:[#allocation2 + $0x13a] sm:$0xff] }
 0xa34   : > { %4998 = vrot.lane.b32.xlu1 %v4919_v7, %s9243_s16  ;;  %v4797_v7 = vpop.permute.xlu0 %4796  ;;  %v4813_v56 = vpop.permute.xlu2 %4812 }
 0xa35   : > { %5002 = vrot.lane.b32.xlu0 %v4921_v57, %s9243_s16  ;;  %v4923_v57 = vld [vmem:[#allocation2 + $0xe2] sm:$0xff]  ;;  %4882 = vst.msk [vmem:[#allocation3 + $0x50] sm:$0xff] %vm500_vm2, %v4797_v7 }
 0xa36   : > { %5006 = vrot.lane.b32.xlu2 %v4923_v57, %s9243_s16  ;;  %4890 = vst.msk [vmem:[#allocation3 + $0x90] sm:$0xff] %vm500_vm2, %v4813_v56  ;;  %v4928_v56 = vld [vmem:[#allocation2 + $0x122] sm:$0xff] }
 0xa3a   : > { %v4799_v57 = vpop.permute.xlu1 %4798 }
 0xa3b   : > { %4883 = vst.msk [vmem:[#allocation3 + $0x58] sm:$0xff] %vm500_vm2, %v4799_v57  ;;  %v4933_v57 = vld [vmem:[#allocation2 + $0x15a] sm:$0xff] }
 0xa3c   : > { %5004 = vrot.lane.b32.xlu1 %v4922_v30, %s9243_s16  ;;  %v4803_v30 = vpop.permute.xlu0 %4802  ;;  %v4819_v7 = vpop.permute.xlu2 %4818 }
 0xa3d   : > { %5008 = vrot.lane.b32.xlu0 %v4924_v0, %s9243_s16  ;;  %v4926_v0 = vld [vmem:[#allocation2 + $0x10a] sm:$0xff]  ;;  %4885 = vst.msk [vmem:[#allocation3 + $0x68] sm:$0xff] %vm500_vm2, %v4803_v30 }
 0xa3e   : > { %5012 = vrot.lane.b32.xlu2 %v4926_v0, %s9243_s16  ;;  %4893 = vst.msk [vmem:[#allocation3 + $0xa8] sm:$0xff] %vm500_vm2, %v4819_v7  ;;  %v4931_v7 = vld [vmem:[#allocation2 + $0x142] sm:$0xff] }
 0xa42   : > { %v4805_v0 = vpop.permute.xlu1 %4804 }
 0xa43   : > { %4886 = vst.msk [vmem:[#allocation3 + $0x70] sm:$0xff] %vm500_vm2, %v4805_v0  ;;  %v4934_v0 = vld [vmem:[#allocation2 + $0x16a] sm:$0xff] }
 0xa44   : > { %5010 = vrot.lane.b32.xlu1 %v4925_v46, %s9243_s16  ;;  %v4809_v46 = vpop.permute.xlu0 %4808  ;;  %v4825_v30 = vpop.permute.xlu2 %4824 }
 0xa45   : > { %5014 = vrot.lane.b32.xlu0 %v4927_v3, %s9243_s16  ;;  %v4929_v3 = vld [vmem:[#allocation2 + $0x12a] sm:$0xff]  ;;  %4888 = vst.msk [vmem:[#allocation3 + $0x80] sm:$0xff] %vm500_vm2, %v4809_v46 }
 0xa46   : > { %5018 = vrot.lane.b32.xlu2 %v4929_v3, %s9243_s16  ;;  %4896 = vst.msk [vmem:[#allocation3 + $0xc0] sm:$0xff] %vm500_vm2, %v4825_v30  ;;  %v4935_v30 = vld [vmem:[#allocation2 + $0x172] sm:$0xff] }
 0xa4c   : > { %5016 = vrot.lane.b32.xlu1 %v4928_v56, %s9243_s16  ;;  %v4831_v46 = vpop.permute.xlu2 %4830 }
 0xa4d   : > { %5020 = vrot.lane.b32.xlu0 %v4930_v12, %s9243_s16  ;;  %v4932_v12 = vld [vmem:[#allocation2 + $0x152] sm:$0xff]  ;;  %v4811_v3 = vpop.permute.xlu1 %4810  ;;  %4899 = vst.msk [vmem:[#allocation3 + $0xd8] sm:$0xff] %vm500_vm2, %v4831_v46 }
 0xa4e   : > { %5024 = vrot.lane.b32.xlu2 %v4932_v12, %s9243_s16  ;;  %4889 = vst.msk [vmem:[#allocation3 + $0x88] sm:$0xff] %vm500_vm2, %v4811_v3 }
 0xa4f   : > { %v4815_v56 = vpop.permute.xlu0 %4814 }
 0xa50   : > { %4891 = vst.msk [vmem:[#allocation3 + $0x98] sm:$0xff] %vm500_vm2, %v4815_v56 }
 0xa54   : > { %5022 = vrot.lane.b32.xlu1 %v4931_v7, %s9243_s16  ;;  %v4837_v12 = vpop.permute.xlu2 %4836 }
 0xa55   : > { %5026 = vrot.lane.b32.xlu0 %v4933_v57, %s9243_s16  ;;  %v4817_v7 = vpop.permute.xlu1 %4816  ;;  %4902 = vst.msk [vmem:[#allocation3 + $0xf0] sm:$0xff] %vm500_vm2, %v4837_v12 }
 0xa56   : > { %5030 = vrot.lane.b32.xlu2 %v4935_v30, %s9243_s16  ;;  %4892 = vst.msk [vmem:[#allocation3 + $0xa0] sm:$0xff] %vm500_vm2, %v4817_v7 }
 0xa57   : > { %v4821_v57 = vpop.permute.xlu0 %4820 }
 0xa58   : > { %4894 = vst.msk [vmem:[#allocation3 + $0xb0] sm:$0xff] %vm500_vm2, %v4821_v57 }
 0xa5c   : > { %5028 = vrot.lane.b32.xlu1 %v4934_v0, %s9243_s16  ;;  %v4971_v3 = vpop.permute.xlu2 %4970 }
 0xa5d   : > { %5160 = vrot.lane.b32.xlu0 %v12638_v26, %s9244_s17  ;;  %v4823_v56 = vpop.permute.xlu1 %4822  ;;  %5065 = vst.msk [vmem:[#allocation3 + $0x8] sm:$0xff] %vm693_vm3, %v4971_v3 }
 0xa5e   : > { %5164 = vrot.lane.b32.xlu2 %v12622_v28, %s9244_s17  ;;  %4895 = vst.msk [vmem:[#allocation3 + $0xb8] sm:$0xff] %vm500_vm2, %v4823_v56 }
 0xa5f   : > { %v4827_v26 = vpop.permute.xlu0 %4826 }
 0xa60   : > { %4897 = vst.msk [vmem:[#allocation3 + $0xc8] sm:$0xff] %vm500_vm2, %v4827_v26 }
 0xa64   : > { %5162 = vrot.lane.b32.xlu1 %v12608_v29, %s9244_s17  ;;  %v4977_v0 = vpop.permute.xlu2 %4976 }
 0xa65   : > { %5166 = vrot.lane.b32.xlu0 %v12652_v11, %s9244_s17  ;;  %5068 = vst.msk [vmem:[#allocation3 + $0x20] sm:$0xff] %vm693_vm3, %v4977_v0 }
 0xa66   : > { %5170 = vrot.lane.b32.xlu2 %v12644_v40, %s9244_s17 }
 0xa6c   : > { %5168 = vrot.lane.b32.xlu1 %v12612_v8, %s9244_s17 }
 0xa6d   : > { %5172 = vrot.lane.b32.xlu0 %v12666_v51, %s9244_s17 }
 0xa6e   : > { %v4829_v46 = vpop.permute.xlu1 %4828  ;;  %5176 = vrot.lane.b32.xlu2 %v12656_v48, %s9244_s17 }
 0xa6f   : > { %v4833_v29 = vpop.permute.xlu0 %4832  ;;  %4898 = vst.msk [vmem:[#allocation3 + $0xd0] sm:$0xff] %vm500_vm2, %v4829_v46 }
 0xa70   : > { %4900 = vst.msk [vmem:[#allocation3 + $0xe0] sm:$0xff] %vm500_vm2, %v4833_v29  ;;  %v4983_v7 = vpop.permute.xlu2 %4982 }
 0xa71   : > { %5071 = vst.msk [vmem:[#allocation3 + $0x38] sm:$0xff] %vm693_vm3, %v4983_v7 }
 0xa74   : > { %5174 = vrot.lane.b32.xlu1 %v12616_v43, %s9244_s17 }
 0xa75   : > { %5178 = vrot.lane.b32.xlu0 %v12688_v31, %s9244_s17 }
 0xa76   : > { %v4835_v57 = vpop.permute.xlu1 %4834  ;;  %5182 = vrot.lane.b32.xlu2 %v12674_v38, %s9244_s17 }
 0xa77   : > { %v4839_v30 = vpop.permute.xlu0 %4838  ;;  %4901 = vst.msk [vmem:[#allocation3 + $0xe8] sm:$0xff] %vm500_vm2, %v4835_v57  ;;  %v5127_v57 = vld [vmem:[#allocation2 + $0x188] sm:$0xff] }
 0xa78   : > { %4903 = vst.msk [vmem:[#allocation3 + $0xf8] sm:$0xff] %vm500_vm2, %v4839_v30  ;;  %v4989_v56 = vpop.permute.xlu2 %4988  ;;  %v5126_v30 = vld [vmem:[#allocation2 + $0x180] sm:$0xff] }
 0xa79   : > { %5074 = vst.msk [vmem:[#allocation3 + $0x50] sm:$0xff] %vm693_vm3, %v4989_v56 }
 0xa7c   : > { %5180 = vrot.lane.b32.xlu1 %v12630_v58, %s9244_s17 }
 0xa7d   : > { %5184 = vrot.lane.b32.xlu0 %v12700_v2, %s9244_s17 }
 0xa7e   : > { %v4969_v26 = vpop.permute.xlu1 %4968  ;;  %5188 = vrot.lane.b32.xlu2 %v12692_v14, %s9244_s17 }
 0xa7f   : > { %v4973_v12 = vpop.permute.xlu0 %4972  ;;  %5064 = vst.msk [vmem:[#allocation3] sm:$0xff] %vm693_vm3, %v4969_v26  ;;  %v15681_v26 = vld [vmem:[#allocation5_spill] sm:$0xff] }
 0xa80   : > { %5066 = vst.msk [vmem:[#allocation3 + $0x10] sm:$0xff] %vm693_vm3, %v4973_v12  ;;  %v4995_v29 = vpop.permute.xlu2 %4994 }
 0xa81   : > { %5077 = vst.msk [vmem:[#allocation3 + $0x68] sm:$0xff] %vm693_vm3, %v4995_v29  ;;  %v5318_v29 = vld [vmem:[#allocation2 + $0x181] sm:$0xff] }
 0xa84   : > { %5186 = vrot.lane.b32.xlu1 %v12648_v45, %s9244_s17 }
 0xa85   : > { %5190 = vrot.lane.b32.xlu0 %v12718_v37, %s9244_s17 }
 0xa86   : > { %v4975_v3 = vpop.permute.xlu1 %4974  ;;  %5194 = vrot.lane.b32.xlu2 %v12704_v27, %s9244_s17 }
 0xa87   : > { %v4979_v58 = vpop.permute.xlu0 %4978  ;;  %5067 = vst.msk [vmem:[#allocation3 + $0x18] sm:$0xff] %vm693_vm3, %v4975_v3  ;;  %v5319_v3 = vld [vmem:[#allocation2 + $0x189] sm:$0xff] }
 0xa88   : > { %5069 = vst.msk [vmem:[#allocation3 + $0x28] sm:$0xff] %vm693_vm3, %v4979_v58  ;;  %v5001_v0 = vpop.permute.xlu2 %5000 }
 0xa89   : > { %5080 = vst.msk [vmem:[#allocation3 + $0x80] sm:$0xff] %vm693_vm3, %v5001_v0 }
 0xa8c   : > { %5192 = vrot.lane.b32.xlu1 %v12660_v15, %s9244_s17 }
 0xa8d   : > { %5196 = vrot.lane.b32.xlu0 %v12736_v36, %s9244_s17 }
 0xa8e   : > { %v4981_v46 = vpop.permute.xlu1 %4980  ;;  %5200 = vrot.lane.b32.xlu2 %v12726_v34, %s9244_s17 }
 0xa8f   : > { %v4985_v45 = vpop.permute.xlu0 %4984  ;;  %5070 = vst.msk [vmem:[#allocation3 + $0x30] sm:$0xff] %vm693_vm3, %v4981_v46 }
 0xa90   : > { %5072 = vst.msk [vmem:[#allocation3 + $0x40] sm:$0xff] %vm693_vm3, %v4985_v45  ;;  %v5007_v15 = vpop.permute.xlu2 %5006  ;;  %v15684_v45 = vld [vmem:[#allocation8_spill] sm:$0xff] }
 0xa91   : > { %5083 = vst.msk [vmem:[#allocation3 + $0x98] sm:$0xff] %vm693_vm3, %v5007_v15  ;;  %v15686_v15 = vld [vmem:[#allocation9_spill] sm:$0xff] }
 0xa94   : > { %5198 = vrot.lane.b32.xlu1 %v12682_v54, %s9244_s17 }
 0xa95   : > { %5202 = vrot.lane.b32.xlu0 %v12744_v50, %s9244_s17 }
 0xa96   : > { %v4987_v27 = vpop.permute.xlu1 %4986  ;;  %5206 = vrot.lane.b32.xlu2 %v12740_v49, %s9244_s17 }
 0xa97   : > { %v4991_v36 = vpop.permute.xlu0 %4990  ;;  %5073 = vst.msk [vmem:[#allocation3 + $0x48] sm:$0xff] %vm693_vm3, %v4987_v27  ;;  %v15685_v27 = vld [vmem:[#allocation12_spill] sm:$0xff] }
 0xa98   : > { %5075 = vst.msk [vmem:[#allocation3 + $0x58] sm:$0xff] %vm693_vm3, %v4991_v36  ;;  %v5013_v54 = vpop.permute.xlu2 %5012 }
 0xa99   : > { %5086 = vst.msk [vmem:[#allocation3 + $0xb0] sm:$0xff] %vm693_vm3, %v5013_v54 }
 0xa9c   : > { %5204 = vrot.lane.b32.xlu1 %v12696_v18, %s9244_s17 }
 0xa9d   : > { %5208 = vrot.lane.b32.xlu0 %v12754_v39, %s9244_s17 }
 0xa9e   : > { %v4993_v34 = vpop.permute.xlu1 %4992  ;;  %5212 = vrot.lane.b32.xlu2 %v12748_v22, %s9244_s17 }
 0xa9f   : > { %v4997_v50 = vpop.permute.xlu0 %4996  ;;  %5076 = vst.msk [vmem:[#allocation3 + $0x60] sm:$0xff] %vm693_vm3, %v4993_v34 }
 0xaa0   : > { %5078 = vst.msk [vmem:[#allocation3 + $0x70] sm:$0xff] %vm693_vm3, %v4997_v50  ;;  %v5019_v49 = vpop.permute.xlu2 %5018  ;;  %v15687_v50 = vld [vmem:[#allocation7_spill] sm:$0xff] }
 0xaa1   : > { %5089 = vst.msk [vmem:[#allocation3 + $0xc8] sm:$0xff] %vm693_vm3, %v5019_v49  ;;  %v15689_v49 = vld [vmem:[#allocation14_spill] sm:$0xff] }
 0xaa4   : > { %5210 = vrot.lane.b32.xlu1 %v12710_v63, %s9244_s17 }
 0xaa5   : > { %5214 = vrot.lane.b32.xlu0 %v12775_v25, %s9244_s17 }
 0xaa6   : > { %v4999_v39 = vpop.permute.xlu1 %4998  ;;  %5218 = vrot.lane.b32.xlu2 %v12772_v59, %s9244_s17 }
 0xaa7   : > { %v5003_v18 = vpop.permute.xlu0 %5002  ;;  %5079 = vst.msk [vmem:[#allocation3 + $0x78] sm:$0xff] %vm693_vm3, %v4999_v39  ;;  %v15688_v39 = vld [vmem:[#allocation15_spill] sm:$0xff] }
 0xaa8   : > { %5081 = vst.msk [vmem:[#allocation3 + $0x88] sm:$0xff] %vm693_vm3, %v5003_v18  ;;  %v5025_v63 = vpop.permute.xlu2 %5024 }
 0xaa9   : > { %5092 = vst.msk [vmem:[#allocation3 + $0xe0] sm:$0xff] %vm693_vm3, %v5025_v63 }
 0xaac   : > { %5216 = vrot.lane.b32.xlu1 %v12732_v60, %s9244_s17 }
 0xaad   : > { %5220 = vrot.lane.b32.xlu0 %v5126_v30, %s9244_s17  ;;  %v15690_v30 = vld [vmem:[#allocation10_spill] sm:$0xff] }
 0xaae   : > { %v5005_v22 = vpop.permute.xlu1 %5004  ;;  %5352 = vrot.lane.b32.xlu2 %v12462_v55, %s9245_s18 }
 0xaaf   : > { %v5009_v25 = vpop.permute.xlu0 %5008  ;;  %5082 = vst.msk [vmem:[#allocation3 + $0x90] sm:$0xff] %vm693_vm3, %v5005_v22 }
 0xab0   : > { %5084 = vst.msk [vmem:[#allocation3 + $0xa0] sm:$0xff] %vm693_vm3, %v5009_v25  ;;  %v5031_v7 = vpop.permute.xlu2 %5030 }
 0xab1   : > { %5095 = vst.msk [vmem:[#allocation3 + $0xf8] sm:$0xff] %vm693_vm3, %v5031_v7 }
 0xab4   : > { %5222 = vrot.lane.b32.xlu1 %v5127_v57, %s9244_s17  ;;  %v15691_v57 = vld [vmem:[#allocation18_spill] sm:$0xff] }
 0xab5   : > { %5354 = vrot.lane.b32.xlu0 %v12471_v4, %s9245_s18 }
 0xab6   : > { %v5011_v59 = vpop.permute.xlu1 %5010  ;;  %5358 = vrot.lane.b32.xlu2 %v12530_v33, %s9245_s18 }
 0xab7   : > { %v5015_v60 = vpop.permute.xlu0 %5014  ;;  %5085 = vst.msk [vmem:[#allocation3 + $0xa8] sm:$0xff] %vm693_vm3, %v5011_v59  ;;  %v15693_v59 = vld [vmem:[#allocation13_spill] sm:$0xff] }
 0xab8   : > { %5087 = vst.msk [vmem:[#allocation3 + $0xb8] sm:$0xff] %vm693_vm3, %v5015_v60  ;;  %v5165_v12 = vpop.permute.xlu2 %5164  ;;  %v15692_v60 = vld [vmem:[#allocation17_spill] sm:$0xff] }
 0xab9   : > { %5258 = vst.msk [vmem:[#allocation3 + $0x10] sm:$0xff] %vm886_vm4, %v5165_v12  ;;  %v15694_v12 = vld [vmem:[#allocation21_spill] sm:$0xff] }
 0xabc   : > { %5356 = vrot.lane.b32.xlu1 %v12449_v52, %s9245_s18 }
 0xabd   : > { %5360 = vrot.lane.b32.xlu0 %v12539_v24, %s9245_s18 }
 0xabe   : > { %v5017_v55 = vpop.permute.xlu1 %5016  ;;  %5364 = vrot.lane.b32.xlu2 %v12586_v17, %s9245_s18 }
 0xabf   : > { %v5021_v4 = vpop.permute.xlu0 %5020  ;;  %5088 = vst.msk [vmem:[#allocation3 + $0xc0] sm:$0xff] %vm693_vm3, %v5017_v55 }
 0xac0   : > { %5090 = vst.msk [vmem:[#allocation3 + $0xd0] sm:$0xff] %vm693_vm3, %v5021_v4  ;;  %v5171_v24 = vpop.permute.xlu2 %5170 }
 0xac1   : > { %5261 = vst.msk [vmem:[#allocation3 + $0x28] sm:$0xff] %vm886_vm4, %v5171_v24 }
 0xac4   : > { %5362 = vrot.lane.b32.xlu1 %v12519_v5, %s9245_s18 }
 0xac5   : > { %5366 = vrot.lane.b32.xlu0 %v12593_v10, %s9245_s18 }
 0xac6   : > { %v5023_v33 = vpop.permute.xlu1 %5022  ;;  %5370 = vrot.lane.b32.xlu2 %v12626_v21, %s9245_s18 }
 0xac7   : > { %v5027_v52 = vpop.permute.xlu0 %5026  ;;  %5091 = vst.msk [vmem:[#allocation3 + $0xd8] sm:$0xff] %vm693_vm3, %v5023_v33  ;;  %v15696_v33 = vld [vmem:[#allocation16_spill] sm:$0xff] }
 0xac8   : > { %5093 = vst.msk [vmem:[#allocation3 + $0xe8] sm:$0xff] %vm693_vm3, %v5027_v52  ;;  %v5177_v10 = vpop.permute.xlu2 %5176  ;;  %v15695_v52 = vld [vmem:[#allocation20_spill] sm:$0xff] }
 0xac9   : > { %5264 = vst.msk [vmem:[#allocation3 + $0x40] sm:$0xff] %vm886_vm4, %v5177_v10  ;;  %v5864_v10 = vld [vmem:[#allocation2 + $0x31] sm:$0xff] }
 0xacc   : > { %5368 = vrot.lane.b32.xlu1 %v12577_v35, %s9245_s18 }
 0xacd   : > { %5372 = vrot.lane.b32.xlu0 %v12632_v62, %s9245_s18 }
 0xace   : > { %v5029_v17 = vpop.permute.xlu1 %5028  ;;  %5376 = vrot.lane.b32.xlu2 %v12670_v20, %s9245_s18 }
 0xacf   : > { %v5161_v5 = vpop.permute.xlu0 %5160  ;;  %5094 = vst.msk [vmem:[#allocation3 + $0xf0] sm:$0xff] %vm693_vm3, %v5029_v17 }
 0xad0   : > { %5256 = vst.msk [vmem:[#allocation3] sm:$0xff] %vm886_vm4, %v5161_v5  ;;  %v5183_v62 = vpop.permute.xlu2 %5182 }
 0xad1   : > { %5267 = vst.msk [vmem:[#allocation3 + $0x58] sm:$0xff] %vm886_vm4, %v5183_v62 }
 0xad4   : > { %5374 = vrot.lane.b32.xlu1 %v12618_v41, %s9245_s18 }
 0xad5   : > { %5378 = vrot.lane.b32.xlu0 %v12676_v32, %s9245_s18 }
 0xad6   : > { %v5163_v21 = vpop.permute.xlu1 %5162  ;;  %5382 = vrot.lane.b32.xlu2 %v12714_v53, %s9245_s18 }
 0xad7   : > { %v5167_v35 = vpop.permute.xlu0 %5166  ;;  %5257 = vst.msk [vmem:[#allocation3 + $0x8] sm:$0xff] %vm886_vm4, %v5163_v21 }
 0xad8   : > { %5259 = vst.msk [vmem:[#allocation3 + $0x18] sm:$0xff] %vm886_vm4, %v5167_v35  ;;  %v5189_v32 = vpop.permute.xlu2 %5188  ;;  %v15697_v35 = vld [vmem:[#allocation23_spill] sm:$0xff] }
 0xad9   : > { %5270 = vst.msk [vmem:[#allocation3 + $0x70] sm:$0xff] %vm886_vm4, %v5189_v32 }
 0xadc   : > { %5380 = vrot.lane.b32.xlu1 %v12662_v42, %s9245_s18 }
 0xadd   : > { %5384 = vrot.lane.b32.xlu0 %v12720_v16, %s9245_s18 }
 0xade   : > { %v5169_v20 = vpop.permute.xlu1 %5168  ;;  %5388 = vrot.lane.b32.xlu2 %v12758_v1, %s9245_s18 }
 0xadf   : > { %v5173_v41 = vpop.permute.xlu0 %5172  ;;  %5260 = vst.msk [vmem:[#allocation3 + $0x20] sm:$0xff] %vm886_vm4, %v5169_v20  ;;  %v5865_v20 = vld [vmem:[#allocation2 + $0x39] sm:$0xff] }
 0xae0   : > { %5262 = vst.msk [vmem:[#allocation3 + $0x30] sm:$0xff] %vm886_vm4, %v5173_v41  ;;  %v5195_v42 = vpop.permute.xlu2 %5194 }
 0xae1   : > { %5273 = vst.msk [vmem:[#allocation3 + $0x88] sm:$0xff] %vm886_vm4, %v5195_v42 }
 0xae4   : > { %5386 = vrot.lane.b32.xlu1 %v12706_v19, %s9245_s18 }
 0xae5   : > { %5390 = vrot.lane.b32.xlu0 %v12762_v6, %s9245_s18 }
 0xae6   : > { %v5175_v53 = vpop.permute.xlu1 %5174  ;;  %5394 = vrot.lane.b32.xlu2 %v12786_v23, %s9245_s18 }
 0xae7   : > { %v5179_v16 = vpop.permute.xlu0 %5178  ;;  %5263 = vst.msk [vmem:[#allocation3 + $0x38] sm:$0xff] %vm886_vm4, %v5175_v53  ;;  %v5866_v53 = vld [vmem:[#allocation2 + $0x49] sm:$0xff] }
 0xae8   : > { %5265 = vst.msk [vmem:[#allocation3 + $0x48] sm:$0xff] %vm886_vm4, %v5179_v16  ;;  %v5201_v19 = vpop.permute.xlu2 %5200 }
 0xae9   : > { %5276 = vst.msk [vmem:[#allocation3 + $0xa0] sm:$0xff] %vm886_vm4, %v5201_v19 }
 0xaec   : > { %5392 = vrot.lane.b32.xlu1 %v12750_v44, %s9245_s18 }
 0xaed   : > { %5396 = vrot.lane.b32.xlu0 %v12788_v47, %s9245_s18 }
 0xaee   : > { %v5181_v1 = vpop.permute.xlu1 %5180  ;;  %5400 = vrot.lane.b32.xlu2 %v12798_v9, %s9245_s18 }
 0xaef   : > { %v5185_v6 = vpop.permute.xlu0 %5184  ;;  %5266 = vst.msk [vmem:[#allocation3 + $0x50] sm:$0xff] %vm886_vm4, %v5181_v1  ;;  %v5867_v1 = vld [vmem:[#allocation2 + $0x51] sm:$0xff] }
 0xaf0   : > { %5268 = vst.msk [vmem:[#allocation3 + $0x60] sm:$0xff] %vm886_vm4, %v5185_v6  ;;  %v5207_v44 = vpop.permute.xlu2 %5206 }
 0xaf1   : > { %5279 = vst.msk [vmem:[#allocation3 + $0xb8] sm:$0xff] %vm886_vm4, %v5207_v44  ;;  %v6059_v44 = vld [vmem:[#allocation2 + $0x52] sm:$0xff] }
 0xaf4   : > { %5398 = vrot.lane.b32.xlu1 %v12782_v13, %s9245_s18  ;;  %v15683_v13 = vld [vmem:[#allocation11_spill] sm:$0xff] }
 0xaf5   : > { %5402 = vrot.lane.b32.xlu0 %v12800_v61, %s9245_s18  ;;  %v15682_v61 = vld [vmem:[#allocation6_spill] sm:$0xff] }
 0xaf6   : > { %v5187_v23 = vpop.permute.xlu1 %5186  ;;  %5406 = vrot.lane.b32.xlu2 %v15683_v13, %s9245_s18  ;;  %v5869_v13 = vld [vmem:[#allocation2 + $0x69] sm:$0xff] }
 0xaf7   : > { %v5191_v47 = vpop.permute.xlu0 %5190  ;;  %5269 = vst.msk [vmem:[#allocation3 + $0x68] sm:$0xff] %vm886_vm4, %v5187_v23  ;;  %v5868_v23 = vld [vmem:[#allocation2 + $0x61] sm:$0xff] }
 0xaf8   : > { %5271 = vst.msk [vmem:[#allocation3 + $0x78] sm:$0xff] %vm886_vm4, %v5191_v47  ;;  %v5213_v58 = vpop.permute.xlu2 %5212 }
 0xaf9   : > { %5282 = vst.msk [vmem:[#allocation3 + $0xd0] sm:$0xff] %vm886_vm4, %v5213_v58 }
 0xafc   : > { %5404 = vrot.lane.b32.xlu1 %v15682_v61, %s9245_s18 }
 0xafd   : > { %5408 = vrot.lane.b32.xlu0 %v15681_v26, %s9245_s18 }
 0xafe   : > { %v5193_v9 = vpop.permute.xlu1 %5192  ;;  %5412 = vrot.lane.b32.xlu2 %v5318_v29, %s9245_s18  ;;  %v6061_v29 = vld [vmem:[#allocation2 + $0x6a] sm:$0xff] }
 0xaff   : > { %v5197_v56 = vpop.permute.xlu0 %5196  ;;  %5272 = vst.msk [vmem:[#allocation3 + $0x80] sm:$0xff] %vm886_vm4, %v5193_v9 }
 0xb00   : > { %5274 = vst.msk [vmem:[#allocation3 + $0x90] sm:$0xff] %vm886_vm4, %v5197_v56  ;;  %v5219_v36 = vpop.permute.xlu2 %5218  ;;  %v6060_v56 = vld [vmem:[#allocation2 + $0x62] sm:$0xff] }
 0xb01   : > { %5285 = vst.msk [vmem:[#allocation3 + $0xe8] sm:$0xff] %vm886_vm4, %v5219_v36  ;;  %v6062_v36 = vld [vmem:[#allocation2 + $0x7a] sm:$0xff] }
 0xb04   : > { %5410 = vrot.lane.b32.xlu1 %v15684_v45, %s9245_s18 }
 0xb05   : > { %5414 = vrot.lane.b32.xlu0 %v5319_v3, %s9245_s18  ;;  %v5870_v3 = vld [vmem:[#allocation2 + $0x79] sm:$0xff] }
 0xb06   : > { %v5199_v0 = vpop.permute.xlu1 %5198  ;;  %5546 = vrot.lane.b32.xlu2 %v15687_v50, %s9246_s19  ;;  %v5872_v50 = vld [vmem:[#allocation2 + $0x91] sm:$0xff] }
 0xb07   : > { %v5203_v46 = vpop.permute.xlu0 %5202  ;;  %5275 = vst.msk [vmem:[#allocation3 + $0x98] sm:$0xff] %vm886_vm4, %v5199_v0  ;;  %v5871_v0 = vld [vmem:[#allocation2 + $0x81] sm:$0xff] }
 0xb08   : > { %5277 = vst.msk [vmem:[#allocation3 + $0xa8] sm:$0xff] %vm886_vm4, %v5203_v46  ;;  %v5353_v18 = vpop.permute.xlu2 %5352 }
 0xb09   : > { %5448 = vst.msk [vmem:[#allocation3] sm:$0xff] %vm1079_vm5, %v5353_v18 }
 0xb0c   : > { %5544 = vrot.lane.b32.xlu1 %v15686_v15, %s9246_s19 }
 0xb0d   : > { %5548 = vrot.lane.b32.xlu0 %v15685_v27, %s9246_s19 }
 0xb0e   : > { %v5205_v54 = vpop.permute.xlu1 %5204  ;;  %5552 = vrot.lane.b32.xlu2 %v15690_v30, %s9246_s19 }
 0xb0f   : > { %v5209_v34 = vpop.permute.xlu0 %5208  ;;  %5278 = vst.msk [vmem:[#allocation3 + $0xb0] sm:$0xff] %vm886_vm4, %v5205_v54  ;;  %v5680_v54 = vld [vmem:[#allocation2 + $0x90] sm:$0xff] }
 0xb10   : > { %5280 = vst.msk [vmem:[#allocation3 + $0xc0] sm:$0xff] %vm886_vm4, %v5209_v34  ;;  %v5359_v63 = vpop.permute.xlu2 %5358  ;;  %v6063_v34 = vld [vmem:[#allocation2 + $0x82] sm:$0xff] }
 0xb11   : > { %5451 = vst.msk [vmem:[#allocation3 + $0x18] sm:$0xff] %vm1079_vm5, %v5359_v63 }
 0xb14   : > { %5550 = vrot.lane.b32.xlu1 %v15689_v49, %s9246_s19 }
 0xb15   : > { %5554 = vrot.lane.b32.xlu0 %v15688_v39, %s9246_s19 }
 0xb16   : > { %v5211_v22 = vpop.permute.xlu1 %5210  ;;  %5558 = vrot.lane.b32.xlu2 %v15693_v59, %s9246_s19 }
 0xb17   : > { %v5215_v25 = vpop.permute.xlu0 %5214  ;;  %5281 = vst.msk [vmem:[#allocation3 + $0xc8] sm:$0xff] %vm886_vm4, %v5211_v22 }
 0xb18   : > { %5283 = vst.msk [vmem:[#allocation3 + $0xd8] sm:$0xff] %vm886_vm4, %v5215_v25  ;;  %v5365_v55 = vpop.permute.xlu2 %5364 }
 0xb19   : > { %5454 = vst.msk [vmem:[#allocation3 + $0x30] sm:$0xff] %vm1079_vm5, %v5365_v55  ;;  %v6066_v55 = vld [vmem:[#allocation2 + $0xaa] sm:$0xff] }
 0xb1c   : > { %5556 = vrot.lane.b32.xlu1 %v15692_v60, %s9246_s19  ;;  %v6065_v60 = vld [vmem:[#allocation2 + $0x9a] sm:$0xff] }
 0xb1d   : > { %5560 = vrot.lane.b32.xlu0 %v15691_v57, %s9246_s19  ;;  %v5874_v57 = vld [vmem:[#allocation2 + $0xa9] sm:$0xff] }
 0xb1e   : > { %v5217_v4 = vpop.permute.xlu1 %5216  ;;  %5564 = vrot.lane.b32.xlu2 %v15696_v33, %s9246_s19 }
 0xb1f   : > { %v5221_v7 = vpop.permute.xlu0 %5220  ;;  %5284 = vst.msk [vmem:[#allocation3 + $0xe0] sm:$0xff] %vm886_vm4, %v5217_v4  ;;  %v5875_v4 = vld [vmem:[#allocation2 + $0xb1] sm:$0xff] }
 0xb20   : > { %5286 = vst.msk [vmem:[#allocation3 + $0xf0] sm:$0xff] %vm886_vm4, %v5221_v7  ;;  %v5371_v17 = vpop.permute.xlu2 %5370 }
 0xb21   : > { %5457 = vst.msk [vmem:[#allocation3 + $0x48] sm:$0xff] %vm1079_vm5, %v5371_v17  ;;  %v9127_v17 = vld [vmem:[%s15297_s1 + $0x60] sm:$0xff] }
 0xb24   : > { %5562 = vrot.lane.b32.xlu1 %v15695_v52, %s9246_s19 }
 0xb25   : > { %5566 = vrot.lane.b32.xlu0 %v15694_v12, %s9246_s19  ;;  %v5683_v12 = vld [vmem:[#allocation2 + $0xb0] sm:$0xff] }
 0xb26   : > { %v5223_v5 = vpop.permute.xlu1 %5222  ;;  %5736 = vrot.lane.b32.xlu2 %v12622_v28, %s9247_s20 }
 0xb27   : > { %v5355_v24 = vpop.permute.xlu0 %5354  ;;  %5287 = vst.msk [vmem:[#allocation3 + $0xf8] sm:$0xff] %vm886_vm4, %v5223_v5  ;;  %v9128_v5 = vld [vmem:[%s15297_s1 + $0x68] sm:$0xff] }
 0xb28   : > { %5449 = vst.msk [vmem:[#allocation3 + $0x8] sm:$0xff] %vm1079_vm5, %v5355_v24  ;;  %v5377_v41 = vpop.permute.xlu2 %5376 }
 0xb29   : > { %5460 = vst.msk [vmem:[#allocation3 + $0x60] sm:$0xff] %vm1079_vm5, %v5377_v41  ;;  %v9125_v41 = vld [vmem:[%s15297_s1 + $0x50] sm:$0xff] }
 0xb2c   : > { %5568 = vrot.lane.b32.xlu1 %v15697_v35, %s9246_s19  ;;  %v9126_v35 = vld [vmem:[%s15297_s1 + $0x58] sm:$0xff] }
 0xb2d   : > { %5928 = vrot.lane.b32.xlu0 %v5864_v10, %s9248_s21  ;;  %v5876_v10 = vld [vmem:[#allocation2 + $0xc1] sm:$0xff] }
 0xb2e   : > { %v5357_v62 = vpop.permute.xlu1 %5356  ;;  %5738 = vrot.lane.b32.xlu2 %v12652_v11, %s9247_s20 }
 0xb2f   : > { %v5361_v21 = vpop.permute.xlu0 %5360  ;;  %5450 = vst.msk [vmem:[#allocation3 + $0x10] sm:$0xff] %vm1079_vm5, %v5357_v62 }
 0xb30   : > { %5452 = vst.msk [vmem:[#allocation3 + $0x20] sm:$0xff] %vm1079_vm5, %v5361_v21  ;;  %v5383_v16 = vpop.permute.xlu2 %5382  ;;  %v6067_v21 = vld [vmem:[#allocation2 + $0xb2] sm:$0xff] }
 0xb31   : > { %5463 = vst.msk [vmem:[#allocation3 + $0x78] sm:$0xff] %vm1079_vm5, %v5383_v16 }
 0xb34   : > { %6120 = vrot.lane.b32.xlu1 %v15685_v27, %s9249_s22 }
 0xb35   : > { %5930 = vrot.lane.b32.xlu0 %v5865_v20, %s9248_s21 }
 0xb36   : > { %v5363_v28 = vpop.permute.xlu1 %5362  ;;  %5740 = vrot.lane.b32.xlu2 %v12612_v8, %s9247_s20 }
 0xb37   : > { %v5367_v32 = vpop.permute.xlu0 %5366  ;;  %5453 = vst.msk [vmem:[#allocation3 + $0x28] sm:$0xff] %vm1079_vm5, %v5363_v28  ;;  %v6068_v28 = vld [vmem:[#allocation2 + $0xc2] sm:$0xff] }
 0xb38   : > { %5455 = vst.msk [vmem:[#allocation3 + $0x38] sm:$0xff] %vm1079_vm5, %v5367_v32  ;;  %v5389_v6 = vpop.permute.xlu2 %5388 }
 0xb39   : > { %5466 = vst.msk [vmem:[#allocation3 + $0x90] sm:$0xff] %vm1079_vm5, %v5389_v6 }
 0xb3c   : > { %6122 = vrot.lane.b32.xlu1 %v15689_v49, %s9249_s22  ;;  %v5873_v49 = vld [vmem:[#allocation2 + $0x99] sm:$0xff] }
 0xb3d   : > { %5932 = vrot.lane.b32.xlu0 %v5866_v53, %s9248_s21 }
 0xb3e   : > { %v5369_v11 = vpop.permute.xlu1 %5368  ;;  %5742 = vrot.lane.b32.xlu2 %v12644_v40, %s9247_s20 }
 0xb3f   : > { %v5373_v42 = vpop.permute.xlu0 %5372  ;;  %5456 = vst.msk [vmem:[#allocation3 + $0x40] sm:$0xff] %vm1079_vm5, %v5369_v11  ;;  %v6069_v11 = vld [vmem:[#allocation2 + $0xca] sm:$0xff] }
 0xb40   : > { %5458 = vst.msk [vmem:[#allocation3 + $0x50] sm:$0xff] %vm1079_vm5, %v5373_v42  ;;  %v5395_v47 = vpop.permute.xlu2 %5394  ;;  %v5877_v42 = vld [vmem:[#allocation2 + $0xc9] sm:$0xff] }
 0xb41   : > { %5469 = vst.msk [vmem:[#allocation3 + $0xa8] sm:$0xff] %vm1079_vm5, %v5395_v47  ;;  %v5878_v47 = vld [vmem:[#allocation2 + $0xd9] sm:$0xff] }
 0xb44   : > { %6124 = vrot.lane.b32.xlu1 %v15690_v30, %s9249_s22  ;;  %v6064_v30 = vld [vmem:[#allocation2 + $0x92] sm:$0xff] }
 0xb45   : > { %5934 = vrot.lane.b32.xlu0 %v5867_v1, %s9248_s21 }
 0xb46   : > { %v5375_v8 = vpop.permute.xlu1 %5374  ;;  %5744 = vrot.lane.b32.xlu2 %v12666_v51, %s9247_s20 }
 0xb47   : > { %v5379_v19 = vpop.permute.xlu0 %5378  ;;  %5459 = vst.msk [vmem:[#allocation3 + $0x58] sm:$0xff] %vm1079_vm5, %v5375_v8  ;;  %v5686_v8 = vld [vmem:[#allocation2 + $0xd8] sm:$0xff] }
 0xb48   : > { %5461 = vst.msk [vmem:[#allocation3 + $0x68] sm:$0xff] %vm1079_vm5, %v5379_v19  ;;  %v5401_v61 = vpop.permute.xlu2 %5400  ;;  %v6070_v19 = vld [vmem:[#allocation2 + $0xda] sm:$0xff] }
 0xb49   : > { %5472 = vst.msk [vmem:[#allocation3 + $0xc0] sm:$0xff] %vm1079_vm5, %v5401_v61  ;;  %v5687_v61 = vld [vmem:[#allocation2 + $0xe0] sm:$0xff] }
 0xb4c   : > { %6126 = vrot.lane.b32.xlu1 %v6059_v44, %s9249_s22 }
 0xb4d   : > { %5936 = vrot.lane.b32.xlu0 %v5868_v23, %s9248_s21 }
 0xb4e   : > { %v5381_v40 = vpop.permute.xlu1 %5380  ;;  %5746 = vrot.lane.b32.xlu2 %v12616_v43, %s9247_s20 }
 0xb4f   : > { %v5385_v26 = vpop.permute.xlu0 %5384  ;;  %5462 = vst.msk [vmem:[#allocation3 + $0x70] sm:$0xff] %vm1079_vm5, %v5381_v40  ;;  %v5879_v40 = vld [vmem:[#allocation2 + $0xe1] sm:$0xff] }
 0xb50   : > { %5464 = vst.msk [vmem:[#allocation3 + $0x80] sm:$0xff] %vm1079_vm5, %v5385_v26  ;;  %v5407_v58 = vpop.permute.xlu2 %5406 }
 0xb51   : > { %5475 = vst.msk [vmem:[#allocation3 + $0xd8] sm:$0xff] %vm1079_vm5, %v5407_v58  ;;  %v5688_v58 = vld [vmem:[#allocation2 + $0xf0] sm:$0xff] }
 0xb54   : > { %6128 = vrot.lane.b32.xlu1 %v6060_v56, %s9249_s22 }
 0xb55   : > { %5938 = vrot.lane.b32.xlu0 %v5869_v13, %s9248_s21 }
 0xb56   : > { %v5387_v51 = vpop.permute.xlu1 %5386  ;;  %5748 = vrot.lane.b32.xlu2 %v12656_v48, %s9247_s20 }
 0xb57   : > { %v5391_v9 = vpop.permute.xlu0 %5390  ;;  %5465 = vst.msk [vmem:[#allocation3 + $0x88] sm:$0xff] %vm1079_vm5, %v5387_v51 }
 0xb58   : > { %5467 = vst.msk [vmem:[#allocation3 + $0x98] sm:$0xff] %vm1079_vm5, %v5391_v9  ;;  %v5413_v46 = vpop.permute.xlu2 %5412 }
 0xb59   : > { %5478 = vst.msk [vmem:[#allocation3 + $0xf0] sm:$0xff] %vm1079_vm5, %v5413_v46 }
 0xb5c   : > { %6130 = vrot.lane.b32.xlu1 %v6061_v29, %s9249_s22 }
 0xb5d   : > { %5940 = vrot.lane.b32.xlu0 %v5870_v3, %s9248_s21  ;;  %v6071_v3 = vld [vmem:[#allocation2 + $0xe2] sm:$0xff] }
 0xb5e   : > { %v5393_v43 = vpop.permute.xlu1 %5392  ;;  %5750 = vrot.lane.b32.xlu2 %v12688_v31, %s9247_s20 }
 0xb5f   : > { %v5397_v45 = vpop.permute.xlu0 %5396  ;;  %5468 = vst.msk [vmem:[#allocation3 + $0xa0] sm:$0xff] %vm1079_vm5, %v5393_v43 }
 0xb60   : > { %5470 = vst.msk [vmem:[#allocation3 + $0xb0] sm:$0xff] %vm1079_vm5, %v5397_v45  ;;  %v5547_v15 = vpop.permute.xlu2 %5546 }
 0xb61   : > { %5641 = vst.msk [vmem:[#allocation3 + $0x8] sm:$0xff] %vm1272_vm6, %v5547_v15 }
 0xb64   : > { %6132 = vrot.lane.b32.xlu1 %v6062_v36, %s9249_s22  ;;  %v6072_v36 = vld [vmem:[#allocation2 + $0xf2] sm:$0xff] }
 0xb65   : > { %5942 = vrot.lane.b32.xlu0 %v5871_v0, %s9248_s21  ;;  %v5880_v0 = vld [vmem:[#allocation2 + $0xf1] sm:$0xff] }
 0xb66   : > { %v5399_v48 = vpop.permute.xlu1 %5398  ;;  %5752 = vrot.lane.b32.xlu2 %v5680_v54, %s9247_s20  ;;  %v5689_v54 = vld [vmem:[#allocation2 + $0xf8] sm:$0xff] }
 0xb67   : > { %v5403_v27 = vpop.permute.xlu0 %5402  ;;  %5471 = vst.msk [vmem:[#allocation3 + $0xb8] sm:$0xff] %vm1079_vm5, %v5399_v48 }
 0xb68   : > { %5473 = vst.msk [vmem:[#allocation3 + $0xc8] sm:$0xff] %vm1079_vm5, %v5403_v27  ;;  %v5553_v39 = vpop.permute.xlu2 %5552 }
 0xb69   : > { %5644 = vst.msk [vmem:[#allocation3 + $0x20] sm:$0xff] %vm1272_vm6, %v5553_v39 }
 0xb6c   : > { %6134 = vrot.lane.b32.xlu1 %v6063_v34, %s9249_s22  ;;  %v6073_v34 = vld [vmem:[#allocation2 + $0xfa] sm:$0xff] }
 0xb6d   : > { %5944 = vrot.lane.b32.xlu0 %v5872_v50, %s9248_s21 }
 0xb6e   : > { %v5405_v31 = vpop.permute.xlu1 %5404  ;;  %5754 = vrot.lane.b32.xlu2 %v12674_v38, %s9247_s20 }
 0xb6f   : > { %v5409_v18 = vpop.permute.xlu0 %5408  ;;  %5474 = vst.msk [vmem:[#allocation3 + $0xd0] sm:$0xff] %vm1079_vm5, %v5405_v31 }
 0xb70   : > { %5476 = vst.msk [vmem:[#allocation3 + $0xe0] sm:$0xff] %vm1079_vm5, %v5409_v18  ;;  %v5559_v63 = vpop.permute.xlu2 %5558  ;;  %v5881_v18 = vld [vmem:[#allocation2 + $0xf9] sm:$0xff] }
 0xb71   : > { %5647 = vst.msk [vmem:[#allocation3 + $0x38] sm:$0xff] %vm1272_vm6, %v5559_v63 }
 0xb74   : > { %6136 = vrot.lane.b32.xlu1 %v6064_v30, %s9249_s22 }
 0xb75   : > { %5946 = vrot.lane.b32.xlu0 %v5873_v49, %s9248_s21 }
 0xb76   : > { %v5411_v22 = vpop.permute.xlu1 %5410  ;;  %5756 = vrot.lane.b32.xlu2 %v12700_v2, %s9247_s20  ;;  %v9129_v2 = vld [vmem:[%s15297_s1 + $0x70] sm:$0xf] }
 0xb77   : > { %v5415_v25 = vpop.permute.xlu0 %5414  ;;  %5477 = vst.msk [vmem:[#allocation3 + $0xe8] sm:$0xff] %vm1079_vm5, %v5411_v22  ;;  %9135 = vmatpush.msk.msra.mxu2 %vm2014_vm9, %v9129_v2  ;;  %v5690_v22 = vld [vmem:[#allocation2 + $0x108] sm:$0xff]  ;;  %v5883_v2 = vld [vmem:[#allocation2 + $0x111] sm:$0xff] }
 0xb78   : > { %5479 = vst.msk [vmem:[#allocation3 + $0xf8] sm:$0xff] %vm1079_vm5, %v5415_v25  ;;  %v5565_v7 = vpop.permute.xlu2 %5564  ;;  %v5882_v25 = vld [vmem:[#allocation2 + $0x109] sm:$0xff] }
 0xb79   : > { %5650 = vst.msk [vmem:[#allocation3 + $0x50] sm:$0xff] %vm1272_vm6, %v5565_v7  ;;  %6391 = vmatpush.msra.mxu2 %v9128_v5  ;;  %v6074_v7 = vld [vmem:[#allocation2 + $0x10a] sm:$0xff] }
 0xb7b   : > { %6392 = vmatpush.msra.mxu2 %v9127_v17 }
 0xb7c   : > { %6138 = vrot.lane.b32.xlu1 %v6065_v60, %s9249_s22 }
 0xb7d   : > { %5948 = vrot.lane.b32.xlu0 %v5874_v57, %s9248_s21  ;;  %6393 = vmatpush.msra.mxu2 %v9126_v35  ;;  %v6076_v35 = vld [vmem:[#allocation2 + $0x122] sm:$0xff] }
 0xb7e   : > { %v5545_v38 = vpop.permute.xlu1 %5544  ;;  %5758 = vrot.lane.b32.xlu2 %v5683_v12, %s9247_s20 }
 0xb7f   : > { %v5549_v59 = vpop.permute.xlu0 %5548  ;;  %5640 = vst.msk [vmem:[#allocation3] sm:$0xff] %vm1272_vm6, %v5545_v38  ;;  %6394 = vmatpush.msra.mxu2 %v9125_v41  ;;  %v5691_v38 = vld [vmem:[#allocation2 + $0x110] sm:$0xff] }
 0xb80   : > { %5642 = vst.msk [vmem:[#allocation3 + $0x10] sm:$0xff] %vm1272_vm6, %v5549_v59  ;;  %v5737_v24 = vpop.permute.xlu2 %5736 }
 0xb81   : > { %5832 = vst.msk [vmem:[#allocation3] sm:$0xff] %vm1466_vm7, %v5737_v24 }
 0xb84   : > { %6140 = vrot.lane.b32.xlu1 %v6066_v55, %s9249_s22 }
 0xb85   : > { %5950 = vrot.lane.b32.xlu0 %v5875_v4, %s9248_s21 }
 0xb86   : > { %v5551_v33 = vpop.permute.xlu1 %5550  ;;  %5760 = vrot.lane.b32.xlu2 %v12692_v14, %s9247_s20 }
 0xb87   : > { %v5555_v52 = vpop.permute.xlu0 %5554  ;;  %5643 = vst.msk [vmem:[#allocation3 + $0x18] sm:$0xff] %vm1272_vm6, %v5551_v33  ;;  %v6075_v33 = vld [vmem:[#allocation2 + $0x112] sm:$0xff] }
 0xb88   : > { %5645 = vst.msk [vmem:[#allocation3 + $0x28] sm:$0xff] %vm1272_vm6, %v5555_v52  ;;  %v5739_v32 = vpop.permute.xlu2 %5738 }
 0xb89   : > { %5833 = vst.msk [vmem:[#allocation3 + $0x8] sm:$0xff] %vm1466_vm7, %v5739_v32 }
 0xb8c   : > { %6142 = vrot.lane.b32.xlu1 %v6067_v21, %s9249_s22 }
 0xb8d   : > { %5952 = vrot.lane.b32.xlu0 %v5876_v10, %s9248_s21 }
 0xb8e   : > { %v5557_v20 = vpop.permute.xlu1 %5556  ;;  %5570 = vrot.lane.b32.xlu2 %v6067_v21, %s9246_s19  ;;  %v5692_v21 = vld [vmem:[#allocation2 + $0x120] sm:$0xff] }
 0xb8f   : > { %v5561_v62 = vpop.permute.xlu0 %5560  ;;  %5646 = vst.msk [vmem:[#allocation3 + $0x30] sm:$0xff] %vm1272_vm6, %v5557_v20 }
 0xb90   : > { %5648 = vst.msk [vmem:[#allocation3 + $0x40] sm:$0xff] %vm1272_vm6, %v5561_v62  ;;  %v5741_v53 = vpop.permute.xlu2 %5740  ;;  %v5884_v62 = vld [vmem:[#allocation2 + $0x121] sm:$0xff] }
 0xb91   : > { %5834 = vst.msk [vmem:[#allocation3 + $0x10] sm:$0xff] %vm1466_vm7, %v5741_v53 }
 0xb94   : > { %6144 = vrot.lane.b32.xlu1 %v6068_v28, %s9249_s22 }
 0xb95   : > { %5762 = vrot.lane.b32.xlu0 %v12718_v37, %s9247_s20 }
 0xb96   : > { %v5563_v16 = vpop.permute.xlu1 %5562  ;;  %6146 = vrot.lane.b32.xlu2 %v6069_v11, %s9249_s22 }
 0xb97   : > { %v5567_v14 = vpop.permute.xlu0 %5566  ;;  %5649 = vst.msk [vmem:[#allocation3 + $0x48] sm:$0xff] %vm1272_vm6, %v5563_v16  ;;  %v5693_v16 = vld [vmem:[#allocation2 + $0x128] sm:$0xff] }
 0xb98   : > { %5651 = vst.msk [vmem:[#allocation3 + $0x58] sm:$0xff] %vm1272_vm6, %v5567_v14  ;;  %v5743_v1 = vpop.permute.xlu2 %5742  ;;  %v5885_v14 = vld [vmem:[#allocation2 + $0x129] sm:$0xff] }
 0xb99   : > { %5835 = vst.msk [vmem:[#allocation3 + $0x18] sm:$0xff] %vm1466_vm7, %v5743_v1  ;;  %v6077_v1 = vld [vmem:[#allocation2 + $0x12a] sm:$0xff] }
 0xb9c   : > { %5954 = vrot.lane.b32.xlu1 %v5877_v42, %s9248_s21 }
 0xb9d   : > { %5572 = vrot.lane.b32.xlu0 %v6068_v28, %s9246_s19 }
 0xb9e   : > { %v5569_v6 = vpop.permute.xlu1 %5568  ;;  %5956 = vrot.lane.b32.xlu2 %v5878_v47, %s9248_s21 }
 0xb9f   : > { %v5929_v37 = vpop.permute.xlu0 %5928  ;;  %5652 = vst.msk [vmem:[#allocation3 + $0x60] sm:$0xff] %vm1272_vm6, %v5569_v6  ;;  %v5694_v6 = vld [vmem:[#allocation2 + $0x138] sm:$0xff] }
 0xba0   : > { %6024 = vst.msk [vmem:[#allocation3] sm:$0xff] %vm1659_vm8, %v5929_v37  ;;  %v5745_v26 = vpop.permute.xlu2 %5744 }
 0xba1   : > { %5836 = vst.msk [vmem:[#allocation3 + $0x20] sm:$0xff] %vm1466_vm7, %v5745_v26  ;;  %v6078_v26 = vld [vmem:[#allocation2 + $0x13a] sm:$0xff] }
 0xba4   : > { %5764 = vrot.lane.b32.xlu1 %v5686_v8, %s9247_s20 }
 0xba5   : > { %6148 = vrot.lane.b32.xlu0 %v6070_v19, %s9249_s22 }
 0xba6   : > { %v6121_v44 = vpop.permute.xlu1 %6120  ;;  %5766 = vrot.lane.b32.xlu2 %v5687_v61, %s9247_s20 }
 0xba7   : > { %v5931_v23 = vpop.permute.xlu0 %5930  ;;  %6216 = vst.msk [vmem:[#allocation3] sm:$0xff] %vm1852_vm10, %v6121_v44  ;;  %v5886_v44 = vld [vmem:[#allocation2 + $0x139] sm:$0xff] }
 0xba8   : > { %6025 = vst.msk [vmem:[#allocation3 + $0x8] sm:$0xff] %vm1659_vm8, %v5931_v23  ;;  %v5747_v51 = vpop.permute.xlu2 %5746 }
 0xba9   : > { %5837 = vst.msk [vmem:[#allocation3 + $0x28] sm:$0xff] %vm1466_vm7, %v5747_v51  ;;  %v5695_v51 = vld [vmem:[#allocation2 + $0x140] sm:$0xff] }
 0xbac   : > { %5574 = vrot.lane.b32.xlu1 %v6069_v11, %s9246_s19 }
 0xbad   : > { %5958 = vrot.lane.b32.xlu0 %v5879_v40, %s9248_s21 }
 0xbae   : > { %v6123_v56 = vpop.permute.xlu1 %6122  ;;  %v6248_v9 = vld [vmem:[#allocation3] sm:$0xff]  ;;  %5576 = vrot.lane.b32.xlu2 %v6070_v19, %s9246_s19 }
 0xbaf   : > { %v5933_v13 = vpop.permute.xlu0 %5932  ;;  %6217 = vst.msk [vmem:[#allocation3 + $0x8] sm:$0xff] %vm1852_vm10, %v6123_v56  ;;  %9136 = vmatmul.msk.f32.vlgmr.msra.gmra.mxu2 %vm1917_vm11, %v6248_v9  ;;  %v6079_v9 = vld [vmem:[#allocation2 + $0x142] sm:$0xff] }
 0xbb0   : > { %6026 = vst.msk [vmem:[#allocation3 + $0x10] sm:$0xff] %vm1659_vm8, %v5933_v13  ;;  %v5749_v46 = vpop.permute.xlu2 %5748 }
 0xbb1   : > { %5838 = vst.msk [vmem:[#allocation3 + $0x30] sm:$0xff] %vm1466_vm7, %v5749_v46  ;;  %v5888_v46 = vld [vmem:[#allocation2 + $0x151] sm:$0xff] }
 0xbb4   : > { %6150 = vrot.lane.b32.xlu1 %v6071_v3, %s9249_s22 }
 0xbb5   : > { %5768 = vrot.lane.b32.xlu0 %v5688_v58, %s9247_s20  ;;  %v5887_v58 = vld [vmem:[#allocation2 + $0x141] sm:$0xff] }
 0xbb6   : > { %v6125_v45 = vpop.permute.xlu1 %6124  ;;  %v6249_v43 = vld [vmem:[#allocation3 + $0x8] sm:$0xff]  ;;  %6152 = vrot.lane.b32.xlu2 %v6072_v36, %s9249_s22 }
 0xbb7   : > { %v5935_v29 = vpop.permute.xlu0 %5934  ;;  %6218 = vst.msk [vmem:[#allocation3 + $0x10] sm:$0xff] %vm1852_vm10, %v6125_v45  ;;  %9137 = vmatmul.msk.f32.gmra.mxu2 %vm1917_vm11, %v6249_v43 }
 0xbb8   : > { %6027 = vst.msk [vmem:[#allocation3 + $0x18] sm:$0xff] %vm1659_vm8, %v5935_v29  ;;  %v5751_v50 = vpop.permute.xlu2 %5750 }
 0xbb9   : > { %5839 = vst.msk [vmem:[#allocation3 + $0x38] sm:$0xff] %vm1466_vm7, %v5751_v50  ;;  %v5697_v50 = vld [vmem:[#allocation2 + $0x158] sm:$0xff] }
 0xbbc   : > { %5960 = vrot.lane.b32.xlu1 %v5880_v0, %s9248_s21  ;;  %v5696_v0 = vld [vmem:[#allocation2 + $0x150] sm:$0xff] }
 0xbbd   : > { %5578 = vrot.lane.b32.xlu0 %v6071_v3, %s9246_s19 }
 0xbbe   : > { %v6127_v48 = vpop.permute.xlu1 %6126  ;;  %v6250_v15 = vld [vmem:[#allocation3 + $0x10] sm:$0xff]  ;;  %5962 = vrot.lane.b32.xlu2 %v5881_v18, %s9248_s21 }
 0xbbf   : > { %v5937_v27 = vpop.permute.xlu0 %5936  ;;  %6219 = vst.msk [vmem:[#allocation3 + $0x18] sm:$0xff] %vm1852_vm10, %v6127_v48  ;;  %9138 = vmatmul.msk.f32.gmra.mxu2 %vm1917_vm11, %v6250_v15 }
 0xbc0   : > { %6028 = vst.msk [vmem:[#allocation3 + $0x20] sm:$0xff] %vm1659_vm8, %v5937_v27  ;;  %v5753_v30 = vpop.permute.xlu2 %5752 }
 0xbc1   : > { %5840 = vst.msk [vmem:[#allocation3 + $0x40] sm:$0xff] %vm1466_vm7, %v5753_v30  ;;  %v6081_v30 = vld [vmem:[#allocation2 + $0x15a] sm:$0xff] }
 0xbc4   : > { %5770 = vrot.lane.b32.xlu1 %v5689_v54, %s9247_s20 }
 0xbc5   : > { %6154 = vrot.lane.b32.xlu0 %v6073_v34, %s9249_s22 }
 0xbc6   : > { %v6129_v39 = vpop.permute.xlu1 %6128  ;;  %v6251_v49 = vld [vmem:[#allocation3 + $0x18] sm:$0xff]  ;;  %5772 = vrot.lane.b32.xlu2 %v5690_v22, %s9247_s20 }
 0xbc7   : > { %v5939_v31 = vpop.permute.xlu0 %5938  ;;  %6220 = vst.msk [vmem:[#allocation3 + $0x20] sm:$0xff] %vm1852_vm10, %v6129_v39  ;;  %9139 = vmatmul.msk.f32.gmra.mxu2 %vm1917_vm11, %v6251_v49  ;;  %v5889_v49 = vld [vmem:[#allocation2 + $0x159] sm:$0xff] }
 0xbc8   : > { %6029 = vst.msk [vmem:[#allocation3 + $0x28] sm:$0xff] %vm1659_vm8, %v5939_v31  ;;  %v5755_v59 = vpop.permute.xlu2 %5754 }
 0xbc9   : > { %5841 = vst.msk [vmem:[#allocation3 + $0x48] sm:$0xff] %vm1466_vm7, %v5755_v59  ;;  %v5698_v59 = vld [vmem:[#allocation2 + $0x168] sm:$0xff] }
 0xbcc   : > { %5580 = vrot.lane.b32.xlu1 %v6072_v36, %s9246_s19 }
 0xbcd   : > { %5964 = vrot.lane.b32.xlu0 %v5882_v25, %s9248_s21 }
 0xbce   : > { %v6131_v57 = vpop.permute.xlu1 %6130  ;;  %v6252_v60 = vld [vmem:[#allocation3 + $0x20] sm:$0xff]  ;;  %5582 = vrot.lane.b32.xlu2 %v6073_v34, %s9246_s19 }
 0xbcf   : > { %v5941_v63 = vpop.permute.xlu0 %5940  ;;  %6221 = vst.msk [vmem:[#allocation3 + $0x28] sm:$0xff] %vm1852_vm10, %v6131_v57  ;;  %9140 = vmatmul.msk.f32.gmra.mxu2 %vm1917_vm11, %v6252_v60  ;;  %v6080_v34 = vld [vmem:[#allocation2 + $0x152] sm:$0xff]  ;;  %v6082_v60 = vld [vmem:[#allocation2 + $0x16a] sm:$0xff] }
 0xbd0   : > { %6030 = vst.msk [vmem:[#allocation3 + $0x30] sm:$0xff] %vm1659_vm8, %v5941_v63  ;;  %v5757_v52 = vpop.permute.xlu2 %5756 }
 0xbd1   : > { %5842 = vst.msk [vmem:[#allocation3 + $0x50] sm:$0xff] %vm1466_vm7, %v5757_v52  ;;  %v5699_v52 = vld [vmem:[#allocation2 + $0x170] sm:$0xff] }
 0xbd4   : > { %6156 = vrot.lane.b32.xlu1 %v6074_v7, %s9249_s22 }
 0xbd5   : > { %5774 = vrot.lane.b32.xlu0 %v5691_v38, %s9247_s20  ;;  %v5890_v38 = vld [vmem:[#allocation2 + $0x169] sm:$0xff] }
 0xbd6   : > { %v6133_v55 = vpop.permute.xlu1 %6132  ;;  %v6253_v12 = vld [vmem:[#allocation3 + $0x28] sm:$0xff]  ;;  %6158 = vrot.lane.b32.xlu2 %v6075_v33, %s9249_s22 }
 0xbd7   : > { %v5943_v4 = vpop.permute.xlu0 %5942  ;;  %6222 = vst.msk [vmem:[#allocation3 + $0x30] sm:$0xff] %vm1852_vm10, %v6133_v55  ;;  %9141 = vmatmul.msk.f32.gmra.mxu2 %vm1917_vm11, %v6253_v12  ;;  %v5891_v12 = vld [vmem:[#allocation2 + $0x171] sm:$0xff] }
 0xbd8   : > { %6031 = vst.msk [vmem:[#allocation3 + $0x38] sm:$0xff] %vm1659_vm8, %v5943_v4  ;;  %v5759_v10 = vpop.permute.xlu2 %5758 }
 0xbd9   : > { %5843 = vst.msk [vmem:[#allocation3 + $0x58] sm:$0xff] %vm1466_vm7, %v5759_v10  ;;  %v5700_v10 = vld [vmem:[#allocation2 + $0x180] sm:$0xff] }
 0xbdc   : > { %5966 = vrot.lane.b32.xlu1 %v5883_v2, %s9248_s21 }
 0xbdd   : > { %5584 = vrot.lane.b32.xlu0 %v6074_v7, %s9246_s19 }
 0xbde   : > { %v6135_v5 = vpop.permute.xlu1 %6134  ;;  %v6254_v17 = vld [vmem:[#allocation3 + $0x30] sm:$0xff]  ;;  %5968 = vrot.lane.b32.xlu2 %v5884_v62, %s9248_s21 }
 0xbdf   : > { %v5945_v24 = vpop.permute.xlu0 %5944  ;;  %6223 = vst.msk [vmem:[#allocation3 + $0x38] sm:$0xff] %vm1852_vm10, %v6135_v5  ;;  %9142 = vmatmul.msk.f32.gmra.mxu2 %vm1917_vm11, %v6254_v17 }
 0xbe0   : > { %6032 = vst.msk [vmem:[#allocation3 + $0x40] sm:$0xff] %vm1659_vm8, %v5945_v24  ;;  %v5761_v28 = vpop.permute.xlu2 %5760 }
 0xbe1   : > { %5844 = vst.msk [vmem:[#allocation3 + $0x60] sm:$0xff] %vm1466_vm7, %v5761_v28 }
 0xbe4   : > { %5776 = vrot.lane.b32.xlu1 %v5692_v21, %s9247_s20 }
 0xbe5   : > { %6160 = vrot.lane.b32.xlu0 %v6076_v35, %s9249_s22 }
 0xbe6   : > { %v6137_v20 = vpop.permute.xlu1 %6136  ;;  %v6255_v32 = vld [vmem:[#allocation3 + $0x38] sm:$0xff]  ;;  %5778 = vrot.lane.b32.xlu2 %v5693_v16, %s9247_s20 }
 0xbe7   : > { %v5947_v41 = vpop.permute.xlu0 %5946  ;;  %6224 = vst.msk [vmem:[#allocation3 + $0x40] sm:$0xff] %vm1852_vm10, %v6137_v20  ;;  %9143 = vmatmul.msk.f32.gmra.mxu2 %vm1917_vm11, %v6255_v32  ;;  %v5892_v32 = vld [vmem:[#allocation2 + $0x181] sm:$0xff] }
 0xbe8   : > { %6033 = vst.msk [vmem:[#allocation3 + $0x48] sm:$0xff] %vm1659_vm8, %v5947_v41  ;;  %v5571_v37 = vpop.permute.xlu2 %5570 }
 0xbe9   : > { %5653 = vst.msk [vmem:[#allocation3 + $0x68] sm:$0xff] %vm1272_vm6, %v5571_v37  ;;  %v6085_v37 = vld [vmem:[#allocation2 + $0x18a] sm:$0xff] }
 0xbec   : > { %5586 = vrot.lane.b32.xlu1 %v6075_v33, %s9246_s19 }
 0xbed   : > { %5970 = vrot.lane.b32.xlu0 %v5885_v14, %s9248_s21  ;;  %v6084_v14 = vld [vmem:[#allocation2 + $0x182] sm:$0xff] }
 0xbee   : > { %v6139_v42 = vpop.permute.xlu1 %6138  ;;  %v6256_v11 = vld [vmem:[#allocation3 + $0x40] sm:$0xff]  ;;  %5588 = vrot.lane.b32.xlu2 %v6076_v35, %s9246_s19 }
 0xbef   : > { %v5949_v53 = vpop.permute.xlu0 %5948  ;;  %6225 = vst.msk [vmem:[#allocation3 + $0x48] sm:$0xff] %vm1852_vm10, %v6139_v42  ;;  %9144 = vmatmul.msk.f32.gmra.mxu2 %vm1917_vm11, %v6256_v11  ;;  %v6083_v35 = vld [vmem:[#allocation2 + $0x172] sm:$0xff] }
 0xbf0   : > { %6034 = vst.msk [vmem:[#allocation3 + $0x50] sm:$0xff] %vm1659_vm8, %v5949_v53  ;;  %v6147_v23 = vpop.permute.xlu2 %6146 }
 0xbf4   : > { %6162 = vrot.lane.b32.xlu1 %v6077_v1, %s9249_s22 }
 0xbf5   : > { %5780 = vrot.lane.b32.xlu0 %v5694_v6, %s9247_s20  ;;  %v5701_v6 = vld [vmem:[#allocation2 + $0x188] sm:$0xff] }
 0xbf6   : > { %v6141_v8 = vpop.permute.xlu1 %6140  ;;  %v6257_v47 = vld [vmem:[#allocation3 + $0x48] sm:$0xff]  ;;  %6164 = vrot.lane.b32.xlu2 %v6078_v26, %s9249_s22 }
 0xbf7   : > { %v5951_v19 = vpop.permute.xlu0 %5950  ;;  %6226 = vst.msk [vmem:[#allocation3 + $0x50] sm:$0xff] %vm1852_vm10, %v6141_v8  ;;  %9145 = vmatmul.msk.f32.gmra.mxu2 %vm1917_vm11, %v6257_v47 }
 0xbf8   : > { %6035 = vst.msk [vmem:[#allocation3 + $0x58] sm:$0xff] %vm1659_vm8, %v5951_v19  ;;  %v5957_v56 = vpop.permute.xlu2 %5956 }
 0xbfc   : > { %5972 = vrot.lane.b32.xlu1 %v5886_v44, %s9248_s21  ;;  %v5894_v44 = vld [vmem:[#allocation2 + $0x199] sm:$0xff] }
 0xbfd   : > { %5590 = vrot.lane.b32.xlu0 %v6077_v1, %s9246_s19  ;;  %v5893_v1 = vld [vmem:[#allocation2 + $0x189] sm:$0xff] }
 0xbfe   : > { %v6143_v61 = vpop.permute.xlu1 %6142  ;;  %v6258_v13 = vld [vmem:[#allocation3 + $0x50] sm:$0xff]  ;;  %5974 = vrot.lane.b32.xlu2 %v5887_v58, %s9248_s21 }
 0xbff   : > { %v5953_v40 = vpop.permute.xlu0 %5952  ;;  %6227 = vst.msk [vmem:[#allocation3 + $0x58] sm:$0xff] %vm1852_vm10, %v6143_v61  ;;  %9146 = vmatmul.msk.f32.gmra.mxu2 %vm1917_vm11, %v6258_v13  ;;  %v6086_v58 = vld [vmem:[#allocation2 + $0x19a] sm:$0xff] }
 0xc00   : > { %6036 = vst.msk [vmem:[#allocation3 + $0x60] sm:$0xff] %vm1659_vm8, %v5953_v40  ;;  %v5767_v43 = vpop.permute.xlu2 %5766 }
 0xc04   : > { %5782 = vrot.lane.b32.xlu1 %v5695_v51, %s9247_s20  ;;  %v5703_v51 = vld [vmem:[#allocation2 + $0x1a0] sm:$0xff] }
 0xc05   : > { %6166 = vrot.lane.b32.xlu0 %v6079_v9, %s9249_s22 }
 0xc06   : > { %v6145_v29 = vpop.permute.xlu1 %6144  ;;  %v6259_v45 = vld [vmem:[#allocation3 + $0x58] sm:$0xff]  ;;  %5784 = vrot.lane.b32.xlu2 %v5696_v0, %s9247_s20 }
 0xc07   : > { %v5763_v3 = vpop.permute.xlu0 %5762  ;;  %6228 = vst.msk [vmem:[#allocation3 + $0x60] sm:$0xff] %vm1852_vm10, %v6145_v29  ;;  %9147 = vmatmul.msk.f32.gmra.mxu2 %vm1917_vm11, %v6259_v45 }
 0xc08   : > { %5845 = vst.msk [vmem:[#allocation3 + $0x68] sm:$0xff] %vm1466_vm7, %v5763_v3  ;;  %v5577_v15 = vpop.permute.xlu2 %5576 }
 0xc09   : > { %5656 = vst.msk [vmem:[#allocation3 + $0x80] sm:$0xff] %vm1272_vm6, %v5577_v15 }
 0xc0c   : > { %5592 = vrot.lane.b32.xlu1 %v6078_v26, %s9246_s19  ;;  %v5702_v26 = vld [vmem:[#allocation2 + $0x198] sm:$0xff] }
 0xc0d   : > { %5976 = vrot.lane.b32.xlu0 %v5888_v46, %s9248_s21  ;;  %v5895_v46 = vld [vmem:[#allocation2 + $0x1a1] sm:$0xff] }
 0xc0e   : > { %v5955_v27 = vpop.permute.xlu1 %5954  ;;  %v6260_v48 = vld [vmem:[#allocation3 + $0x60] sm:$0xff]  ;;  %5594 = vrot.lane.b32.xlu2 %v6079_v9, %s9246_s19 }
 0xc0f   : > { %v5573_v36 = vpop.permute.xlu0 %5572  ;;  %6037 = vst.msk [vmem:[#allocation3 + $0x68] sm:$0xff] %vm1659_vm8, %v5955_v27  ;;  %9148 = vmatmul.msk.f32.gmra.mxu2 %vm1917_vm11, %v6260_v48 }
 0xc10   : > { %5654 = vst.msk [vmem:[#allocation3 + $0x70] sm:$0xff] %vm1272_vm6, %v5573_v36  ;;  %v6153_v31 = vpop.permute.xlu2 %6152  ;;  %v6087_v36 = vld [vmem:[#allocation2 + $0x1a2] sm:$0xff] }
 0xc11   : > { %6229 = vst.msk [vmem:[#allocation3 + $0x68] sm:$0xff] %vm1852_vm10, %v6147_v23 }
 0xc14   : > { %6168 = vrot.lane.b32.xlu1 %v6080_v34, %s9249_s22 }
 0xc15   : > { %5786 = vrot.lane.b32.xlu0 %v5697_v50, %s9247_s20 }
 0xc16   : > { %v5765_v18 = vpop.permute.xlu1 %5764  ;;  %6170 = vrot.lane.b32.xlu2 %v6081_v30, %s9249_s22 }
 0xc17   : > { %v6149_v54 = vpop.permute.xlu0 %6148  ;;  %5846 = vst.msk [vmem:[#allocation3 + $0x70] sm:$0xff] %vm1466_vm7, %v5765_v18 }
 0xc18   : > { %6038 = vst.msk [vmem:[#allocation3 + $0x70] sm:$0xff] %vm1659_vm8, %v5957_v56  ;;  %v6261_v39 = vld [vmem:[#allocation3 + $0x68] sm:$0xff]  ;;  %v5963_v63 = vpop.permute.xlu2 %5962 }
 0xc19   : > { %6230 = vst.msk [vmem:[#allocation3 + $0x70] sm:$0xff] %vm1852_vm10, %v6149_v54  ;;  %9149 = vmatmul.msk.f32.gmra.mxu2 %vm1917_vm11, %v6261_v39 }
 0xc1c   : > { %5978 = vrot.lane.b32.xlu1 %v5889_v49, %s9248_s21 }
 0xc1d   : > { %5596 = vrot.lane.b32.xlu0 %v6080_v34, %s9246_s19 }
 0xc1e   : > { %v5575_v22 = vpop.permute.xlu1 %5574  ;;  %5980 = vrot.lane.b32.xlu2 %v5890_v38, %s9248_s21 }
 0xc1f   : > { %v5959_v25 = vpop.permute.xlu0 %5958  ;;  %5655 = vst.msk [vmem:[#allocation3 + $0x78] sm:$0xff] %vm1272_vm6, %v5575_v22 }
 0xc20   : > { %5847 = vst.msk [vmem:[#allocation3 + $0x78] sm:$0xff] %vm1466_vm7, %v5767_v43  ;;  %v6262_v57 = vld [vmem:[#allocation3 + $0x70] sm:$0xff]  ;;  %v5773_v55 = vpop.permute.xlu2 %5772 }
 0xc21   : > { %6039 = vst.msk [vmem:[#allocation3 + $0x78] sm:$0xff] %vm1659_vm8, %v5959_v25  ;;  %9150 = vmatmul.msk.f32.gmra.mxu2 %vm1917_vm11, %v6262_v57 }
 0xc24   : > { %5788 = vrot.lane.b32.xlu1 %v5698_v59, %s9247_s20 }
 0xc25   : > { %6172 = vrot.lane.b32.xlu0 %v6082_v60, %s9249_s22 }
 0xc26   : > { %v6151_v4 = vpop.permute.xlu1 %6150  ;;  %5790 = vrot.lane.b32.xlu2 %v5699_v52, %s9247_s20 }
 0xc27   : > { %v5769_v7 = vpop.permute.xlu0 %5768  ;;  %6231 = vst.msk [vmem:[#allocation3 + $0x78] sm:$0xff] %vm1852_vm10, %v6151_v4 }
 0xc28   : > { %5848 = vst.msk [vmem:[#allocation3 + $0x80] sm:$0xff] %vm1466_vm7, %v5769_v7  ;;  %v5583_v5 = vpop.permute.xlu2 %5582 }
 0xc29   : > { %5659 = vst.msk [vmem:[#allocation3 + $0x98] sm:$0xff] %vm1272_vm6, %v5583_v5 }
 0xc2c   : > { %5598 = vrot.lane.b32.xlu1 %v6081_v30, %s9246_s19 }
 0xc2d   : > { %5982 = vrot.lane.b32.xlu0 %v5891_v12, %s9248_s21 }
 0xc2e   : > { %v5961_v33 = vpop.permute.xlu1 %5960  ;;  %v6263_v24 = vld [vmem:[#allocation3 + $0x78] sm:$0xff]  ;;  %5600 = vrot.lane.b32.xlu2 %v6082_v60, %s9246_s19 }
 0xc2f   : > { %v5579_v2 = vpop.permute.xlu0 %5578  ;;  %6040 = vst.msk [vmem:[#allocation3 + $0x80] sm:$0xff] %vm1659_vm8, %v5961_v33  ;;  %9151 = vmatmul.msk.f32.gmra.mxu2 %vm1917_vm11, %v6263_v24 }
 0xc30   : > { %5657 = vst.msk [vmem:[#allocation3 + $0x88] sm:$0xff] %vm1272_vm6, %v5579_v2  ;;  %v6159_v41 = vpop.permute.xlu2 %6158 }
 0xc31   : > { %6232 = vst.msk [vmem:[#allocation3 + $0x80] sm:$0xff] %vm1852_vm10, %v6153_v31 }
 0xc32   : > { %v13382_v17 = vpop.f32.mrf.mxu2 }
 0xc34   : > { %6174 = vrot.lane.b32.xlu1 %v6083_v35, %s9249_s22 }
 0xc35   : > { %5792 = vrot.lane.b32.xlu0 %v5700_v10, %s9247_s20 }
 0xc36   : > { %v5771_v62 = vpop.permute.xlu1 %5770  ;;  %6176 = vrot.lane.b32.xlu2 %v6084_v14, %s9249_s22 }
 0xc37   : > { %v6155_v21 = vpop.permute.xlu0 %6154  ;;  %5849 = vst.msk [vmem:[#allocation3 + $0x88] sm:$0xff] %vm1466_vm7, %v5771_v62 }
 0xc38   : > { %6041 = vst.msk [vmem:[#allocation3 + $0x88] sm:$0xff] %vm1659_vm8, %v5963_v63  ;;  %v6264_v20 = vld [vmem:[#allocation3 + $0x80] sm:$0xff]  ;;  %v5969_v42 = vpop.permute.xlu2 %5968 }
 0xc39   : > { %6233 = vst.msk [vmem:[#allocation3 + $0x88] sm:$0xff] %vm1852_vm10, %v6155_v21  ;;  %9152 = vmatmul.msk.f32.gmra.mxu2 %vm1917_vm11, %v6264_v20 }
 0xc3a   : > { %v13392_v28 = vpop.f32.mrf.mxu2 }
 0xc3c   : > { %5984 = vrot.lane.b32.xlu1 %v5892_v32, %s9248_s21 }
 0xc3d   : > { %5602 = vrot.lane.b32.xlu0 %v6083_v35, %s9246_s19 }
 0xc3e   : > { %v5581_v53 = vpop.permute.xlu1 %5580  ;;  %5986 = vrot.lane.b32.xlu2 %v5893_v1, %s9248_s21 }
 0xc3f   : > { %v5965_v16 = vpop.permute.xlu0 %5964  ;;  %5658 = vst.msk [vmem:[#allocation3 + $0x90] sm:$0xff] %vm1272_vm6, %v5581_v53 }
 0xc40   : > { %5850 = vst.msk [vmem:[#allocation3 + $0x90] sm:$0xff] %vm1466_vm7, %v5773_v55  ;;  %v6265_v11 = vld [vmem:[#allocation3 + $0x88] sm:$0xff]  ;;  %v5779_v23 = vpop.permute.xlu2 %5778 }
 0xc41   : > { %6042 = vst.msk [vmem:[#allocation3 + $0x90] sm:$0xff] %vm1659_vm8, %v5965_v16  ;;  %9153 = vmatmul.msk.f32.gmra.mxu2 %vm1917_vm11, %v6265_v11 }
 0xc42   : > { %v13403_v8 = vpop.f32.mrf.mxu2 }
 0xc44   : > { %5794 = vrot.lane.b32.xlu1 %v5701_v6, %s9247_s20 }
 0xc45   : > { %6178 = vrot.lane.b32.xlu0 %v6085_v37, %s9249_s22 }
 0xc46   : > { %v6157_v47 = vpop.permute.xlu1 %6156  ;;  %5796 = vrot.lane.b32.xlu2 %v5702_v26, %s9247_s20 }
 0xc47   : > { %v5775_v19 = vpop.permute.xlu0 %5774  ;;  %6234 = vst.msk [vmem:[#allocation3 + $0x90] sm:$0xff] %vm1852_vm10, %v6157_v47 }
 0xc48   : > { %5851 = vst.msk [vmem:[#allocation3 + $0x98] sm:$0xff] %vm1466_vm7, %v5775_v19  ;;  %v5589_v56 = vpop.permute.xlu2 %5588 }
 0xc49   : > { %5662 = vst.msk [vmem:[#allocation3 + $0xb0] sm:$0xff] %vm1272_vm6, %v5589_v56 }
 0xc4a   : > { %v13413_v9 = vpop.f32.mrf.mxu2 }
 0xc4c   : > { %5604 = vrot.lane.b32.xlu1 %v6084_v14, %s9246_s19 }
 0xc4d   : > { %5988 = vrot.lane.b32.xlu0 %v5894_v44, %s9248_s21 }
 0xc4e   : > { %v5967_v61 = vpop.permute.xlu1 %5966  ;;  %v6266_v13 = vld [vmem:[#allocation3 + $0x90] sm:$0xff]  ;;  %5606 = vrot.lane.b32.xlu2 %v6085_v37, %s9246_s19 }
 0xc4f   : > { %v5585_v40 = vpop.permute.xlu0 %5584  ;;  %6043 = vst.msk [vmem:[#allocation3 + $0x98] sm:$0xff] %vm1659_vm8, %v5967_v61  ;;  %9154 = vmatmul.msk.f32.gmra.mxu2 %vm1917_vm11, %v6266_v13 }
 0xc50   : > { %5660 = vst.msk [vmem:[#allocation3 + $0xa0] sm:$0xff] %vm1272_vm6, %v5585_v40  ;;  %v6165_v45 = vpop.permute.xlu2 %6164 }
 0xc51   : > { %6235 = vst.msk [vmem:[#allocation3 + $0x98] sm:$0xff] %vm1852_vm10, %v6159_v41 }
 0xc52   : > { %v13424_v0 = vpop.f32.mrf.mxu2 }
 0xc54   : > { %6180 = vrot.lane.b32.xlu1 %v6086_v58, %s9249_s22 }
 0xc55   : > { %5798 = vrot.lane.b32.xlu0 %v5703_v51, %s9247_s20 }
 0xc56   : > { %v5777_v29 = vpop.permute.xlu1 %5776  ;;  %6182 = vrot.lane.b32.xlu2 %v6087_v36, %s9249_s22 }
 0xc57   : > { %v6161_v3 = vpop.permute.xlu0 %6160  ;;  %5852 = vst.msk [vmem:[#allocation3 + $0xa0] sm:$0xff] %vm1466_vm7, %v5777_v29 }
 0xc58   : > { %6044 = vst.msk [vmem:[#allocation3 + $0xa0] sm:$0xff] %vm1659_vm8, %v5969_v42  ;;  %v6267_v43 = vld [vmem:[#allocation3 + $0x98] sm:$0xff]  ;;  %v5975_v15 = vpop.permute.xlu2 %5974 }
 0xc59   : > { %6236 = vst.msk [vmem:[#allocation3 + $0xa0] sm:$0xff] %vm1852_vm10, %v6161_v3  ;;  %9155 = vmatmul.msk.f32.gmra.mxu2 %vm1917_vm11, %v6267_v43 }
 0xc5a   : > { %v13432_v34 = vpop.f32.mrf.mxu2 }
 0xc5c   : > { %5990 = vrot.lane.b32.xlu1 %v5895_v46, %s9248_s21 }
 0xc5e   : > { %v5587_v48 = vpop.permute.xlu1 %5586 }
 0xc5f   : > { %v5971_v27 = vpop.permute.xlu0 %5970  ;;  %5661 = vst.msk [vmem:[#allocation3 + $0xa8] sm:$0xff] %vm1272_vm6, %v5587_v48 }
 0xc60   : > { %5853 = vst.msk [vmem:[#allocation3 + $0xa8] sm:$0xff] %vm1466_vm7, %v5779_v23  ;;  %v6268_v50 = vld [vmem:[#allocation3 + $0xa0] sm:$0xff]  ;;  %v5785_v31 = vpop.permute.xlu2 %5784 }
 0xc61   : > { %6045 = vst.msk [vmem:[#allocation3 + $0xa8] sm:$0xff] %vm1659_vm8, %v5971_v27  ;;  %9156 = vmatmul.msk.f32.gmra.mxu2 %vm1917_vm11, %v6268_v50 }
 0xc62   : > { %v13436_v49 = vpop.f32.mrf.mxu2 }
 0xc66   : > { %v6163_v18 = vpop.permute.xlu1 %6162 }
 0xc67   : > { %v5781_v54 = vpop.permute.xlu0 %5780  ;;  %6237 = vst.msk [vmem:[#allocation3 + $0xa8] sm:$0xff] %vm1852_vm10, %v6163_v18 }
 0xc68   : > { %5854 = vst.msk [vmem:[#allocation3 + $0xb0] sm:$0xff] %vm1466_vm7, %v5781_v54  ;;  %v5595_v22 = vpop.permute.xlu2 %5594 }
 0xc69   : > { %5665 = vst.msk [vmem:[#allocation3 + $0xc8] sm:$0xff] %vm1272_vm6, %v5595_v22 }
 0xc6a   : > { %v13444_v59 = vpop.f32.mrf.mxu2 }
 0xc6e   : > { %v5973_v30 = vpop.permute.xlu1 %5972  ;;  %v6269_v25 = vld [vmem:[#allocation3 + $0xa8] sm:$0xff] }
 0xc6f   : > { %v5591_v39 = vpop.permute.xlu0 %5590  ;;  %6046 = vst.msk [vmem:[#allocation3 + $0xb0] sm:$0xff] %vm1659_vm8, %v5973_v30  ;;  %9157 = vmatmul.msk.f32.gmra.mxu2 %vm1917_vm11, %v6269_v25 }
 0xc70   : > { %5663 = vst.msk [vmem:[#allocation3 + $0xb8] sm:$0xff] %vm1272_vm6, %v5591_v39  ;;  %v6171_v60 = vpop.permute.xlu2 %6170 }
 0xc71   : > { %6238 = vst.msk [vmem:[#allocation3 + $0xb0] sm:$0xff] %vm1852_vm10, %v6165_v45 }
 0xc72   : > { %v13453_v52 = vpop.f32.mrf.mxu2 }
 0xc76   : > { %v5783_v57 = vpop.permute.xlu1 %5782 }
 0xc77   : > { %v6167_v63 = vpop.permute.xlu0 %6166  ;;  %5855 = vst.msk [vmem:[#allocation3 + $0xb8] sm:$0xff] %vm1466_vm7, %v5783_v57 }
 0xc78   : > { %6047 = vst.msk [vmem:[#allocation3 + $0xb8] sm:$0xff] %vm1659_vm8, %v5975_v15  ;;  %v6270_v38 = vld [vmem:[#allocation3 + $0xb0] sm:$0xff]  ;;  %v5981_v55 = vpop.permute.xlu2 %5980 }
 0xc79   : > { %6239 = vst.msk [vmem:[#allocation3 + $0xb8] sm:$0xff] %vm1852_vm10, %v6167_v63  ;;  %9158 = vmatmul.msk.f32.gmra.mxu2 %vm1917_vm11, %v6270_v38  ;;  %v6493_v38 = vsel %vm144_vm0, %v13392_v28, 0.0 }
 0xc7a   : > { %v13457_v5 = vpop.f32.mrf.mxu2 }
 0xc7e   : > { %v5593_v4 = vpop.permute.xlu1 %5592 }
 0xc7f   : > { %v5977_v7 = vpop.permute.xlu0 %5976  ;;  %5664 = vst.msk [vmem:[#allocation3 + $0xc0] sm:$0xff] %vm1272_vm6, %v5593_v4  ;;  %v6495_v4 = vsel %vm144_vm0, %v13403_v8, 0.0 }
 0xc80   : > { %5856 = vst.msk [vmem:[#allocation3 + $0xc0] sm:$0xff] %vm1466_vm7, %v5785_v31  ;;  %v6271_v12 = vld [vmem:[#allocation3 + $0xb8] sm:$0xff]  ;;  %v5791_v24 = vpop.permute.xlu2 %5790 }
 0xc81   : > { %6048 = vst.msk [vmem:[#allocation3 + $0xc0] sm:$0xff] %vm1659_vm8, %v5977_v7  ;;  %9159 = vmatmul.msk.f32.gmra.mxu2 %vm1917_vm11, %v6271_v12  ;;  %v6492_v7 = vsel %vm144_vm0, %v13382_v17, 0.0  ;;  %v6497_v12 = vsel %vm144_vm0, %v13413_v9, 0.0 }
 0xc82   : > { %v13464_v20 = vpop.f32.mrf.mxu2 }
 0xc86   : > { %v6169_v33 = vpop.permute.xlu1 %6168 }
 0xc87   : > { %v5787_v2 = vpop.permute.xlu0 %5786  ;;  %6240 = vst.msk [vmem:[#allocation3 + $0xc0] sm:$0xff] %vm1852_vm10, %v6169_v33  ;;  %v6499_v33 = vsel %vm144_vm0, %v13424_v0, 0.0 }
 0xc88   : > { %5857 = vst.msk [vmem:[#allocation3 + $0xc8] sm:$0xff] %vm1466_vm7, %v5787_v2  ;;  %v5601_v62 = vpop.permute.xlu2 %5600 }
 0xc89   : > { %5668 = vst.msk [vmem:[#allocation3 + $0xe0] sm:$0xff] %vm1272_vm6, %v5601_v62  ;;  %v6503_v62 = vsel %vm144_vm0, %v13436_v49, 0.0 }
 0xc8a   : > { %v13471_v37 = vpop.f32.mrf.mxu2 }
 0xc8e   : > { %v5979_v35 = vpop.permute.xlu1 %5978  ;;  %v6272_v21 = vld [vmem:[#allocation3 + $0xc0] sm:$0xff] }
 0xc8f   : > { %v5597_v10 = vpop.permute.xlu0 %5596  ;;  %6049 = vst.msk [vmem:[#allocation3 + $0xc8] sm:$0xff] %vm1659_vm8, %v5979_v35  ;;  %9160 = vmatmul.msk.f32.gmra.mxu2 %vm1917_vm11, %v6272_v21  ;;  %v6501_v35 = vsel %vm144_vm0, %v13432_v34, 0.0 }
 0xc90   : > { %5666 = vst.msk [vmem:[#allocation3 + $0xd0] sm:$0xff] %vm1272_vm6, %v5597_v10  ;;  %v6177_v14 = vpop.permute.xlu2 %6176 }
 0xc91   : > { %6241 = vst.msk [vmem:[#allocation3 + $0xc8] sm:$0xff] %vm1852_vm10, %v6171_v60 }
 0xc92   : > { %v13478_v23 = vpop.f32.mrf.mxu2 }
 0xc96   : > { %v5789_v32 = vpop.permute.xlu1 %5788 }
 0xc97   : > { %v6173_v41 = vpop.permute.xlu0 %6172  ;;  %5858 = vst.msk [vmem:[#allocation3 + $0xd0] sm:$0xff] %vm1466_vm7, %v5789_v32  ;;  %v6505_v32 = vsel %vm144_vm0, %v13444_v59, 0.0 }
 0xc98   : > { %6050 = vst.msk [vmem:[#allocation3 + $0xd0] sm:$0xff] %vm1659_vm8, %v5981_v55  ;;  %v6273_v16 = vld [vmem:[#allocation3 + $0xc8] sm:$0xff]  ;;  %v5987_v11 = vpop.permute.xlu2 %5986  ;;  %v6494_v55 = vadd.f32 %v6493_v38, %v6492_v7 }
 0xc99   : > { %6242 = vst.msk [vmem:[#allocation3 + $0xd0] sm:$0xff] %vm1852_vm10, %v6173_v41  ;;  %9161 = vmatmul.msk.f32.gmra.mxu2 %vm1917_vm11, %v6273_v16  ;;  %v6507_v16 = vsel %vm144_vm0, %v13453_v52, 0.0 }
 0xc9a   : > { %v6496_v2 = vadd.f32 %v6495_v4, %v6494_v55 }
 0xc9c   : > { %v13485_v13 = vpop.f32.mrf.mxu2  ;;  %v6498_v10 = vadd.f32 %v6497_v12, %v6496_v2 }
 0xc9e   : > { %v5599_v42 = vpop.permute.xlu1 %5598  ;;  %v6500_v21 = vadd.f32 %v6499_v33, %v6498_v10 }
 0xc9f   : > { %v5983_v53 = vpop.permute.xlu0 %5982  ;;  %5667 = vst.msk [vmem:[#allocation3 + $0xd8] sm:$0xff] %vm1272_vm6, %v5599_v42  ;;  %v6509_v42 = vsel %vm144_vm0, %v13457_v5, 0.0 }
 0xca0   : > { %5859 = vst.msk [vmem:[#allocation3 + $0xd8] sm:$0xff] %vm1466_vm7, %v5791_v24  ;;  %v6274_v6 = vld [vmem:[#allocation3 + $0xd0] sm:$0xff]  ;;  %v5797_v47 = vpop.permute.xlu2 %5796  ;;  %v6502_v41 = vadd.f32 %v6501_v35, %v6500_v21 }
 0xca1   : > { %6051 = vst.msk [vmem:[#allocation3 + $0xd8] sm:$0xff] %vm1659_vm8, %v5983_v53  ;;  %9162 = vmatmul.msk.f32.gmra.mxu2 %vm1917_vm11, %v6274_v6 }
 0xca4   : > { %v13491_v29 = vpop.f32.mrf.mxu2 }
 0xca6   : > { %v6175_v19 = vpop.permute.xlu1 %6174 }
 0xca7   : > { %v5793_v1 = vpop.permute.xlu0 %5792  ;;  %6243 = vst.msk [vmem:[#allocation3 + $0xd8] sm:$0xff] %vm1852_vm10, %v6175_v19 }
 0xca8   : > { %5860 = vst.msk [vmem:[#allocation3 + $0xe0] sm:$0xff] %vm1466_vm7, %v5793_v1  ;;  %v5607_v61 = vpop.permute.xlu2 %5606  ;;  %v6511_v1 = vsel %vm144_vm0, %v13464_v20, 0.0 }
 0xca9   : > { %5671 = vst.msk [vmem:[#allocation3 + $0xf8] sm:$0xff] %vm1272_vm6, %v5607_v61  ;;  %v6517_v61 = vsel %vm144_vm0, %v13485_v13, 0.0 }
 0xcae   : > { %v5985_v26 = vpop.permute.xlu1 %5984  ;;  %v6275_v40 = vld [vmem:[#allocation3 + $0xd8] sm:$0xff] }
 0xcaf   : > { %v5603_v44 = vpop.permute.xlu0 %5602  ;;  %6052 = vst.msk [vmem:[#allocation3 + $0xe0] sm:$0xff] %vm1659_vm8, %v5985_v26  ;;  %9163 = vmatmul.msk.f32.gmra.mxu2 %vm1917_vm11, %v6275_v40  ;;  %v6515_v26 = vsel %vm144_vm0, %v13478_v23, 0.0 }
 0xcb0   : > { %5669 = vst.msk [vmem:[#allocation3 + $0xe8] sm:$0xff] %vm1272_vm6, %v5603_v44  ;;  %v6183_v48 = vpop.permute.xlu2 %6182 }
 0xcb1   : > { %6244 = vst.msk [vmem:[#allocation3 + $0xe0] sm:$0xff] %vm1852_vm10, %v6177_v14  ;;  %v6504_v14 = vadd.f32 %v6503_v62, %v6502_v41 }
 0xcb2   : > { %v13497_v36 = vpop.f32.mrf.mxu2 }
 0xcb3   : > { %v6506_v53 = vadd.f32 %v6505_v32, %v6504_v14 }
 0xcb5   : > { %v6508_v6 = vadd.f32 %v6507_v16, %v6506_v53 }
 0xcb6   : > { %v5795_v51 = vpop.permute.xlu1 %5794 }
 0xcb7   : > { %v6179_v56 = vpop.permute.xlu0 %6178  ;;  %5861 = vst.msk [vmem:[#allocation3 + $0xe8] sm:$0xff] %vm1466_vm7, %v5795_v51  ;;  %v6510_v19 = vadd.f32 %v6509_v42, %v6508_v6 }
 0xcb8   : > { %6053 = vst.msk [vmem:[#allocation3 + $0xe8] sm:$0xff] %vm1659_vm8, %v5987_v11  ;;  %v6276_v58 = vld [vmem:[#allocation3 + $0xe0] sm:$0xff] }
 0xcb9   : > { %6245 = vst.msk [vmem:[#allocation3 + $0xe8] sm:$0xff] %vm1852_vm10, %v6179_v56  ;;  %9164 = vmatmul.msk.f32.gmra.mxu2 %vm1917_vm11, %v6276_v58  ;;  %v6512_v44 = vadd.f32 %v6511_v1, %v6510_v19  ;;  %v6519_v58 = vsel %vm144_vm0, %v13491_v29, 0.0 }
 0xcbc   : > { %v13503_v54 = vpop.f32.mrf.mxu2 }
 0xcbe   : > { %v5605_v45 = vpop.permute.xlu1 %5604 }
 0xcbf   : > { %v5989_v3 = vpop.permute.xlu0 %5988  ;;  %5670 = vst.msk [vmem:[#allocation3 + $0xf0] sm:$0xff] %vm1272_vm6, %v5605_v45  ;;  %v6521_v45 = vsel %vm144_vm0, %v13497_v36, 0.0 }
 0xcc0   : > { %5862 = vst.msk [vmem:[#allocation3 + $0xf0] sm:$0xff] %vm1466_vm7, %v5797_v47  ;;  %v6277_v43 = vld [vmem:[#allocation3 + $0xe8] sm:$0xff]  ;;  %v6513_v47 = vsel %vm144_vm0, %v13471_v37, 0.0 }
 0xcc1   : > { %9165 = vmatmul.msk.f32.gmra.mxu2 %vm1917_vm11, %v6277_v43  ;;  %6054 = vst.msk [vmem:[#allocation3 + $0xf0] sm:$0xff] %vm1659_vm8, %v5989_v3  ;;  %v6514_v40 = vadd.f32 %v6513_v47, %v6512_v44 }
 0xcc3   : > { %v6516_v51 = vadd.f32 %v6515_v26, %v6514_v40 }
 0xcc4   : > { %v13507_v31 = vpop.f32.mrf.mxu2 }
 0xcc5   : > { %v6518_v3 = vadd.f32 %v6517_v61, %v6516_v51 }
 0xcc6   : > { %v6181_v27 = vpop.permute.xlu1 %6180 }
 0xcc7   : > { %v5799_v46 = vpop.permute.xlu0 %5798  ;;  %6246 = vst.msk [vmem:[#allocation3 + $0xf0] sm:$0xff] %vm1852_vm10, %v6181_v27  ;;  %v6520_v43 = vadd.f32 %v6519_v58, %v6518_v3 }
 0xcc8   : > { %5863 = vst.msk [vmem:[#allocation3 + $0xf8] sm:$0xff] %vm1466_vm7, %v5799_v46  ;;  %v6523_v46 = vsel %vm144_vm0, %v13503_v54, 0.0 }
 0xcc9   : > { %v6522_v27 = vadd.f32 %v6521_v45, %v6520_v43 }
 0xcce   : > { %v5991_v15 = vpop.permute.xlu1 %5990  ;;  %v6278_v50 = vld [vmem:[#allocation3 + $0xf0] sm:$0xff] }
 0xccf   : > { %6055 = vst.msk [vmem:[#allocation3 + $0xf8] sm:$0xff] %vm1659_vm8, %v5991_v15  ;;  %9166 = vmatmul.msk.f32.gmra.mxu2 %vm1917_vm11, %v6278_v50  ;;  %v6524_v15 = vadd.f32 %v6523_v46, %v6522_v27 }
 0xcd0   : > { %6247 = vst.msk [vmem:[#allocation3 + $0xf8] sm:$0xff] %vm1852_vm10, %v6183_v48  ;;  %v6525_v48 = vsel %vm144_vm0, %v13507_v31, 0.0 }
 0xcd1   : > { %v6526_v38 = vadd.f32 %v6525_v48, %v6524_v15 }
 0xcd2   : > { %v13509_v39 = vpop.f32.mrf.mxu2 }
 0xcd3   : > { %v6527_v50 = vsel %vm144_vm0, %v13509_v39, 0.0 }
 0xcd4   : > { %v6528_v4 = vadd.f32 %v6527_v50, %v6526_v38 }
 0xcd7   : > { %v6279_v18 = vld [vmem:[#allocation3 + $0xf8] sm:$0xff] }
 0xcd8   : > { %9167 = vmatmul.msk.f32.gmra.mxu2 %vm1917_vm11, %v6279_v18 }
 0xcdc   : > { %v13511_v30 = vpop.f32.mrf.mxu2 }
 0xcdd   : > { %v6529_v7 = vsel %vm144_vm0, %v13511_v30, 0.0 }
 0xcde   : > { %v6530_v12 = vadd.f32 %v6529_v7, %v6528_v4  ;;  %v15698_v4 = vld [vmem:[#allocation38_spill] sm:$0xff] }
 0xce4   : > { %v13513_v25 = vpop.f32.mrf.mxu2 }
 0xce5   : > { %v6531_v55 = vsel %vm144_vm0, %v13513_v25, 0.0 }
 0xce6   : > { %v6532_v33 = vadd.f32 %v6531_v55, %v6530_v12 }
 0xcf2   : > { %v13515_v22 = vpop.f32.mrf.mxu2 }
 0xcf3   : > { %v6533_v2 = vsel %vm144_vm0, %v13515_v22, 0.0 }
 0xcf4   : > { %v6534_v35 = vadd.f32 %v6533_v2, %v6532_v33 }
 0xcfc   : > { %v13517_v63 = vpop.f32.mrf.mxu2 }
 0xcfd   : > { %v6535_v10 = vsel %vm144_vm0, %v13517_v63, 0.0 }
 0xcfe   : > { %v6536_v41 = vadd.f32 %v6535_v10, %v6534_v35 }
 0xd04   : > { %v13519_v57 = vpop.f32.mrf.mxu2 }
 0xd05   : > { %v6537_v21 = vsel %vm144_vm0, %v13519_v57, 0.0 }
 0xd06   : > { %v6538_v14 = vadd.f32 %v6537_v21, %v6536_v41 }
 0xd12   : > { %v13521_v60 = vpop.f32.mrf.mxu2 }
 0xd13   : > { %v6539_v32 = vsel %vm144_vm0, %v13521_v60, 0.0 }
 0xd14   : > { %v6540_v53 = vadd.f32 %v6539_v32, %v6538_v14 }
 0xd1c   : > { %v13533_v24 = vpop.f32.mrf.mxu2 }
 0xd1d   : > { %v6541_v16 = vsel %vm144_vm0, %v13533_v24, 0.0 }
 0xd1e   : > { %v6542_v6 = vadd.f32 %v6541_v16, %v6540_v53 }
 0xd24   : > { %v13545_v11 = vpop.f32.mrf.mxu2 }
 0xd25   : > { %v6543_v42 = vsel %vm144_vm0, %v13545_v11, 0.0 }
 0xd26   : > { %v6544_v47 = vadd.f32 %v6543_v42, %v6542_v6 }
 0xd32   : > { %v13555_v56 = vpop.f32.mrf.mxu2 }
 0xd33   : > { %v6545_v1 = vsel %vm144_vm0, %v13555_v56, 0.0 }
 0xd34   : > { %v6546_v26 = vadd.f32 %v6545_v1, %v6544_v47 }
 0xd3c   : > { %v13567_v18 = vpop.f32.mrf.mxu2 }
 0xd3d   : > { %v6547_v44 = vsel %vm144_vm0, %v13567_v18, 0.0 }
 0xd3e   : > { %v6548_v61 = vadd.f32 %v6547_v44, %v6546_v26 }
 0xd44   : > { %v13579_v62 = vpop.f32.mrf.mxu2 }
 0xd45   : > { %v6549_v40 = vsel %vm144_vm0, %v13579_v62, 0.0 }
 0xd46   : > { %v6550_v58 = vadd.f32 %v6549_v40, %v6548_v61 }
 0xd52   : > { %v13589_v19 = vpop.f32.mrf.mxu2 }
 0xd53   : > { %v6551_v51 = vsel %vm144_vm0, %v13589_v19, 0.0 }
 0xd54   : > { %v6552_v3 = vadd.f32 %v6551_v51, %v6550_v58 }
 0xd5b   : > { %v13597_v45 = vpop.f32.mrf.mxu2 }
 0xd5c   : > { %v6553_v43 = vsel %vm144_vm0, %v13597_v45, 0.0 }
 0xd5d   : > { %v6554_v46 = vadd.f32 %v6553_v43, %v6552_v3 }
 0xd5f   : > { %v6555_v27 = vrot.slane %v6554_v46, 4 }
 0xd61   : > { %v6556_v48 = vadd.f32 %v6555_v27, %v6554_v46 }
 0xd63   : > { %v6557_v15 = vrot.slane %v6556_v48, 2 }
 0xd65   : > { %v6558_v50 = vadd.f32 %v6557_v15, %v6556_v48 }
 0xd67   : > { %v6559_v38 = vrot.slane %v6558_v50, 1 }
 0xd69   : > { %v6560_v7 = vadd.f32 %v6559_v38, %v6558_v50 }
 0xd6b   : > { %v13602_v55 = vmul.f32 %v6560_v7, %v15698_v4 }
 0xd6d   : > { %v13606_v12 = vsub.f32 %v13382_v17, %v13602_v55  ;;  %v13610_v2 = vsub.f32 %v13392_v28, %v13602_v55  ;;  %v13614_v33 = vsub.f32 %v13403_v8, %v13602_v55  ;;  %v13618_v10 = vsub.f32 %v13413_v9, %v13602_v55 }
 0xd6e   : > { %v13626_v17 = vsub.f32 %v13424_v0, %v13602_v55  ;;  %v13632_v8 = vsub.f32 %v13432_v34, %v13602_v55  ;;  %v13640_v16 = vsub.f32 %v13436_v49, %v13602_v55  ;;  %v13647_v34 = vsub.f32 %v13444_v59, %v13602_v55 }
 0xd6f   : > { %v6594_v35 = vmul.f32 %v13606_v12, %v13606_v12  ;;  %v6595_v21 = vmul.f32 %v13610_v2, %v13610_v2  ;;  %v6596_v28 = vmul.f32 %v13614_v33, %v13614_v33  ;;  %v6597_v9 = vmul.f32 %v13618_v10, %v13618_v10 }
 0xd70   : > { %v6598_v0 = vmul.f32 %v13626_v17, %v13626_v17  ;;  %v6599_v6 = vmul.f32 %v13632_v8, %v13632_v8  ;;  %v13654_v49 = vsub.f32 %v13453_v52, %v13602_v55  ;;  %v6600_v44 = vmul.f32 %v13640_v16, %v13640_v16 }
 0xd71   : > { %v6626_v41 = vsel %vm144_vm0, %v6594_v35, 0.0  ;;  %v6627_v32 = vsel %vm144_vm0, %v6595_v21, 0.0  ;;  %v6629_v53 = vsel %vm144_vm0, %v6596_v28, 0.0  ;;  %v6631_v1 = vsel %vm144_vm0, %v6597_v9, 0.0 }
 0xd72   : > { %v6628_v14 = vadd.f32 %v6627_v32, %v6626_v41  ;;  %v6633_v26 = vsel %vm144_vm0, %v6598_v0, 0.0  ;;  %v13661_v59 = vsub.f32 %v13457_v5, %v13602_v55  ;;  %v6601_v61 = vmul.f32 %v13647_v34, %v13647_v34 }
 0xd73   : > { %v6635_v51 = vsel %vm144_vm0, %v6599_v6, 0.0  ;;  %v13668_v52 = vsub.f32 %v13464_v20, %v13602_v55  ;;  %v6602_v3 = vmul.f32 %v13654_v49, %v13654_v49  ;;  %v6637_v43 = vsel %vm144_vm0, %v6600_v44, 0.0 }
 0xd74   : > { %v6630_v42 = vadd.f32 %v6629_v53, %v6628_v14  ;;  %v13675_v5 = vsub.f32 %v13471_v37, %v13602_v55  ;;  %v6603_v27 = vmul.f32 %v13661_v59, %v13661_v59  ;;  %v6639_v48 = vsel %vm144_vm0, %v6601_v61, 0.0 }
 0xd75   : > { %v13682_v20 = vsub.f32 %v13478_v23, %v13602_v55  ;;  %v6604_v50 = vmul.f32 %v13668_v52, %v13668_v52  ;;  %v6641_v38 = vsel %vm144_vm0, %v6602_v3, 0.0  ;;  %v13689_v37 = vsub.f32 %v13485_v13, %v13602_v55 }
 0xd76   : > { %v6632_v47 = vadd.f32 %v6631_v1, %v6630_v42  ;;  %v6605_v35 = vmul.f32 %v13675_v5, %v13675_v5  ;;  %v6643_v21 = vsel %vm144_vm0, %v6603_v27, 0.0  ;;  %v13696_v23 = vsub.f32 %v13491_v29, %v13602_v55 }
 0xd77   : > { %v6606_v9 = vmul.f32 %v13682_v20, %v13682_v20  ;;  %v6645_v41 = vsel %vm144_vm0, %v6604_v50, 0.0  ;;  %v13703_v13 = vsub.f32 %v13497_v36, %v13602_v55  ;;  %v6607_v14 = vmul.f32 %v13689_v37, %v13689_v37 }
 0xd78   : > { %v6634_v40 = vadd.f32 %v6633_v26, %v6632_v47  ;;  %v6647_v0 = vsel %vm144_vm0, %v6605_v35, 0.0  ;;  %v13710_v29 = vsub.f32 %v13503_v54, %v13602_v55  ;;  %v6608_v42 = vmul.f32 %v13696_v23, %v13696_v23 }
 0xd79   : > { %v6649_v6 = vsel %vm144_vm0, %v6606_v9, 0.0  ;;  %v13717_v36 = vsub.f32 %v13507_v31, %v13602_v55  ;;  %v6609_v47 = vmul.f32 %v13703_v13, %v13703_v13  ;;  %v6651_v44 = vsel %vm144_vm0, %v6607_v14, 0.0 }
 0xd7a   : > { %v6636_v58 = vadd.f32 %v6635_v51, %v6634_v40  ;;  %v13724_v54 = vsub.f32 %v13509_v39, %v13602_v55  ;;  %v6610_v40 = vmul.f32 %v13710_v29, %v13710_v29  ;;  %v6653_v61 = vsel %vm144_vm0, %v6608_v42, 0.0 }
 0xd7b   : > { %v13731_v31 = vsub.f32 %v13511_v30, %v13602_v55  ;;  %v6655_v3 = vsel %vm144_vm0, %v6609_v47, 0.0  ;;  %v13738_v39 = vsub.f32 %v13513_v25, %v13602_v55  ;;  %v13745_v30 = vsub.f32 %v13515_v22, %v13602_v55 }
 0xd7c   : > { %v6638_v46 = vadd.f32 %v6637_v43, %v6636_v58  ;;  %v6611_v58 = vmul.f32 %v13717_v36, %v13717_v36  ;;  %v6657_v27 = vsel %vm144_vm0, %v6610_v40, 0.0  ;;  %v13752_v25 = vsub.f32 %v13517_v63, %v13602_v55 }
 0xd7d   : > { %v13759_v22 = vsub.f32 %v13519_v57, %v13602_v55  ;;  %v13766_v63 = vsub.f32 %v13521_v60, %v13602_v55  ;;  %v13773_v57 = vsub.f32 %v13533_v24, %v13602_v55  ;;  %v13780_v60 = vsub.f32 %v13545_v11, %v13602_v55 }
 0xd7e   : > { %v6640_v15 = vadd.f32 %v6639_v48, %v6638_v46  ;;  %v6612_v46 = vmul.f32 %v13724_v54, %v13724_v54  ;;  %v6659_v50 = vsel %vm144_vm0, %v6611_v58, 0.0  ;;  %v13787_v24 = vsub.f32 %v13555_v56, %v13602_v55 }
 0xd7f   : > { %v13794_v11 = vsub.f32 %v13567_v18, %v13602_v55  ;;  %v13801_v56 = vsub.f32 %v13579_v62, %v13602_v55  ;;  %v13808_v18 = vsub.f32 %v13589_v19, %v13602_v55  ;;  %v6593_v62 = vsub.f32 %v13597_v45, %v13602_v55 }
 0xd80   : > { %v6642_v7 = vadd.f32 %v6641_v38, %v6640_v15  ;;  %v6613_v15 = vmul.f32 %v13731_v31, %v13731_v31  ;;  %v6661_v35 = vsel %vm144_vm0, %v6612_v46, 0.0 }
 0xd82   : > { %v6644_v28 = vadd.f32 %v6643_v21, %v6642_v7  ;;  %v6614_v7 = vmul.f32 %v13738_v39, %v13738_v39  ;;  %v6663_v9 = vsel %vm144_vm0, %v6613_v15, 0.0 }
 0xd84   : > { %v6646_v32 = vadd.f32 %v6645_v41, %v6644_v28  ;;  %v6615_v28 = vmul.f32 %v13745_v30, %v13745_v30  ;;  %v6665_v14 = vsel %vm144_vm0, %v6614_v7, 0.0 }
 0xd86   : > { %v6648_v53 = vadd.f32 %v6647_v0, %v6646_v32  ;;  %v6616_v32 = vmul.f32 %v13752_v25, %v13752_v25  ;;  %v6667_v42 = vsel %vm144_vm0, %v6615_v28, 0.0 }
 0xd88   : > { %v6650_v1 = vadd.f32 %v6649_v6, %v6648_v53  ;;  %v6617_v53 = vmul.f32 %v13759_v22, %v13759_v22  ;;  %v6669_v47 = vsel %vm144_vm0, %v6616_v32, 0.0 }
 0xd8a   : > { %v6652_v26 = vadd.f32 %v6651_v44, %v6650_v1  ;;  %v6618_v1 = vmul.f32 %v13766_v63, %v13766_v63  ;;  %v6671_v40 = vsel %vm144_vm0, %v6617_v53, 0.0 }
 0xd8c   : > { %v6654_v51 = vadd.f32 %v6653_v61, %v6652_v26  ;;  %v6619_v26 = vmul.f32 %v13773_v57, %v13773_v57  ;;  %v6673_v58 = vsel %vm144_vm0, %v6618_v1, 0.0 }
 0xd8e   : > { %v6656_v43 = vadd.f32 %v6655_v3, %v6654_v51  ;;  %v6620_v51 = vmul.f32 %v13780_v60, %v13780_v60  ;;  %v6675_v46 = vsel %vm144_vm0, %v6619_v26, 0.0  ;;  %v6867_v26 = vld [vmem:[#allocation2 + $0x1] sm:$0xff] }
 0xd8f   : > { %6931 = vrot.lane.b32.xlu0 %v6867_v26, %s9242_s11 }
 0xd90   : > { %v6658_v48 = vadd.f32 %v6657_v27, %v6656_v43  ;;  %v6621_v43 = vmul.f32 %v13787_v24, %v13787_v24  ;;  %v6677_v15 = vsel %vm144_vm0, %v6620_v51, 0.0  ;;  %v6868_v51 = vld [vmem:[#allocation2 + $0x9] sm:$0xff] }
 0xd91   : > { %6933 = vrot.lane.b32.xlu1 %v6868_v51, %s9242_s11 }
 0xd92   : > { %v6660_v38 = vadd.f32 %v6659_v50, %v6658_v48  ;;  %v6622_v48 = vmul.f32 %v13794_v11, %v13794_v11  ;;  %v6679_v7 = vsel %vm144_vm0, %v6621_v43, 0.0 }
 0xd94   : > { %v6662_v21 = vadd.f32 %v6661_v35, %v6660_v38  ;;  %v6623_v38 = vmul.f32 %v13801_v56, %v13801_v56  ;;  %v6681_v19 = vsel %vm144_vm0, %v6622_v48, 0.0 }
 0xd96   : > { %v6664_v41 = vadd.f32 %v6663_v9, %v6662_v21  ;;  %v6624_v21 = vmul.f32 %v13808_v18, %v13808_v18  ;;  %v6625_v9 = vmul.f32 %v6593_v62, %v6593_v62 }
 0xd98   : > { %v6666_v0 = vadd.f32 %v6665_v14, %v6664_v41  ;;  %v6683_v41 = vsel %vm144_vm0, %v6623_v38, 0.0  ;;  %v6685_v14 = vsel %vm144_vm0, %v6624_v21, 0.0  ;;  %v6687_v45 = vsel %vm144_vm0, %v6625_v9, 0.0 }
 0xd9a   : > { %v6668_v6 = vadd.f32 %v6667_v42, %v6666_v0 }
 0xd9c   : > { %v6670_v44 = vadd.f32 %v6669_v47, %v6668_v6 }
 0xd9e   : > { %v6672_v61 = vadd.f32 %v6671_v40, %v6670_v44 }
 0xda0   : > { %v6674_v3 = vadd.f32 %v6673_v58, %v6672_v61 }
 0xda2   : > { %v6676_v27 = vadd.f32 %v6675_v46, %v6674_v3 }
 0xda4   : > { %v6678_v50 = vadd.f32 %v6677_v15, %v6676_v27 }
 0xda6   : > { %v6680_v35 = vadd.f32 %v6679_v7, %v6678_v50 }
 0xda8   : > { %v6682_v28 = vadd.f32 %v6681_v19, %v6680_v35 }
 0xdaa   : > { %v6684_v32 = vadd.f32 %v6683_v41, %v6682_v28 }
 0xdac   : > { %v6686_v0 = vadd.f32 %v6685_v14, %v6684_v32 }
 0xdae   : > { %v6688_v55 = vadd.f32 %v6687_v45, %v6686_v0 }
 0xdb0   : > { %v6689_v53 = vrot.slane %v6688_v55, 4 }
 0xdb2   : > { %v6690_v42 = vadd.f32 %v6689_v53, %v6688_v55 }
 0xdb4   : > { %v6691_v6 = vrot.slane %v6690_v42, 2 }
 0xdb6   : > { %v6692_v1 = vadd.f32 %v6691_v6, %v6690_v42 }
 0xdb8   : > { %v6693_v47 = vrot.slane %v6692_v1, 1 }
 0xdba   : > { %v6694_v44 = vadd.f32 %v6693_v47, %v6692_v1 }
 0xdbc   : > { %v6695_v40 = vmul.f32 %v6694_v44, %v15698_v4 }
 0xdbe   : > { %v6696_v61 = vadd.f32 1e-05, %v6695_v40 }
 0xdc0   : > { %9229 = vrsqrt.f32 %v6696_v61  ;;  %vm6703_vm15 = vweird.f32 %v6696_v61 }
 0xdc6   : > { %v9230_v58 = vpop.eup %9229 }
 0xdc7   : > { %v6698_v3 = vmul.f32 %v9230_v58, %v6696_v61  ;;  %vm6704_vm14 = vweird.f32 %v9230_v58 }
 0xdc8   : > { %vm6705_vm1 = vmor %vm6703_vm15, %vm6704_vm14 }
 0xdc9   : > { %v6699_v43 = vmul.f32 %v9230_v58, %v6698_v3 }
 0xdcb   : > { %v6700_v46 = vmul.f32 0.5, %v6699_v43 }
 0xdcd   : > { %v6701_v27 = vsub.f32 1.5, %v6700_v46 }
 0xdcf   : > { %v6702_v48 = vmul.f32 %v9230_v58, %v6701_v27 }
 0xdd1   : > { %v13827_v15 = vsel %vm6705_vm1, %v9230_v58, %v6702_v48 }
 0xdd2   : > { %v6738_v50 = vmul.f32 %v13827_v15, %v6593_v62  ;;  %v6707_v7 = vmul.f32 %v13827_v15, %v13606_v12  ;;  %v6708_v35 = vmul.f32 %v13827_v15, %v13610_v2  ;;  %v6709_v21 = vmul.f32 %v13827_v15, %v13614_v33 }
 0xdd3   : > { %v6710_v19 = vmul.f32 %v13827_v15, %v13618_v10  ;;  %v6711_v28 = vmul.f32 %v13827_v15, %v13626_v17  ;;  %v6712_v62 = vmul.f32 %v13827_v15, %v13632_v8  ;;  %v6713_v12 = vmul.f32 %v13827_v15, %v13640_v16 }
 0xdd4   : > { %v6770_v38 = vmax.f32 %v6738_v50, 0.0  ;;  %v6739_v9 = vmax.f32 %v6707_v7, 0.0  ;;  %v6740_v41 = vmax.f32 %v6708_v35, 0.0  ;;  %v6741_v2 = vmax.f32 %v6709_v21, 0.0 }
 0xdd5   : > { %v6714_v33 = vmul.f32 %v13827_v15, %v13647_v34  ;;  %v6742_v32 = vmax.f32 %v6710_v19, 0.0  ;;  %v6715_v14 = vmul.f32 %v13827_v15, %v13654_v49  ;;  %v6743_v10 = vmax.f32 %v6711_v28, 0.0 }
 0xdd6   : > { %6802 = vst.msk [vmem:[#allocation2 + $0x189] sm:$0xff] %vm144_vm0, %v6770_v38  ;;  %v6716_v17 = vmul.f32 %v13827_v15, %v13661_v59  ;;  %v6744_v8 = vmax.f32 %v6712_v62, 0.0  ;;  %v6717_v16 = vmul.f32 %v13827_v15, %v13668_v52  ;;  %v6745_v0 = vmax.f32 %v6713_v12, 0.0 }
 0xdd7   : > { %6771 = vst.msk [vmem:[#allocation2 + $0x19] sm:$0xff] %vm144_vm0, %v6739_v9  ;;  %v6718_v34 = vmul.f32 %v13827_v15, %v13675_v5  ;;  %v6746_v45 = vmax.f32 %v6714_v33, 0.0  ;;  %v6719_v49 = vmul.f32 %v13827_v15, %v13682_v20  ;;  %v6747_v55 = vmax.f32 %v6715_v14, 0.0 }
 0xdd8   : > { %6772 = vst.msk [vmem:[#allocation2 + $0x21] sm:$0xff] %vm144_vm0, %v6740_v41  ;;  %v6720_v59 = vmul.f32 %v13827_v15, %v13689_v37  ;;  %v6748_v53 = vmax.f32 %v6716_v17, 0.0  ;;  %v6721_v52 = vmul.f32 %v13827_v15, %v13696_v23  ;;  %v6749_v42 = vmax.f32 %v6717_v16, 0.0 }
 0xdd9   : > { %6773 = vst.msk [vmem:[#allocation2 + $0x31] sm:$0xff] %vm144_vm0, %v6741_v2  ;;  %v6722_v5 = vmul.f32 %v13827_v15, %v13703_v13  ;;  %v6750_v6 = vmax.f32 %v6718_v34, 0.0  ;;  %v6723_v37 = vmul.f32 %v13827_v15, %v13710_v29  ;;  %v6751_v1 = vmax.f32 %v6719_v49, 0.0 }
 0xdda   : > { %6774 = vst.msk [vmem:[#allocation2 + $0x39] sm:$0xff] %vm144_vm0, %v6742_v32  ;;  %v6724_v23 = vmul.f32 %v13827_v15, %v13717_v36  ;;  %v6752_v13 = vmax.f32 %v6720_v59, 0.0  ;;  %v6725_v29 = vmul.f32 %v13827_v15, %v13724_v54  ;;  %v6753_v26 = vmax.f32 %v6721_v52, 0.0 }
 0xddb   : > { %6775 = vst.msk [vmem:[#allocation2 + $0x49] sm:$0xff] %vm144_vm0, %v6743_v10  ;;  %v6726_v36 = vmul.f32 %v13827_v15, %v13731_v31  ;;  %v6754_v40 = vmax.f32 %v6722_v5, 0.0  ;;  %v6727_v61 = vmul.f32 %v13827_v15, %v13738_v39  ;;  %v6755_v51 = vmax.f32 %v6723_v37, 0.0 }
 0xddc   : > { %6776 = vst.msk [vmem:[#allocation2 + $0x51] sm:$0xff] %vm144_vm0, %v6744_v8  ;;  %v6728_v54 = vmul.f32 %v13827_v15, %v13745_v30  ;;  %v6756_v58 = vmax.f32 %v6724_v23, 0.0  ;;  %v6729_v3 = vmul.f32 %v13827_v15, %v13752_v25  ;;  %v6757_v43 = vmax.f32 %v6725_v29, 0.0 }
 0xddd   : > { %6777 = vst.msk [vmem:[#allocation2 + $0x61] sm:$0xff] %vm144_vm0, %v6745_v0  ;;  %v6730_v31 = vmul.f32 %v13827_v15, %v13759_v22  ;;  %v6758_v46 = vmax.f32 %v6726_v36, 0.0  ;;  %v6731_v30 = vmul.f32 %v13827_v15, %v13766_v63  ;;  %v6759_v27 = vmax.f32 %v6727_v61, 0.0 }
 0xdde   : > { %6778 = vst.msk [vmem:[#allocation2 + $0x69] sm:$0xff] %vm144_vm0, %v6746_v45  ;;  %v13871_v20 = vld [vmem:[#allocation2 + $0x19] sm:$0xff]  ;;  %v6732_v25 = vmul.f32 %v13827_v15, %v13773_v57  ;;  %v6760_v22 = vmax.f32 %v6728_v54, 0.0  ;;  %v6733_v63 = vmul.f32 %v13827_v15, %v13780_v60  ;;  %v6761_v38 = vmax.f32 %v6729_v3, 0.0 }
 0xddf   : > { %6779 = vst.msk [vmem:[#allocation2 + $0x79] sm:$0xff] %vm144_vm0, %v6747_v55  ;;  %v13876_v47 = vld [vmem:[#allocation2 + $0x21] sm:$0xff]  ;;  %6935 = vrot.lane.b32.xlu2 %v13871_v20, %s9242_s11  ;;  %v6734_v57 = vmul.f32 %v13827_v15, %v13787_v24  ;;  %v6762_v7 = vmax.f32 %v6730_v31, 0.0  ;;  %v6735_v35 = vmul.f32 %v13827_v15, %v13794_v11  ;;  %v6763_v21 = vmax.f32 %v6731_v30, 0.0  ;;  %v13958_v41 = vld [vmem:[#allocation2 + $0x18] sm:$0xff] }
 0xde0   : > { %6780 = vst.msk [vmem:[#allocation2 + $0x81] sm:$0xff] %vm144_vm0, %v6748_v53  ;;  %v13883_v44 = vld [vmem:[#allocation2 + $0x31] sm:$0xff]  ;;  %6937 = vrot.lane.b32.xlu0 %v13876_v47, %s9242_s11  ;;  %v6736_v60 = vmul.f32 %v13827_v15, %v13801_v56  ;;  %v6764_v19 = vmax.f32 %v6732_v25, 0.0  ;;  %v6737_v28 = vmul.f32 %v13827_v15, %v13808_v18  ;;  %v6765_v62 = vmax.f32 %v6733_v63, 0.0  ;;  %v13978_v17 = vld [vmem:[#allocation2 + $0x20] sm:$0xff] }
 0xde1   : > { %6781 = vst.msk [vmem:[#allocation2 + $0x91] sm:$0xff] %vm144_vm0, %v6749_v42  ;;  %6939 = vrot.lane.b32.xlu1 %v13883_v44, %s9242_s11  ;;  %v13907_v39 = vld [vmem:[#allocation2 + $0x39] sm:$0xff]  ;;  %v6766_v24 = vmax.f32 %v6734_v57, 0.0  ;;  %v6767_v11 = vmax.f32 %v6735_v35, 0.0  ;;  %v13970_v14 = vld [vmem:[#allocation2 + $0x30] sm:$0xff] }
 0xde2   : > { %6782 = vst.msk [vmem:[#allocation2 + $0x99] sm:$0xff] %vm144_vm0, %v6750_v6  ;;  %v13912_v48 = vld [vmem:[#allocation2 + $0x49] sm:$0xff]  ;;  %v6768_v56 = vmax.f32 %v6736_v60, 0.0  ;;  %v6769_v15 = vmax.f32 %v6737_v28, 0.0  ;;  %v13961_v2 = vld [vmem:[#allocation2 + $0x38] sm:$0xff] }
 0xde3   : > { %6783 = vst.msk [vmem:[#allocation2 + $0xa9] sm:$0xff] %vm144_vm0, %v6751_v1  ;;  %v13919_v50 = vld [vmem:[#allocation2 + $0x51] sm:$0xff]  ;;  %v13996_v34 = vld [vmem:[#allocation2 + $0x48] sm:$0xff] }
 0xde4   : > { %6784 = vst.msk [vmem:[#allocation2 + $0xb1] sm:$0xff] %vm144_vm0, %v6752_v13  ;;  %v13941_v12 = vld [vmem:[#allocation2 + $0x61] sm:$0xff]  ;;  %v13992_v0 = vld [vmem:[#allocation2 + $0x50] sm:$0xff] }
 0xde5   : > { %6785 = vst.msk [vmem:[#allocation2 + $0xc1] sm:$0xff] %vm144_vm0, %v6753_v26  ;;  %v13944_v9 = vld [vmem:[#allocation2 + $0x69] sm:$0xff]  ;;  %v13964_v33 = vld [vmem:[#allocation2 + $0x60] sm:$0xff] }
 0xde6   : > { %6786 = vst.msk [vmem:[#allocation2 + $0xc9] sm:$0xff] %vm144_vm0, %v6754_v40  ;;  %v13949_v18 = vld [vmem:[#allocation2 + $0x79] sm:$0xff]  ;;  %v14008_v55 = vld [vmem:[#allocation2 + $0x68] sm:$0xff] }
 0xde7   : > { %6787 = vst.msk [vmem:[#allocation2 + $0xd9] sm:$0xff] %vm144_vm0, %v6755_v51  ;;  %6941 = vrot.lane.b32.xlu2 %v13907_v39, %s9242_s11  ;;  %v13966_v32 = vld [vmem:[#allocation2 + $0x81] sm:$0xff]  ;;  %v14004_v49 = vld [vmem:[#allocation2 + $0x78] sm:$0xff] }
 0xde8   : > { %6788 = vst.msk [vmem:[#allocation2 + $0xe1] sm:$0xff] %vm144_vm0, %v6756_v58  ;;  %6943 = vrot.lane.b32.xlu0 %v13912_v48, %s9242_s11  ;;  %v13972_v10 = vld [vmem:[#allocation2 + $0x91] sm:$0xff]  ;;  %v13986_v16 = vld [vmem:[#allocation2 + $0x80] sm:$0xff] }
 0xde9   : > { %6789 = vst.msk [vmem:[#allocation2 + $0xf1] sm:$0xff] %vm144_vm0, %v6757_v43  ;;  %6945 = vrot.lane.b32.xlu1 %v13919_v50, %s9242_s11  ;;  %v13980_v8 = vld [vmem:[#allocation2 + $0x99] sm:$0xff]  ;;  %v14028_v6 = vld [vmem:[#allocation2 + $0x90] sm:$0xff] }
 0xdea   : > { %6790 = vst.msk [vmem:[#allocation2 + $0xf9] sm:$0xff] %vm144_vm0, %v6758_v46  ;;  %v14000_v45 = vld [vmem:[#allocation2 + $0xa8] sm:$0xff]  ;;  %v14022_v42 = vld [vmem:[#allocation2 + $0x98] sm:$0xff] }
 0xdeb   : > { %6791 = vst.msk [vmem:[#allocation2 + $0x109] sm:$0xff] %vm144_vm0, %v6759_v27  ;;  %v14010_v59 = vld [vmem:[#allocation2 + $0xa9] sm:$0xff]  ;;  %v14016_v52 = vld [vmem:[#allocation2 + $0xb1] sm:$0xff] }
 0xdec   : > { %6792 = vst.msk [vmem:[#allocation2 + $0x111] sm:$0xff] %vm144_vm0, %v6760_v22  ;;  %v6883_v5 = vld [vmem:[#allocation2 + $0xc1] sm:$0xff]  ;;  %v14041_v23 = vld [vmem:[#allocation2 + $0xb0] sm:$0xff] }
 0xded   : > { %6793 = vst.msk [vmem:[#allocation2 + $0x121] sm:$0xff] %vm144_vm0, %v6761_v38  ;;  %v14014_v53 = vld [vmem:[#allocation2 + $0xc8] sm:$0xff]  ;;  %v14037_v1 = vld [vmem:[#allocation2 + $0xc0] sm:$0xff] }
 0xdee   : > { %6794 = vst.msk [vmem:[#allocation2 + $0x129] sm:$0xff] %vm144_vm0, %v6762_v7  ;;  %v6884_v26 = vld [vmem:[#allocation2 + $0xc9] sm:$0xff]  ;;  %v14051_v36 = vld [vmem:[#allocation2 + $0xd8] sm:$0xff] }
 0xdef   : > { %6795 = vst.msk [vmem:[#allocation2 + $0x139] sm:$0xff] %vm144_vm0, %v6763_v21  ;;  %6947 = vrot.lane.b32.xlu2 %v13941_v12, %s9242_s11  ;;  %v14047_v29 = vld [vmem:[#allocation2 + $0xe0] sm:$0xff] }
 0xdf0   : > { %6796 = vst.msk [vmem:[#allocation2 + $0x141] sm:$0xff] %vm144_vm0, %v6764_v19  ;;  %6949 = vrot.lane.b32.xlu0 %v13944_v9, %s9242_s11  ;;  %v14033_v37 = vld [vmem:[#allocation2 + $0xf0] sm:$0xff]  ;;  %v6885_v40 = vld [vmem:[#allocation2 + $0xd9] sm:$0xff]  ;;  %v6886_v51 = vld [vmem:[#allocation2 + $0xe1] sm:$0xff] }
 0xdf1   : > { %6797 = vst.msk [vmem:[#allocation2 + $0x151] sm:$0xff] %vm144_vm0, %v6765_v62  ;;  %6951 = vrot.lane.b32.xlu1 %v13949_v18, %s9242_s11  ;;  %v14063_v58 = vld [vmem:[#allocation2 + $0xf8] sm:$0xff] }
 0xdf2   : > { %6798 = vst.msk [vmem:[#allocation2 + $0x159] sm:$0xff] %vm144_vm0, %v6766_v24  ;;  %v14058_v54 = vld [vmem:[#allocation2 + $0x108] sm:$0xff]  ;;  %v6887_v30 = vld [vmem:[#allocation2 + $0xf1] sm:$0xff]  ;;  %v6888_v25 = vld [vmem:[#allocation2 + $0xf9] sm:$0xff] }
 0xdf3   : > { %6799 = vst.msk [vmem:[#allocation2 + $0x169] sm:$0xff] %vm144_vm0, %v6767_v11  ;;  %v6826_v13 = vld [vmem:[#allocation2 + $0x110] sm:$0xff]  ;;  %v6803_v11 = vld [vmem:[#allocation2] sm:$0xff] }
 0xdf4   : > { %6800 = vst.msk [vmem:[#allocation2 + $0x171] sm:$0xff] %vm144_vm0, %v6768_v56  ;;  %v6827_v31 = vld [vmem:[#allocation2 + $0x120] sm:$0xff]  ;;  %v6889_v63 = vld [vmem:[#allocation2 + $0x109] sm:$0xff]  ;;  %v6890_v57 = vld [vmem:[#allocation2 + $0x111] sm:$0xff] }
 0xdf5   : > { %6801 = vst.msk [vmem:[#allocation2 + $0x181] sm:$0xff] %vm144_vm0, %v6769_v15  ;;  %v6828_v43 = vld [vmem:[#allocation2 + $0x128] sm:$0xff] }
 0xdf6   : > { %6837 = vst.msk [vmem:[#allocation3 + $0x10] sm:$0xff] %vm144_vm0, %v13958_v41  ;;  %v6829_v61 = vld [vmem:[#allocation2 + $0x138] sm:$0xff]  ;;  %v6891_v7 = vld [vmem:[#allocation2 + $0x121] sm:$0xff]  ;;  %v6892_v35 = vld [vmem:[#allocation2 + $0x129] sm:$0xff] }
 0xdf7   : > { %6953 = vrot.lane.b32.xlu2 %v13966_v32, %s9242_s11  ;;  %6840 = vst.msk [vmem:[#allocation3 + $0x28] sm:$0xff] %vm144_vm0, %v13961_v2  ;;  %v6830_v27 = vld [vmem:[#allocation2 + $0x140] sm:$0xff]  ;;  %v6804_v15 = vld [vmem:[#allocation2 + $0x8] sm:$0xff] }
 0xdf8   : > { %6955 = vrot.lane.b32.xlu0 %v13972_v10, %s9242_s11  ;;  %6843 = vst.msk [vmem:[#allocation3 + $0x40] sm:$0xff] %vm144_vm0, %v13964_v33  ;;  %v6831_v46 = vld [vmem:[#allocation2 + $0x150] sm:$0xff]  ;;  %v6893_v21 = vld [vmem:[#allocation2 + $0x139] sm:$0xff]  ;;  %v6894_v60 = vld [vmem:[#allocation2 + $0x141] sm:$0xff] }
 0xdf9   : > { %6957 = vrot.lane.b32.xlu1 %v13980_v8, %s9242_s11  ;;  %6839 = vst.msk [vmem:[#allocation3 + $0x20] sm:$0xff] %vm144_vm0, %v13970_v14  ;;  %v6832_v3 = vld [vmem:[#allocation2 + $0x158] sm:$0xff] }
 0xdfa   : > { %6838 = vst.msk [vmem:[#allocation3 + $0x18] sm:$0xff] %vm144_vm0, %v13978_v17  ;;  %v6833_v38 = vld [vmem:[#allocation2 + $0x168] sm:$0xff]  ;;  %v6895_v19 = vld [vmem:[#allocation2 + $0x151] sm:$0xff]  ;;  %v6896_v28 = vld [vmem:[#allocation2 + $0x159] sm:$0xff] }
 0xdfb   : > { %6846 = vst.msk [vmem:[#allocation3 + $0x58] sm:$0xff] %vm144_vm0, %v13986_v16  ;;  %v6834_v22 = vld [vmem:[#allocation2 + $0x170] sm:$0xff] }
 0xdfc   : > { %6842 = vst.msk [vmem:[#allocation3 + $0x38] sm:$0xff] %vm144_vm0, %v13992_v0  ;;  %v6897_v62 = vld [vmem:[#allocation2 + $0x169] sm:$0xff]  ;;  %v6898_v24 = vld [vmem:[#allocation2 + $0x171] sm:$0xff] }
 0xdfd   : > { %6841 = vst.msk [vmem:[#allocation3 + $0x30] sm:$0xff] %vm144_vm0, %v13996_v34 }
 0xdfe   : > { %6849 = vst.msk [vmem:[#allocation3 + $0x70] sm:$0xff] %vm144_vm0, %v14000_v45 }
 0xdff   : > { %6959 = vrot.lane.b32.xlu2 %v14010_v59, %s9242_s11  ;;  %6845 = vst.msk [vmem:[#allocation3 + $0x50] sm:$0xff] %vm144_vm0, %v14004_v49 }
 0xe00   : > { %6961 = vrot.lane.b32.xlu0 %v14016_v52, %s9242_s11  ;;  %6844 = vst.msk [vmem:[#allocation3 + $0x48] sm:$0xff] %vm144_vm0, %v14008_v55 }
 0xe01   : > { %6963 = vrot.lane.b32.xlu1 %v6883_v5, %s9242_s11  ;;  %6852 = vst.msk [vmem:[#allocation3 + $0x88] sm:$0xff] %vm144_vm0, %v14014_v53  ;;  %v6932_v56 = vpop.permute.xlu0 %6931  ;;  %v7059_v5 = vld [vmem:[#allocation2 + $0x2] sm:$0xff] }
 0xe02   : > { %6848 = vst.msk [vmem:[#allocation3 + $0x68] sm:$0xff] %vm144_vm0, %v14022_v42 }
 0xe03   : > { %6847 = vst.msk [vmem:[#allocation3 + $0x60] sm:$0xff] %vm144_vm0, %v14028_v6 }
 0xe04   : > { %6855 = vst.msk [vmem:[#allocation3 + $0xa0] sm:$0xff] %vm144_vm0, %v14033_v37 }
 0xe05   : > { %6851 = vst.msk [vmem:[#allocation3 + $0x80] sm:$0xff] %vm144_vm0, %v14037_v1 }
 0xe06   : > { %6850 = vst.msk [vmem:[#allocation3 + $0x78] sm:$0xff] %vm144_vm0, %v14041_v23 }
 0xe07   : > { %6965 = vrot.lane.b32.xlu2 %v6884_v26, %s9242_s11  ;;  %6858 = vst.msk [vmem:[#allocation3 + $0xb8] sm:$0xff] %vm144_vm0, %v6826_v13  ;;  %v7060_v13 = vld [vmem:[#allocation2 + $0xa] sm:$0xff]  ;;  %v6934_v26 = vpop.permute.xlu1 %6933 }
 0xe08   : > { %6967 = vrot.lane.b32.xlu0 %v6885_v40, %s9242_s11  ;;  %6854 = vst.msk [vmem:[#allocation3 + $0x98] sm:$0xff] %vm144_vm0, %v14047_v29  ;;  %v14094_v40 = vld [vmem:[#allocation2 + $0x1a] sm:$0xff] }
 0xe09   : > { %6969 = vrot.lane.b32.xlu1 %v6886_v51, %s9242_s11  ;;  %6853 = vst.msk [vmem:[#allocation3 + $0x90] sm:$0xff] %vm144_vm0, %v14051_v36  ;;  %v14101_v51 = vld [vmem:[#allocation2 + $0x32] sm:$0xff] }
 0xe0a   : > { %6861 = vst.msk [vmem:[#allocation3 + $0xd0] sm:$0xff] %vm144_vm0, %v6829_v61  ;;  %v14099_v61 = vld [vmem:[#allocation2 + $0x22] sm:$0xff] }
 0xe0b   : > { %6857 = vst.msk [vmem:[#allocation3 + $0xb0] sm:$0xff] %vm144_vm0, %v14058_v54 }
 0xe0c   : > { %6856 = vst.msk [vmem:[#allocation3 + $0xa8] sm:$0xff] %vm144_vm0, %v14063_v58 }
 0xe0d   : > { %6864 = vst.msk [vmem:[#allocation3 + $0xe8] sm:$0xff] %vm144_vm0, %v6832_v3  ;;  %v14107_v3 = vld [vmem:[#allocation2 + $0x3a] sm:$0xff] }
 0xe0e   : > { %6860 = vst.msk [vmem:[#allocation3 + $0xc8] sm:$0xff] %vm144_vm0, %v6828_v43 }
 0xe0f   : > { %6971 = vrot.lane.b32.xlu2 %v6887_v30, %s9242_s11  ;;  %6859 = vst.msk [vmem:[#allocation3 + $0xc0] sm:$0xff] %vm144_vm0, %v6827_v31  ;;  %v14112_v31 = vld [vmem:[#allocation2 + $0x4a] sm:$0xff]  ;;  %v14120_v30 = vld [vmem:[#allocation2 + $0x62] sm:$0xff] }
 0xe10   : > { %6973 = vrot.lane.b32.xlu0 %v6888_v25, %s9242_s11  ;;  %6863 = vst.msk [vmem:[#allocation3 + $0xe0] sm:$0xff] %vm144_vm0, %v6831_v46  ;;  %v14114_v46 = vld [vmem:[#allocation2 + $0x52] sm:$0xff]  ;;  %v14125_v25 = vld [vmem:[#allocation2 + $0x6a] sm:$0xff] }
 0xe11   : > { %6975 = vrot.lane.b32.xlu1 %v6889_v63, %s9242_s11  ;;  %6862 = vst.msk [vmem:[#allocation3 + $0xd8] sm:$0xff] %vm144_vm0, %v6830_v27  ;;  %v14133_v63 = vld [vmem:[#allocation2 + $0x82] sm:$0xff] }
 0xe12   : > { %6866 = vst.msk [vmem:[#allocation3 + $0xf8] sm:$0xff] %vm144_vm0, %v6834_v22  ;;  %v14127_v22 = vld [vmem:[#allocation2 + $0x7a] sm:$0xff] }
 0xe13   : > { %6865 = vst.msk [vmem:[#allocation3 + $0xf0] sm:$0xff] %vm144_vm0, %v6833_v38 }
 0xe14   : > { %6835 = vst.msk [vmem:[#allocation3] sm:$0xff] %vm144_vm0, %v6803_v11 }
 0xe15   : > { %7027 = vst.msk [vmem:[#allocation3] sm:$0xff] %vm500_vm2, %v6932_v56 }
 0xe16   : > { %6836 = vst.msk [vmem:[#allocation3 + $0x8] sm:$0xff] %vm144_vm0, %v6804_v15 }
 0xe17   : > { %6977 = vrot.lane.b32.xlu2 %v6890_v57, %s9242_s11  ;;  %7028 = vst.msk [vmem:[#allocation3 + $0x8] sm:$0xff] %vm500_vm2, %v6934_v26  ;;  %v14138_v57 = vld [vmem:[#allocation2 + $0x92] sm:$0xff] }
 0xe18   : > { %6979 = vrot.lane.b32.xlu0 %v6891_v7, %s9242_s11  ;;  %v14140_v7 = vld [vmem:[#allocation2 + $0x9a] sm:$0xff]  ;;  %v7079_v26 = vld [vmem:[#allocation2 + $0xf2] sm:$0xff] }
 0xe19   : > { %6981 = vrot.lane.b32.xlu1 %v6892_v35, %s9242_s11  ;;  %v14146_v35 = vld [vmem:[#allocation2 + $0xaa] sm:$0xff] }
 0xe1f   : > { %6983 = vrot.lane.b32.xlu2 %v6893_v21, %s9242_s11 }
 0xe20   : > { %6985 = vrot.lane.b32.xlu0 %v6894_v60, %s9242_s11 }
 0xe21   : > { %6987 = vrot.lane.b32.xlu1 %v6895_v19, %s9242_s11 }
 0xe27   : > { %6989 = vrot.lane.b32.xlu2 %v6896_v28, %s9242_s11  ;;  %v14153_v28 = vld [vmem:[#allocation2 + $0xb2] sm:$0xff] }
 0xe28   : > { %6991 = vrot.lane.b32.xlu0 %v6897_v62, %s9242_s11  ;;  %v14155_v62 = vld [vmem:[#allocation2 + $0xc2] sm:$0xff] }
 0xe29   : > { %6993 = vrot.lane.b32.xlu1 %v6898_v24, %s9242_s11  ;;  %v14161_v24 = vld [vmem:[#allocation2 + $0xca] sm:$0xff] }
 0xe2f   : > { %7123 = vrot.lane.b32.xlu2 %v7059_v5, %s9243_s16  ;;  %v14168_v5 = vld [vmem:[#allocation2 + $0xda] sm:$0xff] }
 0xe30   : > { %7125 = vrot.lane.b32.xlu0 %v7060_v13, %s9243_s16  ;;  %v14170_v13 = vld [vmem:[#allocation2 + $0xe2] sm:$0xff] }
 0xe31   : > { %7127 = vrot.lane.b32.xlu1 %v14094_v40, %s9243_s16 }
 0xe37   : > { %7129 = vrot.lane.b32.xlu2 %v14099_v61, %s9243_s16 }
 0xe38   : > { %7131 = vrot.lane.b32.xlu0 %v14101_v51, %s9243_s16 }
 0xe39   : > { %7133 = vrot.lane.b32.xlu1 %v14107_v3, %s9243_s16  ;;  %v6936_v43 = vpop.permute.xlu2 %6935 }
 0xe3a   : > { %7029 = vst.msk [vmem:[#allocation3 + $0x10] sm:$0xff] %vm500_vm2, %v6936_v43 }
 0xe3f   : > { %7135 = vrot.lane.b32.xlu2 %v14112_v31, %s9243_s16 }
 0xe40   : > { %7137 = vrot.lane.b32.xlu0 %v14114_v46, %s9243_s16 }
 0xe41   : > { %7139 = vrot.lane.b32.xlu1 %v14120_v30, %s9243_s16  ;;  %v6942_v27 = vpop.permute.xlu2 %6941 }
 0xe42   : > { %7032 = vst.msk [vmem:[#allocation3 + $0x28] sm:$0xff] %vm500_vm2, %v6942_v27 }
 0xe47   : > { %7141 = vrot.lane.b32.xlu2 %v14125_v25, %s9243_s16 }
 0xe48   : > { %7143 = vrot.lane.b32.xlu0 %v14127_v22, %s9243_s16 }
 0xe49   : > { %7145 = vrot.lane.b32.xlu1 %v14133_v63, %s9243_s16  ;;  %v6948_v38 = vpop.permute.xlu2 %6947 }
 0xe4a   : > { %7035 = vst.msk [vmem:[#allocation3 + $0x40] sm:$0xff] %vm500_vm2, %v6948_v38 }
 0xe4f   : > { %7147 = vrot.lane.b32.xlu2 %v14138_v57, %s9243_s16 }
 0xe50   : > { %7149 = vrot.lane.b32.xlu0 %v14140_v7, %s9243_s16 }
 0xe51   : > { %7151 = vrot.lane.b32.xlu1 %v14146_v35, %s9243_s16  ;;  %v6954_v21 = vpop.permute.xlu2 %6953 }
 0xe52   : > { %v6938_v60 = vpop.permute.xlu0 %6937  ;;  %7038 = vst.msk [vmem:[#allocation3 + $0x58] sm:$0xff] %vm500_vm2, %v6954_v21  ;;  %v7080_v21 = vld [vmem:[#allocation2 + $0xfa] sm:$0xff] }
 0xe53   : > { %v6940_v19 = vpop.permute.xlu1 %6939  ;;  %7030 = vst.msk [vmem:[#allocation3 + $0x18] sm:$0xff] %vm500_vm2, %v6938_v60  ;;  %v7081_v60 = vld [vmem:[#allocation2 + $0x10a] sm:$0xff] }
 0xe54   : > { %7031 = vst.msk [vmem:[#allocation3 + $0x20] sm:$0xff] %vm500_vm2, %v6940_v19  ;;  %v7082_v19 = vld [vmem:[#allocation2 + $0x112] sm:$0xff] }
 0xe57   : > { %7153 = vrot.lane.b32.xlu2 %v14153_v28, %s9243_s16 }
 0xe58   : > { %7155 = vrot.lane.b32.xlu0 %v14155_v62, %s9243_s16 }
 0xe59   : > { %7157 = vrot.lane.b32.xlu1 %v14161_v24, %s9243_s16  ;;  %v6960_v11 = vpop.permute.xlu2 %6959 }
 0xe5a   : > { %v6944_v56 = vpop.permute.xlu0 %6943  ;;  %7041 = vst.msk [vmem:[#allocation3 + $0x70] sm:$0xff] %vm500_vm2, %v6960_v11 }
 0xe5b   : > { %v6946_v15 = vpop.permute.xlu1 %6945  ;;  %7033 = vst.msk [vmem:[#allocation3 + $0x30] sm:$0xff] %vm500_vm2, %v6944_v56 }
 0xe5c   : > { %7034 = vst.msk [vmem:[#allocation3 + $0x38] sm:$0xff] %vm500_vm2, %v6946_v15 }
 0xe5f   : > { %7159 = vrot.lane.b32.xlu2 %v14168_v5, %s9243_s16 }
 0xe60   : > { %7161 = vrot.lane.b32.xlu0 %v14170_v13, %s9243_s16 }
 0xe61   : > { %7163 = vrot.lane.b32.xlu1 %v7079_v26, %s9243_s16  ;;  %v6966_v43 = vpop.permute.xlu2 %6965  ;;  %v7083_v26 = vld [vmem:[#allocation2 + $0x122] sm:$0xff] }
 0xe62   : > { %v6950_v27 = vpop.permute.xlu0 %6949  ;;  %7044 = vst.msk [vmem:[#allocation3 + $0x88] sm:$0xff] %vm500_vm2, %v6966_v43  ;;  %v7084_v43 = vld [vmem:[#allocation2 + $0x12a] sm:$0xff] }
 0xe63   : > { %v6952_v38 = vpop.permute.xlu1 %6951  ;;  %7036 = vst.msk [vmem:[#allocation3 + $0x48] sm:$0xff] %vm500_vm2, %v6950_v27  ;;  %v7085_v27 = vld [vmem:[#allocation2 + $0x13a] sm:$0xff] }
 0xe64   : > { %7037 = vst.msk [vmem:[#allocation3 + $0x50] sm:$0xff] %vm500_vm2, %v6952_v38 }
 0xe67   : > { %7165 = vrot.lane.b32.xlu2 %v7080_v21, %s9243_s16 }
 0xe68   : > { %7167 = vrot.lane.b32.xlu0 %v7081_v60, %s9243_s16 }
 0xe69   : > { %7169 = vrot.lane.b32.xlu1 %v7082_v19, %s9243_s16  ;;  %v6972_v11 = vpop.permute.xlu2 %6971  ;;  %v7086_v19 = vld [vmem:[#allocation2 + $0x142] sm:$0xff] }
 0xe6a   : > { %v6956_v56 = vpop.permute.xlu0 %6955  ;;  %7047 = vst.msk [vmem:[#allocation3 + $0xa0] sm:$0xff] %vm500_vm2, %v6972_v11  ;;  %v7087_v11 = vld [vmem:[#allocation2 + $0x152] sm:$0xff] }
 0xe6b   : > { %v6958_v15 = vpop.permute.xlu1 %6957  ;;  %7039 = vst.msk [vmem:[#allocation3 + $0x60] sm:$0xff] %vm500_vm2, %v6956_v56  ;;  %v7088_v56 = vld [vmem:[#allocation2 + $0x15a] sm:$0xff] }
 0xe6c   : > { %7040 = vst.msk [vmem:[#allocation3 + $0x68] sm:$0xff] %vm500_vm2, %v6958_v15 }
 0xe6f   : > { %7171 = vrot.lane.b32.xlu2 %v7083_v26, %s9243_s16 }
 0xe70   : > { %7173 = vrot.lane.b32.xlu0 %v7084_v43, %s9243_s16 }
 0xe71   : > { %7175 = vrot.lane.b32.xlu1 %v7085_v27, %s9243_s16  ;;  %v6978_v38 = vpop.permute.xlu2 %6977  ;;  %v7089_v27 = vld [vmem:[#allocation2 + $0x16a] sm:$0xff] }
 0xe72   : > { %v6962_v21 = vpop.permute.xlu0 %6961  ;;  %7050 = vst.msk [vmem:[#allocation3 + $0xb8] sm:$0xff] %vm500_vm2, %v6978_v38  ;;  %v7090_v38 = vld [vmem:[#allocation2 + $0x172] sm:$0xff] }
 0xe73   : > { %v6964_v60 = vpop.permute.xlu1 %6963  ;;  %7042 = vst.msk [vmem:[#allocation3 + $0x78] sm:$0xff] %vm500_vm2, %v6962_v21 }
 0xe74   : > { %7043 = vst.msk [vmem:[#allocation3 + $0x80] sm:$0xff] %vm500_vm2, %v6964_v60 }
 0xe77   : > { %7177 = vrot.lane.b32.xlu2 %v7086_v19, %s9243_s16 }
 0xe78   : > { %7179 = vrot.lane.b32.xlu0 %v7087_v11, %s9243_s16 }
 0xe79   : > { %7181 = vrot.lane.b32.xlu1 %v7088_v56, %s9243_s16  ;;  %v6984_v15 = vpop.permute.xlu2 %6983 }
 0xe7a   : > { %v6968_v26 = vpop.permute.xlu0 %6967  ;;  %7053 = vst.msk [vmem:[#allocation3 + $0xd0] sm:$0xff] %vm500_vm2, %v6984_v15 }
 0xe7b   : > { %v6970_v43 = vpop.permute.xlu1 %6969  ;;  %7045 = vst.msk [vmem:[#allocation3 + $0x90] sm:$0xff] %vm500_vm2, %v6968_v26 }
 0xe7c   : > { %7046 = vst.msk [vmem:[#allocation3 + $0x98] sm:$0xff] %vm500_vm2, %v6970_v43 }
 0xe7f   : > { %7183 = vrot.lane.b32.xlu2 %v7089_v27, %s9243_s16 }
 0xe80   : > { %7185 = vrot.lane.b32.xlu0 %v7090_v38, %s9243_s16 }
 0xe81   : > { %7315 = vrot.lane.b32.xlu1 %v13958_v41, %s9244_s17  ;;  %v6990_v21 = vpop.permute.xlu2 %6989 }
 0xe82   : > { %v6974_v60 = vpop.permute.xlu0 %6973  ;;  %7056 = vst.msk [vmem:[#allocation3 + $0xe8] sm:$0xff] %vm500_vm2, %v6990_v21 }
 0xe83   : > { %v6976_v19 = vpop.permute.xlu1 %6975  ;;  %7048 = vst.msk [vmem:[#allocation3 + $0xa8] sm:$0xff] %vm500_vm2, %v6974_v60 }
 0xe84   : > { %7049 = vst.msk [vmem:[#allocation3 + $0xb0] sm:$0xff] %vm500_vm2, %v6976_v19 }
 0xe87   : > { %7317 = vrot.lane.b32.xlu2 %v13978_v17, %s9244_s17 }
 0xe88   : > { %7319 = vrot.lane.b32.xlu0 %v13970_v14, %s9244_s17 }
 0xe89   : > { %7321 = vrot.lane.b32.xlu1 %v13961_v2, %s9244_s17  ;;  %v7124_v11 = vpop.permute.xlu2 %7123 }
 0xe8a   : > { %v6980_v41 = vpop.permute.xlu0 %6979  ;;  %7219 = vst.msk [vmem:[#allocation3] sm:$0xff] %vm693_vm3, %v7124_v11 }
 0xe8b   : > { %v6982_v56 = vpop.permute.xlu1 %6981  ;;  %7051 = vst.msk [vmem:[#allocation3 + $0xc0] sm:$0xff] %vm500_vm2, %v6980_v41 }
 0xe8c   : > { %7052 = vst.msk [vmem:[#allocation3 + $0xc8] sm:$0xff] %vm500_vm2, %v6982_v56 }
 0xe8f   : > { %7323 = vrot.lane.b32.xlu2 %v13996_v34, %s9244_s17 }
 0xe90   : > { %7325 = vrot.lane.b32.xlu0 %v13992_v0, %s9244_s17 }
 0xe91   : > { %7327 = vrot.lane.b32.xlu1 %v13964_v33, %s9244_s17  ;;  %v7130_v17 = vpop.permute.xlu2 %7129 }
 0xe92   : > { %v6986_v15 = vpop.permute.xlu0 %6985  ;;  %7222 = vst.msk [vmem:[#allocation3 + $0x18] sm:$0xff] %vm693_vm3, %v7130_v17 }
 0xe93   : > { %v6988_v26 = vpop.permute.xlu1 %6987  ;;  %7054 = vst.msk [vmem:[#allocation3 + $0xd8] sm:$0xff] %vm500_vm2, %v6986_v15 }
 0xe94   : > { %7055 = vst.msk [vmem:[#allocation3 + $0xe0] sm:$0xff] %vm500_vm2, %v6988_v26 }
 0xe97   : > { %7507 = vrot.lane.b32.xlu2 %v13871_v20, %s9245_s18 }
 0xe98   : > { %7699 = vrot.lane.b32.xlu0 %v14094_v40, %s9246_s19 }
 0xe99   : > { %7891 = vrot.lane.b32.xlu1 %v13970_v14, %s9247_s20  ;;  %v7136_v43 = vpop.permute.xlu2 %7135 }
 0xe9a   : > { %v6992_v27 = vpop.permute.xlu0 %6991  ;;  %7225 = vst.msk [vmem:[#allocation3 + $0x30] sm:$0xff] %vm693_vm3, %v7136_v43 }
 0xe9b   : > { %v6994_v38 = vpop.permute.xlu1 %6993  ;;  %7057 = vst.msk [vmem:[#allocation3 + $0xf0] sm:$0xff] %vm500_vm2, %v6992_v27 }
 0xe9c   : > { %7058 = vst.msk [vmem:[#allocation3 + $0xf8] sm:$0xff] %vm500_vm2, %v6994_v38 }
 0xe9f   : > { %8083 = vrot.lane.b32.xlu2 %v13883_v44, %s9248_s21 }
 0xea0   : > { %8275 = vrot.lane.b32.xlu0 %v14101_v51, %s9249_s22 }
 0xea1   : > { %7509 = vrot.lane.b32.xlu1 %v13876_v47, %s9245_s18  ;;  %v7142_v20 = vpop.permute.xlu2 %7141 }
 0xea2   : > { %v7126_v14 = vpop.permute.xlu0 %7125  ;;  %7228 = vst.msk [vmem:[#allocation3 + $0x48] sm:$0xff] %vm693_vm3, %v7142_v20 }
 0xea3   : > { %7220 = vst.msk [vmem:[#allocation3 + $0x8] sm:$0xff] %vm693_vm3, %v7126_v14  ;;  %v7128_v40 = vpop.permute.xlu1 %7127 }
 0xea4   : > { %7221 = vst.msk [vmem:[#allocation3 + $0x10] sm:$0xff] %vm693_vm3, %v7128_v40 }
 0xea7   : > { %7701 = vrot.lane.b32.xlu2 %v14099_v61, %s9246_s19 }
 0xea8   : > { %7893 = vrot.lane.b32.xlu0 %v13961_v2, %s9247_s20 }
 0xea9   : > { %8085 = vrot.lane.b32.xlu1 %v13907_v39, %s9248_s21  ;;  %v7148_v21 = vpop.permute.xlu2 %7147 }
 0xeaa   : > { %v7132_v47 = vpop.permute.xlu0 %7131  ;;  %7231 = vst.msk [vmem:[#allocation3 + $0x60] sm:$0xff] %vm693_vm3, %v7148_v21  ;;  %v9133_v21 = vld [vmem:[%s15297_s1 + $0x90] sm:$0xff] }
 0xeab   : > { %7223 = vst.msk [vmem:[#allocation3 + $0x20] sm:$0xff] %vm693_vm3, %v7132_v47  ;;  %v7134_v60 = vpop.permute.xlu1 %7133  ;;  %v9131_v47 = vld [vmem:[%s15297_s1 + $0x80] sm:$0xff] }
 0xeac   : > { %7224 = vst.msk [vmem:[#allocation3 + $0x28] sm:$0xff] %vm693_vm3, %v7134_v60 }
 0xeaf   : > { %8277 = vrot.lane.b32.xlu2 %v14107_v3, %s9249_s22 }
 0xeb0   : > { %7511 = vrot.lane.b32.xlu0 %v13883_v44, %s9245_s18 }
 0xeb1   : > { %7703 = vrot.lane.b32.xlu1 %v14101_v51, %s9246_s19  ;;  %v7154_v2 = vpop.permute.xlu2 %7153 }
 0xeb2   : > { %v7138_v61 = vpop.permute.xlu0 %7137  ;;  %7234 = vst.msk [vmem:[#allocation3 + $0x78] sm:$0xff] %vm693_vm3, %v7154_v2  ;;  %v9130_v2 = vld [vmem:[%s15297_s1 + $0x78] sm:$0xff] }
 0xeb3   : > { %7226 = vst.msk [vmem:[#allocation3 + $0x38] sm:$0xff] %vm693_vm3, %v7138_v61  ;;  %v7140_v19 = vpop.permute.xlu1 %7139 }
 0xeb4   : > { %7227 = vst.msk [vmem:[#allocation3 + $0x40] sm:$0xff] %vm693_vm3, %v7140_v19 }
 0xeb7   : > { %7895 = vrot.lane.b32.xlu2 %v13996_v34, %s9247_s20 }
 0xeb8   : > { %8087 = vrot.lane.b32.xlu0 %v13912_v48, %s9248_s21 }
 0xeb9   : > { %8279 = vrot.lane.b32.xlu1 %v14112_v31, %s9249_s22  ;;  %v7160_v44 = vpop.permute.xlu2 %7159 }
 0xeba   : > { %v7144_v51 = vpop.permute.xlu0 %7143  ;;  %7237 = vst.msk [vmem:[#allocation3 + $0x90] sm:$0xff] %vm693_vm3, %v7160_v44 }
 0xebb   : > { %7229 = vst.msk [vmem:[#allocation3 + $0x50] sm:$0xff] %vm693_vm3, %v7144_v51  ;;  %v7146_v11 = vpop.permute.xlu1 %7145 }
 0xebc   : > { %7230 = vst.msk [vmem:[#allocation3 + $0x58] sm:$0xff] %vm693_vm3, %v7146_v11 }
 0xebf   : > { %7513 = vrot.lane.b32.xlu2 %v13907_v39, %s9245_s18 }
 0xec0   : > { %7705 = vrot.lane.b32.xlu0 %v14107_v3, %s9246_s19 }
 0xec1   : > { %7897 = vrot.lane.b32.xlu1 %v13992_v0, %s9247_s20  ;;  %v7166_v34 = vpop.permute.xlu2 %7165 }
 0xec2   : > { %v7150_v41 = vpop.permute.xlu0 %7149  ;;  %7240 = vst.msk [vmem:[#allocation3 + $0xa8] sm:$0xff] %vm693_vm3, %v7166_v34 }
 0xec3   : > { %7232 = vst.msk [vmem:[#allocation3 + $0x68] sm:$0xff] %vm693_vm3, %v7150_v41  ;;  %v7152_v56 = vpop.permute.xlu1 %7151 }
 0xec4   : > { %7233 = vst.msk [vmem:[#allocation3 + $0x70] sm:$0xff] %vm693_vm3, %v7152_v56 }
 0xec7   : > { %8089 = vrot.lane.b32.xlu2 %v13919_v50, %s9248_s21 }
 0xec8   : > { %8281 = vrot.lane.b32.xlu0 %v14114_v46, %s9249_s22 }
 0xec9   : > { %7515 = vrot.lane.b32.xlu1 %v13912_v48, %s9245_s18  ;;  %v7172_v39 = vpop.permute.xlu2 %7171 }
 0xeca   : > { %v7156_v0 = vpop.permute.xlu0 %7155  ;;  %7243 = vst.msk [vmem:[#allocation3 + $0xc0] sm:$0xff] %vm693_vm3, %v7172_v39 }
 0xecb   : > { %7235 = vst.msk [vmem:[#allocation3 + $0x80] sm:$0xff] %vm693_vm3, %v7156_v0  ;;  %v7158_v3 = vpop.permute.xlu1 %7157 }
 0xecc   : > { %7236 = vst.msk [vmem:[#allocation3 + $0x88] sm:$0xff] %vm693_vm3, %v7158_v3 }
 0xecf   : > { %7707 = vrot.lane.b32.xlu2 %v14112_v31, %s9246_s19 }
 0xed0   : > { %7899 = vrot.lane.b32.xlu0 %v13964_v33, %s9247_s20 }
 0xed1   : > { %8091 = vrot.lane.b32.xlu1 %v13941_v12, %s9248_s21  ;;  %v7178_v17 = vpop.permute.xlu2 %7177 }
 0xed2   : > { %v7162_v48 = vpop.permute.xlu0 %7161  ;;  %7246 = vst.msk [vmem:[#allocation3 + $0xd8] sm:$0xff] %vm693_vm3, %v7178_v17 }
 0xed3   : > { %7238 = vst.msk [vmem:[#allocation3 + $0x98] sm:$0xff] %vm693_vm3, %v7162_v48  ;;  %v7164_v15 = vpop.permute.xlu1 %7163 }
 0xed4   : > { %7239 = vst.msk [vmem:[#allocation3 + $0xa0] sm:$0xff] %vm693_vm3, %v7164_v15 }
 0xed7   : > { %8283 = vrot.lane.b32.xlu2 %v14120_v30, %s9249_s22 }
 0xed8   : > { %7517 = vrot.lane.b32.xlu0 %v13919_v50, %s9245_s18 }
 0xed9   : > { %7709 = vrot.lane.b32.xlu1 %v14114_v46, %s9246_s19  ;;  %v7184_v33 = vpop.permute.xlu2 %7183 }
 0xeda   : > { %v7168_v31 = vpop.permute.xlu0 %7167  ;;  %7249 = vst.msk [vmem:[#allocation3 + $0xf0] sm:$0xff] %vm693_vm3, %v7184_v33 }
 0xedb   : > { %7241 = vst.msk [vmem:[#allocation3 + $0xb0] sm:$0xff] %vm693_vm3, %v7168_v31  ;;  %v7170_v26 = vpop.permute.xlu1 %7169 }
 0xedc   : > { %7242 = vst.msk [vmem:[#allocation3 + $0xb8] sm:$0xff] %vm693_vm3, %v7170_v26 }
 0xedf   : > { %7901 = vrot.lane.b32.xlu2 %v14008_v55, %s9247_s20 }
 0xee0   : > { %8093 = vrot.lane.b32.xlu0 %v13944_v9, %s9248_s21 }
 0xee1   : > { %8285 = vrot.lane.b32.xlu1 %v14125_v25, %s9249_s22  ;;  %v7318_v50 = vpop.permute.xlu2 %7317 }
 0xee2   : > { %v7174_v46 = vpop.permute.xlu0 %7173  ;;  %7412 = vst.msk [vmem:[#allocation3 + $0x8] sm:$0xff] %vm886_vm4, %v7318_v50 }
 0xee3   : > { %7244 = vst.msk [vmem:[#allocation3 + $0xc8] sm:$0xff] %vm693_vm3, %v7174_v46  ;;  %v7176_v43 = vpop.permute.xlu1 %7175 }
 0xee4   : > { %7245 = vst.msk [vmem:[#allocation3 + $0xd0] sm:$0xff] %vm693_vm3, %v7176_v43 }
 0xee7   : > { %7519 = vrot.lane.b32.xlu2 %v13941_v12, %s9245_s18 }
 0xee8   : > { %7711 = vrot.lane.b32.xlu0 %v14120_v30, %s9246_s19  ;;  %v9134_v30 = vld [vmem:[%s15297_s1 + $0x98] sm:$0xf] }
 0xee9   : > { %7903 = vrot.lane.b32.xlu1 %v14004_v49, %s9247_s20  ;;  %v7324_v27 = vpop.permute.xlu2 %7323  ;;  %9168 = vmatpush.msk.msra.mxu3 %vm2014_vm9, %v9134_v30  ;;  %v7456_v30 = vld [vmem:[#allocation2 + $0xb1] sm:$0xff] }
 0xeea   : > { %v7180_v38 = vpop.permute.xlu0 %7179  ;;  %7415 = vst.msk [vmem:[#allocation3 + $0x20] sm:$0xff] %vm886_vm4, %v7324_v27 }
 0xeeb   : > { %7247 = vst.msk [vmem:[#allocation3 + $0xe0] sm:$0xff] %vm693_vm3, %v7180_v38  ;;  %v7182_v20 = vpop.permute.xlu1 %7181  ;;  %8546 = vmatpush.msra.mxu3 %v9133_v21  ;;  %v8031_v38 = vld [vmem:[#allocation2 + $0xc1] sm:$0xff] }
 0xeec   : > { %7248 = vst.msk [vmem:[#allocation3 + $0xe8] sm:$0xff] %vm693_vm3, %v7182_v20 }
 0xeef   : > { %8095 = vrot.lane.b32.xlu2 %v13949_v18, %s9248_s21 }
 0xef0   : > { %8287 = vrot.lane.b32.xlu0 %v14127_v22, %s9249_s22 }
 0xef1   : > { %7329 = vrot.lane.b32.xlu1 %v14008_v55, %s9244_s17  ;;  %v7508_v12 = vpop.permute.xlu2 %7507  ;;  %v9132_v55 = vld [vmem:[%s15297_s1 + $0x88] sm:$0xff] }
 0xef2   : > { %v7186_v14 = vpop.permute.xlu0 %7185  ;;  %8547 = vmatpush.msra.mxu3 %v9132_v55  ;;  %v8032_v55 = vld [vmem:[#allocation2 + $0xc9] sm:$0xff] }
 0xef3   : > { %7250 = vst.msk [vmem:[#allocation3 + $0xf8] sm:$0xff] %vm693_vm3, %v7186_v14  ;;  %v7316_v40 = vpop.permute.xlu1 %7315 }
 0xef4   : > { %7411 = vst.msk [vmem:[#allocation3] sm:$0xff] %vm886_vm4, %v7316_v40  ;;  %8548 = vmatpush.msra.mxu3 %v9131_v47 }
 0xef5   : > { %7603 = vst.msk [vmem:[#allocation3] sm:$0xff] %vm1079_vm5, %v7508_v12 }
 0xef6   : > { %8549 = vmatpush.msra.mxu3 %v9130_v2 }
 0xef7   : > { %7521 = vrot.lane.b32.xlu2 %v13944_v9, %s9245_s18 }
 0xef8   : > { %7713 = vrot.lane.b32.xlu0 %v14125_v25, %s9246_s19 }
 0xef9   : > { %7905 = vrot.lane.b32.xlu1 %v13986_v16, %s9247_s20  ;;  %v8084_v60 = vpop.permute.xlu2 %8083 }
 0xefa   : > { %v7320_v61 = vpop.permute.xlu0 %7319 }
 0xefb   : > { %7413 = vst.msk [vmem:[#allocation3 + $0x10] sm:$0xff] %vm886_vm4, %v7320_v61  ;;  %v7322_v9 = vpop.permute.xlu1 %7321 }
 0xefc   : > { %7414 = vst.msk [vmem:[#allocation3 + $0x18] sm:$0xff] %vm886_vm4, %v7322_v9 }
 0xeff   : > { %8097 = vrot.lane.b32.xlu2 %v13966_v32, %s9248_s21 }
 0xf00   : > { %8289 = vrot.lane.b32.xlu0 %v14133_v63, %s9249_s22 }
 0xf01   : > { %7331 = vrot.lane.b32.xlu1 %v14004_v49, %s9244_s17  ;;  %v7702_v25 = vpop.permute.xlu2 %7701 }
 0xf02   : > { %v7326_v19 = vpop.permute.xlu0 %7325 }
 0xf03   : > { %7416 = vst.msk [vmem:[#allocation3 + $0x28] sm:$0xff] %vm886_vm4, %v7326_v19  ;;  %v7328_v44 = vpop.permute.xlu1 %7327 }
 0xf04   : > { %7417 = vst.msk [vmem:[#allocation3 + $0x30] sm:$0xff] %vm886_vm4, %v7328_v44 }
 0xf07   : > { %7523 = vrot.lane.b32.xlu2 %v13949_v18, %s9245_s18 }
 0xf08   : > { %7715 = vrot.lane.b32.xlu0 %v14127_v22, %s9246_s19 }
 0xf09   : > { %7907 = vrot.lane.b32.xlu1 %v14028_v6, %s9247_s20  ;;  %v8278_v51 = vpop.permute.xlu2 %8277 }
 0xf0a   : > { %v7700_v11 = vpop.permute.xlu0 %7699 }
 0xf0b   : > { %7795 = vst.msk [vmem:[#allocation3] sm:$0xff] %vm1272_vm6, %v7700_v11  ;;  %v7892_v49 = vpop.permute.xlu1 %7891 }
 0xf0c   : > { %7987 = vst.msk [vmem:[#allocation3] sm:$0xff] %vm1466_vm7, %v7892_v49 }
 0xf0d   : > { %8179 = vst.msk [vmem:[#allocation3] sm:$0xff] %vm1659_vm8, %v8084_v60 }
 0xf0f   : > { %8099 = vrot.lane.b32.xlu2 %v13972_v10, %s9248_s21 }
 0xf10   : > { %8291 = vrot.lane.b32.xlu0 %v14138_v57, %s9249_s22 }
 0xf11   : > { %7333 = vrot.lane.b32.xlu1 %v13986_v16, %s9244_s17  ;;  %v7896_v18 = vpop.permute.xlu2 %7895 }
 0xf12   : > { %v8276_v22 = vpop.permute.xlu0 %8275 }
 0xf13   : > { %8371 = vst.msk [vmem:[#allocation3] sm:$0xff] %vm1852_vm10, %v8276_v22  ;;  %v7510_v34 = vpop.permute.xlu1 %7509 }
 0xf14   : > { %7604 = vst.msk [vmem:[#allocation3 + $0x8] sm:$0xff] %vm1079_vm5, %v7510_v34 }
 0xf15   : > { %7796 = vst.msk [vmem:[#allocation3 + $0x8] sm:$0xff] %vm1272_vm6, %v7702_v25  ;;  %v8033_v25 = vld [vmem:[#allocation2 + $0xd9] sm:$0xff] }
 0xf17   : > { %7525 = vrot.lane.b32.xlu2 %v13966_v32, %s9245_s18 }
 0xf18   : > { %7717 = vrot.lane.b32.xlu0 %v14133_v63, %s9246_s19 }
 0xf19   : > { %7909 = vrot.lane.b32.xlu1 %v14022_v42, %s9247_s20  ;;  %v7514_v41 = vpop.permute.xlu2 %7513 }
 0xf1a   : > { %v7894_v16 = vpop.permute.xlu0 %7893  ;;  %7606 = vst.msk [vmem:[#allocation3 + $0x18] sm:$0xff] %vm1079_vm5, %v7514_v41  ;;  %v8403_v56 = vld [vmem:[#allocation3] sm:$0xff] }
 0xf1b   : > { %7988 = vst.msk [vmem:[#allocation3 + $0x8] sm:$0xff] %vm1466_vm7, %v7894_v16  ;;  %v8086_v39 = vpop.permute.xlu1 %8085  ;;  %9169 = vmatmul.msk.f32.vlgmr.msra.gmra.mxu3 %vm1917_vm11, %v8403_v56  ;;  %v8035_v56 = vld [vmem:[#allocation2 + $0xf1] sm:$0xff] }
 0xf1c   : > { %8180 = vst.msk [vmem:[#allocation3 + $0x8] sm:$0xff] %vm1659_vm8, %v8086_v39  ;;  %v8227_v39 = vld [vmem:[#allocation2 + $0xf2] sm:$0xff] }
 0xf1d   : > { %8372 = vst.msk [vmem:[#allocation3 + $0x8] sm:$0xff] %vm1852_vm10, %v8278_v51 }
 0xf1f   : > { %8101 = vrot.lane.b32.xlu2 %v13980_v8, %s9248_s21 }
 0xf20   : > { %8293 = vrot.lane.b32.xlu0 %v14140_v7, %s9249_s22 }
 0xf21   : > { %7335 = vrot.lane.b32.xlu1 %v14028_v6, %s9244_s17  ;;  %v8090_v32 = vpop.permute.xlu2 %8089 }
 0xf22   : > { %v7512_v63 = vpop.permute.xlu0 %7511 }
 0xf23   : > { %7605 = vst.msk [vmem:[#allocation3 + $0x10] sm:$0xff] %vm1079_vm5, %v7512_v63  ;;  %v7704_v0 = vpop.permute.xlu1 %7703  ;;  %v7652_v63 = vld [vmem:[#allocation2 + $0xe2] sm:$0xff] }
 0xf24   : > { %7797 = vst.msk [vmem:[#allocation3 + $0x10] sm:$0xff] %vm1272_vm6, %v7704_v0  ;;  %v8404_v3 = vld [vmem:[#allocation3 + $0x8] sm:$0xff] }
 0xf25   : > { %7989 = vst.msk [vmem:[#allocation3 + $0x10] sm:$0xff] %vm1466_vm7, %v7896_v18  ;;  %9170 = vmatmul.msk.f32.gmra.mxu3 %vm1917_vm11, %v8404_v3  ;;  %v8034_v18 = vld [vmem:[#allocation2 + $0xe1] sm:$0xff] }
 0xf27   : > { %7527 = vrot.lane.b32.xlu2 %v13972_v10, %s9245_s18 }
 0xf28   : > { %7719 = vrot.lane.b32.xlu0 %v14138_v57, %s9246_s19 }
 0xf29   : > { %7911 = vrot.lane.b32.xlu1 %v14000_v45, %s9247_s20  ;;  %v7708_v6 = vpop.permute.xlu2 %7707 }
 0xf2a   : > { %v8088_v17 = vpop.permute.xlu0 %8087 }
 0xf2b   : > { %8181 = vst.msk [vmem:[#allocation3 + $0x10] sm:$0xff] %vm1659_vm8, %v8088_v17  ;;  %v8280_v48 = vpop.permute.xlu1 %8279  ;;  %v8036_v17 = vld [vmem:[#allocation2 + $0xf9] sm:$0xff] }
 0xf2c   : > { %8373 = vst.msk [vmem:[#allocation3 + $0x10] sm:$0xff] %vm1852_vm10, %v8280_v48  ;;  %v8228_v48 = vld [vmem:[#allocation2 + $0xfa] sm:$0xff] }
 0xf2f   : > { %8103 = vrot.lane.b32.xlu2 %v14010_v59, %s9248_s21 }
 0xf30   : > { %8295 = vrot.lane.b32.xlu0 %v14146_v35, %s9249_s22 }
 0xf31   : > { %7337 = vrot.lane.b32.xlu1 %v14022_v42, %s9244_s17  ;;  %v8284_v10 = vpop.permute.xlu2 %8283 }
 0xf32   : > { %v7706_v57 = vpop.permute.xlu0 %7705 }
 0xf33   : > { %7798 = vst.msk [vmem:[#allocation3 + $0x18] sm:$0xff] %vm1272_vm6, %v7706_v57  ;;  %v7898_v15 = vpop.permute.xlu1 %7897  ;;  %v8405_v33 = vld [vmem:[#allocation3 + $0x10] sm:$0xff] }
 0xf34   : > { %7990 = vst.msk [vmem:[#allocation3 + $0x18] sm:$0xff] %vm1466_vm7, %v7898_v15  ;;  %9171 = vmatmul.msk.f32.gmra.mxu3 %vm1917_vm11, %v8405_v33 }
 0xf35   : > { %8182 = vst.msk [vmem:[#allocation3 + $0x18] sm:$0xff] %vm1659_vm8, %v8090_v32 }
 0xf37   : > { %7529 = vrot.lane.b32.xlu2 %v13980_v8, %s9245_s18 }
 0xf38   : > { %7721 = vrot.lane.b32.xlu0 %v14140_v7, %s9246_s19 }
 0xf39   : > { %7913 = vrot.lane.b32.xlu1 %v14041_v23, %s9247_s20  ;;  %v7902_v59 = vpop.permute.xlu2 %7901 }
 0xf3a   : > { %v8282_v42 = vpop.permute.xlu0 %8281 }
 0xf3b   : > { %8374 = vst.msk [vmem:[#allocation3 + $0x18] sm:$0xff] %vm1852_vm10, %v8282_v42  ;;  %v7516_v31 = vpop.permute.xlu1 %7515 }
 0xf3c   : > { %7607 = vst.msk [vmem:[#allocation3 + $0x20] sm:$0xff] %vm1079_vm5, %v7516_v31 }
 0xf3d   : > { %7799 = vst.msk [vmem:[#allocation3 + $0x20] sm:$0xff] %vm1272_vm6, %v7708_v6 }
 0xf3f   : > { %8105 = vrot.lane.b32.xlu2 %v14016_v52, %s9248_s21  ;;  %v7455_v52 = vld [vmem:[#allocation2 + $0xa9] sm:$0xff] }
 0xf40   : > { %8297 = vrot.lane.b32.xlu0 %v14153_v28, %s9249_s22 }
 0xf41   : > { %7339 = vrot.lane.b32.xlu1 %v14000_v45, %s9244_s17  ;;  %v7520_v8 = vpop.permute.xlu2 %7519 }
 0xf42   : > { %v7900_v7 = vpop.permute.xlu0 %7899  ;;  %7609 = vst.msk [vmem:[#allocation3 + $0x30] sm:$0xff] %vm1079_vm5, %v7520_v8  ;;  %v8406_v26 = vld [vmem:[#allocation3 + $0x18] sm:$0xff] }
 0xf43   : > { %7991 = vst.msk [vmem:[#allocation3 + $0x20] sm:$0xff] %vm1466_vm7, %v7900_v7  ;;  %v8092_v50 = vpop.permute.xlu1 %8091  ;;  %9172 = vmatmul.msk.f32.gmra.mxu3 %vm1917_vm11, %v8406_v26  ;;  %v8037_v7 = vld [vmem:[#allocation2 + $0x109] sm:$0xff] }
 0xf44   : > { %8183 = vst.msk [vmem:[#allocation3 + $0x20] sm:$0xff] %vm1659_vm8, %v8092_v50  ;;  %v8229_v26 = vld [vmem:[#allocation2 + $0x10a] sm:$0xff] }
 0xf45   : > { %8375 = vst.msk [vmem:[#allocation3 + $0x20] sm:$0xff] %vm1852_vm10, %v8284_v10  ;;  %v7269_v10 = vld [vmem:[#allocation2 + $0xf0] sm:$0xff] }
 0xf47   : > { %7531 = vrot.lane.b32.xlu2 %v7455_v52, %s9245_s18 }
 0xf48   : > { %7723 = vrot.lane.b32.xlu0 %v14146_v35, %s9246_s19 }
 0xf49   : > { %7915 = vrot.lane.b32.xlu1 %v14037_v1, %s9247_s20  ;;  %v8096_v45 = vpop.permute.xlu2 %8095 }
 0xf4a   : > { %v7518_v46 = vpop.permute.xlu0 %7517 }
 0xf4b   : > { %7608 = vst.msk [vmem:[#allocation3 + $0x28] sm:$0xff] %vm1079_vm5, %v7518_v46  ;;  %v7710_v43 = vpop.permute.xlu1 %7709 }
 0xf4c   : > { %7800 = vst.msk [vmem:[#allocation3 + $0x28] sm:$0xff] %vm1272_vm6, %v7710_v43  ;;  %v8407_v27 = vld [vmem:[#allocation3 + $0x20] sm:$0xff] }
 0xf4d   : > { %7992 = vst.msk [vmem:[#allocation3 + $0x28] sm:$0xff] %vm1466_vm7, %v7902_v59  ;;  %9173 = vmatmul.msk.f32.gmra.mxu3 %vm1917_vm11, %v8407_v27 }
 0xf4f   : > { %8107 = vrot.lane.b32.xlu2 %v8031_v38, %s9248_s21 }
 0xf50   : > { %8299 = vrot.lane.b32.xlu0 %v14155_v62, %s9249_s22 }
 0xf51   : > { %7341 = vrot.lane.b32.xlu1 %v14041_v23, %s9244_s17  ;;  %v7522_v35 = vpop.permute.xlu2 %7521 }
 0xf52   : > { %v8094_v20 = vpop.permute.xlu0 %8093 }
 0xf53   : > { %8184 = vst.msk [vmem:[#allocation3 + $0x28] sm:$0xff] %vm1659_vm8, %v8094_v20  ;;  %v8286_v12 = vpop.permute.xlu1 %8285  ;;  %v7271_v20 = vld [vmem:[#allocation2 + $0x108] sm:$0xff] }
 0xf54   : > { %8376 = vst.msk [vmem:[#allocation3 + $0x28] sm:$0xff] %vm1852_vm10, %v8286_v12 }
 0xf57   : > { %7533 = vrot.lane.b32.xlu2 %v7456_v30, %s9245_s18 }
 0xf58   : > { %7725 = vrot.lane.b32.xlu0 %v14153_v28, %s9246_s19 }
 0xf59   : > { %7917 = vrot.lane.b32.xlu1 %v14014_v53, %s9247_s20  ;;  %v8098_v14 = vpop.permute.xlu2 %8097 }
 0xf5a   : > { %v7712_v40 = vpop.permute.xlu0 %7711 }
 0xf5b   : > { %7801 = vst.msk [vmem:[#allocation3 + $0x30] sm:$0xff] %vm1272_vm6, %v7712_v40  ;;  %v7904_v23 = vpop.permute.xlu1 %7903  ;;  %v8408_v21 = vld [vmem:[#allocation3 + $0x28] sm:$0xff]  ;;  %v7847_v40 = vld [vmem:[#allocation2 + $0x120] sm:$0xff] }
 0xf5c   : > { %7993 = vst.msk [vmem:[#allocation3 + $0x30] sm:$0xff] %vm1466_vm7, %v7904_v23  ;;  %9174 = vmatmul.msk.f32.gmra.mxu3 %vm1917_vm11, %v8408_v21 }
 0xf5d   : > { %8185 = vst.msk [vmem:[#allocation3 + $0x30] sm:$0xff] %vm1659_vm8, %v8096_v45  ;;  %v7846_v45 = vld [vmem:[#allocation2 + $0x110] sm:$0xff] }
 0xf5f   : > { %8109 = vrot.lane.b32.xlu2 %v8032_v55, %s9248_s21 }
 0xf60   : > { %8301 = vrot.lane.b32.xlu0 %v14161_v24, %s9249_s22 }
 0xf61   : > { %7343 = vrot.lane.b32.xlu1 %v14037_v1, %s9244_s17  ;;  %v7524_v28 = vpop.permute.xlu2 %7523 }
 0xf62   : > { %v8288_v47 = vpop.permute.xlu0 %8287 }
 0xf63   : > { %8377 = vst.msk [vmem:[#allocation3 + $0x30] sm:$0xff] %vm1852_vm10, %v8288_v47  ;;  %v7330_v60 = vpop.permute.xlu1 %7329  ;;  %v8039_v47 = vld [vmem:[#allocation2 + $0x121] sm:$0xff] }
 0xf64   : > { %7418 = vst.msk [vmem:[#allocation3 + $0x38] sm:$0xff] %vm886_vm4, %v7330_v60  ;;  %v8231_v60 = vld [vmem:[#allocation2 + $0x122] sm:$0xff] }
 0xf65   : > { %7610 = vst.msk [vmem:[#allocation3 + $0x38] sm:$0xff] %vm1079_vm5, %v7522_v35  ;;  %v8230_v35 = vld [vmem:[#allocation2 + $0x112] sm:$0xff] }
 0xf67   : > { %7535 = vrot.lane.b32.xlu2 %v8031_v38, %s9245_s18  ;;  %v8038_v38 = vld [vmem:[#allocation2 + $0x111] sm:$0xff] }
 0xf68   : > { %7727 = vrot.lane.b32.xlu0 %v14155_v62, %s9246_s19 }
 0xf69   : > { %7919 = vrot.lane.b32.xlu1 %v14051_v36, %s9247_s20  ;;  %v8100_v2 = vpop.permute.xlu2 %8099 }
 0xf6a   : > { %v7714_v61 = vpop.permute.xlu0 %7713  ;;  %v8409_v1 = vld [vmem:[#allocation3 + $0x30] sm:$0xff] }
 0xf6b   : > { %7802 = vst.msk [vmem:[#allocation3 + $0x38] sm:$0xff] %vm1272_vm6, %v7714_v61  ;;  %v7906_v9 = vpop.permute.xlu1 %7905  ;;  %9175 = vmatmul.msk.f32.gmra.mxu3 %vm1917_vm11, %v8409_v1 }
 0xf6c   : > { %7994 = vst.msk [vmem:[#allocation3 + $0x38] sm:$0xff] %vm1466_vm7, %v7906_v9  ;;  %v7848_v9 = vld [vmem:[#allocation2 + $0x128] sm:$0xff] }
 0xf6d   : > { %8186 = vst.msk [vmem:[#allocation3 + $0x38] sm:$0xff] %vm1659_vm8, %v8098_v14 }
 0xf6f   : > { %8111 = vrot.lane.b32.xlu2 %v8033_v25, %s9248_s21 }
 0xf70   : > { %8303 = vrot.lane.b32.xlu0 %v14168_v5, %s9249_s22 }
 0xf71   : > { %7345 = vrot.lane.b32.xlu1 %v14014_v53, %s9244_s17  ;;  %v7526_v62 = vpop.permute.xlu2 %7525 }
 0xf72   : > { %v8290_v19 = vpop.permute.xlu0 %8289 }
 0xf73   : > { %8378 = vst.msk [vmem:[#allocation3 + $0x38] sm:$0xff] %vm1852_vm10, %v8290_v19  ;;  %v7332_v44 = vpop.permute.xlu1 %7331 }
 0xf74   : > { %7419 = vst.msk [vmem:[#allocation3 + $0x40] sm:$0xff] %vm886_vm4, %v7332_v44 }
 0xf75   : > { %7611 = vst.msk [vmem:[#allocation3 + $0x40] sm:$0xff] %vm1079_vm5, %v7524_v28 }
 0xf77   : > { %7537 = vrot.lane.b32.xlu2 %v8032_v55, %s9245_s18 }
 0xf78   : > { %7729 = vrot.lane.b32.xlu0 %v14161_v24, %s9246_s19 }
 0xf79   : > { %7921 = vrot.lane.b32.xlu1 %v14047_v29, %s9247_s20  ;;  %v8102_v51 = vpop.permute.xlu2 %8101 }
 0xf7a   : > { %v7716_v11 = vpop.permute.xlu0 %7715  ;;  %v8410_v53 = vld [vmem:[#allocation3 + $0x38] sm:$0xff] }
 0xf7b   : > { %7803 = vst.msk [vmem:[#allocation3 + $0x40] sm:$0xff] %vm1272_vm6, %v7716_v11  ;;  %v7908_v49 = vpop.permute.xlu1 %7907  ;;  %9176 = vmatmul.msk.f32.gmra.mxu3 %vm1917_vm11, %v8410_v53  ;;  %v8232_v11 = vld [vmem:[#allocation2 + $0x12a] sm:$0xff] }
 0xf7c   : > { %7995 = vst.msk [vmem:[#allocation3 + $0x40] sm:$0xff] %vm1466_vm7, %v7908_v49 }
 0xf7d   : > { %8187 = vst.msk [vmem:[#allocation3 + $0x40] sm:$0xff] %vm1659_vm8, %v8100_v2 }
 0xf7f   : > { %8113 = vrot.lane.b32.xlu2 %v8034_v18, %s9248_s21 }
 0xf80   : > { %8305 = vrot.lane.b32.xlu0 %v14170_v13, %s9249_s22 }
 0xf81   : > { %7347 = vrot.lane.b32.xlu1 %v14051_v36, %s9244_s17  ;;  %v7528_v24 = vpop.permute.xlu2 %7527 }
 0xf82   : > { %v8292_v22 = vpop.permute.xlu0 %8291 }
 0xf83   : > { %8379 = vst.msk [vmem:[#allocation3 + $0x40] sm:$0xff] %vm1852_vm10, %v8292_v22  ;;  %v7334_v34 = vpop.permute.xlu1 %7333 }
 0xf84   : > { %7420 = vst.msk [vmem:[#allocation3 + $0x48] sm:$0xff] %vm886_vm4, %v7334_v34 }
 0xf85   : > { %7612 = vst.msk [vmem:[#allocation3 + $0x48] sm:$0xff] %vm1079_vm5, %v7526_v62 }
 0xf87   : > { %7539 = vrot.lane.b32.xlu2 %v8033_v25, %s9245_s18 }
 0xf88   : > { %7731 = vrot.lane.b32.xlu0 %v14168_v5, %s9246_s19 }
 0xf89   : > { %7923 = vrot.lane.b32.xlu1 %v14033_v37, %s9247_s20  ;;  %v8104_v13 = vpop.permute.xlu2 %8103 }
 0xf8a   : > { %v7718_v41 = vpop.permute.xlu0 %7717  ;;  %v8411_v36 = vld [vmem:[#allocation3 + $0x40] sm:$0xff] }
 0xf8b   : > { %7804 = vst.msk [vmem:[#allocation3 + $0x48] sm:$0xff] %vm1272_vm6, %v7718_v41  ;;  %v7910_v16 = vpop.permute.xlu1 %7909  ;;  %9177 = vmatmul.msk.f32.gmra.mxu3 %vm1917_vm11, %v8411_v36  ;;  %v8041_v36 = vld [vmem:[#allocation2 + $0x139] sm:$0xff] }
 0xf8c   : > { %7996 = vst.msk [vmem:[#allocation3 + $0x48] sm:$0xff] %vm1466_vm7, %v7910_v16  ;;  %v8233_v16 = vld [vmem:[#allocation2 + $0x13a] sm:$0xff] }
 0xf8d   : > { %8188 = vst.msk [vmem:[#allocation3 + $0x48] sm:$0xff] %vm1659_vm8, %v8102_v51  ;;  %v8040_v51 = vld [vmem:[#allocation2 + $0x129] sm:$0xff] }
 0xf8f   : > { %8115 = vrot.lane.b32.xlu2 %v8035_v56, %s9248_s21 }
 0xf90   : > { %8307 = vrot.lane.b32.xlu0 %v8227_v39, %s9249_s22 }
 0xf91   : > { %7349 = vrot.lane.b32.xlu1 %v14047_v29, %s9244_s17  ;;  %v7530_v37 = vpop.permute.xlu2 %7529 }
 0xf92   : > { %v8294_v5 = vpop.permute.xlu0 %8293 }
 0xf93   : > { %8380 = vst.msk [vmem:[#allocation3 + $0x48] sm:$0xff] %vm1852_vm10, %v8294_v5  ;;  %v7336_v32 = vpop.permute.xlu1 %7335  ;;  %v7850_v5 = vld [vmem:[#allocation2 + $0x140] sm:$0xff] }
 0xf94   : > { %7421 = vst.msk [vmem:[#allocation3 + $0x50] sm:$0xff] %vm886_vm4, %v7336_v32 }
 0xf95   : > { %7613 = vst.msk [vmem:[#allocation3 + $0x50] sm:$0xff] %vm1079_vm5, %v7528_v24  ;;  %v7849_v24 = vld [vmem:[#allocation2 + $0x138] sm:$0xff] }
 0xf97   : > { %7541 = vrot.lane.b32.xlu2 %v8034_v18, %s9245_s18 }
 0xf98   : > { %7733 = vrot.lane.b32.xlu0 %v7652_v63, %s9246_s19 }
 0xf99   : > { %7925 = vrot.lane.b32.xlu1 %v14063_v58, %s9247_s20  ;;  %v8106_v0 = vpop.permute.xlu2 %8105 }
 0xf9a   : > { %v7720_v3 = vpop.permute.xlu0 %7719  ;;  %v8412_v29 = vld [vmem:[#allocation3 + $0x48] sm:$0xff] }
 0xf9b   : > { %7805 = vst.msk [vmem:[#allocation3 + $0x50] sm:$0xff] %vm1272_vm6, %v7720_v3  ;;  %v7912_v6 = vpop.permute.xlu1 %7911  ;;  %9178 = vmatmul.msk.f32.gmra.mxu3 %vm1917_vm11, %v8412_v29  ;;  %v8042_v29 = vld [vmem:[#allocation2 + $0x141] sm:$0xff] }
 0xf9c   : > { %7997 = vst.msk [vmem:[#allocation3 + $0x50] sm:$0xff] %vm1466_vm7, %v7912_v6  ;;  %v8234_v6 = vld [vmem:[#allocation2 + $0x142] sm:$0xff] }
 0xf9d   : > { %8189 = vst.msk [vmem:[#allocation3 + $0x50] sm:$0xff] %vm1659_vm8, %v8104_v13 }
 0xf9f   : > { %8117 = vrot.lane.b32.xlu2 %v8036_v17, %s9248_s21 }
 0xfa0   : > { %8309 = vrot.lane.b32.xlu0 %v8228_v48, %s9249_s22 }
 0xfa1   : > { %7351 = vrot.lane.b32.xlu1 %v7269_v10, %s9244_s17  ;;  %v7532_v57 = vpop.permute.xlu2 %7531 }
 0xfa2   : > { %v8296_v15 = vpop.permute.xlu0 %8295 }
 0xfa3   : > { %8381 = vst.msk [vmem:[#allocation3 + $0x50] sm:$0xff] %vm1852_vm10, %v8296_v15  ;;  %v7338_v33 = vpop.permute.xlu1 %7337 }
 0xfa4   : > { %7422 = vst.msk [vmem:[#allocation3 + $0x58] sm:$0xff] %vm886_vm4, %v7338_v33 }
 0xfa5   : > { %7614 = vst.msk [vmem:[#allocation3 + $0x58] sm:$0xff] %vm1079_vm5, %v7530_v37 }
 0xfa7   : > { %7543 = vrot.lane.b32.xlu2 %v8035_v56, %s9245_s18 }
 0xfa8   : > { %7735 = vrot.lane.b32.xlu0 %v8227_v39, %s9246_s19 }
 0xfa9   : > { %7927 = vrot.lane.b32.xlu1 %v14058_v54, %s9247_s20  ;;  %v8108_v59 = vpop.permute.xlu2 %8107 }
 0xfaa   : > { %v7722_v42 = vpop.permute.xlu0 %7721  ;;  %v8413_v31 = vld [vmem:[#allocation3 + $0x50] sm:$0xff] }
 0xfab   : > { %7806 = vst.msk [vmem:[#allocation3 + $0x58] sm:$0xff] %vm1272_vm6, %v7722_v42  ;;  %v7914_v8 = vpop.permute.xlu1 %7913  ;;  %9179 = vmatmul.msk.f32.gmra.mxu3 %vm1917_vm11, %v8413_v31  ;;  %v8043_v31 = vld [vmem:[#allocation2 + $0x151] sm:$0xff] }
 0xfac   : > { %7998 = vst.msk [vmem:[#allocation3 + $0x58] sm:$0xff] %vm1466_vm7, %v7914_v8  ;;  %v8235_v8 = vld [vmem:[#allocation2 + $0x152] sm:$0xff] }
 0xfad   : > { %8190 = vst.msk [vmem:[#allocation3 + $0x58] sm:$0xff] %vm1659_vm8, %v8106_v0 }
 0xfaf   : > { %8119 = vrot.lane.b32.xlu2 %v8037_v7, %s9248_s21 }
 0xfb0   : > { %8311 = vrot.lane.b32.xlu0 %v8229_v26, %s9249_s22 }
 0xfb1   : > { %7353 = vrot.lane.b32.xlu1 %v14063_v58, %s9244_s17  ;;  %v7534_v54 = vpop.permute.xlu2 %7533 }
 0xfb2   : > { %v8298_v50 = vpop.permute.xlu0 %8297 }
 0xfb3   : > { %8382 = vst.msk [vmem:[#allocation3 + $0x58] sm:$0xff] %vm1852_vm10, %v8298_v50  ;;  %v7340_v52 = vpop.permute.xlu1 %7339  ;;  %v7852_v50 = vld [vmem:[#allocation2 + $0x158] sm:$0xff] }
 0xfb4   : > { %7423 = vst.msk [vmem:[#allocation3 + $0x60] sm:$0xff] %vm886_vm4, %v7340_v52 }
 0xfb5   : > { %7615 = vst.msk [vmem:[#allocation3 + $0x60] sm:$0xff] %vm1079_vm5, %v7532_v57  ;;  %v7851_v57 = vld [vmem:[#allocation2 + $0x150] sm:$0xff] }
 0xfb7   : > { %7545 = vrot.lane.b32.xlu2 %v8036_v17, %s9245_s18 }
 0xfb8   : > { %7737 = vrot.lane.b32.xlu0 %v8228_v48, %s9246_s19 }
 0xfb9   : > { %7929 = vrot.lane.b32.xlu1 %v7846_v45, %s9247_s20  ;;  %v8110_v46 = vpop.permute.xlu2 %8109 }
 0xfba   : > { %v7724_v43 = vpop.permute.xlu0 %7723  ;;  %v8414_v27 = vld [vmem:[#allocation3 + $0x58] sm:$0xff] }
 0xfbb   : > { %7807 = vst.msk [vmem:[#allocation3 + $0x60] sm:$0xff] %vm1272_vm6, %v7724_v43  ;;  %v7916_v58 = vpop.permute.xlu1 %7915  ;;  %9180 = vmatmul.msk.f32.gmra.mxu3 %vm1917_vm11, %v8414_v27  ;;  %v8044_v27 = vld [vmem:[#allocation2 + $0x159] sm:$0xff] }
 0xfbc   : > { %7999 = vst.msk [vmem:[#allocation3 + $0x60] sm:$0xff] %vm1466_vm7, %v7916_v58  ;;  %v8236_v58 = vld [vmem:[#allocation2 + $0x15a] sm:$0xff] }
 0xfbd   : > { %8191 = vst.msk [vmem:[#allocation3 + $0x60] sm:$0xff] %vm1659_vm8, %v8108_v59 }
 0xfbf   : > { %8121 = vrot.lane.b32.xlu2 %v8038_v38, %s9248_s21 }
 0xfc0   : > { %8313 = vrot.lane.b32.xlu0 %v8230_v35, %s9249_s22 }
 0xfc1   : > { %7355 = vrot.lane.b32.xlu1 %v7271_v20, %s9244_s17  ;;  %v7536_v12 = vpop.permute.xlu2 %7535 }
 0xfc2   : > { %v8300_v30 = vpop.permute.xlu0 %8299 }
 0xfc3   : > { %8383 = vst.msk [vmem:[#allocation3 + $0x60] sm:$0xff] %vm1852_vm10, %v8300_v30  ;;  %v7342_v14 = vpop.permute.xlu1 %7341 }
 0xfc4   : > { %7424 = vst.msk [vmem:[#allocation3 + $0x68] sm:$0xff] %vm886_vm4, %v7342_v14 }
 0xfc5   : > { %7616 = vst.msk [vmem:[#allocation3 + $0x68] sm:$0xff] %vm1079_vm5, %v7534_v54 }
 0xfc7   : > { %7547 = vrot.lane.b32.xlu2 %v8037_v7, %s9245_s18 }
 0xfc8   : > { %7739 = vrot.lane.b32.xlu0 %v8229_v26, %s9246_s19 }
 0xfc9   : > { %7931 = vrot.lane.b32.xlu1 %v7847_v40, %s9247_s20  ;;  %v8112_v23 = vpop.permute.xlu2 %8111 }
 0xfca   : > { %v7726_v21 = vpop.permute.xlu0 %7725  ;;  %v8415_v55 = vld [vmem:[#allocation3 + $0x60] sm:$0xff] }
 0xfcb   : > { %7808 = vst.msk [vmem:[#allocation3 + $0x68] sm:$0xff] %vm1272_vm6, %v7726_v21  ;;  %v7918_v28 = vpop.permute.xlu1 %7917  ;;  %9181 = vmatmul.msk.f32.gmra.mxu3 %vm1917_vm11, %v8415_v55  ;;  %v8045_v21 = vld [vmem:[#allocation2 + $0x169] sm:$0xff] }
 0xfcc   : > { %8000 = vst.msk [vmem:[#allocation3 + $0x68] sm:$0xff] %vm1466_vm7, %v7918_v28  ;;  %v8237_v55 = vld [vmem:[#allocation2 + $0x16a] sm:$0xff] }
 0xfcd   : > { %8192 = vst.msk [vmem:[#allocation3 + $0x68] sm:$0xff] %vm1659_vm8, %v8110_v46 }
 0xfcf   : > { %8123 = vrot.lane.b32.xlu2 %v8039_v47, %s9248_s21 }
 0xfd0   : > { %8315 = vrot.lane.b32.xlu0 %v8231_v60, %s9249_s22 }
 0xfd1   : > { %7357 = vrot.lane.b32.xlu1 %v7846_v45, %s9244_s17  ;;  %v7538_v2 = vpop.permute.xlu2 %7537 }
 0xfd2   : > { %v8302_v61 = vpop.permute.xlu0 %8301 }
 0xfd3   : > { %8384 = vst.msk [vmem:[#allocation3 + $0x68] sm:$0xff] %vm1852_vm10, %v8302_v61  ;;  %v7344_v1 = vpop.permute.xlu1 %7343 }
 0xfd4   : > { %7425 = vst.msk [vmem:[#allocation3 + $0x70] sm:$0xff] %vm886_vm4, %v7344_v1 }
 0xfd5   : > { %7617 = vst.msk [vmem:[#allocation3 + $0x70] sm:$0xff] %vm1079_vm5, %v7536_v12  ;;  %v7853_v12 = vld [vmem:[#allocation2 + $0x168] sm:$0xff] }
 0xfd7   : > { %7549 = vrot.lane.b32.xlu2 %v8038_v38, %s9245_s18 }
 0xfd8   : > { %7741 = vrot.lane.b32.xlu0 %v8230_v35, %s9246_s19 }
 0xfd9   : > { %7933 = vrot.lane.b32.xlu1 %v7848_v9, %s9247_s20  ;;  %v8114_v25 = vpop.permute.xlu2 %8113 }
 0xfda   : > { %v7728_v62 = vpop.permute.xlu0 %7727  ;;  %v8416_v19 = vld [vmem:[#allocation3 + $0x68] sm:$0xff] }
 0xfdb   : > { %7809 = vst.msk [vmem:[#allocation3 + $0x70] sm:$0xff] %vm1272_vm6, %v7728_v62  ;;  %v7920_v44 = vpop.permute.xlu1 %7919  ;;  %9182 = vmatmul.msk.f32.gmra.mxu3 %vm1917_vm11, %v8416_v19  ;;  %v8046_v62 = vld [vmem:[#allocation2 + $0x171] sm:$0xff] }
 0xfdc   : > { %8001 = vst.msk [vmem:[#allocation3 + $0x70] sm:$0xff] %vm1466_vm7, %v7920_v44  ;;  %v8238_v19 = vld [vmem:[#allocation2 + $0x172] sm:$0xff] }
 0xfdd   : > { %8193 = vst.msk [vmem:[#allocation3 + $0x70] sm:$0xff] %vm1659_vm8, %v8112_v23 }
 0xfdf   : > { %8125 = vrot.lane.b32.xlu2 %v8040_v51, %s9248_s21 }
 0xfe0   : > { %8317 = vrot.lane.b32.xlu0 %v8232_v11, %s9249_s22 }
 0xfe1   : > { %7359 = vrot.lane.b32.xlu1 %v7847_v40, %s9244_s17  ;;  %v7540_v53 = vpop.permute.xlu2 %7539 }
 0xfe2   : > { %v8304_v49 = vpop.permute.xlu0 %8303 }
 0xfe3   : > { %8385 = vst.msk [vmem:[#allocation3 + $0x70] sm:$0xff] %vm1852_vm10, %v8304_v49  ;;  %v7346_v18 = vpop.permute.xlu1 %7345 }
 0xfe4   : > { %7426 = vst.msk [vmem:[#allocation3 + $0x78] sm:$0xff] %vm886_vm4, %v7346_v18 }
 0xfe5   : > { %7618 = vst.msk [vmem:[#allocation3 + $0x78] sm:$0xff] %vm1079_vm5, %v7538_v2  ;;  %v7854_v2 = vld [vmem:[#allocation2 + $0x170] sm:$0xff] }
 0xfe7   : > { %7551 = vrot.lane.b32.xlu2 %v8039_v47, %s9245_s18 }
 0xfe8   : > { %7743 = vrot.lane.b32.xlu0 %v8231_v60, %s9246_s19 }
 0xfe9   : > { %7935 = vrot.lane.b32.xlu1 %v7849_v24, %s9247_s20  ;;  %v8116_v22 = vpop.permute.xlu2 %8115 }
 0xfea   : > { %v7730_v34 = vpop.permute.xlu0 %7729  ;;  %v8417_v13 = vld [vmem:[#allocation3 + $0x70] sm:$0xff] }
 0xfeb   : > { %7810 = vst.msk [vmem:[#allocation3 + $0x78] sm:$0xff] %vm1272_vm6, %v7730_v34  ;;  %v7922_v41 = vpop.permute.xlu1 %7921  ;;  %9183 = vmatmul.msk.f32.gmra.mxu3 %vm1917_vm11, %v8417_v13  ;;  %v8047_v34 = vld [vmem:[#allocation2 + $0x181] sm:$0xff] }
 0xfec   : > { %8002 = vst.msk [vmem:[#allocation3 + $0x78] sm:$0xff] %vm1466_vm7, %v7922_v41  ;;  %v8239_v13 = vld [vmem:[#allocation2 + $0x182] sm:$0xff] }
 0xfed   : > { %8194 = vst.msk [vmem:[#allocation3 + $0x78] sm:$0xff] %vm1659_vm8, %v8114_v25 }
 0xfef   : > { %8127 = vrot.lane.b32.xlu2 %v8041_v36, %s9248_s21 }
 0xff0   : > { %8319 = vrot.lane.b32.xlu0 %v8233_v16, %s9249_s22 }
 0xff1   : > { %7361 = vrot.lane.b32.xlu1 %v7848_v9, %s9244_s17  ;;  %v7542_v56 = vpop.permute.xlu2 %7541 }
 0xff2   : > { %v8306_v39 = vpop.permute.xlu0 %8305 }
 0xff3   : > { %8386 = vst.msk [vmem:[#allocation3 + $0x78] sm:$0xff] %vm1852_vm10, %v8306_v39  ;;  %v7348_v37 = vpop.permute.xlu1 %7347 }
 0xff4   : > { %7427 = vst.msk [vmem:[#allocation3 + $0x80] sm:$0xff] %vm886_vm4, %v7348_v37 }
 0xff5   : > { %7619 = vst.msk [vmem:[#allocation3 + $0x80] sm:$0xff] %vm1079_vm5, %v7540_v53  ;;  %v7855_v53 = vld [vmem:[#allocation2 + $0x180] sm:$0xff] }
 0xff7   : > { %7553 = vrot.lane.b32.xlu2 %v8040_v51, %s9245_s18 }
 0xff8   : > { %7745 = vrot.lane.b32.xlu0 %v8232_v11, %s9246_s19 }
 0xff9   : > { %7937 = vrot.lane.b32.xlu1 %v7850_v5, %s9247_s20  ;;  %v8118_v32 = vpop.permute.xlu2 %8117 }
 0xffa   : > { %v7732_v63 = vpop.permute.xlu0 %7731  ;;  %v8418_v0 = vld [vmem:[#allocation3 + $0x78] sm:$0xff] }
 0xffb   : > { %7811 = vst.msk [vmem:[#allocation3 + $0x80] sm:$0xff] %vm1272_vm6, %v7732_v63  ;;  %v7924_v3 = vpop.permute.xlu1 %7923  ;;  %9184 = vmatmul.msk.f32.gmra.mxu3 %vm1917_vm11, %v8418_v0  ;;  %v8048_v63 = vld [vmem:[#allocation2 + $0x189] sm:$0xff] }
 0xffc   : > { %8003 = vst.msk [vmem:[#allocation3 + $0x80] sm:$0xff] %vm1466_vm7, %v7924_v3  ;;  %v8240_v0 = vld [vmem:[#allocation2 + $0x18a] sm:$0xff] }
 0xffd   : > { %8195 = vst.msk [vmem:[#allocation3 + $0x80] sm:$0xff] %vm1659_vm8, %v8116_v22 }
 0xfff   : > { %8129 = vrot.lane.b32.xlu2 %v8042_v29, %s9248_s21 }
0x1000   : > { %8321 = vrot.lane.b32.xlu0 %v8234_v6, %s9249_s22 }
0x1001   : > { %7363 = vrot.lane.b32.xlu1 %v7849_v24, %s9244_s17  ;;  %v7544_v17 = vpop.permute.xlu2 %7543 }
0x1002   : > { %v8308_v48 = vpop.permute.xlu0 %8307 }
0x1003   : > { %8387 = vst.msk [vmem:[#allocation3 + $0x80] sm:$0xff] %vm1852_vm10, %v8308_v48  ;;  %v7350_v10 = vpop.permute.xlu1 %7349 }
0x1004   : > { %7428 = vst.msk [vmem:[#allocation3 + $0x88] sm:$0xff] %vm886_vm4, %v7350_v10 }
0x1005   : > { %7620 = vst.msk [vmem:[#allocation3 + $0x88] sm:$0xff] %vm1079_vm5, %v7542_v56  ;;  %v7856_v56 = vld [vmem:[#allocation2 + $0x188] sm:$0xff] }
0x1007   : > { %7555 = vrot.lane.b32.xlu2 %v8041_v36, %s9245_s18 }
0x1008   : > { %7747 = vrot.lane.b32.xlu0 %v8233_v16, %s9246_s19 }
0x1009   : > { %7939 = vrot.lane.b32.xlu1 %v7851_v57, %s9247_s20  ;;  %v8120_v15 = vpop.permute.xlu2 %8119 }
0x100a   : > { %v7734_v33 = vpop.permute.xlu0 %7733  ;;  %v8419_v59 = vld [vmem:[#allocation3 + $0x80] sm:$0xff] }
0x100b   : > { %7812 = vst.msk [vmem:[#allocation3 + $0x88] sm:$0xff] %vm1272_vm6, %v7734_v33  ;;  %v7926_v42 = vpop.permute.xlu1 %7925  ;;  %9185 = vmatmul.msk.f32.gmra.mxu3 %vm1917_vm11, %v8419_v59  ;;  %v8049_v33 = vld [vmem:[#allocation2 + $0x199] sm:$0xff] }
0x100c   : > { %8004 = vst.msk [vmem:[#allocation3 + $0x88] sm:$0xff] %vm1466_vm7, %v7926_v42  ;;  %v8241_v59 = vld [vmem:[#allocation2 + $0x19a] sm:$0xff] }
0x100d   : > { %8196 = vst.msk [vmem:[#allocation3 + $0x88] sm:$0xff] %vm1659_vm8, %v8118_v32 }
0x100f   : > { %8131 = vrot.lane.b32.xlu2 %v8043_v31, %s9248_s21 }
0x1010   : > { %8323 = vrot.lane.b32.xlu0 %v8235_v8, %s9249_s22 }
0x1011   : > { %7365 = vrot.lane.b32.xlu1 %v7850_v5, %s9244_s17  ;;  %v7546_v7 = vpop.permute.xlu2 %7545 }
0x1012   : > { %v8310_v26 = vpop.permute.xlu0 %8309 }
0x1013   : > { %8388 = vst.msk [vmem:[#allocation3 + $0x88] sm:$0xff] %vm1852_vm10, %v8310_v26  ;;  %v7352_v54 = vpop.permute.xlu1 %7351 }
0x1014   : > { %7429 = vst.msk [vmem:[#allocation3 + $0x90] sm:$0xff] %vm886_vm4, %v7352_v54 }
0x1015   : > { %7621 = vst.msk [vmem:[#allocation3 + $0x90] sm:$0xff] %vm1079_vm5, %v7544_v17  ;;  %v7857_v17 = vld [vmem:[#allocation2 + $0x198] sm:$0xff] }
0x1017   : > { %7557 = vrot.lane.b32.xlu2 %v8042_v29, %s9245_s18 }
0x1018   : > { %7749 = vrot.lane.b32.xlu0 %v8234_v6, %s9246_s19 }
0x1019   : > { %7941 = vrot.lane.b32.xlu1 %v7852_v50, %s9247_s20  ;;  %v8122_v52 = vpop.permute.xlu2 %8121 }
0x101a   : > { %v7736_v45 = vpop.permute.xlu0 %7735  ;;  %v8420_v46 = vld [vmem:[#allocation3 + $0x88] sm:$0xff] }
0x101b   : > { %7813 = vst.msk [vmem:[#allocation3 + $0x90] sm:$0xff] %vm1272_vm6, %v7736_v45  ;;  %v7928_v43 = vpop.permute.xlu1 %7927  ;;  %9186 = vmatmul.msk.f32.gmra.mxu3 %vm1917_vm11, %v8420_v46  ;;  %v8050_v45 = vld [vmem:[#allocation2 + $0x1a1] sm:$0xff] }
0x101c   : > { %8005 = vst.msk [vmem:[#allocation3 + $0x90] sm:$0xff] %vm1466_vm7, %v7928_v43  ;;  %v8242_v46 = vld [vmem:[#allocation2 + $0x1a2] sm:$0xff] }
0x101d   : > { %8197 = vst.msk [vmem:[#allocation3 + $0x90] sm:$0xff] %vm1659_vm8, %v8120_v15 }
0x101f   : > { %8133 = vrot.lane.b32.xlu2 %v8044_v27, %s9248_s21 }
0x1020   : > { %8325 = vrot.lane.b32.xlu0 %v8236_v58, %s9249_s22 }
0x1021   : > { %7367 = vrot.lane.b32.xlu1 %v7851_v57, %s9244_s17  ;;  %v7548_v38 = vpop.permute.xlu2 %7547 }
0x1022   : > { %v8312_v35 = vpop.permute.xlu0 %8311 }
0x1023   : > { %8389 = vst.msk [vmem:[#allocation3 + $0x90] sm:$0xff] %vm1852_vm10, %v8312_v35  ;;  %v7354_v20 = vpop.permute.xlu1 %7353 }
0x1024   : > { %7430 = vst.msk [vmem:[#allocation3 + $0x98] sm:$0xff] %vm886_vm4, %v7354_v20 }
0x1025   : > { %7622 = vst.msk [vmem:[#allocation3 + $0x98] sm:$0xff] %vm1079_vm5, %v7546_v7  ;;  %v7858_v7 = vld [vmem:[#allocation2 + $0x1a0] sm:$0xff] }
0x1027   : > { %7559 = vrot.lane.b32.xlu2 %v8043_v31, %s9245_s18 }
0x1028   : > { %7751 = vrot.lane.b32.xlu0 %v8235_v8, %s9246_s19 }
0x1029   : > { %7943 = vrot.lane.b32.xlu1 %v7853_v12, %s9247_s20  ;;  %v8124_v30 = vpop.permute.xlu2 %8123 }
0x102a   : > { %v7738_v14 = vpop.permute.xlu0 %7737  ;;  %v8421_v40 = vld [vmem:[#allocation3 + $0x90] sm:$0xff] }
0x102b   : > { %7814 = vst.msk [vmem:[#allocation3 + $0x98] sm:$0xff] %vm1272_vm6, %v7738_v14  ;;  %v7930_v23 = vpop.permute.xlu1 %7929  ;;  %9187 = vmatmul.msk.f32.gmra.mxu3 %vm1917_vm11, %v8421_v40 }
0x102c   : > { %8006 = vst.msk [vmem:[#allocation3 + $0x98] sm:$0xff] %vm1466_vm7, %v7930_v23 }
0x102d   : > { %8198 = vst.msk [vmem:[#allocation3 + $0x98] sm:$0xff] %vm1659_vm8, %v8122_v52 }
0x102f   : > { %8135 = vrot.lane.b32.xlu2 %v8045_v21, %s9248_s21 }
0x1030   : > { %8327 = vrot.lane.b32.xlu0 %v8237_v55, %s9249_s22 }
0x1031   : > { %7369 = vrot.lane.b32.xlu1 %v7852_v50, %s9244_s17  ;;  %v7550_v28 = vpop.permute.xlu2 %7549 }
0x1032   : > { %v8314_v47 = vpop.permute.xlu0 %8313 }
0x1033   : > { %8390 = vst.msk [vmem:[#allocation3 + $0x98] sm:$0xff] %vm1852_vm10, %v8314_v47  ;;  %v7356_v60 = vpop.permute.xlu1 %7355 }
0x1034   : > { %7431 = vst.msk [vmem:[#allocation3 + $0xa0] sm:$0xff] %vm886_vm4, %v7356_v60 }
0x1035   : > { %7623 = vst.msk [vmem:[#allocation3 + $0xa0] sm:$0xff] %vm1079_vm5, %v7548_v38  ;;  %v14720_v38 = vpop.f32.mrf.mxu3 }
0x1037   : > { %7561 = vrot.lane.b32.xlu2 %v8044_v27, %s9245_s18 }
0x1038   : > { %7753 = vrot.lane.b32.xlu0 %v8236_v58, %s9246_s19 }
0x1039   : > { %7945 = vrot.lane.b32.xlu1 %v7854_v2, %s9247_s20  ;;  %v8126_v61 = vpop.permute.xlu2 %8125 }
0x103a   : > { %v7740_v1 = vpop.permute.xlu0 %7739  ;;  %v8422_v9 = vld [vmem:[#allocation3 + $0x98] sm:$0xff] }
0x103b   : > { %7815 = vst.msk [vmem:[#allocation3 + $0xa0] sm:$0xff] %vm1272_vm6, %v7740_v1  ;;  %v7932_v25 = vpop.permute.xlu1 %7931  ;;  %9188 = vmatmul.msk.f32.gmra.mxu3 %vm1917_vm11, %v8422_v9 }
0x103c   : > { %8007 = vst.msk [vmem:[#allocation3 + $0xa0] sm:$0xff] %vm1466_vm7, %v7932_v25 }
0x103d   : > { %8199 = vst.msk [vmem:[#allocation3 + $0xa0] sm:$0xff] %vm1659_vm8, %v8124_v30  ;;  %v14726_v14 = vpop.f32.mrf.mxu3 }
0x103f   : > { %8137 = vrot.lane.b32.xlu2 %v8046_v62, %s9248_s21 }
0x1040   : > { %8329 = vrot.lane.b32.xlu0 %v8238_v19, %s9249_s22 }
0x1041   : > { %7371 = vrot.lane.b32.xlu1 %v7853_v12, %s9244_s17  ;;  %v7552_v44 = vpop.permute.xlu2 %7551 }
0x1042   : > { %v8316_v51 = vpop.permute.xlu0 %8315 }
0x1043   : > { %8391 = vst.msk [vmem:[#allocation3 + $0xa0] sm:$0xff] %vm1852_vm10, %v8316_v51  ;;  %v7358_v11 = vpop.permute.xlu1 %7357 }
0x1044   : > { %7432 = vst.msk [vmem:[#allocation3 + $0xa8] sm:$0xff] %vm886_vm4, %v7358_v11 }
0x1045   : > { %7624 = vst.msk [vmem:[#allocation3 + $0xa8] sm:$0xff] %vm1079_vm5, %v7550_v28 }
0x1047   : > { %7563 = vrot.lane.b32.xlu2 %v8045_v21, %s9245_s18 }
0x1048   : > { %7755 = vrot.lane.b32.xlu0 %v8237_v55, %s9246_s19  ;;  %v14731_v55 = vpop.f32.mrf.mxu3 }
0x1049   : > { %7947 = vrot.lane.b32.xlu1 %v7855_v53, %s9247_s20  ;;  %v8128_v49 = vpop.permute.xlu2 %8127 }
0x104a   : > { %v7742_v18 = vpop.permute.xlu0 %7741  ;;  %v8423_v24 = vld [vmem:[#allocation3 + $0xa0] sm:$0xff] }
0x104b   : > { %7816 = vst.msk [vmem:[#allocation3 + $0xa8] sm:$0xff] %vm1272_vm6, %v7742_v18  ;;  %v7934_v22 = vpop.permute.xlu1 %7933  ;;  %9189 = vmatmul.msk.f32.gmra.mxu3 %vm1917_vm11, %v8423_v24 }
0x104c   : > { %8008 = vst.msk [vmem:[#allocation3 + $0xa8] sm:$0xff] %vm1466_vm7, %v7934_v22 }
0x104d   : > { %8200 = vst.msk [vmem:[#allocation3 + $0xa8] sm:$0xff] %vm1659_vm8, %v8126_v61 }
0x104f   : > { %8139 = vrot.lane.b32.xlu2 %v8047_v34, %s9248_s21 }
0x1050   : > { %8331 = vrot.lane.b32.xlu0 %v8239_v13, %s9249_s22  ;;  %v14737_v61 = vpop.f32.mrf.mxu3 }
0x1051   : > { %7373 = vrot.lane.b32.xlu1 %v7854_v2, %s9244_s17  ;;  %v7554_v41 = vpop.permute.xlu2 %7553 }
0x1052   : > { %v8318_v36 = vpop.permute.xlu0 %8317 }
0x1053   : > { %8392 = vst.msk [vmem:[#allocation3 + $0xa8] sm:$0xff] %vm1852_vm10, %v8318_v36  ;;  %v7360_v16 = vpop.permute.xlu1 %7359 }
0x1054   : > { %7433 = vst.msk [vmem:[#allocation3 + $0xb0] sm:$0xff] %vm886_vm4, %v7360_v16 }
0x1055   : > { %7625 = vst.msk [vmem:[#allocation3 + $0xb0] sm:$0xff] %vm1079_vm5, %v7552_v44 }
0x1057   : > { %7565 = vrot.lane.b32.xlu2 %v8046_v62, %s9245_s18 }
0x1058   : > { %7757 = vrot.lane.b32.xlu0 %v8238_v19, %s9246_s19  ;;  %v14742_v25 = vpop.f32.mrf.mxu3 }
0x1059   : > { %7949 = vrot.lane.b32.xlu1 %v7856_v56, %s9247_s20  ;;  %v8130_v39 = vpop.permute.xlu2 %8129 }
0x105a   : > { %v7744_v37 = vpop.permute.xlu0 %7743  ;;  %v8424_v5 = vld [vmem:[#allocation3 + $0xa8] sm:$0xff] }
0x105b   : > { %7817 = vst.msk [vmem:[#allocation3 + $0xb0] sm:$0xff] %vm1272_vm6, %v7744_v37  ;;  %v7936_v32 = vpop.permute.xlu1 %7935  ;;  %9190 = vmatmul.msk.f32.gmra.mxu3 %vm1917_vm11, %v8424_v5 }
0x105c   : > { %8009 = vst.msk [vmem:[#allocation3 + $0xb0] sm:$0xff] %vm1466_vm7, %v7936_v32 }
0x105d   : > { %8201 = vst.msk [vmem:[#allocation3 + $0xb0] sm:$0xff] %vm1659_vm8, %v8128_v49 }
0x105f   : > { %8141 = vrot.lane.b32.xlu2 %v8048_v63, %s9248_s21 }
0x1060   : > { %8333 = vrot.lane.b32.xlu0 %v8240_v0, %s9249_s22  ;;  %v14748_v11 = vpop.f32.mrf.mxu3 }
0x1061   : > { %7375 = vrot.lane.b32.xlu1 %v7855_v53, %s9244_s17  ;;  %v7556_v3 = vpop.permute.xlu2 %7555 }
0x1062   : > { %v8320_v29 = vpop.permute.xlu0 %8319 }
0x1063   : > { %8393 = vst.msk [vmem:[#allocation3 + $0xb0] sm:$0xff] %vm1852_vm10, %v8320_v29  ;;  %v7362_v6 = vpop.permute.xlu1 %7361 }
0x1064   : > { %7434 = vst.msk [vmem:[#allocation3 + $0xb8] sm:$0xff] %vm886_vm4, %v7362_v6 }
0x1065   : > { %7626 = vst.msk [vmem:[#allocation3 + $0xb8] sm:$0xff] %vm1079_vm5, %v7554_v41 }
0x1067   : > { %7567 = vrot.lane.b32.xlu2 %v8047_v34, %s9245_s18 }
0x1068   : > { %7759 = vrot.lane.b32.xlu0 %v8239_v13, %s9246_s19  ;;  %v14753_v24 = vpop.f32.mrf.mxu3 }
0x1069   : > { %7951 = vrot.lane.b32.xlu1 %v7857_v17, %s9247_s20  ;;  %v8132_v48 = vpop.permute.xlu2 %8131 }
0x106a   : > { %v7746_v10 = vpop.permute.xlu0 %7745  ;;  %v8425_v57 = vld [vmem:[#allocation3 + $0xb0] sm:$0xff] }
0x106b   : > { %7818 = vst.msk [vmem:[#allocation3 + $0xb8] sm:$0xff] %vm1272_vm6, %v7746_v10  ;;  %v7938_v15 = vpop.permute.xlu1 %7937  ;;  %9191 = vmatmul.msk.f32.gmra.mxu3 %vm1917_vm11, %v8425_v57 }
0x106c   : > { %8010 = vst.msk [vmem:[#allocation3 + $0xb8] sm:$0xff] %vm1466_vm7, %v7938_v15 }
0x106d   : > { %8202 = vst.msk [vmem:[#allocation3 + $0xb8] sm:$0xff] %vm1659_vm8, %v8130_v39 }
0x106f   : > { %8143 = vrot.lane.b32.xlu2 %v8049_v33, %s9248_s21 }
0x1070   : > { %8335 = vrot.lane.b32.xlu0 %v8241_v59, %s9249_s22  ;;  %v14759_v36 = vpop.f32.mrf.mxu3 }
0x1071   : > { %7377 = vrot.lane.b32.xlu1 %v7856_v56, %s9244_s17  ;;  %v7558_v42 = vpop.permute.xlu2 %7557 }
0x1072   : > { %v8322_v31 = vpop.permute.xlu0 %8321 }
0x1073   : > { %8394 = vst.msk [vmem:[#allocation3 + $0xb8] sm:$0xff] %vm1852_vm10, %v8322_v31  ;;  %v7364_v8 = vpop.permute.xlu1 %7363 }
0x1074   : > { %7435 = vst.msk [vmem:[#allocation3 + $0xc0] sm:$0xff] %vm886_vm4, %v7364_v8 }
0x1075   : > { %7627 = vst.msk [vmem:[#allocation3 + $0xc0] sm:$0xff] %vm1079_vm5, %v7556_v3 }
0x1077   : > { %7569 = vrot.lane.b32.xlu2 %v8048_v63, %s9245_s18 }
0x1078   : > { %7761 = vrot.lane.b32.xlu0 %v8240_v0, %s9246_s19  ;;  %v14764_v37 = vpop.f32.mrf.mxu3  ;;  %s15149_s19 = scalar_lea.vmem %s15298_s2, %s9203_s12 }
0x1079   : > { %v8134_v26 = vpop.permute.xlu2 %8133  ;;  %7953 = vrot.lane.b32.xlu1 %v7858_v7, %s9247_s20 }
0x107a   : > { %v7748_v54 = vpop.permute.xlu0 %7747  ;;  %v8426_v50 = vld [vmem:[#allocation3 + $0xb8] sm:$0xff] }
0x107b   : > { %7819 = vst.msk [vmem:[#allocation3 + $0xc0] sm:$0xff] %vm1272_vm6, %v7748_v54  ;;  %v7940_v52 = vpop.permute.xlu1 %7939  ;;  %9192 = vmatmul.msk.f32.gmra.mxu3 %vm1917_vm11, %v8426_v50 }
0x107c   : > { %8011 = vst.msk [vmem:[#allocation3 + $0xc0] sm:$0xff] %vm1466_vm7, %v7940_v52 }
0x107d   : > { %8203 = vst.msk [vmem:[#allocation3 + $0xc0] sm:$0xff] %vm1659_vm8, %v8132_v48 }
0x107f   : > { %8145 = vrot.lane.b32.xlu2 %v8050_v45, %s9248_s21 }
0x1080   : > { %8337 = vrot.lane.b32.xlu0 %v8242_v46, %s9249_s22  ;;  %v14770_v0 = vpop.f32.mrf.mxu3 }
0x1081   : > { %v7560_v43 = vpop.permute.xlu2 %7559 }
0x1082   : > { %v8324_v27 = vpop.permute.xlu0 %8323 }
0x1083   : > { %8395 = vst.msk [vmem:[#allocation3 + $0xc0] sm:$0xff] %vm1852_vm10, %v8324_v27  ;;  %v7366_v58 = vpop.permute.xlu1 %7365 }
0x1084   : > { %7436 = vst.msk [vmem:[#allocation3 + $0xc8] sm:$0xff] %vm886_vm4, %v7366_v58 }
0x1085   : > { %7628 = vst.msk [vmem:[#allocation3 + $0xc8] sm:$0xff] %vm1079_vm5, %v7558_v42 }
0x1088   : > { %v14775_v17 = vpop.f32.mrf.mxu3 }
0x1089   : > { %v8136_v35 = vpop.permute.xlu2 %8135 }
0x108a   : > { %v7750_v20 = vpop.permute.xlu0 %7749  ;;  %v8427_v12 = vld [vmem:[#allocation3 + $0xc0] sm:$0xff] }
0x108b   : > { %7820 = vst.msk [vmem:[#allocation3 + $0xc8] sm:$0xff] %vm1272_vm6, %v7750_v20  ;;  %v7942_v30 = vpop.permute.xlu1 %7941  ;;  %9193 = vmatmul.msk.f32.gmra.mxu3 %vm1917_vm11, %v8427_v12 }
0x108c   : > { %8012 = vst.msk [vmem:[#allocation3 + $0xc8] sm:$0xff] %vm1466_vm7, %v7942_v30 }
0x108d   : > { %8204 = vst.msk [vmem:[#allocation3 + $0xc8] sm:$0xff] %vm1659_vm8, %v8134_v26 }
0x1090   : > { %v14781_v33 = vpop.f32.mrf.mxu3 }
0x1091   : > { %v7562_v23 = vpop.permute.xlu2 %7561 }
0x1092   : > { %v8326_v40 = vpop.permute.xlu0 %8325 }
0x1093   : > { %8396 = vst.msk [vmem:[#allocation3 + $0xc8] sm:$0xff] %vm1852_vm10, %v8326_v40  ;;  %v7368_v21 = vpop.permute.xlu1 %7367 }
0x1094   : > { %7437 = vst.msk [vmem:[#allocation3 + $0xd0] sm:$0xff] %vm886_vm4, %v7368_v21 }
0x1095   : > { %7629 = vst.msk [vmem:[#allocation3 + $0xd0] sm:$0xff] %vm1079_vm5, %v7560_v43 }
0x1098   : > { %v14786_v8 = vpop.f32.mrf.mxu3 }
0x1099   : > { %v8138_v2 = vpop.permute.xlu2 %8137 }
0x109a   : > { %v7752_v28 = vpop.permute.xlu0 %7751  ;;  %v8428_v47 = vld [vmem:[#allocation3 + $0xc8] sm:$0xff] }
0x109b   : > { %7821 = vst.msk [vmem:[#allocation3 + $0xd0] sm:$0xff] %vm1272_vm6, %v7752_v28  ;;  %v7944_v60 = vpop.permute.xlu1 %7943  ;;  %9194 = vmatmul.msk.f32.gmra.mxu3 %vm1917_vm11, %v8428_v47  ;;  %v8648_v28 = vsel %vm144_vm0, %v14726_v14, 0.0  ;;  %v8647_v47 = vsel %vm144_vm0, %v14720_v38, 0.0 }
0x109c   : > { %8013 = vst.msk [vmem:[#allocation3 + $0xd0] sm:$0xff] %vm1466_vm7, %v7944_v60  ;;  %v8650_v60 = vsel %vm144_vm0, %v14731_v55, 0.0 }
0x109d   : > { %8205 = vst.msk [vmem:[#allocation3 + $0xd0] sm:$0xff] %vm1659_vm8, %v8136_v35 }
0x10a0   : > { %v14792_v52 = vpop.f32.mrf.mxu3 }
0x10a1   : > { %v7564_v62 = vpop.permute.xlu2 %7563 }
0x10a2   : > { %v8328_v1 = vpop.permute.xlu0 %8327 }
0x10a3   : > { %8397 = vst.msk [vmem:[#allocation3 + $0xd0] sm:$0xff] %vm1852_vm10, %v8328_v1  ;;  %v7370_v9 = vpop.permute.xlu1 %7369  ;;  %v8652_v1 = vsel %vm144_vm0, %v14737_v61, 0.0 }
0x10a4   : > { %7438 = vst.msk [vmem:[#allocation3 + $0xd8] sm:$0xff] %vm886_vm4, %v7370_v9 }
0x10a5   : > { %7630 = vst.msk [vmem:[#allocation3 + $0xd8] sm:$0xff] %vm1079_vm5, %v7562_v23 }
0x10a8   : > { %v14795_v46 = vpop.f32.mrf.mxu3 }
0x10a9   : > { %v8140_v53 = vpop.permute.xlu2 %8139 }
0x10aa   : > { %v7754_v19 = vpop.permute.xlu0 %7753  ;;  %v8429_v44 = vld [vmem:[#allocation3 + $0xd0] sm:$0xff] }
0x10ab   : > { %7822 = vst.msk [vmem:[#allocation3 + $0xd8] sm:$0xff] %vm1272_vm6, %v7754_v19  ;;  %v7946_v51 = vpop.permute.xlu1 %7945  ;;  %9195 = vmatmul.msk.f32.gmra.mxu3 %vm1917_vm11, %v8429_v44  ;;  %v8654_v19 = vsel %vm144_vm0, %v14742_v25, 0.0 }
0x10ac   : > { %8014 = vst.msk [vmem:[#allocation3 + $0xd8] sm:$0xff] %vm1466_vm7, %v7946_v51  ;;  %v8656_v51 = vsel %vm144_vm0, %v14748_v11, 0.0 }
0x10ad   : > { %8206 = vst.msk [vmem:[#allocation3 + $0xd8] sm:$0xff] %vm1659_vm8, %v8138_v2  ;;  %v8649_v2 = vadd.f32 %v8648_v28, %v8647_v47 }
0x10af   : > { %v8651_v9 = vadd.f32 %v8650_v60, %v8649_v2 }
0x10b0   : > { %v14798_v27 = vpop.f32.mrf.mxu3 }
0x10b1   : > { %v7566_v22 = vpop.permute.xlu2 %7565  ;;  %v8653_v44 = vadd.f32 %v8652_v1, %v8651_v9 }
0x10b2   : > { %v8330_v49 = vpop.permute.xlu0 %8329 }
0x10b3   : > { %8398 = vst.msk [vmem:[#allocation3 + $0xd8] sm:$0xff] %vm1852_vm10, %v8330_v49  ;;  %v7372_v18 = vpop.permute.xlu1 %7371  ;;  %v8658_v49 = vsel %vm144_vm0, %v14753_v24, 0.0 }
0x10b4   : > { %7439 = vst.msk [vmem:[#allocation3 + $0xe0] sm:$0xff] %vm886_vm4, %v7372_v18 }
0x10b5   : > { %7631 = vst.msk [vmem:[#allocation3 + $0xe0] sm:$0xff] %vm1079_vm5, %v7564_v62 }
0x10b8   : > { %v14800_v58 = vpop.f32.mrf.mxu3 }
0x10b9   : > { %v8142_v39 = vpop.permute.xlu2 %8141 }
0x10ba   : > { %v7756_v34 = vpop.permute.xlu0 %7755  ;;  %v8430_v13 = vld [vmem:[#allocation3 + $0xd8] sm:$0xff] }
0x10bb   : > { %7823 = vst.msk [vmem:[#allocation3 + $0xe0] sm:$0xff] %vm1272_vm6, %v7756_v34  ;;  %v7948_v41 = vpop.permute.xlu1 %7947  ;;  %9196 = vmatmul.msk.f32.gmra.mxu3 %vm1917_vm11, %v8430_v13 }
0x10bc   : > { %8015 = vst.msk [vmem:[#allocation3 + $0xe0] sm:$0xff] %vm1466_vm7, %v7948_v41  ;;  %v8662_v41 = vsel %vm144_vm0, %v14764_v37, 0.0 }
0x10bd   : > { %8207 = vst.msk [vmem:[#allocation3 + $0xe0] sm:$0xff] %vm1659_vm8, %v8140_v53  ;;  %v8655_v53 = vadd.f32 %v8654_v19, %v8653_v44 }
0x10bf   : > { %v8657_v18 = vadd.f32 %v8656_v51, %v8655_v53 }
0x10c0   : > { %v14802_v35 = vpop.f32.mrf.mxu3 }
0x10c1   : > { %v7568_v3 = vpop.permute.xlu2 %7567  ;;  %v8659_v34 = vadd.f32 %v8658_v49, %v8657_v18 }
0x10c2   : > { %v8332_v16 = vpop.permute.xlu0 %8331 }
0x10c3   : > { %8399 = vst.msk [vmem:[#allocation3 + $0xe0] sm:$0xff] %vm1852_vm10, %v8332_v16  ;;  %v7374_v56 = vpop.permute.xlu1 %7373 }
0x10c4   : > { %7440 = vst.msk [vmem:[#allocation3 + $0xe8] sm:$0xff] %vm886_vm4, %v7374_v56  ;;  %v8664_v56 = vsel %vm144_vm0, %v14770_v0, 0.0 }
0x10c5   : > { %7632 = vst.msk [vmem:[#allocation3 + $0xe8] sm:$0xff] %vm1079_vm5, %v7566_v22  ;;  %v8660_v22 = vsel %vm144_vm0, %v14759_v36, 0.0 }
0x10c6   : > { %v8661_v16 = vadd.f32 %v8660_v22, %v8659_v34 }
0x10c8   : > { %v14804_v20 = vpop.f32.mrf.mxu3 }
0x10c9   : > { %v8144_v48 = vpop.permute.xlu2 %8143 }
0x10ca   : > { %v7758_v5 = vpop.permute.xlu0 %7757  ;;  %v8431_v32 = vld [vmem:[#allocation3 + $0xe0] sm:$0xff] }
0x10cb   : > { %7824 = vst.msk [vmem:[#allocation3 + $0xe8] sm:$0xff] %vm1272_vm6, %v7758_v5  ;;  %v7950_v63 = vpop.permute.xlu1 %7949  ;;  %9197 = vmatmul.msk.f32.gmra.mxu3 %vm1917_vm11, %v8431_v32  ;;  %v8666_v5 = vsel %vm144_vm0, %v14775_v17, 0.0 }
0x10cc   : > { %8016 = vst.msk [vmem:[#allocation3 + $0xe8] sm:$0xff] %vm1466_vm7, %v7950_v63  ;;  %v8668_v63 = vsel %vm144_vm0, %v14781_v33, 0.0 }
0x10cd   : > { %8208 = vst.msk [vmem:[#allocation3 + $0xe8] sm:$0xff] %vm1659_vm8, %v8142_v39  ;;  %v8663_v39 = vadd.f32 %v8662_v41, %v8661_v16 }
0x10cf   : > { %v8665_v32 = vadd.f32 %v8664_v56, %v8663_v39 }
0x10d0   : > { %v14806_v12 = vpop.f32.mrf.mxu3 }
0x10d1   : > { %v7570_v59 = vpop.permute.xlu2 %7569  ;;  %v8684_v47 = vsel %vm144_vm0, %v14806_v12, 0.0 }
0x10d2   : > { %v8334_v29 = vpop.permute.xlu0 %8333 }
0x10d3   : > { %8400 = vst.msk [vmem:[#allocation3 + $0xe8] sm:$0xff] %vm1852_vm10, %v8334_v29  ;;  %v7376_v6 = vpop.permute.xlu1 %7375 }
0x10d4   : > { %7441 = vst.msk [vmem:[#allocation3 + $0xf0] sm:$0xff] %vm886_vm4, %v7376_v6  ;;  %v8670_v6 = vsel %vm144_vm0, %v14786_v8, 0.0 }
0x10d5   : > { %7633 = vst.msk [vmem:[#allocation3 + $0xf0] sm:$0xff] %vm1079_vm5, %v7568_v3  ;;  %v8667_v3 = vadd.f32 %v8666_v5, %v8665_v32 }
0x10d8   : > { %v14808_v30 = vpop.f32.mrf.mxu3 }
0x10d9   : > { %v8146_v54 = vpop.permute.xlu2 %8145  ;;  %v8686_v1 = vsel %vm144_vm0, %v14808_v30, 0.0 }
0x10da   : > { %v7760_v10 = vpop.permute.xlu0 %7759  ;;  %v8432_v57 = vld [vmem:[#allocation3 + $0xe8] sm:$0xff] }
0x10db   : > { %7825 = vst.msk [vmem:[#allocation3 + $0xf0] sm:$0xff] %vm1272_vm6, %v7760_v10  ;;  %v7952_v15 = vpop.permute.xlu1 %7951  ;;  %9198 = vmatmul.msk.f32.gmra.mxu3 %vm1917_vm11, %v8432_v57  ;;  %v8672_v10 = vsel %vm144_vm0, %v14792_v52, 0.0 }
0x10dc   : > { %8017 = vst.msk [vmem:[#allocation3 + $0xf0] sm:$0xff] %vm1466_vm7, %v7952_v15  ;;  %v8674_v15 = vsel %vm144_vm0, %v14795_v46, 0.0 }
0x10dd   : > { %8209 = vst.msk [vmem:[#allocation3 + $0xf0] sm:$0xff] %vm1659_vm8, %v8144_v48  ;;  %v8669_v48 = vadd.f32 %v8668_v63, %v8667_v3 }
0x10df   : > { %v8671_v57 = vadd.f32 %v8670_v6, %v8669_v48 }
0x10e0   : > { %v14810_v40 = vpop.f32.mrf.mxu3 }
0x10e1   : > { %v8688_v19 = vsel %vm144_vm0, %v14810_v40, 0.0 }
0x10e2   : > { %v8336_v42 = vpop.permute.xlu0 %8335 }
0x10e3   : > { %8401 = vst.msk [vmem:[#allocation3 + $0xf0] sm:$0xff] %vm1852_vm10, %v8336_v42  ;;  %v7378_v31 = vpop.permute.xlu1 %7377  ;;  %v8676_v42 = vsel %vm144_vm0, %v14798_v27, 0.0 }
0x10e4   : > { %7442 = vst.msk [vmem:[#allocation3 + $0xf8] sm:$0xff] %vm886_vm4, %v7378_v31 }
0x10e5   : > { %7634 = vst.msk [vmem:[#allocation3 + $0xf8] sm:$0xff] %vm1079_vm5, %v7570_v59  ;;  %v8673_v59 = vadd.f32 %v8672_v10, %v8671_v57 }
0x10e7   : > { %v8675_v31 = vadd.f32 %v8674_v15, %v8673_v59 }
0x10ea   : > { %v7762_v7 = vpop.permute.xlu0 %7761  ;;  %v8433_v26 = vld [vmem:[#allocation3 + $0xf0] sm:$0xff] }
0x10eb   : > { %7826 = vst.msk [vmem:[#allocation3 + $0xf8] sm:$0xff] %vm1272_vm6, %v7762_v7  ;;  %9199 = vmatmul.msk.f32.gmra.mxu3 %vm1917_vm11, %v8433_v26  ;;  %v7954_v50 = vpop.permute.xlu1 %7953  ;;  %v8678_v26 = vsel %vm144_vm0, %v14800_v58, 0.0 }
0x10ec   : > { %8018 = vst.msk [vmem:[#allocation3 + $0xf8] sm:$0xff] %vm1466_vm7, %v7954_v50  ;;  %v8680_v50 = vsel %vm144_vm0, %v14802_v35, 0.0 }
0x10ed   : > { %8210 = vst.msk [vmem:[#allocation3 + $0xf8] sm:$0xff] %vm1659_vm8, %v8146_v54  ;;  %v8677_v54 = vadd.f32 %v8676_v42, %v8675_v31 }
0x10ee   : > { %v14812_v23 = vpop.f32.mrf.mxu3 }
0x10ef   : > { %v8690_v51 = vsel %vm144_vm0, %v14812_v23, 0.0 }
0x10f2   : > { %v8338_v45 = vpop.permute.xlu0 %8337 }
0x10f3   : > { %8402 = vst.msk [vmem:[#allocation3 + $0xf8] sm:$0xff] %vm1852_vm10, %v8338_v45  ;;  %v8679_v45 = vadd.f32 %v8678_v26, %v8677_v54 }
0x10f5   : > { %v8681_v28 = vadd.f32 %v8680_v50, %v8679_v45 }
0x10fa   : > { %v8434_v43 = vld [vmem:[#allocation3 + $0xf8] sm:$0xff] }
0x10fb   : > { %9200 = vmatmul.msk.f32.gmra.mxu3 %vm1917_vm11, %v8434_v43  ;;  %v8682_v43 = vsel %vm144_vm0, %v14804_v20, 0.0 }
0x10fc   : > { %v8683_v60 = vadd.f32 %v8682_v43, %v8681_v28 }
0x10fe   : > { %v14814_v21 = vpop.f32.mrf.mxu3  ;;  %v8685_v9 = vadd.f32 %v8684_v47, %v8683_v60 }
0x10ff   : > { %v8692_v49 = vsel %vm144_vm0, %v14814_v21, 0.0 }
0x1100   : > { %v8687_v44 = vadd.f32 %v8686_v1, %v8685_v9 }
0x1102   : > { %v8689_v53 = vadd.f32 %v8688_v19, %v8687_v44 }
0x1104   : > { %v8691_v18 = vadd.f32 %v8690_v51, %v8689_v53 }
0x1106   : > { %v8693_v41 = vadd.f32 %v8692_v49, %v8691_v18 }
0x110e   : > { %v14824_v62 = vpop.f32.mrf.mxu3 }
0x110f   : > { %v8694_v34 = vsel %vm144_vm0, %v14824_v62, 0.0 }
0x1110   : > { %v8695_v56 = vadd.f32 %v8694_v34, %v8693_v41 }
0x111e   : > { %v14834_v13 = vpop.f32.mrf.mxu3 }
0x111f   : > { %v8696_v16 = vsel %vm144_vm0, %v14834_v13, 0.0 }
0x1120   : > { %v8697_v5 = vadd.f32 %v8696_v16, %v8695_v56 }
0x112e   : > { %v14844_v29 = vpop.f32.mrf.mxu3 }
0x112f   : > { %v8698_v39 = vsel %vm144_vm0, %v14844_v29, 0.0 }
0x1130   : > { %v8699_v63 = vadd.f32 %v8698_v39, %v8697_v5 }
0x113e   : > { %v14854_v7 = vpop.f32.mrf.mxu3 }
0x113f   : > { %v8700_v32 = vsel %vm144_vm0, %v14854_v7, 0.0 }
0x1140   : > { %v8701_v48 = vadd.f32 %v8700_v32, %v8699_v63 }
0x114e   : > { %v14864_v2 = vpop.f32.mrf.mxu3 }
0x114f   : > { %v8702_v6 = vsel %vm144_vm0, %v14864_v2, 0.0 }
0x1150   : > { %v8703_v57 = vadd.f32 %v8702_v6, %v8701_v48 }
0x115e   : > { %v14874_v22 = vpop.f32.mrf.mxu3 }
0x115f   : > { %v8704_v10 = vsel %vm144_vm0, %v14874_v22, 0.0 }
0x1160   : > { %v8705_v59 = vadd.f32 %v8704_v10, %v8703_v57 }
0x116e   : > { %v14884_v3 = vpop.f32.mrf.mxu3 }
0x116f   : > { %v8706_v15 = vsel %vm144_vm0, %v14884_v3, 0.0 }
0x1170   : > { %v8707_v42 = vadd.f32 %v8706_v15, %v8705_v59 }
0x117e   : > { %v14892_v31 = vpop.f32.mrf.mxu3 }
0x117f   : > { %v8708_v26 = vsel %vm144_vm0, %v14892_v31, 0.0 }
0x1180   : > { %v8709_v54 = vadd.f32 %v8708_v26, %v8707_v42 }
0x1182   : > { %v8710_v50 = vrot.slane %v8709_v54, 4 }
0x1184   : > { %v8711_v45 = vadd.f32 %v8710_v50, %v8709_v54 }
0x1186   : > { %v8712_v43 = vrot.slane %v8711_v45, 2 }
0x1188   : > { %v8713_v28 = vadd.f32 %v8712_v43, %v8711_v45 }
0x118a   : > { %v8714_v47 = vrot.slane %v8713_v28, 1 }
0x118c   : > { %v8715_v60 = vadd.f32 %v8714_v47, %v8713_v28 }
0x118e   : > { %v14897_v1 = vmul.f32 %v8715_v60, %v15698_v4 }
0x1190   : > { %v14901_v9 = vsub.f32 %v14720_v38, %v14897_v1  ;;  %v14905_v19 = vsub.f32 %v14726_v14, %v14897_v1  ;;  %v14909_v44 = vsub.f32 %v14731_v55, %v14897_v1  ;;  %v14913_v51 = vsub.f32 %v14737_v61, %v14897_v1 }
0x1191   : > { %v14921_v38 = vsub.f32 %v14742_v25, %v14897_v1  ;;  %v14927_v55 = vsub.f32 %v14748_v11, %v14897_v1  ;;  %v14935_v16 = vsub.f32 %v14753_v24, %v14897_v1  ;;  %v14942_v11 = vsub.f32 %v14759_v36, %v14897_v1 }
0x1192   : > { %v8749_v53 = vmul.f32 %v14901_v9, %v14901_v9  ;;  %v8750_v49 = vmul.f32 %v14905_v19, %v14905_v19  ;;  %v8751_v14 = vmul.f32 %v14909_v44, %v14909_v44  ;;  %v8752_v61 = vmul.f32 %v14913_v51, %v14913_v51 }
0x1193   : > { %v8753_v25 = vmul.f32 %v14921_v38, %v14921_v38  ;;  %v8754_v5 = vmul.f32 %v14927_v55, %v14927_v55  ;;  %v14949_v24 = vsub.f32 %v14764_v37, %v14897_v1  ;;  %v8755_v6 = vmul.f32 %v14935_v16, %v14935_v16 }
0x1194   : > { %v8781_v18 = vsel %vm144_vm0, %v8749_v53, 0.0  ;;  %v8782_v34 = vsel %vm144_vm0, %v8750_v49, 0.0  ;;  %v8784_v56 = vsel %vm144_vm0, %v8751_v14, 0.0  ;;  %v8786_v32 = vsel %vm144_vm0, %v8752_v61, 0.0 }
0x1195   : > { %v8783_v41 = vadd.f32 %v8782_v34, %v8781_v18  ;;  %v8788_v48 = vsel %vm144_vm0, %v8753_v25, 0.0  ;;  %v14956_v36 = vsub.f32 %v14770_v0, %v14897_v1  ;;  %v8756_v57 = vmul.f32 %v14942_v11, %v14942_v11 }
0x1196   : > { %v8790_v15 = vsel %vm144_vm0, %v8754_v5, 0.0  ;;  %v14963_v37 = vsub.f32 %v14775_v17, %v14897_v1  ;;  %v8757_v42 = vmul.f32 %v14949_v24, %v14949_v24  ;;  %v8792_v26 = vsel %vm144_vm0, %v8755_v6, 0.0 }
0x1197   : > { %v8785_v39 = vadd.f32 %v8784_v56, %v8783_v41  ;;  %v14970_v0 = vsub.f32 %v14781_v33, %v14897_v1  ;;  %v8758_v50 = vmul.f32 %v14956_v36, %v14956_v36  ;;  %v8794_v45 = vsel %vm144_vm0, %v8756_v57, 0.0 }
0x1198   : > { %v14977_v17 = vsub.f32 %v14786_v8, %v14897_v1  ;;  %v8759_v28 = vmul.f32 %v14963_v37, %v14963_v37  ;;  %v8796_v47 = vsel %vm144_vm0, %v8757_v42, 0.0  ;;  %v14984_v33 = vsub.f32 %v14792_v52, %v14897_v1 }
0x1199   : > { %v8787_v63 = vadd.f32 %v8786_v32, %v8785_v39  ;;  %v8760_v53 = vmul.f32 %v14970_v0, %v14970_v0  ;;  %v8798_v49 = vsel %vm144_vm0, %v8758_v50, 0.0  ;;  %v14991_v8 = vsub.f32 %v14795_v46, %v14897_v1 }
0x119a   : > { %v8761_v61 = vmul.f32 %v14977_v17, %v14977_v17  ;;  %v8800_v18 = vsel %vm144_vm0, %v8759_v28, 0.0  ;;  %v14998_v52 = vsub.f32 %v14798_v27, %v14897_v1  ;;  %v8762_v41 = vmul.f32 %v14984_v33, %v14984_v33 }
0x119b   : > { %v8789_v10 = vadd.f32 %v8788_v48, %v8787_v63  ;;  %v8802_v25 = vsel %vm144_vm0, %v8760_v53, 0.0  ;;  %v15005_v46 = vsub.f32 %v14800_v58, %v14897_v1  ;;  %v8763_v39 = vmul.f32 %v14991_v8, %v14991_v8 }
0x119c   : > { %v8804_v5 = vsel %vm144_vm0, %v8761_v61, 0.0  ;;  %v15012_v27 = vsub.f32 %v14802_v35, %v14897_v1  ;;  %v8764_v63 = vmul.f32 %v14998_v52, %v14998_v52  ;;  %v8806_v6 = vsel %vm144_vm0, %v8762_v41, 0.0 }
0x119d   : > { %v8791_v59 = vadd.f32 %v8790_v15, %v8789_v10  ;;  %v15019_v58 = vsub.f32 %v14804_v20, %v14897_v1  ;;  %v8765_v10 = vmul.f32 %v15005_v46, %v15005_v46  ;;  %v8808_v57 = vsel %vm144_vm0, %v8763_v39, 0.0 }
0x119e   : > { %v15026_v35 = vsub.f32 %v14806_v12, %v14897_v1  ;;  %v8810_v42 = vsel %vm144_vm0, %v8764_v63, 0.0  ;;  %v15033_v20 = vsub.f32 %v14808_v30, %v14897_v1  ;;  %v15040_v12 = vsub.f32 %v14810_v40, %v14897_v1 }
0x119f   : > { %v8793_v54 = vadd.f32 %v8792_v26, %v8791_v59  ;;  %v8766_v59 = vmul.f32 %v15012_v27, %v15012_v27  ;;  %v8812_v50 = vsel %vm144_vm0, %v8765_v10, 0.0  ;;  %v15047_v30 = vsub.f32 %v14812_v23, %v14897_v1 }
0x11a0   : > { %v15054_v40 = vsub.f32 %v14814_v21, %v14897_v1  ;;  %v15061_v23 = vsub.f32 %v14824_v62, %v14897_v1  ;;  %v15068_v21 = vsub.f32 %v14834_v13, %v14897_v1  ;;  %v15075_v62 = vsub.f32 %v14844_v29, %v14897_v1 }
0x11a1   : > { %v8795_v43 = vadd.f32 %v8794_v45, %v8793_v54  ;;  %v8767_v54 = vmul.f32 %v15019_v58, %v15019_v58  ;;  %v8814_v28 = vsel %vm144_vm0, %v8766_v59, 0.0  ;;  %v15082_v13 = vsub.f32 %v14854_v7, %v14897_v1 }
0x11a2   : > { %v15089_v29 = vsub.f32 %v14864_v2, %v14897_v1  ;;  %v15096_v7 = vsub.f32 %v14874_v22, %v14897_v1  ;;  %v15103_v2 = vsub.f32 %v14884_v3, %v14897_v1  ;;  %v15110_v22 = vsub.f32 %v14892_v31, %v14897_v1 }
0x11a3   : > { %v8797_v60 = vadd.f32 %v8796_v47, %v8795_v43  ;;  %v8768_v43 = vmul.f32 %v15026_v35, %v15026_v35  ;;  %v8816_v53 = vsel %vm144_vm0, %v8767_v54, 0.0 }
0x11a4   : > { %v8779_v3 = vmul.f32 %v15103_v2, %v15103_v2 }
0x11a5   : > { %v8799_v14 = vadd.f32 %v8798_v49, %v8797_v60  ;;  %v8769_v60 = vmul.f32 %v15033_v20, %v15033_v20  ;;  %v8818_v61 = vsel %vm144_vm0, %v8768_v43, 0.0 }
0x11a6   : > { %v8840_v31 = vsel %vm144_vm0, %v8779_v3, 0.0 }
0x11a7   : > { %v8801_v34 = vadd.f32 %v8800_v18, %v8799_v14  ;;  %v8770_v14 = vmul.f32 %v15040_v12, %v15040_v12  ;;  %v8820_v41 = vsel %vm144_vm0, %v8769_v60, 0.0 }
0x11a9   : > { %v8803_v56 = vadd.f32 %v8802_v25, %v8801_v34  ;;  %v8771_v34 = vmul.f32 %v15047_v30, %v15047_v30  ;;  %v8822_v39 = vsel %vm144_vm0, %v8770_v14, 0.0 }
0x11ab   : > { %v8805_v32 = vadd.f32 %v8804_v5, %v8803_v56  ;;  %v8772_v56 = vmul.f32 %v15054_v40, %v15054_v40  ;;  %v8824_v63 = vsel %vm144_vm0, %v8771_v34, 0.0 }
0x11ad   : > { %v8807_v48 = vadd.f32 %v8806_v6, %v8805_v32  ;;  %v8773_v32 = vmul.f32 %v15061_v23, %v15061_v23  ;;  %v8826_v10 = vsel %vm144_vm0, %v8772_v56, 0.0 }
0x11af   : > { %v8809_v15 = vadd.f32 %v8808_v57, %v8807_v48  ;;  %v8774_v48 = vmul.f32 %v15068_v21, %v15068_v21  ;;  %v8828_v59 = vsel %vm144_vm0, %v8773_v32, 0.0 }
0x11b1   : > { %v8811_v26 = vadd.f32 %v8810_v42, %v8809_v15  ;;  %v8775_v15 = vmul.f32 %v15075_v62, %v15075_v62  ;;  %v8830_v54 = vsel %vm144_vm0, %v8774_v48, 0.0 }
0x11b3   : > { %v8813_v45 = vadd.f32 %v8812_v50, %v8811_v26  ;;  %v8776_v26 = vmul.f32 %v15082_v13, %v15082_v13  ;;  %v8832_v43 = vsel %vm144_vm0, %v8775_v15, 0.0 }
0x11b5   : > { %v8815_v47 = vadd.f32 %v8814_v28, %v8813_v45  ;;  %v8777_v45 = vmul.f32 %v15089_v29, %v15089_v29  ;;  %v8834_v60 = vsel %vm144_vm0, %v8776_v26, 0.0 }
0x11b7   : > { %v8817_v49 = vadd.f32 %v8816_v53, %v8815_v47  ;;  %v8778_v47 = vmul.f32 %v15096_v7, %v15096_v7 }
0x11b9   : > { %v8819_v18 = vadd.f32 %v8818_v61, %v8817_v49  ;;  %v8836_v49 = vsel %vm144_vm0, %v8777_v45, 0.0  ;;  %v8780_v61 = vmul.f32 %v15110_v22, %v15110_v22 }
0x11bb   : > { %v8821_v25 = vadd.f32 %v8820_v41, %v8819_v18  ;;  %v8838_v18 = vsel %vm144_vm0, %v8778_v47, 0.0  ;;  %v8842_v41 = vsel %vm144_vm0, %v8780_v61, 0.0  ;;  %v15699_v61 = vld [vmem:[#allocation41_spill] sm:$0xff] }
0x11bd   : > { %v8823_v5 = vadd.f32 %v8822_v39, %v8821_v25 }
0x11bf   : > { %v8825_v6 = vadd.f32 %v8824_v63, %v8823_v5 }
0x11c1   : > { %v8827_v57 = vadd.f32 %v8826_v10, %v8825_v6 }
0x11c3   : > { %v8829_v42 = vadd.f32 %v8828_v59, %v8827_v57 }
0x11c5   : > { %v8831_v50 = vadd.f32 %v8830_v54, %v8829_v42 }
0x11c7   : > { %v8833_v28 = vadd.f32 %v8832_v43, %v8831_v50 }
0x11c9   : > { %v8835_v53 = vadd.f32 %v8834_v60, %v8833_v28 }
0x11cb   : > { %v8837_v14 = vadd.f32 %v8836_v49, %v8835_v53 }
0x11cd   : > { %v8839_v34 = vadd.f32 %v8838_v18, %v8837_v14 }
0x11cf   : > { %v8841_v1 = vadd.f32 %v8840_v31, %v8839_v34  ;;  %v15701_v31 = vld [vmem:[#allocation35_spill] sm:$0xff] }
0x11d1   : > { %v8843_v25 = vadd.f32 %v8842_v41, %v8841_v1 }
0x11d3   : > { %v8844_v56 = vrot.slane %v8843_v25, 4 }
0x11d5   : > { %v8845_v39 = vadd.f32 %v8844_v56, %v8843_v25  ;;  %v15702_v56 = vld [vmem:[#allocation44_spill] sm:$0xff] }
0x11d7   : > { %v8846_v5 = vrot.slane %v8845_v39, 2 }
0x11d9   : > { %v8847_v32 = vadd.f32 %v8846_v5, %v8845_v39  ;;  %v15703_v5 = vld [vmem:[#allocation39_spill] sm:$0xff] }
0x11db   : > { %v8848_v63 = vrot.slane %v8847_v32, 1 }
0x11dd   : > { %v8849_v6 = vadd.f32 %v8848_v63, %v8847_v32 }
0x11df   : > { %v8850_v48 = vmul.f32 %v8849_v6, %v15698_v4 }
0x11e1   : > { %v8851_v10 = vadd.f32 1e-05, %v8850_v48  ;;  %v15704_v48 = vld [vmem:[#allocation37_spill] sm:$0xff] }
0x11e3   : > { %9231 = vrsqrt.f32 %v8851_v10  ;;  %vm8858_vm3 = vweird.f32 %v8851_v10 }
0x11e9   : > { %v9232_v57 = vpop.eup %9231 }
0x11ea   : > { %v8853_v15 = vmul.f32 %v9232_v57, %v8851_v10  ;;  %vm8859_vm2 = vweird.f32 %v9232_v57 }
0x11eb   : > { %vm8860_vm4 = vmor %vm8858_vm3, %vm8859_vm2 }
0x11ec   : > { %v8854_v59 = vmul.f32 %v9232_v57, %v8853_v15 }
0x11ee   : > { %v8855_v42 = vmul.f32 0.5, %v8854_v59 }
0x11f0   : > { %v8856_v26 = vsub.f32 1.5, %v8855_v42 }
0x11f2   : > { %v8857_v54 = vmul.f32 %v9232_v57, %v8856_v26 }
0x11f4   : > { %v15124_v50 = vsel %vm8860_vm4, %v9232_v57, %v8857_v54 }
0x11f5   : > { %v8862_v45 = vmul.f32 %v15124_v50, %v14901_v9  ;;  %v8863_v4 = vmul.f32 %v15124_v50, %v14905_v19  ;;  %v8864_v43 = vmul.f32 %v15124_v50, %v14909_v44  ;;  %v8865_v28 = vmul.f32 %v15124_v50, %v14913_v51 }
0x11f6   : > { %v8866_v47 = vmul.f32 %v15124_v50, %v14921_v38  ;;  %v8867_v60 = vmul.f32 %v15124_v50, %v14927_v55  ;;  %v8868_v53 = vmul.f32 %v15124_v50, %v14935_v16  ;;  %v8869_v19 = vmul.f32 %v15124_v50, %v14942_v11 }
0x11f7   : > { %v8894_v3 = vmax.f32 %v8862_v45, 0.0  ;;  %v8895_v9 = vmax.f32 %v8863_v4, 0.0  ;;  %v8896_v49 = vmax.f32 %v8864_v43, 0.0  ;;  %v8897_v14 = vmax.f32 %v8865_v28, 0.0 }
0x11f8   : > { %v8870_v44 = vmul.f32 %v15124_v50, %v14949_v24  ;;  %v8898_v51 = vmax.f32 %v8866_v47, 0.0  ;;  %v8871_v38 = vmul.f32 %v15124_v50, %v14956_v36  ;;  %v8872_v55 = vmul.f32 %v15124_v50, %v14963_v37  ;;  %v15700_v24 = vld [vmem:[#allocation36_spill] sm:$0xff] }
0x11f9   : > { %v8899_v16 = vmax.f32 %v8867_v60, 0.0  ;;  %v8900_v11 = vmax.f32 %v8868_v53, 0.0  ;;  %v8926_v18 = vadd.f32 %v8894_v3, %v15699_v61  ;;  %v8927_v34 = vadd.f32 %v8895_v9, %v15700_v24 }
0x11fa   : > { %v8928_v1 = vadd.f32 %v8896_v49, %v15701_v31  ;;  %v8873_v41 = vmul.f32 %v15124_v50, %v14970_v0  ;;  %v8901_v25 = vmax.f32 %v8869_v19, 0.0  ;;  %v8929_v39 = vadd.f32 %v8897_v14, %v15702_v56 }
0x11fb   : > { %v8874_v36 = vmul.f32 %v15124_v50, %v14977_v17  ;;  %v8902_v37 = vmax.f32 %v8870_v44, 0.0  ;;  %v8930_v32 = vadd.f32 %v8898_v51, %v15703_v5  ;;  %8958 = vst.msk [vmem:[%s15149_s19] sm:$0xff] %vm144_vm0, %v8926_v18  ;;  %v8875_v63 = vmul.f32 %v15124_v50, %v14984_v33  ;;  %v15705_v17 = vld [vmem:[#allocation47_spill] sm:$0xff]  ;;  %v15706_v33 = vld [vmem:[#allocation42_spill] sm:$0xff] }
0x11fc   : > { %v8903_v6 = vmax.f32 %v8871_v38, 0.0  ;;  %v8931_v10 = vadd.f32 %v8899_v16, %v15704_v48  ;;  %8959 = vst.msk [vmem:[%s15149_s19 + $0x8] sm:$0xff] %vm144_vm0, %v8927_v34  ;;  %v8876_v0 = vmul.f32 %v15124_v50, %v14991_v8  ;;  %v8904_v57 = vmax.f32 %v8872_v55, 0.0  ;;  %v15707_v8 = vld [vmem:[#allocation40_spill] sm:$0xff] }
0x11fd   : > { %v8932_v15 = vadd.f32 %v8900_v11, %v15705_v17  ;;  %8960 = vst.msk [vmem:[%s15149_s19 + $0x10] sm:$0xff] %vm144_vm0, %v8928_v1  ;;  %v8877_v59 = vmul.f32 %v15124_v50, %v14998_v52  ;;  %v8905_v42 = vmax.f32 %v8873_v41, 0.0  ;;  %v8933_v26 = vadd.f32 %v8901_v25, %v15706_v33  ;;  %v15708_v52 = vld [vmem:[#allocation50_spill] sm:$0xff]  ;;  %v15721_v33 = vld [vmem:[#allocation57_spill] sm:$0xff] }
0x11fe   : > { %8961 = vst.msk [vmem:[%s15149_s19 + $0x18] sm:$0xff] %vm144_vm0, %v8929_v39  ;;  %v8878_v54 = vmul.f32 %v15124_v50, %v15005_v46  ;;  %v8906_v45 = vmax.f32 %v8874_v36, 0.0  ;;  %v8934_v4 = vadd.f32 %v8902_v37, %v15707_v8  ;;  %v8879_v43 = vmul.f32 %v15124_v50, %v15012_v27  ;;  %v15709_v46 = vld [vmem:[#allocation45_spill] sm:$0xff]  ;;  %v15710_v27 = vld [vmem:[#allocation43_spill] sm:$0xff] }
0x11ff   : > { %8962 = vst.msk [vmem:[%s15149_s19 + $0x20] sm:$0xff] %vm144_vm0, %v8930_v32  ;;  %v8907_v28 = vmax.f32 %v8875_v63, 0.0  ;;  %v8935_v47 = vadd.f32 %v8903_v6, %v15708_v52  ;;  %v8880_v60 = vmul.f32 %v15124_v50, %v15019_v58  ;;  %v8908_v53 = vmax.f32 %v8876_v0, 0.0  ;;  %v15711_v58 = vld [vmem:[#allocation53_spill] sm:$0xff]  ;;  %v15724_v52 = vld [vmem:[#allocation58_spill] sm:$0xff] }
0x1200   : > { %8963 = vst.msk [vmem:[%s15149_s19 + $0x28] sm:$0xff] %vm144_vm0, %v8931_v10  ;;  %v8936_v3 = vadd.f32 %v8904_v57, %v15709_v46  ;;  %v8881_v9 = vmul.f32 %v15124_v50, %v15026_v35  ;;  %v8909_v49 = vmax.f32 %v8877_v59, 0.0  ;;  %v8937_v19 = vadd.f32 %v8905_v42, %v15710_v27  ;;  %v15712_v35 = vld [vmem:[#allocation48_spill] sm:$0xff]  ;;  %v15726_v46 = vld [vmem:[#allocation61_spill] sm:$0xff] }
0x1201   : > { %8964 = vst.msk [vmem:[%s15149_s19 + $0x30] sm:$0xff] %vm144_vm0, %v8932_v15  ;;  %v8882_v14 = vmul.f32 %v15124_v50, %v15033_v20  ;;  %v8910_v44 = vmax.f32 %v8878_v54, 0.0  ;;  %v8938_v51 = vadd.f32 %v8906_v45, %v15711_v58  ;;  %v8883_v38 = vmul.f32 %v15124_v50, %v15040_v12  ;;  %v15713_v20 = vld [vmem:[#allocation46_spill] sm:$0xff]  ;;  %v15714_v12 = vld [vmem:[#allocation56_spill] sm:$0xff]  ;;  %v15722_v45 = vld [vmem:[#allocation55_spill] sm:$0xff] }
0x1202   : > { %8965 = vst.msk [vmem:[%s15149_s19 + $0x38] sm:$0xff] %vm144_vm0, %v8933_v26  ;;  %v8911_v55 = vmax.f32 %v8879_v43, 0.0  ;;  %v8939_v16 = vadd.f32 %v8907_v28, %v15712_v35  ;;  %v8884_v11 = vmul.f32 %v15124_v50, %v15047_v30  ;;  %v8912_v61 = vmax.f32 %v8880_v60, 0.0  ;;  %v15715_v30 = vld [vmem:[#allocation51_spill] sm:$0xff]  ;;  %v15723_v43 = vld [vmem:[#allocation60_spill] sm:$0xff]  ;;  %v15728_v27 = vld [vmem:[#allocation65_spill] sm:$0xff] }
0x1203   : > { %8966 = vst.msk [vmem:[%s15149_s19 + $0x40] sm:$0xff] %vm144_vm0, %v8934_v4  ;;  %v8940_v18 = vadd.f32 %v8908_v53, %v15713_v20  ;;  %v8885_v24 = vmul.f32 %v15124_v50, %v15054_v40  ;;  %v8913_v34 = vmax.f32 %v8881_v9, 0.0  ;;  %v8941_v31 = vadd.f32 %v8909_v49, %v15714_v12  ;;  %v15716_v40 = vld [vmem:[#allocation49_spill] sm:$0xff]  ;;  %v15727_v9 = vld [vmem:[#allocation66_spill] sm:$0xff] }
0x1204   : > { %8967 = vst.msk [vmem:[%s15149_s19 + $0x48] sm:$0xff] %vm144_vm0, %v8935_v47  ;;  %v8886_v1 = vmul.f32 %v15124_v50, %v15061_v23  ;;  %v8914_v41 = vmax.f32 %v8882_v14, 0.0  ;;  %v8942_v25 = vadd.f32 %v8910_v44, %v15715_v30  ;;  %v8887_v56 = vmul.f32 %v15124_v50, %v15068_v21  ;;  %v15717_v23 = vld [vmem:[#allocation59_spill] sm:$0xff]  ;;  %v15718_v21 = vld [vmem:[#allocation54_spill] sm:$0xff]  ;;  %v15729_v14 = vld [vmem:[#allocation4_spill] sm:$0xff] }
0x1205   : > { %8968 = vst.msk [vmem:[%s15149_s19 + $0x50] sm:$0xff] %vm144_vm0, %v8936_v3  ;;  %v8915_v39 = vmax.f32 %v8883_v38, 0.0  ;;  %v8943_v36 = vadd.f32 %v8911_v55, %v15716_v40  ;;  %v8888_v37 = vmul.f32 %v15124_v50, %v15075_v62  ;;  %v8916_v5 = vmax.f32 %v8884_v11, 0.0  ;;  %v15719_v62 = vld [vmem:[#allocation52_spill] sm:$0xff]  ;;  %v15730_v58 = vld [vmem:[#allocation34_spill] sm:$0xff] }
0x1206   : > { %8969 = vst.msk [vmem:[%s15149_s19 + $0x58] sm:$0xff] %vm144_vm0, %v8937_v19  ;;  %v8944_v32 = vadd.f32 %v8912_v61, %v15717_v23  ;;  %v8889_v63 = vmul.f32 %v15124_v50, %v15082_v13  ;;  %v8917_v6 = vmax.f32 %v8885_v24, 0.0  ;;  %v8945_v48 = vadd.f32 %v8913_v34, %v15718_v21  ;;  %v15720_v13 = vld [vmem:[#allocation62_spill] sm:$0xff] }
0x1207   : > { %8970 = vst.msk [vmem:[%s15149_s19 + $0x60] sm:$0xff] %vm144_vm0, %v8938_v51  ;;  %v8890_v10 = vmul.f32 %v15124_v50, %v15089_v29  ;;  %v8918_v0 = vmax.f32 %v8886_v1, 0.0  ;;  %v8946_v57 = vadd.f32 %v8914_v41, %v15719_v62  ;;  %v8891_v17 = vmul.f32 %v15124_v50, %v15096_v7 }
0x1208   : > { %8971 = vst.msk [vmem:[%s15149_s19 + $0x68] sm:$0xff] %vm144_vm0, %v8939_v16  ;;  %v8919_v15 = vmax.f32 %v8887_v56, 0.0  ;;  %v8947_v59 = vadd.f32 %v8915_v39, %v15720_v13  ;;  %v8892_v42 = vmul.f32 %v15124_v50, %v15103_v2  ;;  %v8920_v29 = vmax.f32 %v8888_v37, 0.0 }
0x1209   : > { %8972 = vst.msk [vmem:[%s15149_s19 + $0x70] sm:$0xff] %vm144_vm0, %v8940_v18  ;;  %v8948_v26 = vadd.f32 %v8916_v5, %v15721_v33  ;;  %v8893_v54 = vmul.f32 %v15124_v50, %v15110_v22  ;;  %v8921_v7 = vmax.f32 %v8889_v63, 0.0  ;;  %v8949_v8 = vadd.f32 %v8917_v6, %v15722_v45  ;;  %v15725_v50 = vld [vmem:[#allocation63_spill] sm:$0xff] }
0x120a   : > { %8973 = vst.msk [vmem:[%s15149_s19 + $0x78] sm:$0xff] %vm144_vm0, %v8941_v31  ;;  %v8922_v4 = vmax.f32 %v8890_v10, 0.0  ;;  %v8950_v2 = vadd.f32 %v8918_v0, %v15723_v43  ;;  %v8923_v28 = vmax.f32 %v8891_v17, 0.0  ;;  %v8951_v47 = vadd.f32 %v8919_v15, %v15724_v52 }
0x120b   : > { %8974 = vst.msk [vmem:[%s15149_s19 + $0x80] sm:$0xff] %vm144_vm0, %v8942_v25  ;;  %v8924_v22 = vmax.f32 %v8892_v42, 0.0  ;;  %v8952_v60 = vadd.f32 %v8920_v29, %v15725_v50  ;;  %v8925_v53 = vmax.f32 %v8893_v54, 0.0  ;;  %v8953_v3 = vadd.f32 %v8921_v7, %v15726_v46 }
0x120c   : > { %8975 = vst.msk [vmem:[%s15149_s19 + $0x88] sm:$0xff] %vm144_vm0, %v8943_v36  ;;  %v8954_v49 = vadd.f32 %v8922_v4, %v15727_v9  ;;  %v8955_v19 = vadd.f32 %v8923_v28, %v15728_v27 }
0x120d   : > { %8976 = vst.msk [vmem:[%s15149_s19 + $0x90] sm:$0xff] %vm144_vm0, %v8944_v32  ;;  %v8956_v44 = vadd.f32 %v8924_v22, %v15729_v14  ;;  %v8957_v51 = vadd.f32 %v8925_v53, %v15730_v58 }
0x120e   : > { %8977 = vst.msk [vmem:[%s15149_s19 + $0x98] sm:$0xff] %vm144_vm0, %v8945_v48 }
0x120f   : > { %8978 = vst.msk [vmem:[%s15149_s19 + $0xa0] sm:$0xff] %vm144_vm0, %v8946_v57 }
0x1210   : > { %8979 = vst.msk [vmem:[%s15149_s19 + $0xa8] sm:$0xff] %vm144_vm0, %v8947_v59 }
0x1211   : > { %8980 = vst.msk [vmem:[%s15149_s19 + $0xb0] sm:$0xff] %vm144_vm0, %v8948_v26 }
0x1212   : > { %8981 = vst.msk [vmem:[%s15149_s19 + $0xb8] sm:$0xff] %vm144_vm0, %v8949_v8 }
0x1213   : > { %8982 = vst.msk [vmem:[%s15149_s19 + $0xc0] sm:$0xff] %vm144_vm0, %v8950_v2 }
0x1214   : > { %8983 = vst.msk [vmem:[%s15149_s19 + $0xc8] sm:$0xff] %vm144_vm0, %v8951_v47 }
0x1215   : > { %8984 = vst.msk [vmem:[%s15149_s19 + $0xd0] sm:$0xff] %vm144_vm0, %v8952_v60 }
0x1216   : > { %8985 = vst.msk [vmem:[%s15149_s19 + $0xd8] sm:$0xff] %vm144_vm0, %v8953_v3 }
0x1217   : > { %8986 = vst.msk [vmem:[%s15149_s19 + $0xe0] sm:$0xff] %vm144_vm0, %v8954_v49 }
0x1218   : > { %8987 = vst.msk [vmem:[%s15149_s19 + $0xe8] sm:$0xff] %vm144_vm0, %v8955_v19 }
0x1219   : > { %8988 = vst.msk [vmem:[%s15149_s19 + $0xf0] sm:$0xff] %vm144_vm0, %v8956_v44 }
0x121a   : > { %8989 = vst.msk [vmem:[%s15149_s19 + $0xf8] sm:$0xff] %vm144_vm0, %v8957_v51 }
0x121b PF: > { %s12_s9 = sadd.s32 1, %s9239_s9  }
0x121c   : > { %p9_p4 = scmp.ge.s32.totalorder %s12_s9, 4  }
0x121e   :  { %11 = sbr.rel (!%p9_p4) target bundleno = 1 (0x1), region = 63 }

</bundles_post_ra>
